<compile_context>
chip_gen: v6e
topology: v6e:2x2x1
jax: 0.10.0
libtpu: 0.0.40
codegen_flags: <defaults>
</compile_context>

<pallas_src>
import jax
import jax.numpy as jnp
from jax.experimental import pallas as pl
from jax.experimental.pallas import tpu as pltpu


def _gcn_kernel(x_ref, a_ref, w_ref, b_ref, o_ref):
    # x_ref: (T, C, V)  a_ref: (P, V, V)  w_ref: (C_out, (P+1)*C)  b_ref: (C_out, 1)
    # o_ref: (T, C_out, V)
    T, C, V = x_ref.shape
    C_out, C_cat = w_ref.shape
    P = a_ref.shape[0]

    x3 = x_ref[...]                      # (T, C, V), input dtype
    x2 = x3.reshape(T * C, V)            # rows = (t, c); diffusion is row-wise
    w = w_ref[...]                       # (C_out, C_cat)

    def mix(w_slice, part):
        # part: (T, C, V); w_slice: (C_out, C)  ->  (T, C_out, V) accumulated in f32
        w_b = jnp.broadcast_to(w_slice[None], (T, C_out, C))
        return jnp.einsum('toc,tcv->tov', w_b, part,
                          preferred_element_type=jnp.float32)

    # Part 0: x itself (W columns [0, C)).
    acc = mix(w[:, 0:C], x3)

    # Parts 1..P: x @ A_s^k (A powers precomputed in wrapper). Each part is used
    # immediately and discarded -- no concat, low VMEM pressure.
    for p in range(P):
        y2 = jnp.dot(x2, a_ref[p], preferred_element_type=jnp.float32)   # (T*C, V)
        y3 = y2.astype(x3.dtype).reshape(T, C, V)
        acc = acc + mix(w[:, (p + 1) * C:(p + 2) * C], y3)

    out = acc + b_ref[...].astype(jnp.float32)[None]      # (1, C_out, 1) broadcast
    # TODO(synk): dropout is identity here (eval mode); training-mode dropout would
    # use pltpu.prng_seed / pltpu.prng_random_bits.
    o_ref[...] = out.astype(o_ref.dtype)


def gcn_forward(x, supports, w, b, *, order=2, tile_b=128):
    """x: (N, C, V, L), supports: (S, V, V), w: (C_out, (S*order+1)*C), b: (C_out,)."""
    N, C, V, L = x.shape
    S = supports.shape[0]
    C_out, C_cat = w.shape
    P = S * order
    assert C_cat == (P + 1) * C, "W columns must equal (support_len*order+1)*C"

    # Precompute diffusion matrices in the torch concat order:
    # [A1, A1^2, ..., A1^order, A2, A2^2, ..., AS^order]
    hi = jax.lax.Precision.HIGHEST
    pows = []
    for s in range(S):
        a = supports[s]
        ak = a
        pows.append(ak)
        for _ in range(2, order + 1):
            ak = jnp.matmul(ak, a, precision=hi)
            pows.append(ak)
    a_stack = jnp.stack(pows, axis=0)                         # (P, V, V)

    # (N, C, V, L) -> (N, L, C, V) -> (N*L, C, V): one relayout so diffusion and
    # channel mixing map onto large MXU-shaped matmuls inside the kernel.
    B = N * L
    x_k = jnp.transpose(x, (0, 3, 1, 2)).reshape(B, C, V)

    T = min(tile_b, B)                    # keep T modest so tiles fit v7x's 64 MiB VMEM
    num_tiles = (B + T - 1) // T
    Bp = num_tiles * T
    if Bp != B:
        x_k = jnp.pad(x_k, ((0, Bp - B), (0, 0), (0, 0)))

    b_k = b.reshape(C_out, 1)

    out = pl.pallas_call(
        _gcn_kernel,
        out_shape=jax.ShapeDtypeStruct((Bp, C_out, V), x.dtype),
        grid_spec=pltpu.PrefetchScalarGridSpec(
            num_scalar_prefetch=0,
            grid=(num_tiles,),
            in_specs=[
                pl.BlockSpec((T, C, V), lambda i: (i, 0, 0)),        # x tile
                pl.BlockSpec((P, V, V), lambda i: (0, 0, 0)),        # A powers (resident)
                pl.BlockSpec((C_out, C_cat), lambda i: (0, 0)),      # W (resident)
                pl.BlockSpec((C_out, 1), lambda i: (0, 0)),          # b (resident)
            ],
            out_specs=pl.BlockSpec((T, C_out, V), lambda i: (i, 0, 0)),
        ),
        compiler_params=pltpu.CompilerParams(
            dimension_semantics=("parallel",)),
    )(x_k, a_stack, w, b_k)

    # (Bp, C_out, V) -> drop padding -> (N, L, C_out, V) -> (N, C_out, V, L)
    out = out[:B].reshape(N, L, C_out, V)
    return jnp.transpose(out, (0, 2, 3, 1))


def _gcn_reference(x, supports, w, b, order=2):
    """Pure-JAX reference mirroring the PyTorch module."""
    hi = jax.lax.Precision.HIGHEST
    outs = [x]
    for s in range(supports.shape[0]):
        a = supports[s]
        x1 = jnp.einsum('ncvl,vw->ncwl', x, a, precision=hi)
        outs.append(x1)
        for _ in range(2, order + 1):
            x1 = jnp.einsum('ncvl,vw->ncwl', x1, a, precision=hi)
            outs.append(x1)
    h = jnp.concatenate(outs, axis=1)
    return jnp.einsum('oc,ncvl->novl', w, h, precision=hi) + b[None, :, None, None]


if __name__ == "__main__":
    key = jax.random.PRNGKey(0)
    N, C, V, L = 2, 8, 128, 32            # batch, channels, nodes, time
    C_out = 32
    S, ORDER = 3, 2
    C_cat = (S * ORDER + 1) * C

    k1, k2, k3, k4 = jax.random.split(key, 4)
    x = jax.random.normal(k1, (N, C, V, L), dtype=jnp.float32)
    supports = jax.random.normal(k2, (S, V, V), dtype=jnp.float32) * 0.1
    # Conv2d(c_in, c_out, 1x1) weights: (C_out, C_cat), bias: (C_out,)
    w = jax.random.normal(k3, (C_out, C_cat), dtype=jnp.float32) * 0.05
    b = jax.random.normal(k4, (C_out,), dtype=jnp.float32) * 0.05

    out = jax.block_until_ready(gcn_forward(x, supports, w, b, order=ORDER, tile_b=32))
    assert out.shape == (N, C_out, V, L)

    ref = _gcn_reference(x, supports, w, b, order=ORDER)
    err = float(jnp.max(jnp.abs(out - ref)))
    assert err < 5e-2, f"max abs err {err}"
    print("KERNEL_OK")
</pallas_src>

<mosaic_0001>
module attributes {stable_mosaic.version = 11 : i64} {
  func.func @_gcn_kernel(%arg0: i32, %arg1: memref<32x8x128xf32, #tpu.memory_space<vmem>>, %arg2: memref<6x128x128xf32, #tpu.memory_space<vmem>>, %arg3: memref<32x56xf32, #tpu.memory_space<vmem>>, %arg4: memref<32x1xf32, #tpu.memory_space<vmem>>, %arg5: memref<32x32x128xf32, #tpu.memory_space<vmem>>) attributes {dimension_semantics = [#tpu.dimension_semantics<parallel>], iteration_bounds = array<i64: 2>, scalar_prefetch = 0 : i64, scratch_operands = 0 : i64, tpu.core_type = #tpu.core_type<tc>, window_params = [{transform_indices = @transform_0, window_bounds = array<i64: 32, 8, 128>}, {pipeline_mode = #tpu.pipeline_mode<synchronous>, transform_indices = @transform_1, window_bounds = array<i64: 6, 128, 128>}, {pipeline_mode = #tpu.pipeline_mode<synchronous>, transform_indices = @transform_2, window_bounds = array<i64: 32, 56>}, {pipeline_mode = #tpu.pipeline_mode<synchronous>, transform_indices = @transform_3, window_bounds = array<i64: 32, 1>}, {transform_indices = @transform_4, window_bounds = array<i64: 32, 32, 128>}]} {
    %c0 = arith.constant 0 : index
    %c0_0 = arith.constant 0 : index
    %c0_1 = arith.constant 0 : index
    %0 = vector.load %arg1[%c0, %c0_0, %c0_1] : memref<32x8x128xf32, #tpu.memory_space<vmem>>, vector<32x8x128xf32>
    %1 = vector.shape_cast %0 : vector<32x8x128xf32> to vector<256x128xf32>
    %c0_2 = arith.constant 0 : index
    %c0_3 = arith.constant 0 : index
    %2 = vector.load %arg3[%c0_2, %c0_3] : memref<32x56xf32, #tpu.memory_space<vmem>>, vector<32x56xf32>
    %3 = vector.extract_strided_slice %2 {offsets = [0, 0], sizes = [32, 8], strides = [1, 1]} : vector<32x56xf32> to vector<32x8xf32>
    %4 = vector.shape_cast %3 : vector<32x8xf32> to vector<1x32x8xf32>
    %5 = vector.shape_cast %4 : vector<1x32x8xf32> to vector<1x32x8xf32>
    %6 = vector.broadcast %5 : vector<1x32x8xf32> to vector<32x32x8xf32>
    "tpu.trace_start"() <{level = 10 : i32, message = "toc,tcv->tov"}> : () -> ()
    %cst = arith.constant dense<0.000000e+00> : vector<32x32x128xf32>
    %7 = tpu.matmul %6, %0, %cst {dimension_numbers = #tpu.dot_dimension_numbers<[2], [1], [1], [2], [0, 0, 0, 1, 1, 2], [0], [0]>} : vector<32x32x8xf32>, vector<32x8x128xf32>, vector<32x32x128xf32> -> vector<32x32x128xf32>
    "tpu.trace_stop"() : () -> ()
    %c0_4 = arith.constant 0 : index
    %c0_5 = arith.constant 0 : index
    %c0_6 = arith.constant 0 : index
    %8 = vector.load %arg2[%c0_4, %c0_5, %c0_6] : memref<6x128x128xf32, #tpu.memory_space<vmem>>, vector<1x128x128xf32>
    %9 = vector.shape_cast %8 : vector<1x128x128xf32> to vector<128x128xf32>
    %cst_7 = arith.constant dense<0.000000e+00> : vector<256x128xf32>
    %10 = tpu.matmul %1, %9, %cst_7 {dimension_numbers = #tpu.dot_dimension_numbers<[1], [0], [0], [1], [0, 0, 1, 1], [], []>} : vector<256x128xf32>, vector<128x128xf32>, vector<256x128xf32> -> vector<256x128xf32>
    %11 = vector.shape_cast %10 : vector<256x128xf32> to vector<32x8x128xf32>
    %12 = vector.extract_strided_slice %2 {offsets = [0, 8], sizes = [32, 8], strides = [1, 1]} : vector<32x56xf32> to vector<32x8xf32>
    %13 = vector.shape_cast %12 : vector<32x8xf32> to vector<1x32x8xf32>
    %14 = vector.shape_cast %13 : vector<1x32x8xf32> to vector<1x32x8xf32>
    %15 = vector.broadcast %14 : vector<1x32x8xf32> to vector<32x32x8xf32>
    "tpu.trace_start"() <{level = 10 : i32, message = "toc,tcv->tov"}> : () -> ()
    %cst_8 = arith.constant dense<0.000000e+00> : vector<32x32x128xf32>
    %16 = tpu.matmul %15, %11, %cst_8 {dimension_numbers = #tpu.dot_dimension_numbers<[2], [1], [1], [2], [0, 0, 0, 1, 1, 2], [0], [0]>} : vector<32x32x8xf32>, vector<32x8x128xf32>, vector<32x32x128xf32> -> vector<32x32x128xf32>
    "tpu.trace_stop"() : () -> ()
    %17 = arith.addf %7, %16 : vector<32x32x128xf32>
    %c1 = arith.constant 1 : index
    %c0_9 = arith.constant 0 : index
    %c0_10 = arith.constant 0 : index
    %18 = vector.load %arg2[%c1, %c0_9, %c0_10] : memref<6x128x128xf32, #tpu.memory_space<vmem>>, vector<1x128x128xf32>
    %19 = vector.shape_cast %18 : vector<1x128x128xf32> to vector<128x128xf32>
    %cst_11 = arith.constant dense<0.000000e+00> : vector<256x128xf32>
    %20 = tpu.matmul %1, %19, %cst_11 {dimension_numbers = #tpu.dot_dimension_numbers<[1], [0], [0], [1], [0, 0, 1, 1], [], []>} : vector<256x128xf32>, vector<128x128xf32>, vector<256x128xf32> -> vector<256x128xf32>
    %21 = vector.shape_cast %20 : vector<256x128xf32> to vector<32x8x128xf32>
    %22 = vector.extract_strided_slice %2 {offsets = [0, 16], sizes = [32, 8], strides = [1, 1]} : vector<32x56xf32> to vector<32x8xf32>
    %23 = vector.shape_cast %22 : vector<32x8xf32> to vector<1x32x8xf32>
    %24 = vector.shape_cast %23 : vector<1x32x8xf32> to vector<1x32x8xf32>
    %25 = vector.broadcast %24 : vector<1x32x8xf32> to vector<32x32x8xf32>
    "tpu.trace_start"() <{level = 10 : i32, message = "toc,tcv->tov"}> : () -> ()
    %cst_12 = arith.constant dense<0.000000e+00> : vector<32x32x128xf32>
    %26 = tpu.matmul %25, %21, %cst_12 {dimension_numbers = #tpu.dot_dimension_numbers<[2], [1], [1], [2], [0, 0, 0, 1, 1, 2], [0], [0]>} : vector<32x32x8xf32>, vector<32x8x128xf32>, vector<32x32x128xf32> -> vector<32x32x128xf32>
    "tpu.trace_stop"() : () -> ()
    %27 = arith.addf %17, %26 : vector<32x32x128xf32>
    %c2 = arith.constant 2 : index
    %c0_13 = arith.constant 0 : index
    %c0_14 = arith.constant 0 : index
    %28 = vector.load %arg2[%c2, %c0_13, %c0_14] : memref<6x128x128xf32, #tpu.memory_space<vmem>>, vector<1x128x128xf32>
    %29 = vector.shape_cast %28 : vector<1x128x128xf32> to vector<128x128xf32>
    %cst_15 = arith.constant dense<0.000000e+00> : vector<256x128xf32>
    %30 = tpu.matmul %1, %29, %cst_15 {dimension_numbers = #tpu.dot_dimension_numbers<[1], [0], [0], [1], [0, 0, 1, 1], [], []>} : vector<256x128xf32>, vector<128x128xf32>, vector<256x128xf32> -> vector<256x128xf32>
    %31 = vector.shape_cast %30 : vector<256x128xf32> to vector<32x8x128xf32>
    %32 = vector.extract_strided_slice %2 {offsets = [0, 24], sizes = [32, 8], strides = [1, 1]} : vector<32x56xf32> to vector<32x8xf32>
    %33 = vector.shape_cast %32 : vector<32x8xf32> to vector<1x32x8xf32>
    %34 = vector.shape_cast %33 : vector<1x32x8xf32> to vector<1x32x8xf32>
    %35 = vector.broadcast %34 : vector<1x32x8xf32> to vector<32x32x8xf32>
    "tpu.trace_start"() <{level = 10 : i32, message = "toc,tcv->tov"}> : () -> ()
    %cst_16 = arith.constant dense<0.000000e+00> : vector<32x32x128xf32>
    %36 = tpu.matmul %35, %31, %cst_16 {dimension_numbers = #tpu.dot_dimension_numbers<[2], [1], [1], [2], [0, 0, 0, 1, 1, 2], [0], [0]>} : vector<32x32x8xf32>, vector<32x8x128xf32>, vector<32x32x128xf32> -> vector<32x32x128xf32>
    "tpu.trace_stop"() : () -> ()
    %37 = arith.addf %27, %36 : vector<32x32x128xf32>
    %c3 = arith.constant 3 : index
    %c0_17 = arith.constant 0 : index
    %c0_18 = arith.constant 0 : index
    %38 = vector.load %arg2[%c3, %c0_17, %c0_18] : memref<6x128x128xf32, #tpu.memory_space<vmem>>, vector<1x128x128xf32>
    %39 = vector.shape_cast %38 : vector<1x128x128xf32> to vector<128x128xf32>
    %cst_19 = arith.constant dense<0.000000e+00> : vector<256x128xf32>
    %40 = tpu.matmul %1, %39, %cst_19 {dimension_numbers = #tpu.dot_dimension_numbers<[1], [0], [0], [1], [0, 0, 1, 1], [], []>} : vector<256x128xf32>, vector<128x128xf32>, vector<256x128xf32> -> vector<256x128xf32>
    %41 = vector.shape_cast %40 : vector<256x128xf32> to vector<32x8x128xf32>
    %42 = vector.extract_strided_slice %2 {offsets = [0, 32], sizes = [32, 8], strides = [1, 1]} : vector<32x56xf32> to vector<32x8xf32>
    %43 = vector.shape_cast %42 : vector<32x8xf32> to vector<1x32x8xf32>
    %44 = vector.shape_cast %43 : vector<1x32x8xf32> to vector<1x32x8xf32>
    %45 = vector.broadcast %44 : vector<1x32x8xf32> to vector<32x32x8xf32>
    "tpu.trace_start"() <{level = 10 : i32, message = "toc,tcv->tov"}> : () -> ()
    %cst_20 = arith.constant dense<0.000000e+00> : vector<32x32x128xf32>
    %46 = tpu.matmul %45, %41, %cst_20 {dimension_numbers = #tpu.dot_dimension_numbers<[2], [1], [1], [2], [0, 0, 0, 1, 1, 2], [0], [0]>} : vector<32x32x8xf32>, vector<32x8x128xf32>, vector<32x32x128xf32> -> vector<32x32x128xf32>
    "tpu.trace_stop"() : () -> ()
    %47 = arith.addf %37, %46 : vector<32x32x128xf32>
    %c4 = arith.constant 4 : index
    %c0_21 = arith.constant 0 : index
    %c0_22 = arith.constant 0 : index
    %48 = vector.load %arg2[%c4, %c0_21, %c0_22] : memref<6x128x128xf32, #tpu.memory_space<vmem>>, vector<1x128x128xf32>
    %49 = vector.shape_cast %48 : vector<1x128x128xf32> to vector<128x128xf32>
    %cst_23 = arith.constant dense<0.000000e+00> : vector<256x128xf32>
    %50 = tpu.matmul %1, %49, %cst_23 {dimension_numbers = #tpu.dot_dimension_numbers<[1], [0], [0], [1], [0, 0, 1, 1], [], []>} : vector<256x128xf32>, vector<128x128xf32>, vector<256x128xf32> -> vector<256x128xf32>
    %51 = vector.shape_cast %50 : vector<256x128xf32> to vector<32x8x128xf32>
    %52 = vector.extract_strided_slice %2 {offsets = [0, 40], sizes = [32, 8], strides = [1, 1]} : vector<32x56xf32> to vector<32x8xf32>
    %53 = vector.shape_cast %52 : vector<32x8xf32> to vector<1x32x8xf32>
    %54 = vector.shape_cast %53 : vector<1x32x8xf32> to vector<1x32x8xf32>
    %55 = vector.broadcast %54 : vector<1x32x8xf32> to vector<32x32x8xf32>
    "tpu.trace_start"() <{level = 10 : i32, message = "toc,tcv->tov"}> : () -> ()
    %cst_24 = arith.constant dense<0.000000e+00> : vector<32x32x128xf32>
    %56 = tpu.matmul %55, %51, %cst_24 {dimension_numbers = #tpu.dot_dimension_numbers<[2], [1], [1], [2], [0, 0, 0, 1, 1, 2], [0], [0]>} : vector<32x32x8xf32>, vector<32x8x128xf32>, vector<32x32x128xf32> -> vector<32x32x128xf32>
    "tpu.trace_stop"() : () -> ()
    %57 = arith.addf %47, %56 : vector<32x32x128xf32>
    %c5 = arith.constant 5 : index
    %c0_25 = arith.constant 0 : index
    %c0_26 = arith.constant 0 : index
    %58 = vector.load %arg2[%c5, %c0_25, %c0_26] : memref<6x128x128xf32, #tpu.memory_space<vmem>>, vector<1x128x128xf32>
    %59 = vector.shape_cast %58 : vector<1x128x128xf32> to vector<128x128xf32>
    %cst_27 = arith.constant dense<0.000000e+00> : vector<256x128xf32>
    %60 = tpu.matmul %1, %59, %cst_27 {dimension_numbers = #tpu.dot_dimension_numbers<[1], [0], [0], [1], [0, 0, 1, 1], [], []>} : vector<256x128xf32>, vector<128x128xf32>, vector<256x128xf32> -> vector<256x128xf32>
    %61 = vector.shape_cast %60 : vector<256x128xf32> to vector<32x8x128xf32>
    %62 = vector.extract_strided_slice %2 {offsets = [0, 48], sizes = [32, 8], strides = [1, 1]} : vector<32x56xf32> to vector<32x8xf32>
    %63 = vector.shape_cast %62 : vector<32x8xf32> to vector<1x32x8xf32>
    %64 = vector.shape_cast %63 : vector<1x32x8xf32> to vector<1x32x8xf32>
    %65 = vector.broadcast %64 : vector<1x32x8xf32> to vector<32x32x8xf32>
    "tpu.trace_start"() <{level = 10 : i32, message = "toc,tcv->tov"}> : () -> ()
    %cst_28 = arith.constant dense<0.000000e+00> : vector<32x32x128xf32>
    %66 = tpu.matmul %65, %61, %cst_28 {dimension_numbers = #tpu.dot_dimension_numbers<[2], [1], [1], [2], [0, 0, 0, 1, 1, 2], [0], [0]>} : vector<32x32x8xf32>, vector<32x8x128xf32>, vector<32x32x128xf32> -> vector<32x32x128xf32>
    "tpu.trace_stop"() : () -> ()
    %67 = arith.addf %57, %66 : vector<32x32x128xf32>
    %c0_29 = arith.constant 0 : index
    %c0_30 = arith.constant 0 : index
    %68 = vector.load %arg4[%c0_29, %c0_30] : memref<32x1xf32, #tpu.memory_space<vmem>>, vector<32x1xf32>
    %69 = vector.shape_cast %68 : vector<32x1xf32> to vector<1x32x1xf32>
    %70 = vector.broadcast %69 : vector<1x32x1xf32> to vector<32x32x128xf32>
    %71 = arith.addf %67, %70 : vector<32x32x128xf32>
    %c0_31 = arith.constant 0 : index
    %c0_32 = arith.constant 0 : index
    %c0_33 = arith.constant 0 : index
    %72 = vector.load %arg5[%c0_31, %c0_32, %c0_33] : memref<32x32x128xf32, #tpu.memory_space<vmem>>, vector<32x32x128xf32>
    tpu.vector_store %arg5[%c0_31, %c0_32, %c0_33], %71 {strides = array<i32>} : memref<32x32x128xf32, #tpu.memory_space<vmem>>, vector<32x32x128xf32>,
    return
  }
  func.func @transform_0(%arg0: i32) -> (i32, i32, i32) {
    %c0_i32 = arith.constant 0 : i32
    %c0_i32_0 = arith.constant 0 : i32
    %c0_i32_1 = arith.constant 0 : i32
    return %arg0, %c0_i32, %c0_i32_0 : i32, i32, i32
  }
  func.func @transform_1(%arg0: i32) -> (i32, i32, i32) {
    %c0_i32 = arith.constant 0 : i32
    %c0_i32_0 = arith.constant 0 : i32
    %c0_i32_1 = arith.constant 0 : i32
    %c0_i32_2 = arith.constant 0 : i32
    return %c0_i32, %c0_i32_0, %c0_i32_1 : i32, i32, i32
  }
  func.func @transform_2(%arg0: i32) -> (i32, i32) {
    %c0_i32 = arith.constant 0 : i32
    %c0_i32_0 = arith.constant 0 : i32
    %c0_i32_1 = arith.constant 0 : i32
    return %c0_i32, %c0_i32_0 : i32, i32
  }
  func.func @transform_3(%arg0: i32) -> (i32, i32) {
    %c0_i32 = arith.constant 0 : i32
    %c0_i32_0 = arith.constant 0 : i32
    %c0_i32_1 = arith.constant 0 : i32
    return %c0_i32, %c0_i32_0 : i32, i32
  }
  func.func @transform_4(%arg0: i32) -> (i32, i32, i32) {
    %c0_i32 = arith.constant 0 : i32
    %c0_i32_0 = arith.constant 0 : i32
    %c0_i32_1 = arith.constant 0 : i32
    return %arg0, %c0_i32, %c0_i32_0 : i32, i32, i32
  }
}

</mosaic_0001>

<bundles_post_ra>
// kernel: tpu_custom_call.1
= control target key start
LH: loop header
LB: loop body
LE: loop exit
PB: predicated region body
PF: predicated region fallthrough
CT: control target
= control target key end

     0   :  { %9 = vsyncpa [#allocation3], 0  ;;  %s32476_s0 = inlined_call_operand.hbm [shape: f32[64,8,128], index: 0, kind: input, shape index: {}]   ;;  %s32477_s1 = inlined_call_operand.hbm [shape: f32[6,128,128], index: 1, kind: input, shape index: {}]   ;;  %s32478_s2 = inlined_call_operand.vmem [shape: f32[32,56], index: 2, kind: input, shape index: {}]   ;;  %s32479_s3 = inlined_call_operand.vmem [shape: f32[32,1], index: 3, kind: input, shape index: {}]   ;;  %s32480_s4 = inlined_call_operand.hbm [shape: f32[64,32,128], index: 4, kind: output, shape index: {}]  }
   0x1   :  { %11 = vsyncpa [#allocation3 + $0x1], 0 }
   0x2   :  { %12 = vsyncpa [#allocation6], 0 }
   0x3   :  { %13 = vsyncpa [#allocation4], 0 }
   0x4   :  { %15 = vsyncpa [#allocation4 + $0x1], 0  ;;  %s26862_s15 = smov 0   ;;  %s26864_s16 = smov 0  }
   0x5   :  { %s26866_s17 = smov 0   ;;  %s26868_s18 = smov 0  }
   0x6 LB: > { %s26883_s19 = sadd.s32 4294967295, %s26821_s18   ;;  %s21887_s20 = sadd.s32 4294967294, %s26821_s18   ;;  %s26821_s18 = sphi %s26868_s18, %s33715_s18   ;;  %s26817_s17 = sphi %s26866_s17, %s33714_s17   ;;  %s26813_s16 = sphi %s26864_s16, %s33713_s16   ;;  %s26809_s15 = sphi %s26862_s15, %s33712_s15  }
   0x7   : > { %p41_p0 = scmp.ne.s32.totalorder %s26813_s16, %s26809_s15  ;;  %p32481_p1 = scmp.eq.s32.totalorder %s26883_s19, 0 }
   0x8   : > { %p134_p3 = scmp.eq.s32.totalorder %s21887_s20, 1  ;;  %p21888_p5 = scmp.ge.s32.totalorder %s26821_s18, 1 }
   0x9   : > { %p26892_p4 = por %p32481_p1, %p41_p0  ;;  %p141_p7 = scmp.lt.s32.totalorder %s26821_s18, 3 }
   0xa   : > { %p26897_p6 = por %p134_p3, %p41_p0  ;;  %s26823_s24 = smov [#allocation5]  }
   0xb   : > { %s32504_s21 = scalar_select %p26892_p4, 1, 0 }
   0xc   : > { %s32505_s22 = scalar_select %p26897_p6, 1, 0 }
   0xd   : > { %p26902_p8 = pnand %p21888_p5, %p141_p7  ;;  %s153_s25 = sshll.u32 %s26823_s24, 4  ;;  %s154_s25 = int_to_ptr.vmem [resolvable:$true] %s153_s25 }
   0xe   : > { %s26916_s27 = sadd.s32 1, %s26821_s18   ;;  %s28_s28 = sadd.s32 1, %s26817_s17 }
   0xf   : > { %s32506_s23 = scalar_select %p26902_p8, 1, 0 }
  0x10   : > { %p26493_p9 = pneg %p26902_p8  ;;  %s25_s29 = ssub.s32 %s26821_s18, %s26916_s27 }
  0x11   : > { %s26710_s30 = scalar_lea.vmem %s154_s25, 12288  ;;  %p26718_p5 = scmp.lt.s32.totalorder %s154_s25, %s154_s25 }
  0x12   : > { %p26911_p11 = pnand %p26493_p9, %p32481_p1  ;;  %p26711_p13 = scmp.ne.s32.totalorder %s154_s25, %s26710_s30 }
  0x13   : > { %p26719_p7 = scmp.lt.s32.totalorder %s26710_s30, %s26710_s30 }
  0x14   : > { %p26701_p12 = pneg %p26911_p11 }
  0x15   : > { %p26720_p10 = por %p26719_p7, %p26718_p5 }
  0x16   : > { %p26713_p0 = pnand %p26711_p13, %p26701_p12 }
  0x18   : > { %p26714_p3 = pneg %p26713_p0 }
  0x1a   : > { %p26721_p2 = pnand %p26720_p10, %p26714_p3 }
  0x1c   : > { %26724 = shalt.err (!%p26721_p2)
}
  0x1d   : > { %s26824_s5 = smov 128   ;;  %s26825_s6 = smov 8  }
  0x1e   : > { %26496 = dma.hbm_to_vmem [thread:$0]  (!%p26911_p11), %s32477_s1, 12288, %s154_s25, [#allocation6], %s26824_s5, %s26824_s5, %s26825_s6  }
  0x1f   : > { %p26_p2 = scmp.eq.s32.totalorder %s25_s29, 0  ;;  %p35_p9 = scmp.ne.s32.totalorder %s26817_s17, %s26813_s16 }
  0x20   : > { %p36_p10 = scmp.eq.s32.totalorder %s26821_s18, 0  ;;  %p26506_p12 = scmp.lt.s32.totalorder %s26821_s18, 2 }
  0x21   : > { %s26936_s9 = scalar_select %p26_p2, %s26817_s17, %s28_s28  }
  0x22   : > { %p37_p13 = por %p36_p10, %p35_p9  ;;  %p32508_p0 = scmp.eq.s32.totalorder %s26883_s19, 1 }
  0x23   : > { %s173_s11 = sand.u32 1, %s26817_s17   ;;  %s22800_s12 = sshll.u32 %s26821_s18, 12 }
  0x24   : > { %p26940_p3 = por %p32508_p0, %p35_p9  ;;  %s21891_s13 = sshll.u32 %s173_s11, 8 }
  0x25   : > { %s26949_s24 = scalar_lea.hbm %s32476_s0, %s22800_s12  ;;  %s177_s25 = scalar_lea.vmem [#allocation2], %s21891_s13 }
  0x26   : > { %s32509_s10 = scalar_select %p26940_p3, 1, 0 }
  0x27   : > { %s184_s26 = sshll.u32 %s177_s25, 4  ;;  %p26951_p11 = pnand %p26506_p12, %p37_p13  ;;  %s26955_s26 = int_to_ptr.vmem [resolvable:$true] %s184_s26 }
  0x28   : > { %s26957_s29 = scalar_lea.sflag [#allocation3], %s173_s11  ;;  %s26725_s30 = scalar_lea.hbm %s26949_s24, 4096 }
  0x29   : > { %p26726_p5 = scmp.ne.s32.totalorder %s26949_s24, %s26725_s30  ;;  %p26727_p7 = pneg %p26951_p11 }
  0x2a   : > { %s26730_s12 = scalar_lea.hbm %s32476_s0, 8192  ;;  %p26731_p10 = scmp.lt.s32.totalorder %s26949_s24, %s32476_s0 }
  0x2b   : > { %p26728_p2 = pnand %p26727_p7, %p26726_p5  ;;  %p26732_p12 = scmp.lt.s32.totalorder %s26730_s12, %s26725_s30 }
  0x2d   : > { %p26729_p9 = pneg %p26728_p2  ;;  %p26733_p13 = por %p26732_p12, %p26731_p10 }
  0x2f   : > { %p26734_p0 = pnand %p26733_p13, %p26729_p9 }
  0x31   : > { %26737 = shalt.err (!%p26734_p0)
}
  0x32   : > { %s26738_s11 = scalar_lea.vmem %s26955_s26, 4096  ;;  %s26826_s20 = smov [#allocation2]  }
  0x33   : > { %p26739_p1 = scmp.ne.s32.totalorder %s26955_s26, %s26738_s11  ;;  %s26743_s25 = sshll.u32 %s26826_s20, 4  ;;  %s26744_s25 = int_to_ptr.vmem [resolvable:$false] %s26743_s25 }
  0x34   : > { %s26745_s7 = scalar_lea.vmem %s26744_s25, 8192  ;;  %p26746_p2 = scmp.lt.s32.totalorder %s26955_s26, %s26744_s25 }
  0x35   : > { %p26741_p6 = pnand %p26739_p1, %p26727_p7  ;;  %p26747_p3 = scmp.lt.s32.totalorder %s26745_s7, %s26738_s11 }
  0x37   : > { %p26742_p5 = pneg %p26741_p6  ;;  %p26748_p4 = por %p26747_p3, %p26746_p2 }
  0x39   : > { %p26749_p8 = pnand %p26748_p4, %p26742_p5 }
  0x3b   : > { %26752 = shalt.err (!%p26749_p8)
}
  0x3c   : > { %26500 = dma.hbm_to_vmem [thread:$0]  (!%p26951_p11), %s26949_s24, 4096, %s26955_s26, %s26957_s29, %s26824_s5, %s26824_s5, %s26825_s6  }
  0x3d   : > { %p32511_p1 = scmp.ne.s32.totalorder %s32506_s23, 0 }
  0x3f   : > { %196 = sbr.rel (%p32511_p1) target bundleno = 2691 (0xa83), region = 36 }
  0x44   : > { %s26984_s30 = sand.u32 1, %s26813_s16   ;;  %p32512_p4 = scmp.ne.s32.totalorder %s32504_s21, 0 }
  0x45   : > { %s21895_s8 = sshll.u32 %s26984_s30, 8  ;;  %s199_s12 = scalar_lea.sflag [#allocation3], %s26984_s30 }
  0x46   : > { %s26988_s13 = scalar_lea.vmem [#allocation2], %s21895_s8 }
  0x47   : > { %26796 = dma.done.wait (%p32512_p4), %s199_s12, 4096  }
  0x48   : > { %26798 = vsyncadd (%p32512_p4), %s199_s12, 4294963200  ;;  %p32513_p6 = scmp.eq.s32.totalorder %s26883_s19, 0 }
  0x4a   : > { %26800 = dma.done.wait (%p32513_p6), [#allocation6], 12288   ;;  %p32514_p8 = pmov %p32513_p6 }
  0x4b   : > { %v284_v0 = vld [vmem:[#allocation5 + $0x78] sm:$0xff]  ;;  %v283_v1 = vld [vmem:[#allocation5 + $0x70] sm:$0xff]  ;;  %v282_v2 = vld [vmem:[#allocation5 + $0x68] sm:$0xff]  ;;  %s26827_s5 = smov 120   ;;  %vm522_vm0 = vcmask 64512   ;;  %s26828_s11 = smov 112  }
  0x4c   : > { %26802 = vsyncadd (%p32514_p8), [#allocation6], 4294955008  ;;  %24211 = vmatprep.subr.mxu0 %v284_v0  ;;  %v281_v3 = vld [vmem:[#allocation5 + $0x60] sm:$0xff]  ;;  %v280_v5 = vld [vmem:[#allocation5 + $0x58] sm:$0xff]  ;;  %s26829_s26 = smov 104   ;;  %s26830_s12 = smov 96  }
  0x4d   : > { %24212 = vmatpush3.msra.mxu0 %v284_v0  ;;  %v26999_v4 = vld [vmem:[%s26988_s13] sm:$0xff]  ;;  %v279_v6 = vld [vmem:[#allocation5 + $0x50] sm:$0xff]  ;;  %v278_v7 = vld [vmem:[#allocation5 + $0x48] sm:$0xff]  ;;  %s26831_s28 = smov 88   ;;  %s21897_s14 = sshll.u32 %s26984_s30, 10 }
  0x4e   : > { %24213 = vmatprep.subr.mxu0 %v283_v1  ;;  %24243 = vmatprep.mubr.f32.mxu0 %v26999_v4  ;;  %v277_v8 = vld [vmem:[#allocation5 + $0x40] sm:$0xff]  ;;  %v276_v9 = vld [vmem:[#allocation5 + $0x38] sm:$0xff]  ;;  %v27011_v11 = vld [vmem:[%s32478_s2 + $0x10] sm:$0xff]  ;;  %s22802_s20 = sshll.u32 %s26883_s19, 14  ;;  %s21790_s19 = scalar_lea.sflag [#allocation4], %s26984_s30 }
  0x4f   : > { %24214 = vmatpush3.msra.mxu0 %v283_v1  ;;  %v27005_v10 = vld [vmem:[%s32478_s2] sm:$0xff]  ;;  %v275_v12 = vld [vmem:[#allocation5 + $0x30] sm:$0xff]  ;;  %518 = vrot.lane.b32.xlu1 %v27011_v11, %s26827_s5  ;;  %v27017_v13 = vld [vmem:[%s32478_s2 + $0x8] sm:$0xff]  ;;  %p33709_p11 = scmp.ne.s32.totalorder %s32509_s10, 0 }
  0x50   : > { %24215 = vmatprep.subr.mxu0 %v282_v2  ;;  %514 = vrot.lane.b32.xlu0 %v27005_v10, %s26827_s5  ;;  %v27022_v14 = vld [vmem:[%s32478_s2 + $0x18] sm:$0xff]  ;;  %v274_v15 = vld [vmem:[#allocation5 + $0x28] sm:$0xff]  ;;  %v273_v16 = vld [vmem:[#allocation5 + $0x20] sm:$0xff] }
  0x51   : > { %24216 = vmatpush3.msra.mxu0 %v282_v2  ;;  %v272_v17 = vld [vmem:[#allocation5 + $0x18] sm:$0xff]  ;;  %v271_v18 = vld [vmem:[#allocation5 + $0x10] sm:$0xff]  ;;  %v270_v19 = vld [vmem:[#allocation5 + $0x8] sm:$0xff] }
  0x52   : > { %24217 = vmatprep.subr.mxu0 %v281_v3  ;;  %v269_v20 = vld [vmem:[#allocation5] sm:$0xff]  ;;  %v27027_v21 = vld [vmem:[%s26988_s13 + $0x8] sm:$0xff]  ;;  %v27030_v22 = vld [vmem:[%s26988_s13 + $0x10] sm:$0xff] }
  0x53   : > { %24218 = vmatpush3.msra.mxu0 %v281_v3  ;;  %520 = vrot.lane.b32.xlu1 %v27022_v14, %s26827_s5  ;;  %v27035_v23 = vld [vmem:[%s26988_s13 + $0x18] sm:$0xff]  ;;  %v27038_v24 = vld [vmem:[%s26988_s13 + $0x20] sm:$0xff]  ;;  %v27043_v25 = vld [vmem:[%s26988_s13 + $0x28] sm:$0xff] }
  0x54   : > { %24219 = vmatprep.subr.mxu0 %v280_v5  ;;  %516 = vrot.lane.b32.xlu0 %v27017_v13, %s26827_s5  ;;  %v27046_v26 = vld [vmem:[%s26988_s13 + $0x30] sm:$0xff]  ;;  %v27051_v27 = vld [vmem:[%s26988_s13 + $0x38] sm:$0xff]  ;;  %v27054_v28 = vld [vmem:[%s26988_s13 + $0x40] sm:$0xff] }
  0x55   : > { %24220 = vmatpush3.msra.mxu0 %v280_v5  ;;  %v27059_v29 = vld [vmem:[%s26988_s13 + $0x48] sm:$0xff]  ;;  %v27062_v30 = vld [vmem:[%s26988_s13 + $0x50] sm:$0xff]  ;;  %v27067_v31 = vld [vmem:[%s26988_s13 + $0x58] sm:$0xff] }
  0x56   : > { %24221 = vmatprep.subr.mxu0 %v279_v6  ;;  %v27070_v32 = vld [vmem:[%s26988_s13 + $0x60] sm:$0xff]  ;;  %v27075_v33 = vld [vmem:[%s26988_s13 + $0x68] sm:$0xff]  ;;  %v27078_v34 = vld [vmem:[%s26988_s13 + $0x70] sm:$0xff] }
  0x57   : > { %24222 = vmatpush3.msra.mxu0 %v279_v6  ;;  %v27083_v35 = vld [vmem:[%s26988_s13 + $0x78] sm:$0xff]  ;;  %v27086_v36 = vld [vmem:[%s26988_s13 + $0x80] sm:$0xff]  ;;  %v27091_v37 = vld [vmem:[%s26988_s13 + $0x88] sm:$0xff]  ;;  %6223 = vrot.lane.b32.xlu1 %v27017_v13, %s26828_s11 }
  0x58   : > { %24223 = vmatprep.subr.mxu0 %v278_v7  ;;  %v27094_v38 = vld [vmem:[%s26988_s13 + $0x90] sm:$0xff]  ;;  %v27099_v39 = vld [vmem:[%s26988_s13 + $0x98] sm:$0xff]  ;;  %v27102_v40 = vld [vmem:[%s26988_s13 + $0xa0] sm:$0xff]  ;;  %6221 = vrot.lane.b32.xlu0 %v27005_v10, %s26828_s11 }
  0x59   : > { %24224 = vmatpush3.msra.mxu0 %v278_v7  ;;  %v27107_v41 = vld [vmem:[%s26988_s13 + $0xa8] sm:$0xff]  ;;  %v27110_v42 = vld [vmem:[%s26988_s13 + $0xb0] sm:$0xff]  ;;  %v256_v43 = vld [vmem:[%s26988_s13 + $0xb8] sm:$0xff] }
  0x5a   : > { %24225 = vmatprep.subr.mxu0 %v277_v8  ;;  %v27116_v44 = vld [vmem:[%s26988_s13 + $0xc0] sm:$0xff]  ;;  %v258_v45 = vld [vmem:[%s26988_s13 + $0xc8] sm:$0xff]  ;;  %v27121_v46 = vld [vmem:[%s26988_s13 + $0xd0] sm:$0xff] }
  0x5b   : > { %24226 = vmatpush3.msra.mxu0 %v277_v8  ;;  %v260_v47 = vld [vmem:[%s26988_s13 + $0xd8] sm:$0xff]  ;;  %v27126_v48 = vld [vmem:[%s26988_s13 + $0xe0] sm:$0xff]  ;;  %v262_v49 = vld [vmem:[%s26988_s13 + $0xe8] sm:$0xff]  ;;  %6227 = vrot.lane.b32.xlu1 %v27022_v14, %s26828_s11 }
  0x5c   : > { %24227 = vmatprep.subr.mxu0 %v276_v9  ;;  %v27131_v50 = vld [vmem:[%s26988_s13 + $0xf0] sm:$0xff]  ;;  %v264_v51 = vld [vmem:[%s26988_s13 + $0xf8] sm:$0xff]  ;;  %6225 = vrot.lane.b32.xlu0 %v27011_v11, %s26828_s11  ;;  %s26832_s11 = smov 80  }
  0x5d   : > { %24228 = vmatpush3.msra.mxu0 %v276_v9 }
  0x5e   : > { %24229 = vmatprep.subr.mxu0 %v275_v12 }
  0x5f   : > { %24230 = vmatpush3.msra.mxu0 %v275_v12 }
  0x60   : > { %24231 = vmatprep.subr.mxu0 %v274_v15 }
  0x61   : > { %24232 = vmatpush3.msra.mxu0 %v274_v15 }
  0x62   : > { %24233 = vmatprep.subr.mxu0 %v273_v16 }
  0x63   : > { %24234 = vmatpush3.msra.mxu0 %v273_v16 }
  0x64   : > { %24235 = vmatprep.subr.mxu0 %v272_v17 }
  0x65   : > { %24236 = vmatpush3.msra.mxu0 %v272_v17 }
  0x66   : > { %24237 = vmatprep.subr.mxu0 %v271_v18 }
  0x67   : > { %24238 = vmatpush3.msra.mxu0 %v271_v18 }
  0x68   : > { %24239 = vmatprep.subr.mxu0 %v270_v19 }
  0x69   : > { %24240 = vmatpush3.msra.mxu0 %v270_v19 }
  0x6a   : > { %24241 = vmatprep.subr.mxu0 %v269_v20 }
  0x6b   : > { %24242 = vmatpush3.msra.mxu0 %v269_v20 }
  0x6c   : > { %24244 = vmatmul.mubr.f32.vlgmr.msra.gmra.mxu0 %v27027_v21 }
  0x6d   : > { %24246 = vmatprep.mubr.f32.mxu0 %v27030_v22 }
  0x70   : > { %24247 = vmatmul.mubr.f32.gmra.mxu0 %v27035_v23 }
  0x71   : > { %24249 = vmatprep.mubr.f32.mxu0 %v27038_v24 }
  0x74   : > { %24250 = vmatmul.mubr.f32.gmra.mxu0 %v27043_v25 }
  0x75   : > { %24252 = vmatprep.mubr.f32.mxu0 %v27046_v26 }
  0x78   : > { %24253 = vmatmul.mubr.f32.gmra.mxu0 %v27051_v27 }
  0x79   : > { %24255 = vmatprep.mubr.f32.mxu0 %v27054_v28 }
  0x7c   : > { %24256 = vmatmul.mubr.f32.gmra.mxu0 %v27059_v29 }
  0x7d   : > { %24258 = vmatprep.mubr.f32.mxu0 %v27062_v30 }
  0x80   : > { %24259 = vmatmul.mubr.f32.gmra.mxu0 %v27067_v31 }
  0x81   : > { %24261 = vmatprep.mubr.f32.mxu0 %v27070_v32 }
  0x84   : > { %24262 = vmatmul.mubr.f32.gmra.mxu0 %v27075_v33 }
  0x85   : > { %24264 = vmatprep.mubr.f32.mxu0 %v27078_v34 }
  0x88   : > { %24265 = vmatmul.mubr.f32.gmra.mxu0 %v27083_v35 }
  0x89   : > { %24267 = vmatprep.mubr.f32.mxu0 %v27086_v36 }
  0x8c   : > { %24268 = vmatmul.mubr.f32.gmra.mxu0 %v27091_v37 }
  0x8d   : > { %24270 = vmatprep.mubr.f32.mxu0 %v27094_v38 }
  0x90   : > { %24271 = vmatmul.mubr.f32.gmra.mxu0 %v27099_v39 }
  0x91   : > { %24273 = vmatprep.mubr.f32.mxu0 %v27102_v40 }
  0x94   : > { %24274 = vmatmul.mubr.f32.gmra.mxu0 %v27107_v41 }
  0x95   : > { %24276 = vmatprep.mubr.f32.mxu0 %v27110_v42 }
  0x98   : > { %24277 = vmatmul.mubr.f32.gmra.mxu0 %v256_v43 }
  0x99   : > { %24279 = vmatprep.mubr.f32.mxu0 %v27116_v44 }
  0x9c   : > { %24280 = vmatmul.mubr.f32.gmra.mxu0 %v258_v45 }
  0x9d   : > { %24282 = vmatprep.mubr.f32.mxu0 %v27121_v46 }
  0xa0   : > { %24283 = vmatmul.mubr.f32.gmra.mxu0 %v260_v47 }
  0xa1   : > { %24285 = vmatprep.mubr.f32.mxu0 %v27126_v48 }
  0xa4   : > { %24286 = vmatmul.mubr.f32.gmra.mxu0 %v262_v49 }
  0xa5   : > { %24288 = vmatprep.mubr.f32.mxu0 %v27131_v50 }
  0xa8   : > { %24289 = vmatmul.mubr.f32.gmra.mxu0 %v264_v51 }
  0xc1   : > { %v27141_v54 = vpop.permute.xlu1 %518 }
  0xc2   : > { %v27135_v52 = vpop.permute.xlu0 %514 }
  0xc3   : > { %24293 = vmatprep.mubr.msk.f32.mxu1 %vm522_vm0, %v27135_v52  ;;  %24389 = vmatprep.mubr.msk.f32.mxu0 %vm522_vm0, %v27135_v52 }
  0xc5   : > { %v27147_v59 = vpop.permute.xlu1 %520 }
  0xc6   : > { %v27143_v56 = vpop.permute.xlu0 %516 }
 0x12c   : > { %v24245_v53 = vpop.f32.mrf.mxu0 }
 0x12e   : > { %v351_v55 = vpop.f32.mrf.mxu0 }
 0x12f   : > { %24291 = vmatprep.subr.mxu1 %v351_v55 }
 0x130   : > { %v24248_v57 = vpop.f32.mrf.mxu0  ;;  %24292 = vmatpush3.msra.mxu1 %v351_v55 }
 0x131   : > { %24294 = vmatmul.mubr.msk.f32.vlgmr.msra.gmra.mxu1 %vm522_vm0, %v27143_v56  ;;  %24299 = vmatprep.subr.mxu1 %v24245_v53 }
 0x132   : > { %v361_v58 = vpop.f32.mrf.mxu0  ;;  %24300 = vmatpush3.msra.mxu1 %v24245_v53  ;;  %24296 = vmatprep.mubr.msk.f32.mxu1 %vm522_vm0, %v27141_v54 }
 0x133   : > { %24307 = vmatprep.subr.mxu1 %v361_v58 }
 0x134   : > { %v24251_v60 = vpop.f32.mrf.mxu0 }
 0x135   : > { %24297 = vmatmul.mubr.msk.f32.gmra.mxu1 %vm522_vm0, %v27147_v59 }
 0x136   : > { %v371_v61 = vpop.f32.mrf.mxu0  ;;  %24301 = vmatprep.mubr.msk.f32.mxu1 %vm522_vm0, %v27135_v52 }
 0x138   : > { %v27155_v62 = vpop.f32.mrf.mxu0 }
 0x139   : > { %24302 = vmatmul.mubr.msk.f32.vlgmr.msra.gmra.mxu1 %vm522_vm0, %v27143_v56 }
 0x13a   : > { %24308 = vmatpush3.msra.mxu1 %v361_v58  ;;  %v381_v63 = vpop.f32.mrf.mxu0  ;;  %24304 = vmatprep.mubr.msk.f32.mxu1 %vm522_vm0, %v27141_v54  ;;  %v5992_v58 = vld [vmem:[#allocation5 + $0xe0] sm:$0xff] }
 0x13b   : > { %24315 = vmatprep.subr.mxu1 %v24248_v57 }
 0x13c   : > { %v27161_v0 = vpop.f32.mrf.mxu0 }
 0x13d   : > { %24305 = vmatmul.mubr.msk.f32.gmra.mxu1 %vm522_vm0, %v27147_v59 }
 0x13e   : > { %v27165_v1 = vpop.f32.mrf.mxu0  ;;  %24309 = vmatprep.mubr.msk.f32.mxu1 %vm522_vm0, %v27135_v52 }
 0x140   : > { %v27169_v2 = vpop.f32.mrf.mxu0 }
 0x141   : > { %24310 = vmatmul.mubr.msk.f32.vlgmr.msra.gmra.mxu1 %vm522_vm0, %v27143_v56 }
 0x142   : > { %24316 = vmatpush3.msra.mxu1 %v24248_v57  ;;  %v27173_v3 = vpop.f32.mrf.mxu0  ;;  %24312 = vmatprep.mubr.msk.f32.mxu1 %vm522_vm0, %v27141_v54 }
 0x143   : > { %24323 = vmatprep.subr.mxu1 %v371_v61 }
 0x144   : > { %v27177_v5 = vpop.f32.mrf.mxu0 }
 0x145   : > { %24313 = vmatmul.mubr.msk.f32.gmra.mxu1 %vm522_vm0, %v27147_v59 }
 0x146   : > { %v27181_v6 = vpop.f32.mrf.mxu0  ;;  %24317 = vmatprep.mubr.msk.f32.mxu1 %vm522_vm0, %v27135_v52 }
 0x147   : > { %24387 = vmatprep.subr.mxu0 %v27181_v6 }
 0x148   : > { %v27186_v7 = vpop.f32.mrf.mxu0  ;;  %24388 = vmatpush3.msra.mxu0 %v27181_v6 }
 0x149   : > { %24318 = vmatmul.mubr.msk.f32.vlgmr.msra.gmra.mxu1 %vm522_vm0, %v27143_v56  ;;  %24390 = vmatmul.mubr.msk.f32.vlgmr.msra.gmra.mxu0 %vm522_vm0, %v27143_v56 }
 0x14a   : > { %24324 = vmatpush3.msra.mxu1 %v371_v61  ;;  %v421_v8 = vpop.f32.mrf.mxu0  ;;  %24320 = vmatprep.mubr.msk.f32.mxu1 %vm522_vm0, %v27141_v54  ;;  %v26555_v61 = vld [vmem:[%s26988_s13] sm:$0xff] }
 0x14b   : > { %24331 = vmatprep.subr.mxu1 %v24251_v60  ;;  %24403 = vmatprep.subr.mxu0 %v421_v8 }
 0x14c   : > { %24404 = vmatpush3.msra.mxu0 %v421_v8  ;;  %24405 = vmatprep.mubr.msk.f32.mxu0 %vm522_vm0, %v27135_v52  ;;  %v27197_v9 = vpop.f32.mrf.mxu0 }
 0x14d   : > { %24321 = vmatmul.mubr.msk.f32.gmra.mxu1 %vm522_vm0, %v27147_v59  ;;  %24406 = vmatmul.mubr.msk.f32.vlgmr.msra.gmra.mxu0 %vm522_vm0, %v27143_v56 }
 0x14e   : > { %24325 = vmatprep.mubr.msk.f32.mxu1 %vm522_vm0, %v27135_v52  ;;  %24408 = vmatprep.mubr.msk.f32.mxu0 %vm522_vm0, %v27141_v54  ;;  %v431_v12 = vpop.f32.mrf.mxu0 }
 0x14f   : > { %24419 = vmatprep.subr.mxu0 %v431_v12 }
 0x150   : > { %24420 = vmatpush3.msra.mxu0 %v431_v12  ;;  %v27207_v15 = vpop.f32.mrf.mxu0  ;;  %v27786_v12 = vld [vmem:[%s32478_s2 + $0x8] sm:$0xff] }
 0x151   : > { %24326 = vmatmul.mubr.msk.f32.vlgmr.msra.gmra.mxu1 %vm522_vm0, %v27143_v56  ;;  %24409 = vmatmul.mubr.msk.f32.gmra.mxu0 %vm522_vm0, %v27147_v59 }
 0x152   : > { %24332 = vmatpush3.msra.mxu1 %v24251_v60  ;;  %24328 = vmatprep.mubr.msk.f32.mxu1 %vm522_vm0, %v27141_v54  ;;  %v441_v16 = vpop.f32.mrf.mxu0 }
 0x153   : > { %24339 = vmatprep.subr.mxu1 %v381_v63  ;;  %24421 = vmatprep.mubr.msk.f32.mxu0 %vm522_vm0, %v27135_v52 }
 0x154   : > { %24435 = vmatprep.subr.mxu0 %v441_v16  ;;  %v27217_v17 = vpop.f32.mrf.mxu0 }
 0x155   : > { %24329 = vmatmul.mubr.msk.f32.gmra.mxu1 %vm522_vm0, %v27147_v59  ;;  %24422 = vmatmul.mubr.msk.f32.vlgmr.msra.gmra.mxu0 %vm522_vm0, %v27143_v56 }
 0x156   : > { %24333 = vmatprep.mubr.msk.f32.mxu1 %vm522_vm0, %v27135_v52  ;;  %24424 = vmatprep.mubr.msk.f32.mxu0 %vm522_vm0, %v27141_v54  ;;  %v451_v18 = vpop.f32.mrf.mxu0 }
 0x157   : > { %24436 = vmatpush3.msra.mxu0 %v441_v16  ;;  %v27793_v16 = vld [vmem:[%s32478_s2 + $0x10] sm:$0xff] }
 0x158   : > { %24451 = vmatprep.subr.mxu0 %v451_v18  ;;  %v27231_v19 = vpop.f32.mrf.mxu0 }
 0x159   : > { %24334 = vmatmul.mubr.msk.f32.vlgmr.msra.gmra.mxu1 %vm522_vm0, %v27143_v56  ;;  %24425 = vmatmul.mubr.msk.f32.gmra.mxu0 %vm522_vm0, %v27147_v59 }
 0x15a   : > { %24340 = vmatpush3.msra.mxu1 %v381_v63  ;;  %24336 = vmatprep.mubr.msk.f32.mxu1 %vm522_vm0, %v27141_v54  ;;  %v461_v20 = vpop.f32.mrf.mxu0 }
 0x15b   : > { %24347 = vmatprep.subr.mxu1 %v27155_v62  ;;  %24437 = vmatprep.mubr.msk.f32.mxu0 %vm522_vm0, %v27135_v52 }
 0x15c   : > { %v27250_v43 = vpop.f32.mrf.mxu0 }
 0x15d   : > { %24337 = vmatmul.mubr.msk.f32.gmra.mxu1 %vm522_vm0, %v27147_v59  ;;  %24438 = vmatmul.mubr.msk.f32.vlgmr.msra.gmra.mxu0 %vm522_vm0, %v27143_v56 }
 0x15e   : > { %24341 = vmatprep.mubr.msk.f32.mxu1 %vm522_vm0, %v27135_v52  ;;  %24440 = vmatprep.mubr.msk.f32.mxu0 %vm522_vm0, %v27141_v54  ;;  %v471_v45 = vpop.f32.mrf.mxu0 }
 0x15f   : > { %24452 = vmatpush3.msra.mxu0 %v451_v18 }
 0x160   : > { %24467 = vmatprep.subr.mxu0 %v461_v20  ;;  %v27270_v47 = vpop.f32.mrf.mxu0 }
 0x161   : > { %24342 = vmatmul.mubr.msk.f32.vlgmr.msra.gmra.mxu1 %vm522_vm0, %v27143_v56  ;;  %24441 = vmatmul.mubr.msk.f32.gmra.mxu0 %vm522_vm0, %v27147_v59 }
 0x162   : > { %24348 = vmatpush3.msra.mxu1 %v27155_v62  ;;  %24344 = vmatprep.mubr.msk.f32.mxu1 %vm522_vm0, %v27141_v54  ;;  %v481_v49 = vpop.f32.mrf.mxu0 }
 0x163   : > { %24355 = vmatprep.subr.mxu1 %v27165_v1  ;;  %24453 = vmatprep.mubr.msk.f32.mxu0 %vm522_vm0, %v27135_v52 }
 0x164   : > { %v27290_v51 = vpop.f32.mrf.mxu0 }
 0x165   : > { %24345 = vmatmul.mubr.msk.f32.gmra.mxu1 %vm522_vm0, %v27147_v59  ;;  %24454 = vmatmul.mubr.msk.f32.vlgmr.msra.gmra.mxu0 %vm522_vm0, %v27143_v56 }
 0x166   : > { %24349 = vmatprep.mubr.msk.f32.mxu1 %vm522_vm0, %v27135_v52  ;;  %24456 = vmatprep.mubr.msk.f32.mxu0 %vm522_vm0, %v27141_v54  ;;  %v491_v53 = vpop.f32.mrf.mxu0 }
 0x167   : > { %24468 = vmatpush3.msra.mxu0 %v461_v20 }
 0x168   : > { %24483 = vmatprep.subr.mxu0 %v471_v45  ;;  %v27310_v55 = vpop.f32.mrf.mxu0 }
 0x169   : > { %24350 = vmatmul.mubr.msk.f32.vlgmr.msra.gmra.mxu1 %vm522_vm0, %v27143_v56  ;;  %24457 = vmatmul.mubr.msk.f32.gmra.mxu0 %vm522_vm0, %v27147_v59 }
 0x16a   : > { %24356 = vmatpush3.msra.mxu1 %v27165_v1  ;;  %24352 = vmatprep.mubr.msk.f32.mxu1 %vm522_vm0, %v27141_v54  ;;  %v501_v57 = vpop.f32.mrf.mxu0  ;;  %v5989_v1 = vld [vmem:[#allocation5 + $0xc8] sm:$0xff] }
 0x16b   : > { %24363 = vmatprep.subr.mxu1 %v27161_v0  ;;  %24469 = vmatprep.mubr.msk.f32.mxu0 %vm522_vm0, %v27135_v52 }
 0x16d   : > { %24353 = vmatmul.mubr.msk.f32.gmra.mxu1 %vm522_vm0, %v27147_v59  ;;  %24470 = vmatmul.mubr.msk.f32.vlgmr.msra.gmra.mxu0 %vm522_vm0, %v27143_v56 }
 0x16e   : > { %24357 = vmatprep.mubr.msk.f32.mxu1 %vm522_vm0, %v27135_v52  ;;  %24472 = vmatprep.mubr.msk.f32.mxu0 %vm522_vm0, %v27141_v54 }
 0x16f   : > { %24484 = vmatpush3.msra.mxu0 %v471_v45  ;;  %v5984_v45 = vld [vmem:[#allocation5 + $0xa0] sm:$0xff] }
 0x170   : > { %24499 = vmatprep.subr.mxu0 %v481_v49 }
 0x171   : > { %24358 = vmatmul.mubr.msk.f32.vlgmr.msra.gmra.mxu1 %vm522_vm0, %v27143_v56  ;;  %24473 = vmatmul.mubr.msk.f32.gmra.mxu0 %vm522_vm0, %v27147_v59 }
 0x172   : > { %24364 = vmatpush3.msra.mxu1 %v27161_v0  ;;  %24360 = vmatprep.mubr.msk.f32.mxu1 %vm522_vm0, %v27141_v54 }
 0x173   : > { %24371 = vmatprep.subr.mxu1 %v27173_v3  ;;  %24485 = vmatprep.mubr.msk.f32.mxu0 %vm522_vm0, %v27135_v52 }
 0x175   : > { %24361 = vmatmul.mubr.msk.f32.gmra.mxu1 %vm522_vm0, %v27147_v59  ;;  %24486 = vmatmul.mubr.msk.f32.vlgmr.msra.gmra.mxu0 %vm522_vm0, %v27143_v56 }
 0x176   : > { %24365 = vmatprep.mubr.msk.f32.mxu1 %vm522_vm0, %v27135_v52  ;;  %24488 = vmatprep.mubr.msk.f32.mxu0 %vm522_vm0, %v27141_v54 }
 0x177   : > { %24500 = vmatpush3.msra.mxu0 %v481_v49  ;;  %v5983_v49 = vld [vmem:[#allocation5 + $0x98] sm:$0xff] }
 0x178   : > { %24515 = vmatprep.subr.mxu0 %v491_v53 }
 0x179   : > { %24366 = vmatmul.mubr.msk.f32.vlgmr.msra.gmra.mxu1 %vm522_vm0, %v27143_v56  ;;  %24489 = vmatmul.mubr.msk.f32.gmra.mxu0 %vm522_vm0, %v27147_v59 }
 0x17a   : > { %24372 = vmatpush3.msra.mxu1 %v27173_v3  ;;  %24368 = vmatprep.mubr.msk.f32.mxu1 %vm522_vm0, %v27141_v54  ;;  %v5988_v3 = vld [vmem:[#allocation5 + $0xc0] sm:$0xff] }
 0x17b   : > { %24379 = vmatprep.subr.mxu1 %v27169_v2  ;;  %24501 = vmatprep.mubr.msk.f32.mxu0 %vm522_vm0, %v27135_v52 }
 0x17d   : > { %24369 = vmatmul.mubr.msk.f32.gmra.mxu1 %vm522_vm0, %v27147_v59  ;;  %24502 = vmatmul.mubr.msk.f32.vlgmr.msra.gmra.mxu0 %vm522_vm0, %v27143_v56 }
 0x17e   : > { %24373 = vmatprep.mubr.msk.f32.mxu1 %vm522_vm0, %v27135_v52  ;;  %24504 = vmatprep.mubr.msk.f32.mxu0 %vm522_vm0, %v27141_v54 }
 0x17f   : > { %24516 = vmatpush3.msra.mxu0 %v491_v53 }
 0x180   : > { %24531 = vmatprep.subr.mxu0 %v501_v57 }
 0x181   : > { %24374 = vmatmul.mubr.msk.f32.vlgmr.msra.gmra.mxu1 %vm522_vm0, %v27143_v56  ;;  %24505 = vmatmul.mubr.msk.f32.gmra.mxu0 %vm522_vm0, %v27147_v59 }
 0x182   : > { %24380 = vmatpush3.msra.mxu1 %v27169_v2  ;;  %24517 = vmatprep.mubr.msk.f32.mxu0 %vm522_vm0, %v27135_v52 }
 0x183   : > { %26483 = vmatprep.subr.mxu1 %v27181_v6  ;;  %24376 = vmatprep.mubr.msk.f32.mxu1 %vm522_vm0, %v27141_v54 }
 0x185   : > { %24377 = vmatmul.mubr.msk.f32.gmra.mxu1 %vm522_vm0, %v27147_v59  ;;  %24518 = vmatmul.mubr.msk.f32.vlgmr.msra.gmra.mxu0 %vm522_vm0, %v27143_v56 }
 0x186   : > { %24381 = vmatprep.mubr.msk.f32.mxu1 %vm522_vm0, %v27135_v52  ;;  %24520 = vmatprep.mubr.msk.f32.mxu0 %vm522_vm0, %v27141_v54 }
 0x187   : > { %24532 = vmatpush3.msra.mxu0 %v501_v57 }
 0x188   : > { %24547 = vmatprep.subr.mxu0 %v26999_v4 }
 0x189   : > { %24382 = vmatmul.mubr.msk.f32.vlgmr.msra.gmra.mxu1 %vm522_vm0, %v27143_v56  ;;  %24521 = vmatmul.mubr.msk.f32.gmra.mxu0 %vm522_vm0, %v27147_v59 }
 0x18a   : > { %26484 = vmatpush3.msra.mxu1 %v27181_v6  ;;  %24384 = vmatprep.mubr.msk.f32.mxu1 %vm522_vm0, %v27141_v54 }
 0x18b   : > { %24395 = vmatprep.subr.mxu1 %v27177_v5  ;;  %24533 = vmatprep.mubr.msk.f32.mxu0 %vm522_vm0, %v27135_v52 }
 0x18d   : > { %24385 = vmatmul.mubr.msk.f32.gmra.mxu1 %vm522_vm0, %v27147_v59  ;;  %24534 = vmatmul.mubr.msk.f32.vlgmr.msra.gmra.mxu0 %vm522_vm0, %v27143_v56 }
 0x18e   : > { %24392 = vmatprep.mubr.msk.f32.mxu1 %vm522_vm0, %v27141_v54  ;;  %24536 = vmatprep.mubr.msk.f32.mxu0 %vm522_vm0, %v27141_v54 }
 0x18f   : > { %24548 = vmatpush3.msra.mxu0 %v26999_v4 }
 0x190   : > { %24563 = vmatprep.subr.mxu0 %v27030_v22 }
 0x191   : > { %24393 = vmatmul.mubr.msk.f32.vlgmr.msra.gmra.mxu1 %vm522_vm0, %v27147_v59  ;;  %24537 = vmatmul.mubr.msk.f32.gmra.mxu0 %vm522_vm0, %v27147_v59 }
 0x192   : > { %24396 = vmatpush3.msra.mxu1 %v27177_v5  ;;  %24397 = vmatprep.mubr.msk.f32.mxu1 %vm522_vm0, %v27135_v52 }
 0x193   : > { %24411 = vmatprep.subr.mxu1 %v27186_v7  ;;  %24549 = vmatprep.mubr.msk.f32.mxu0 %vm522_vm0, %v27005_v10 }
 0x195   : > { %24398 = vmatmul.mubr.msk.f32.vlgmr.msra.gmra.mxu1 %vm522_vm0, %v27143_v56  ;;  %24550 = vmatmul.mubr.msk.f32.vlgmr.msra.gmra.mxu0 %vm522_vm0, %v27017_v13 }
 0x196   : > { %24412 = vmatpush3.msra.mxu1 %v27186_v7  ;;  %24400 = vmatprep.mubr.msk.f32.mxu1 %vm522_vm0, %v27141_v54  ;;  %v5987_v7 = vld [vmem:[#allocation5 + $0xb8] sm:$0xff] }
 0x197   : > { %24427 = vmatprep.subr.mxu1 %v27197_v9  ;;  %24552 = vmatprep.mubr.msk.f32.mxu0 %vm522_vm0, %v27011_v11 }
 0x198   : > { %24564 = vmatpush3.msra.mxu0 %v27030_v22 }
 0x199   : > { %24401 = vmatmul.mubr.msk.f32.gmra.mxu1 %vm522_vm0, %v27147_v59  ;;  %24553 = vmatmul.mubr.msk.f32.gmra.mxu0 %vm522_vm0, %v27022_v14 }
 0x19a   : > { %24413 = vmatprep.mubr.msk.f32.mxu1 %vm522_vm0, %v27135_v52  ;;  %24565 = vmatprep.mubr.msk.f32.mxu0 %vm522_vm0, %v27005_v10 }
 0x19b   : > { %24579 = vmatprep.subr.mxu0 %v27038_v24 }
 0x19d   : > { %24414 = vmatmul.mubr.msk.f32.vlgmr.msra.gmra.mxu1 %vm522_vm0, %v27143_v56  ;;  %24566 = vmatmul.mubr.msk.f32.vlgmr.msra.gmra.mxu0 %vm522_vm0, %v27017_v13 }
 0x19e   : > { %24428 = vmatpush3.msra.mxu1 %v27197_v9  ;;  %24416 = vmatprep.mubr.msk.f32.mxu1 %vm522_vm0, %v27141_v54 }
 0x19f   : > { %24443 = vmatprep.subr.mxu1 %v27207_v15  ;;  %24568 = vmatprep.mubr.msk.f32.mxu0 %vm522_vm0, %v27011_v11 }
 0x1a0   : > { %24580 = vmatpush3.msra.mxu0 %v27038_v24 }
 0x1a1   : > { %24417 = vmatmul.mubr.msk.f32.gmra.mxu1 %vm522_vm0, %v27147_v59  ;;  %24569 = vmatmul.mubr.msk.f32.gmra.mxu0 %vm522_vm0, %v27022_v14 }
 0x1a2   : > { %24429 = vmatprep.mubr.msk.f32.mxu1 %vm522_vm0, %v27135_v52  ;;  %24581 = vmatprep.mubr.msk.f32.mxu0 %vm522_vm0, %v27005_v10 }
 0x1a3   : > { %24595 = vmatprep.subr.mxu0 %v27046_v26 }
 0x1a5   : > { %24430 = vmatmul.mubr.msk.f32.vlgmr.msra.gmra.mxu1 %vm522_vm0, %v27143_v56  ;;  %24582 = vmatmul.mubr.msk.f32.vlgmr.msra.gmra.mxu0 %vm522_vm0, %v27017_v13 }
 0x1a6   : > { %24444 = vmatpush3.msra.mxu1 %v27207_v15  ;;  %24432 = vmatprep.mubr.msk.f32.mxu1 %vm522_vm0, %v27141_v54  ;;  %v5986_v15 = vld [vmem:[#allocation5 + $0xb0] sm:$0xff] }
 0x1a7   : > { %24459 = vmatprep.subr.mxu1 %v27217_v17  ;;  %24584 = vmatprep.mubr.msk.f32.mxu0 %vm522_vm0, %v27011_v11 }
 0x1a8   : > { %24596 = vmatpush3.msra.mxu0 %v27046_v26 }
 0x1a9   : > { %24433 = vmatmul.mubr.msk.f32.gmra.mxu1 %vm522_vm0, %v27147_v59  ;;  %24585 = vmatmul.mubr.msk.f32.gmra.mxu0 %vm522_vm0, %v27022_v14 }
 0x1aa   : > { %24445 = vmatprep.mubr.msk.f32.mxu1 %vm522_vm0, %v27135_v52  ;;  %24597 = vmatprep.mubr.msk.f32.mxu0 %vm522_vm0, %v27005_v10 }
 0x1ab   : > { %24611 = vmatprep.subr.mxu0 %v27054_v28 }
 0x1ad   : > { %24446 = vmatmul.mubr.msk.f32.vlgmr.msra.gmra.mxu1 %vm522_vm0, %v27143_v56  ;;  %24598 = vmatmul.mubr.msk.f32.vlgmr.msra.gmra.mxu0 %vm522_vm0, %v27017_v13 }
 0x1ae   : > { %24460 = vmatpush3.msra.mxu1 %v27217_v17  ;;  %24448 = vmatprep.mubr.msk.f32.mxu1 %vm522_vm0, %v27141_v54 }
 0x1af   : > { %24475 = vmatprep.subr.mxu1 %v27231_v19  ;;  %24600 = vmatprep.mubr.msk.f32.mxu0 %vm522_vm0, %v27011_v11 }
 0x1b0   : > { %24612 = vmatpush3.msra.mxu0 %v27054_v28 }
 0x1b1   : > { %24449 = vmatmul.mubr.msk.f32.gmra.mxu1 %vm522_vm0, %v27147_v59  ;;  %24601 = vmatmul.mubr.msk.f32.gmra.mxu0 %vm522_vm0, %v27022_v14 }
 0x1b2   : > { %24461 = vmatprep.mubr.msk.f32.mxu1 %vm522_vm0, %v27135_v52  ;;  %24613 = vmatprep.mubr.msk.f32.mxu0 %vm522_vm0, %v27005_v10 }
 0x1b3   : > { %24627 = vmatprep.subr.mxu0 %v27062_v30 }
 0x1b5   : > { %24462 = vmatmul.mubr.msk.f32.vlgmr.msra.gmra.mxu1 %vm522_vm0, %v27143_v56  ;;  %24614 = vmatmul.mubr.msk.f32.vlgmr.msra.gmra.mxu0 %vm522_vm0, %v27017_v13 }
 0x1b6   : > { %24476 = vmatpush3.msra.mxu1 %v27231_v19  ;;  %24464 = vmatprep.mubr.msk.f32.mxu1 %vm522_vm0, %v27141_v54  ;;  %v5985_v19 = vld [vmem:[#allocation5 + $0xa8] sm:$0xff] }
 0x1b7   : > { %24491 = vmatprep.subr.mxu1 %v27250_v43  ;;  %24616 = vmatprep.mubr.msk.f32.mxu0 %vm522_vm0, %v27011_v11 }
 0x1b8   : > { %24628 = vmatpush3.msra.mxu0 %v27062_v30 }
 0x1b9   : > { %24465 = vmatmul.mubr.msk.f32.gmra.mxu1 %vm522_vm0, %v27147_v59  ;;  %24617 = vmatmul.mubr.msk.f32.gmra.mxu0 %vm522_vm0, %v27022_v14 }
 0x1ba   : > { %24477 = vmatprep.mubr.msk.f32.mxu1 %vm522_vm0, %v27135_v52  ;;  %24629 = vmatprep.mubr.msk.f32.mxu0 %vm522_vm0, %v27005_v10 }
 0x1bb   : > { %24643 = vmatprep.subr.mxu0 %v27070_v32 }
 0x1bd   : > { %24478 = vmatmul.mubr.msk.f32.vlgmr.msra.gmra.mxu1 %vm522_vm0, %v27143_v56  ;;  %24630 = vmatmul.mubr.msk.f32.vlgmr.msra.gmra.mxu0 %vm522_vm0, %v27017_v13 }
 0x1be   : > { %24492 = vmatpush3.msra.mxu1 %v27250_v43  ;;  %24480 = vmatprep.mubr.msk.f32.mxu1 %vm522_vm0, %v27141_v54 }
 0x1bf   : > { %24507 = vmatprep.subr.mxu1 %v27270_v47  ;;  %24632 = vmatprep.mubr.msk.f32.mxu0 %vm522_vm0, %v27011_v11 }
 0x1c0   : > { %24644 = vmatpush3.msra.mxu0 %v27070_v32  ;;  %v5995_v32 = vld [vmem:[#allocation5 + $0xf8] sm:$0xff] }
 0x1c1   : > { %24481 = vmatmul.mubr.msk.f32.gmra.mxu1 %vm522_vm0, %v27147_v59  ;;  %24633 = vmatmul.mubr.msk.f32.gmra.mxu0 %vm522_vm0, %v27022_v14 }
 0x1c2   : > { %24493 = vmatprep.mubr.msk.f32.mxu1 %vm522_vm0, %v27135_v52  ;;  %24645 = vmatprep.mubr.msk.f32.mxu0 %vm522_vm0, %v27005_v10 }
 0x1c3   : > { %24659 = vmatprep.subr.mxu0 %v27078_v34 }
 0x1c5   : > { %24494 = vmatmul.mubr.msk.f32.vlgmr.msra.gmra.mxu1 %vm522_vm0, %v27143_v56  ;;  %24646 = vmatmul.mubr.msk.f32.vlgmr.msra.gmra.mxu0 %vm522_vm0, %v27017_v13 }
 0x1c6   : > { %24508 = vmatpush3.msra.mxu1 %v27270_v47  ;;  %24496 = vmatprep.mubr.msk.f32.mxu1 %vm522_vm0, %v27141_v54 }
 0x1c7   : > { %24523 = vmatprep.subr.mxu1 %v27290_v51  ;;  %24648 = vmatprep.mubr.msk.f32.mxu0 %vm522_vm0, %v27011_v11 }
 0x1c8   : > { %24660 = vmatpush3.msra.mxu0 %v27078_v34 }
 0x1c9   : > { %24497 = vmatmul.mubr.msk.f32.gmra.mxu1 %vm522_vm0, %v27147_v59  ;;  %24649 = vmatmul.mubr.msk.f32.gmra.mxu0 %vm522_vm0, %v27022_v14 }
 0x1ca   : > { %24509 = vmatprep.mubr.msk.f32.mxu1 %vm522_vm0, %v27135_v52  ;;  %24661 = vmatprep.mubr.msk.f32.mxu0 %vm522_vm0, %v27005_v10 }
 0x1cb   : > { %24675 = vmatprep.subr.mxu0 %v27086_v36 }
 0x1cd   : > { %24510 = vmatmul.mubr.msk.f32.vlgmr.msra.gmra.mxu1 %vm522_vm0, %v27143_v56  ;;  %24662 = vmatmul.mubr.msk.f32.vlgmr.msra.gmra.mxu0 %vm522_vm0, %v27017_v13 }
 0x1ce   : > { %24524 = vmatpush3.msra.mxu1 %v27290_v51  ;;  %24512 = vmatprep.mubr.msk.f32.mxu1 %vm522_vm0, %v27141_v54 }
 0x1cf   : > { %24539 = vmatprep.subr.mxu1 %v27310_v55  ;;  %24664 = vmatprep.mubr.msk.f32.mxu0 %vm522_vm0, %v27011_v11 }
 0x1d0   : > { %24676 = vmatpush3.msra.mxu0 %v27086_v36 }
 0x1d1   : > { %24513 = vmatmul.mubr.msk.f32.gmra.mxu1 %vm522_vm0, %v27147_v59  ;;  %24665 = vmatmul.mubr.msk.f32.gmra.mxu0 %vm522_vm0, %v27022_v14 }
 0x1d2   : > { %24525 = vmatprep.mubr.msk.f32.mxu1 %vm522_vm0, %v27135_v52  ;;  %24677 = vmatprep.mubr.msk.f32.mxu0 %vm522_vm0, %v27005_v10 }
 0x1d3   : > { %24691 = vmatprep.subr.mxu0 %v27094_v38 }
 0x1d5   : > { %24526 = vmatmul.mubr.msk.f32.vlgmr.msra.gmra.mxu1 %vm522_vm0, %v27143_v56  ;;  %24678 = vmatmul.mubr.msk.f32.vlgmr.msra.gmra.mxu0 %vm522_vm0, %v27017_v13 }
 0x1d6   : > { %24540 = vmatpush3.msra.mxu1 %v27310_v55  ;;  %24528 = vmatprep.mubr.msk.f32.mxu1 %vm522_vm0, %v27141_v54  ;;  %v5982_v55 = vld [vmem:[#allocation5 + $0x90] sm:$0xff] }
 0x1d7   : > { %24680 = vmatprep.mubr.msk.f32.mxu0 %vm522_vm0, %v27011_v11  ;;  %24692 = vmatpush3.msra.mxu0 %v27094_v38 }
 0x1d8   : > { %24555 = vmatprep.subr.mxu1 %v27027_v21  ;;  %24707 = vmatprep.subr.mxu0 %v27102_v40 }
 0x1d9   : > { %24529 = vmatmul.mubr.msk.f32.gmra.mxu1 %vm522_vm0, %v27147_v59  ;;  %24681 = vmatmul.mubr.msk.f32.gmra.mxu0 %vm522_vm0, %v27022_v14 }
 0x1da   : > { %24541 = vmatprep.mubr.msk.f32.mxu1 %vm522_vm0, %v27135_v52  ;;  %24693 = vmatprep.mubr.msk.f32.mxu0 %vm522_vm0, %v27005_v10 }
 0x1dd   : > { %24542 = vmatmul.mubr.msk.f32.vlgmr.msra.gmra.mxu1 %vm522_vm0, %v27143_v56  ;;  %24694 = vmatmul.mubr.msk.f32.vlgmr.msra.gmra.mxu0 %vm522_vm0, %v27017_v13 }
 0x1de   : > { %24544 = vmatprep.mubr.msk.f32.mxu1 %vm522_vm0, %v27141_v54  ;;  %24696 = vmatprep.mubr.msk.f32.mxu0 %vm522_vm0, %v27011_v11 }
 0x1df   : > { %24556 = vmatpush3.msra.mxu1 %v27027_v21  ;;  %24708 = vmatpush3.msra.mxu0 %v27102_v40 }
 0x1e0   : > { %24571 = vmatprep.subr.mxu1 %v27035_v23  ;;  %24723 = vmatprep.subr.mxu0 %v27110_v42 }
 0x1e1   : > { %24545 = vmatmul.mubr.msk.f32.gmra.mxu1 %vm522_vm0, %v27147_v59  ;;  %24697 = vmatmul.mubr.msk.f32.gmra.mxu0 %vm522_vm0, %v27022_v14 }
 0x1e2   : > { %24557 = vmatprep.mubr.msk.f32.mxu1 %vm522_vm0, %v27005_v10  ;;  %24709 = vmatprep.mubr.msk.f32.mxu0 %vm522_vm0, %v27005_v10 }
 0x1e5   : > { %24558 = vmatmul.mubr.msk.f32.vlgmr.msra.gmra.mxu1 %vm522_vm0, %v27017_v13  ;;  %24710 = vmatmul.mubr.msk.f32.vlgmr.msra.gmra.mxu0 %vm522_vm0, %v27017_v13 }
 0x1e6   : > { %24560 = vmatprep.mubr.msk.f32.mxu1 %vm522_vm0, %v27011_v11  ;;  %24712 = vmatprep.mubr.msk.f32.mxu0 %vm522_vm0, %v27011_v11 }
 0x1e7   : > { %24572 = vmatpush3.msra.mxu1 %v27035_v23  ;;  %24724 = vmatpush3.msra.mxu0 %v27110_v42  ;;  %v5994_v42 = vld [vmem:[#allocation5 + $0xf0] sm:$0xff] }
 0x1e8   : > { %24587 = vmatprep.subr.mxu1 %v27043_v25  ;;  %24739 = vmatprep.subr.mxu0 %v27116_v44 }
 0x1e9   : > { %24561 = vmatmul.mubr.msk.f32.gmra.mxu1 %vm522_vm0, %v27022_v14  ;;  %24713 = vmatmul.mubr.msk.f32.gmra.mxu0 %vm522_vm0, %v27022_v14 }
 0x1ea   : > { %24573 = vmatprep.mubr.msk.f32.mxu1 %vm522_vm0, %v27005_v10  ;;  %24725 = vmatprep.mubr.msk.f32.mxu0 %vm522_vm0, %v27005_v10 }
 0x1ed   : > { %24574 = vmatmul.mubr.msk.f32.vlgmr.msra.gmra.mxu1 %vm522_vm0, %v27017_v13  ;;  %24726 = vmatmul.mubr.msk.f32.vlgmr.msra.gmra.mxu0 %vm522_vm0, %v27017_v13 }
 0x1ee   : > { %24576 = vmatprep.mubr.msk.f32.mxu1 %vm522_vm0, %v27011_v11  ;;  %24728 = vmatprep.mubr.msk.f32.mxu0 %vm522_vm0, %v27011_v11 }
 0x1ef   : > { %24588 = vmatpush3.msra.mxu1 %v27043_v25  ;;  %24740 = vmatpush3.msra.mxu0 %v27116_v44 }
 0x1f0   : > { %24603 = vmatprep.subr.mxu1 %v27051_v27  ;;  %24755 = vmatprep.subr.mxu0 %v27121_v46 }
 0x1f1   : > { %v27607_v4 = vpop.f32.mrf.mxu1  ;;  %24577 = vmatmul.mubr.msk.f32.gmra.mxu1 %vm522_vm0, %v27022_v14  ;;  %24729 = vmatmul.mubr.msk.f32.gmra.mxu0 %vm522_vm0, %v27022_v14 }
 0x1f2   : > { %24589 = vmatprep.mubr.msk.f32.mxu1 %vm522_vm0, %v27005_v10  ;;  %24741 = vmatprep.mubr.msk.f32.mxu0 %vm522_vm0, %v27005_v10 }
 0x1f3   : > { %v27617_v21 = vpop.f32.mrf.mxu1 }
 0x1f4   : > { %32515 = vst [vmem:[#allocation11_spill] sm:$0xff] %v27617_v21  ;;  %v26590_v21 = vld [vmem:[%s26988_s13 + $0xf0] sm:$0xff] }
 0x1f5   : > { %v27619_v22 = vpop.f32.mrf.mxu1  ;;  %24590 = vmatmul.mubr.msk.f32.vlgmr.msra.gmra.mxu1 %vm522_vm0, %v27017_v13  ;;  %24742 = vmatmul.mubr.msk.f32.vlgmr.msra.gmra.mxu0 %vm522_vm0, %v27017_v13 }
 0x1f6   : > { %24592 = vmatprep.mubr.msk.f32.mxu1 %vm522_vm0, %v27011_v11  ;;  %24744 = vmatprep.mubr.msk.f32.mxu0 %vm522_vm0, %v27011_v11 }
 0x1f7   : > { %v27629_v23 = vpop.f32.mrf.mxu1  ;;  %24604 = vmatpush3.msra.mxu1 %v27051_v27  ;;  %24756 = vmatpush3.msra.mxu0 %v27121_v46 }
 0x1f8   : > { %32516 = vst [vmem:[#allocation12_spill] sm:$0xff] %v27629_v23  ;;  %24619 = vmatprep.subr.mxu1 %v27059_v29  ;;  %24771 = vmatprep.subr.mxu0 %v27126_v48 }
 0x1f9   : > { %v27635_v24 = vpop.f32.mrf.mxu1  ;;  %24593 = vmatmul.mubr.msk.f32.gmra.mxu1 %vm522_vm0, %v27022_v14  ;;  %24745 = vmatmul.mubr.msk.f32.gmra.mxu0 %vm522_vm0, %v27022_v14 }
 0x1fa   : > { %24605 = vmatprep.mubr.msk.f32.mxu1 %vm522_vm0, %v27005_v10  ;;  %24757 = vmatprep.mubr.msk.f32.mxu0 %vm522_vm0, %v27005_v10 }
 0x1fb   : > { %v27645_v25 = vpop.f32.mrf.mxu1 }
 0x1fc   : > { %32517 = vst [vmem:[#allocation13_spill] sm:$0xff] %v27645_v25 }
 0x1fd   : > { %v27647_v26 = vpop.f32.mrf.mxu1  ;;  %24606 = vmatmul.mubr.msk.f32.vlgmr.msra.gmra.mxu1 %vm522_vm0, %v27017_v13  ;;  %24758 = vmatmul.mubr.msk.f32.vlgmr.msra.gmra.mxu0 %vm522_vm0, %v27017_v13 }
 0x1fe   : > { %24608 = vmatprep.mubr.msk.f32.mxu1 %vm522_vm0, %v27011_v11  ;;  %24760 = vmatprep.mubr.msk.f32.mxu0 %vm522_vm0, %v27011_v11 }
 0x1ff   : > { %v27657_v27 = vpop.f32.mrf.mxu1  ;;  %24620 = vmatpush3.msra.mxu1 %v27059_v29  ;;  %24772 = vmatpush3.msra.mxu0 %v27126_v48  ;;  %v5993_v48 = vld [vmem:[#allocation5 + $0xe8] sm:$0xff] }
 0x200   : > { %32518 = vst [vmem:[#allocation14_spill] sm:$0xff] %v27657_v27  ;;  %24787 = vmatprep.subr.mxu0 %v27131_v50  ;;  %24635 = vmatprep.subr.mxu1 %v27067_v31 }
 0x201   : > { %v27663_v28 = vpop.f32.mrf.mxu1  ;;  %24609 = vmatmul.mubr.msk.f32.gmra.mxu1 %vm522_vm0, %v27022_v14  ;;  %24761 = vmatmul.mubr.msk.f32.gmra.mxu0 %vm522_vm0, %v27022_v14 }
 0x202   : > { %24621 = vmatprep.mubr.msk.f32.mxu1 %vm522_vm0, %v27005_v10  ;;  %24773 = vmatprep.mubr.msk.f32.mxu0 %vm522_vm0, %v27005_v10 }
 0x203   : > { %v27673_v29 = vpop.f32.mrf.mxu1 }
 0x204   : > { %32519 = vst [vmem:[#allocation15_spill] sm:$0xff] %v27673_v29 }
 0x205   : > { %v27677_v30 = vpop.f32.mrf.mxu1  ;;  %24622 = vmatmul.mubr.msk.f32.vlgmr.msra.gmra.mxu1 %vm522_vm0, %v27017_v13  ;;  %24774 = vmatmul.mubr.msk.f32.vlgmr.msra.gmra.mxu0 %vm522_vm0, %v27017_v13 }
 0x206   : > { %24624 = vmatprep.mubr.msk.f32.mxu1 %vm522_vm0, %v27011_v11  ;;  %24776 = vmatprep.mubr.msk.f32.mxu0 %vm522_vm0, %v27011_v11 }
 0x207   : > { %v27687_v34 = vpop.f32.mrf.mxu1  ;;  %24788 = vmatpush3.msra.mxu0 %v27131_v50  ;;  %24636 = vmatpush3.msra.mxu1 %v27067_v31 }
 0x208   : > { %32520 = vst [vmem:[#allocation16_spill] sm:$0xff] %v27687_v34  ;;  %24803 = vmatprep.subr.mxu0 %v5995_v32  ;;  %24651 = vmatprep.subr.mxu1 %v27075_v33 }
 0x209   : > { %v27692_v36 = vpop.f32.mrf.mxu1  ;;  %v27694_v38 = vpop.f32.mrf.mxu0  ;;  %24625 = vmatmul.mubr.msk.f32.gmra.mxu1 %vm522_vm0, %v27022_v14  ;;  %24777 = vmatmul.mubr.msk.f32.gmra.mxu0 %vm522_vm0, %v27022_v14 }
 0x20a   : > { %32521 = vst [vmem:[#allocation17_spill] sm:$0xff] %v27694_v38  ;;  %24637 = vmatprep.mubr.msk.f32.mxu1 %vm522_vm0, %v27005_v10  ;;  %24789 = vmatprep.mubr.msk.f32.mxu0 %vm522_vm0, %v27005_v10 }
 0x20b   : > { %v27704_v31 = vpop.f32.mrf.mxu1  ;;  %v27706_v40 = vpop.f32.mrf.mxu0 }
 0x20c   : > { %32522 = vst [vmem:[#allocation18_spill] sm:$0xff] %v27704_v31  ;;  %32523 = vst [vmem:[#allocation19_spill] sm:$0xff] %v27706_v40  ;;  %v26574_v31 = vld [vmem:[%s26988_s13 + $0x58] sm:$0xff] }
 0x20d   : > { %v27710_v44 = vpop.f32.mrf.mxu1  ;;  %v27712_v46 = vpop.f32.mrf.mxu0  ;;  %24638 = vmatmul.mubr.msk.f32.vlgmr.msra.gmra.mxu1 %vm522_vm0, %v27017_v13  ;;  %24790 = vmatmul.mubr.msk.f32.vlgmr.msra.gmra.mxu0 %vm522_vm0, %v27017_v13 }
 0x20e   : > { %32524 = vst [vmem:[#allocation20_spill] sm:$0xff] %v27712_v46  ;;  %24804 = vmatpush3.msra.mxu0 %v5995_v32  ;;  %24640 = vmatprep.mubr.msk.f32.mxu1 %vm522_vm0, %v27011_v11 }
 0x20f   : > { %24805 = vmatprep.subr.mxu0 %v5994_v42  ;;  %v27720_v50 = vpop.f32.mrf.mxu1  ;;  %v27722_v52 = vpop.f32.mrf.mxu0  ;;  %24792 = vmatprep.mubr.msk.f32.mxu0 %vm522_vm0, %v27011_v11 }
 0x210   : > { %32525 = vst [vmem:[#allocation21_spill] sm:$0xff] %v27720_v50  ;;  %32526 = vst [vmem:[#allocation22_spill] sm:$0xff] %v27722_v52  ;;  %24806 = vmatpush3.msra.mxu0 %v5994_v42  ;;  %24652 = vmatpush3.msra.mxu1 %v27075_v33  ;;  %v5991_v33 = vld [vmem:[#allocation5 + $0xd8] sm:$0xff]  ;;  %v5981_v42 = vld [vmem:[#allocation5 + $0x88] sm:$0xff] }
 0x211   : > { %24807 = vmatprep.subr.mxu0 %v5993_v48  ;;  %v27727_v54 = vpop.f32.mrf.mxu1  ;;  %v27729_v56 = vpop.f32.mrf.mxu0  ;;  %24641 = vmatmul.mubr.msk.f32.gmra.mxu1 %vm522_vm0, %v27022_v14 }
 0x212   : > { %32527 = vst [vmem:[#allocation23_spill] sm:$0xff] %v27729_v56  ;;  %24793 = vmatmul.mubr.msk.f32.gmra.mxu0 %vm522_vm0, %v27022_v14  ;;  %24653 = vmatprep.mubr.msk.f32.mxu1 %vm522_vm0, %v27005_v10  ;;  %v5990_v10 = vld [vmem:[#allocation5 + $0xd0] sm:$0xff] }
 0x213   : > { %24808 = vmatpush3.msra.mxu0 %v5993_v48  ;;  %v27737_v59 = vpop.f32.mrf.mxu1  ;;  %v27739_v60 = vpop.f32.mrf.mxu0  ;;  %24667 = vmatprep.subr.mxu1 %v27083_v35 }
 0x214   : > { %32528 = vst [vmem:[#allocation24_spill] sm:$0xff] %v27737_v59  ;;  %32529 = vst [vmem:[#allocation25_spill] sm:$0xff] %v27739_v60  ;;  %24809 = vmatprep.subr.mxu0 %v5992_v58  ;;  %24835 = vmatprep.mubr.f32.mxu0 %v26555_v61 }
 0x215   : > { %24810 = vmatpush3.msra.mxu0 %v5992_v58  ;;  %v27743_v62 = vpop.f32.mrf.mxu1  ;;  %v27745_v63 = vpop.f32.mrf.mxu0  ;;  %24654 = vmatmul.mubr.msk.f32.vlgmr.msra.gmra.mxu1 %vm522_vm0, %v27017_v13 }
 0x216   : > { %32530 = vst [vmem:[#allocation26_spill] sm:$0xff] %v27745_v63  ;;  %24811 = vmatprep.subr.mxu0 %v5991_v33  ;;  %24656 = vmatprep.mubr.msk.f32.mxu1 %vm522_vm0, %v27011_v11  ;;  %v27764_v11 = vld [vmem:[%s32478_s2 + $0x18] sm:$0xff] }
 0x217   : > { %24812 = vmatpush3.msra.mxu0 %v5991_v33  ;;  %v27751_v14 = vpop.f32.mrf.mxu1  ;;  %v27753_v0 = vpop.f32.mrf.mxu0  ;;  %24668 = vmatpush3.msra.mxu1 %v27083_v35  ;;  %v27771_v35 = vld [vmem:[%s32478_s2] sm:$0xff] }
 0x218   : > { %32531 = vst [vmem:[#allocation27_spill] sm:$0xff] %v27751_v14  ;;  %32532 = vst [vmem:[#allocation28_spill] sm:$0xff] %v27753_v0  ;;  %24813 = vmatprep.subr.mxu0 %v5990_v10  ;;  %24683 = vmatprep.subr.mxu1 %v27091_v37  ;;  %v5980_v33 = vld [vmem:[#allocation5 + $0x80] sm:$0xff] }
 0x219   : > { %24814 = vmatpush3.msra.mxu0 %v5990_v10  ;;  %v27757_v2 = vpop.f32.mrf.mxu1  ;;  %v27759_v13 = vpop.f32.mrf.mxu0  ;;  %24657 = vmatmul.mubr.msk.f32.gmra.mxu1 %vm522_vm0, %v27764_v11  ;;  %v26585_v14 = vld [vmem:[%s26988_s13 + $0xa0] sm:$0xff] }
 0x21a   : > { %32533 = vst [vmem:[#allocation29_spill] sm:$0xff] %v27759_v13  ;;  %24815 = vmatprep.subr.mxu0 %v5989_v1  ;;  %24669 = vmatprep.mubr.msk.f32.mxu1 %vm522_vm0, %v27771_v35 }
 0x21b   : > { %24816 = vmatpush3.msra.mxu0 %v5989_v1  ;;  %v27775_v5 = vpop.f32.mrf.mxu1  ;;  %v27777_v6 = vpop.f32.mrf.mxu0  ;;  %v26560_v1 = vld [vmem:[%s26988_s13 + $0x8] sm:$0xff] }
 0x21c   : > { %32534 = vst [vmem:[#allocation30_spill] sm:$0xff] %v27775_v5  ;;  %32535 = vst [vmem:[#allocation31_spill] sm:$0xff] %v27777_v6  ;;  %24817 = vmatprep.subr.mxu0 %v5988_v3  ;;  %v26569_v6 = vld [vmem:[%s26988_s13 + $0x38] sm:$0xff]  ;;  %v26571_v5 = vld [vmem:[%s26988_s13 + $0x48] sm:$0xff] }
 0x21d   : > { %24818 = vmatpush3.msra.mxu0 %v5988_v3  ;;  %v27779_v8 = vpop.f32.mrf.mxu1  ;;  %v27781_v9 = vpop.f32.mrf.mxu0  ;;  %24670 = vmatmul.mubr.msk.f32.vlgmr.msra.gmra.mxu1 %vm522_vm0, %v27786_v12 }
 0x21e   : > { %32536 = vst [vmem:[#allocation32_spill] sm:$0xff] %v27781_v9  ;;  %24819 = vmatprep.subr.mxu0 %v5987_v7  ;;  %24672 = vmatprep.mubr.msk.f32.mxu1 %vm522_vm0, %v27793_v16 }
 0x21f   : > { %24820 = vmatpush3.msra.mxu0 %v5987_v7  ;;  %v27797_v17 = vpop.f32.mrf.mxu1  ;;  %v27799_v18 = vpop.f32.mrf.mxu0  ;;  %24684 = vmatpush3.msra.mxu1 %v27091_v37 }
 0x220   : > { %32537 = vst [vmem:[#allocation33_spill] sm:$0xff] %v27797_v17  ;;  %32538 = vst [vmem:[#allocation34_spill] sm:$0xff] %v27799_v18  ;;  %24821 = vmatprep.subr.mxu0 %v5986_v15  ;;  %24699 = vmatprep.subr.mxu1 %v27099_v39 }
 0x221   : > { %24822 = vmatpush3.msra.mxu0 %v5986_v15  ;;  %v27803_v20 = vpop.f32.mrf.mxu1  ;;  %v27805_v43 = vpop.f32.mrf.mxu0  ;;  %24673 = vmatmul.mubr.msk.f32.gmra.mxu1 %vm522_vm0, %v27764_v11  ;;  %v26561_v15 = vld [vmem:[%s26988_s13 + $0x10] sm:$0xff] }
 0x222   : > { %32539 = vst [vmem:[#allocation35_spill] sm:$0xff] %v27805_v43  ;;  %24823 = vmatprep.subr.mxu0 %v5985_v19  ;;  %24685 = vmatprep.mubr.msk.f32.mxu1 %vm522_vm0, %v27771_v35 }
 0x223   : > { %24824 = vmatpush3.msra.mxu0 %v5985_v19  ;;  %v27811_v47 = vpop.f32.mrf.mxu1  ;;  %v27813_v37 = vpop.f32.mrf.mxu0  ;;  %v27856_v19 = vld [vmem:[%s26988_s13 + $0xa8] sm:$0xff] }
 0x224   : > { %32540 = vst [vmem:[#allocation36_spill] sm:$0xff] %v27811_v47  ;;  %32541 = vst [vmem:[#allocation37_spill] sm:$0xff] %v27813_v37  ;;  %24825 = vmatprep.subr.mxu0 %v5984_v45 }
 0x225   : > { %24826 = vmatpush3.msra.mxu0 %v5984_v45  ;;  %v27815_v51 = vpop.f32.mrf.mxu1  ;;  %v27817_v53 = vpop.f32.mrf.mxu0  ;;  %24686 = vmatmul.mubr.msk.f32.vlgmr.msra.gmra.mxu1 %vm522_vm0, %v27786_v12  ;;  %v27860_v45 = vld [vmem:[%s26988_s13 + $0xb8] sm:$0xff] }
 0x226   : > { %32542 = vst [vmem:[#allocation38_spill] sm:$0xff] %v27817_v53  ;;  %24827 = vmatprep.subr.mxu0 %v5983_v49  ;;  %24688 = vmatprep.mubr.msk.f32.mxu1 %vm522_vm0, %v27793_v16 }
 0x227   : > { %24828 = vmatpush3.msra.mxu0 %v5983_v49  ;;  %v27823_v57 = vpop.f32.mrf.mxu1  ;;  %v27825_v32 = vpop.f32.mrf.mxu0  ;;  %24700 = vmatpush3.msra.mxu1 %v27099_v39 }
 0x228   : > { %32543 = vst [vmem:[#allocation39_spill] sm:$0xff] %v27823_v57  ;;  %32544 = vst [vmem:[#allocation40_spill] sm:$0xff] %v27825_v32  ;;  %24829 = vmatprep.subr.mxu0 %v5982_v55  ;;  %24715 = vmatprep.subr.mxu1 %v27107_v41  ;;  %v26566_v32 = vld [vmem:[%s26988_s13 + $0x28] sm:$0xff] }
 0x229   : > { %24830 = vmatpush3.msra.mxu0 %v5982_v55  ;;  %v27829_v48 = vpop.f32.mrf.mxu1  ;;  %v27831_v58 = vpop.f32.mrf.mxu0  ;;  %24689 = vmatmul.mubr.msk.f32.gmra.mxu1 %vm522_vm0, %v27764_v11 }
 0x22a   : > { %32545 = vst [vmem:[#allocation41_spill] sm:$0xff] %v27831_v58  ;;  %24831 = vmatprep.subr.mxu0 %v5981_v42  ;;  %24701 = vmatprep.mubr.msk.f32.mxu1 %vm522_vm0, %v27771_v35 }
 0x22b   : > { %24832 = vmatpush3.msra.mxu0 %v5981_v42  ;;  %v27837_v39 = vpop.f32.mrf.mxu1  ;;  %v27839_v41 = vpop.f32.mrf.mxu0  ;;  %v26564_v42 = vld [vmem:[%s26988_s13 + $0x18] sm:$0xff] }
 0x22c   : > { %32546 = vst [vmem:[#allocation42_spill] sm:$0xff] %v27837_v39  ;;  %32547 = vst [vmem:[#allocation43_spill] sm:$0xff] %v27839_v41  ;;  %24833 = vmatprep.subr.mxu0 %v5980_v33 }
 0x22d   : > { %24834 = vmatpush3.msra.mxu0 %v5980_v33  ;;  %v27841_v61 = vpop.f32.mrf.mxu1  ;;  %v27843_v10 = vpop.f32.mrf.mxu0  ;;  %24702 = vmatmul.mubr.msk.f32.vlgmr.msra.gmra.mxu1 %vm522_vm0, %v27786_v12 }
 0x22e   : > { %32548 = vst [vmem:[#allocation44_spill] sm:$0xff] %v27841_v61  ;;  %32549 = vst [vmem:[#allocation45_spill] sm:$0xff] %v27843_v10  ;;  %24836 = vmatmul.mubr.f32.vlgmr.msra.gmra.mxu0 %v26560_v1  ;;  %24704 = vmatprep.mubr.msk.f32.mxu1 %vm522_vm0, %v27793_v16 }
 0x22f   : > { %v27850_v3 = vpop.f32.mrf.mxu1  ;;  %v27852_v7 = vpop.f32.mrf.mxu0  ;;  %24838 = vmatprep.mubr.f32.mxu0 %v26561_v15  ;;  %24716 = vmatpush3.msra.mxu1 %v27856_v19  ;;  %v26565_v15 = vld [vmem:[%s26988_s13 + $0x20] sm:$0xff] }
 0x230   : > { %32550 = vst [vmem:[#allocation46_spill] sm:$0xff] %v27850_v3  ;;  %32551 = vst [vmem:[#allocation47_spill] sm:$0xff] %v27852_v7  ;;  %24731 = vmatprep.subr.mxu1 %v27860_v45  ;;  %v26570_v3 = vld [vmem:[%s26988_s13 + $0x40] sm:$0xff] }
 0x231   : > { %v27863_v49 = vpop.f32.mrf.mxu1  ;;  %v27865_v55 = vpop.f32.mrf.mxu0  ;;  %24705 = vmatmul.mubr.msk.f32.gmra.mxu1 %vm522_vm0, %v27764_v11 }
 0x232   : > { %32552 = vst [vmem:[#allocation48_spill] sm:$0xff] %v27863_v49  ;;  %32553 = vst [vmem:[#allocation49_spill] sm:$0xff] %v27865_v55  ;;  %24839 = vmatmul.mubr.f32.gmra.mxu0 %v26564_v42  ;;  %24717 = vmatprep.mubr.msk.f32.mxu1 %vm522_vm0, %v27771_v35 }
 0x233   : > { %v27872_v33 = vpop.f32.mrf.mxu1  ;;  %v27874_v1 = vpop.f32.mrf.mxu0  ;;  %24841 = vmatprep.mubr.f32.mxu0 %v26565_v15  ;;  %v27893_v15 = vld [vmem:[%s26988_s13 + $0xc8] sm:$0xff] }
 0x234   : > { %32554 = vst [vmem:[#allocation50_spill] sm:$0xff] %v27872_v33  ;;  %32555 = vst [vmem:[#allocation51_spill] sm:$0xff] %v27874_v1  ;;  %v26567_v1 = vld [vmem:[%s26988_s13 + $0x30] sm:$0xff] }
 0x235   : > { %v27877_v7 = vpop.f32.mrf.mxu1  ;;  %v27879_v41 = vpop.f32.mrf.mxu0  ;;  %24718 = vmatmul.mubr.msk.f32.vlgmr.msra.gmra.mxu1 %vm522_vm0, %v27786_v12  ;;  %v26583_v33 = vld [vmem:[%s26988_s13 + $0x90] sm:$0xff] }
 0x236   : > { %32556 = vst [vmem:[#allocation52_spill] sm:$0xff] %v27877_v7  ;;  %32557 = vst [vmem:[#allocation53_spill] sm:$0xff] %v27879_v41  ;;  %24842 = vmatmul.mubr.f32.gmra.mxu0 %v26566_v32  ;;  %24720 = vmatprep.mubr.msk.f32.mxu1 %vm522_vm0, %v27793_v16 }
 0x237   : > { %v27886_v42 = vpop.f32.mrf.mxu1  ;;  %v27888_v37 = vpop.f32.mrf.mxu0  ;;  %24844 = vmatprep.mubr.f32.mxu0 %v26567_v1  ;;  %24732 = vmatpush3.msra.mxu1 %v27860_v45 }
 0x238   : > { %32558 = vst [vmem:[#allocation54_spill] sm:$0xff] %v27886_v42  ;;  %32559 = vst [vmem:[#allocation55_spill] sm:$0xff] %v27888_v37  ;;  %24747 = vmatprep.subr.mxu1 %v27893_v15 }
 0x239   : > { %v27896_v18 = vpop.f32.mrf.mxu1  ;;  %v27898_v32 = vpop.f32.mrf.mxu0  ;;  %24721 = vmatmul.mubr.msk.f32.gmra.mxu1 %vm522_vm0, %v27764_v11 }
 0x23a   : > { %32560 = vst [vmem:[#allocation56_spill] sm:$0xff] %v27896_v18  ;;  %32561 = vst [vmem:[#allocation57_spill] sm:$0xff] %v27898_v32  ;;  %24845 = vmatmul.mubr.f32.gmra.mxu0 %v26569_v6  ;;  %24733 = vmatprep.mubr.msk.f32.mxu1 %vm522_vm0, %v27771_v35 }
 0x23b   : > { %v27905_v1 = vpop.f32.mrf.mxu1  ;;  %v27907_v37 = vpop.f32.mrf.mxu0  ;;  %24847 = vmatprep.mubr.f32.mxu0 %v26570_v3  ;;  %v27926_v3 = vld [vmem:[%s26988_s13 + $0xd8] sm:$0xff] }
 0x23c   : > { %32562 = vst [vmem:[#allocation58_spill] sm:$0xff] %v27905_v1  ;;  %32563 = vst [vmem:[#allocation59_spill] sm:$0xff] %v27907_v37  ;;  %v26572_v37 = vld [vmem:[%s26988_s13 + $0x50] sm:$0xff] }
 0x23d   : > { %v27910_v39 = vpop.f32.mrf.mxu1  ;;  %v27912_v17 = vpop.f32.mrf.mxu0  ;;  %24734 = vmatmul.mubr.msk.f32.vlgmr.msra.gmra.mxu1 %vm522_vm0, %v27786_v12 }
 0x23e   : > { %32564 = vst [vmem:[#allocation60_spill] sm:$0xff] %v27910_v39  ;;  %32565 = vst [vmem:[#allocation61_spill] sm:$0xff] %v27912_v17  ;;  %24848 = vmatmul.mubr.f32.gmra.mxu0 %v26571_v5  ;;  %24736 = vmatprep.mubr.msk.f32.mxu1 %vm522_vm0, %v27793_v16 }
 0x23f   : > { %v27919_v6 = vpop.f32.mrf.mxu1  ;;  %v27921_v1 = vpop.f32.mrf.mxu0  ;;  %24850 = vmatprep.mubr.f32.mxu0 %v26572_v37  ;;  %24748 = vmatpush3.msra.mxu1 %v27893_v15 }
 0x240   : > { %32566 = vst [vmem:[#allocation62_spill] sm:$0xff] %v27919_v6  ;;  %32567 = vst [vmem:[#allocation63_spill] sm:$0xff] %v27921_v1  ;;  %24763 = vmatprep.subr.mxu1 %v27926_v3  ;;  %v26575_v6 = vld [vmem:[%s26988_s13 + $0x60] sm:$0xff] }
 0x241   : > { %v27929_v50 = vpop.f32.mrf.mxu1  ;;  %v27931_v5 = vpop.f32.mrf.mxu0  ;;  %24737 = vmatmul.mubr.msk.f32.gmra.mxu1 %vm522_vm0, %v27764_v11 }
 0x242   : > { %32568 = vst [vmem:[#allocation64_spill] sm:$0xff] %v27931_v5  ;;  %24851 = vmatmul.mubr.f32.gmra.mxu0 %v26574_v31  ;;  %24749 = vmatprep.mubr.msk.f32.mxu1 %vm522_vm0, %v27771_v35  ;;  %v26576_v31 = vld [vmem:[%s26988_s13 + $0x68] sm:$0xff] }
 0x243   : > { %v27938_v37 = vpop.f32.mrf.mxu1  ;;  %v27940_v1 = vpop.f32.mrf.mxu0  ;;  %24853 = vmatprep.mubr.f32.mxu0 %v26575_v6  ;;  %v26577_v6 = vld [vmem:[%s26988_s13 + $0x70] sm:$0xff] }
 0x244   : > { %32569 = vst [vmem:[#allocation65_spill] sm:$0xff] %v27938_v37  ;;  %32570 = vst [vmem:[#allocation66_spill] sm:$0xff] %v27940_v1  ;;  %v27959_v1 = vld [vmem:[%s26988_s13 + $0xe8] sm:$0xff] }
 0x245   : > { %v27943_v27 = vpop.f32.mrf.mxu1  ;;  %v27945_v25 = vpop.f32.mrf.mxu0  ;;  %24750 = vmatmul.mubr.msk.f32.vlgmr.msra.gmra.mxu1 %vm522_vm0, %v27786_v12 }
 0x246   : > { %32571 = vst [vmem:[#allocation67_spill] sm:$0xff] %v27945_v25  ;;  %24752 = vmatprep.mubr.msk.f32.mxu1 %vm522_vm0, %v27793_v16  ;;  %24854 = vmatmul.mubr.f32.gmra.mxu0 %v26576_v31  ;;  %v26579_v31 = vld [vmem:[%s26988_s13 + $0x78] sm:$0xff] }
 0x247   : > { %v27952_v0 = vpop.f32.mrf.mxu1  ;;  %v27954_v60 = vpop.f32.mrf.mxu0  ;;  %24764 = vmatpush3.msra.mxu1 %v27926_v3  ;;  %24856 = vmatprep.mubr.f32.mxu0 %v26577_v6 }
 0x248   : > { %32572 = vst [vmem:[#allocation68_spill] sm:$0xff] %v27952_v0  ;;  %32573 = vst [vmem:[#allocation69_spill] sm:$0xff] %v27954_v60  ;;  %24779 = vmatprep.subr.mxu1 %v27959_v1  ;;  %v26580_v0 = vld [vmem:[%s26988_s13 + $0x80] sm:$0xff] }
 0x249   : > { %v27962_v52 = vpop.f32.mrf.mxu1  ;;  %v27964_v40 = vpop.f32.mrf.mxu0  ;;  %24753 = vmatmul.mubr.msk.f32.gmra.mxu1 %vm522_vm0, %v27764_v11 }
 0x24a   : > { %32574 = vst [vmem:[#allocation70_spill] sm:$0xff] %v27964_v40  ;;  %24765 = vmatprep.mubr.msk.f32.mxu1 %vm522_vm0, %v27771_v35  ;;  %24857 = vmatmul.mubr.f32.gmra.mxu0 %v26579_v31 }
 0x24b   : > { %v27971_v6 = vpop.f32.mrf.mxu1  ;;  %v27973_v60 = vpop.f32.mrf.mxu0  ;;  %24859 = vmatprep.mubr.f32.mxu0 %v26580_v0  ;;  %v26582_v0 = vld [vmem:[%s26988_s13 + $0xf8] sm:$0xff] }
 0x24c   : > { %32575 = vst [vmem:[#allocation71_spill] sm:$0xff] %v27971_v6  ;;  %32576 = vst [vmem:[#allocation72_spill] sm:$0xff] %v27973_v60  ;;  %v26581_v60 = vld [vmem:[%s26988_s13 + $0x88] sm:$0xff] }
 0x24d   : > { %v27976_v37 = vpop.f32.mrf.mxu1  ;;  %v27978_v42 = vpop.f32.mrf.mxu0  ;;  %24766 = vmatmul.mubr.msk.f32.vlgmr.msra.gmra.mxu1 %vm522_vm0, %v27786_v12 }
 0x24e   : > { %32577 = vst [vmem:[#allocation73_spill] sm:$0xff] %v27978_v42  ;;  %24768 = vmatprep.mubr.msk.f32.mxu1 %vm522_vm0, %v27793_v16  ;;  %24780 = vmatpush3.msra.mxu1 %v27959_v1 }
 0x24f   : > { %v27985_v31 = vpop.f32.mrf.mxu1  ;;  %v27987_v6 = vpop.f32.mrf.mxu0  ;;  %24860 = vmatmul.mubr.f32.gmra.mxu0 %v26581_v60  ;;  %24795 = vmatprep.subr.mxu1 %v26582_v0  ;;  %v26584_v60 = vld [vmem:[%s26988_s13 + $0x98] sm:$0xff] }
 0x250   : > { %32578 = vst [vmem:[#allocation74_spill] sm:$0xff] %v27985_v31  ;;  %32579 = vst [vmem:[#allocation75_spill] sm:$0xff] %v27987_v6  ;;  %24862 = vmatprep.mubr.f32.mxu0 %v26583_v33 }
 0x251   : > { %v27992_v57 = vpop.f32.mrf.mxu1  ;;  %v27994_v47 = vpop.f32.mrf.mxu0  ;;  %24769 = vmatmul.mubr.msk.f32.gmra.mxu1 %vm522_vm0, %v27764_v11 }
 0x252   : > { %32580 = vst [vmem:[#allocation76_spill] sm:$0xff] %v27994_v47  ;;  %24781 = vmatprep.mubr.msk.f32.mxu1 %vm522_vm0, %v27771_v35 }
 0x253   : > { %v28000_v31 = vpop.f32.mrf.mxu1  ;;  %v28002_v6 = vpop.f32.mrf.mxu0  ;;  %24863 = vmatmul.mubr.f32.gmra.mxu0 %v26584_v60  ;;  %v26586_v60 = vld [vmem:[%s26988_s13 + $0xb0] sm:$0xff] }
 0x254   : > { %32581 = vst [vmem:[#allocation77_spill] sm:$0xff] %v28000_v31  ;;  %32582 = vst [vmem:[#allocation78_spill] sm:$0xff] %v28002_v6  ;;  %24865 = vmatprep.mubr.f32.mxu0 %v26585_v14 }
 0x255   : > { %v28006_v33 = vpop.f32.mrf.mxu1  ;;  %v28008_v59 = vpop.f32.mrf.mxu0  ;;  %24782 = vmatmul.mubr.msk.f32.vlgmr.msra.gmra.mxu1 %vm522_vm0, %v27786_v12 }
 0x256   : > { %24784 = vmatprep.mubr.msk.f32.mxu1 %vm522_vm0, %v27793_v16  ;;  %24796 = vmatpush3.msra.mxu1 %v26582_v0 }
 0x257   : > { %v28014_v34 = vpop.f32.mrf.mxu1  ;;  %v28016_v31 = vpop.f32.mrf.mxu0  ;;  %24866 = vmatmul.mubr.f32.gmra.mxu0 %v27856_v19  ;;  %v26587_v19 = vld [vmem:[%s26988_s13 + $0xc0] sm:$0xff] }
 0x258   : > { %32583 = vst [vmem:[#allocation79_spill] sm:$0xff] %v28014_v34  ;;  %32584 = vst [vmem:[#allocation80_spill] sm:$0xff] %v28016_v31  ;;  %24868 = vmatprep.mubr.f32.mxu0 %v26586_v60 }
 0x259   : > { %v28020_v14 = vpop.f32.mrf.mxu1  ;;  %v28022_v6 = vpop.f32.mrf.mxu0  ;;  %24785 = vmatmul.mubr.msk.f32.gmra.mxu1 %vm522_vm0, %v27764_v11 }
 0x25a   : > { %24797 = vmatprep.mubr.msk.f32.mxu1 %vm522_vm0, %v27771_v35 }
 0x25b   : > { %v28028_v29 = vpop.f32.mrf.mxu1  ;;  %v28030_v34 = vpop.f32.mrf.mxu0  ;;  %24869 = vmatmul.mubr.f32.gmra.mxu0 %v27860_v45  ;;  %v26588_v45 = vld [vmem:[%s26988_s13 + $0xd0] sm:$0xff] }
 0x25c   : > { %32585 = vst [vmem:[#allocation81_spill] sm:$0xff] %v28028_v29  ;;  %32586 = vst [vmem:[#allocation82_spill] sm:$0xff] %v28030_v34  ;;  %24871 = vmatprep.mubr.f32.mxu0 %v26587_v19 }
 0x25d   : > { %v28034_v60 = vpop.f32.mrf.mxu1  ;;  %v28036_v23 = vpop.f32.mrf.mxu0  ;;  %24798 = vmatmul.mubr.msk.f32.vlgmr.msra.gmra.mxu1 %vm522_vm0, %v27786_v12 }
 0x25e   : > { %24800 = vmatprep.mubr.msk.f32.mxu1 %vm522_vm0, %v27793_v16  ;;  %v26589_v16 = vld [vmem:[%s26988_s13 + $0xe0] sm:$0xff] }
 0x25f   : > { %v28042_v35 = vpop.f32.mrf.mxu1  ;;  %v28044_v29 = vpop.f32.mrf.mxu0  ;;  %24872 = vmatmul.mubr.f32.gmra.mxu0 %v27893_v15 }
 0x260   : > { %32587 = vst [vmem:[#allocation83_spill] sm:$0xff] %v28042_v35  ;;  %32588 = vst [vmem:[#allocation84_spill] sm:$0xff] %v28044_v29  ;;  %24874 = vmatprep.mubr.f32.mxu0 %v26588_v45 }
 0x261   : > { %v28048_v19 = vpop.f32.mrf.mxu1  ;;  %v28050_v34 = vpop.f32.mrf.mxu0  ;;  %24801 = vmatmul.mubr.msk.f32.gmra.mxu1 %vm522_vm0, %v27764_v11 }
 0x263   : > { %v28054_v12 = vpop.f32.mrf.mxu1  ;;  %v28056_v31 = vpop.f32.mrf.mxu0  ;;  %24875 = vmatmul.mubr.f32.gmra.mxu0 %v27926_v3 }
 0x264   : > { %32589 = vst [vmem:[#allocation85_spill] sm:$0xff] %v28054_v12  ;;  %32590 = vst [vmem:[#allocation86_spill] sm:$0xff] %v28056_v31  ;;  %24877 = vmatprep.mubr.f32.mxu0 %v26589_v16 }
 0x265   : > { %v28060_v35 = vpop.f32.mrf.mxu1  ;;  %v28062_v15 = vpop.f32.mrf.mxu0 }
 0x267   : > { %v28064_v45 = vpop.f32.mrf.mxu1  ;;  %v28066_v29 = vpop.f32.mrf.mxu0  ;;  %24878 = vmatmul.mubr.f32.gmra.mxu0 %v27959_v1 }
 0x268   : > { %32591 = vst [vmem:[#allocation87_spill] sm:$0xff] %v28064_v45  ;;  %32592 = vst [vmem:[#allocation88_spill] sm:$0xff] %v28066_v29  ;;  %24880 = vmatprep.mubr.f32.mxu0 %v26590_v21 }
 0x269   : > { %v28070_v11 = vpop.f32.mrf.mxu1  ;;  %v28072_v12 = vpop.f32.mrf.mxu0 }
 0x26b   : > { %v28074_v31 = vpop.f32.mrf.mxu1  ;;  %v28076_v3 = vpop.f32.mrf.mxu0  ;;  %24881 = vmatmul.mubr.f32.gmra.mxu0 %v26582_v0 }
 0x26c   : > { %32593 = vst [vmem:[#allocation89_spill] sm:$0xff] %v28074_v31  ;;  %32594 = vst [vmem:[#allocation90_spill] sm:$0xff] %v28076_v3  ;;  %v28098_v0 = vpop.permute.xlu0 %6221 }
 0x26d   : > { %v28078_v16 = vpop.f32.mrf.mxu1  ;;  %v28080_v47 = vpop.f32.mrf.mxu0  ;;  %24885 = vmatprep.mubr.msk.f32.mxu1 %vm522_vm0, %v28098_v0  ;;  %24973 = vmatprep.mubr.msk.f32.mxu0 %vm522_vm0, %v28098_v0 }
 0x26f   : > { %v28082_v45 = vpop.f32.mrf.mxu1  ;;  %v28084_v29 = vpop.f32.mrf.mxu0 }
 0x270   : > { %32595 = vst [vmem:[#allocation91_spill] sm:$0xff] %v28082_v45  ;;  %32596 = vst [vmem:[#allocation92_spill] sm:$0xff] %v28084_v29 }
 0x271   : > { %v28086_v1 = vpop.f32.mrf.mxu1  ;;  %v28088_v21 = vpop.f32.mrf.mxu0 }
 0x273   : > { %v28090_v42 = vpop.f32.mrf.mxu1  ;;  %v28092_v40 = vpop.f32.mrf.mxu0 }
 0x274   : > { %32597 = vst [vmem:[#allocation93_spill] sm:$0xff] %v28090_v42  ;;  %32598 = vst [vmem:[#allocation94_spill] sm:$0xff] %v28092_v40 }
 0x275   : > { %v28094_v31 = vpop.f32.mrf.mxu1  ;;  %v28096_v3 = vpop.f32.mrf.mxu0 }
 0x276   : > { %32599 = vst [vmem:[#allocation95_spill] sm:$0xff] %v28094_v31  ;;  %32600 = vst [vmem:[#allocation96_spill] sm:$0xff] %v28096_v3 }
 0x277   : > { %v28100_v25 = vpop.f32.mrf.mxu1  ;;  %v28102_v5 = vpop.f32.mrf.mxu0 }
 0x278   : > { %32601 = vst [vmem:[#allocation97_spill] sm:$0xff] %v28100_v25  ;;  %32602 = vst [vmem:[#allocation98_spill] sm:$0xff] %v28102_v5 }
 0x279   : > { %v28108_v45 = vpop.f32.mrf.mxu1  ;;  %v28110_v42 = vpop.f32.mrf.mxu0 }
 0x27a   : > { %32603 = vst [vmem:[#allocation99_spill] sm:$0xff] %v28108_v45  ;;  %32604 = vst [vmem:[#allocation100_spill] sm:$0xff] %v28110_v42 }
 0x27b   : > { %v28112_v40 = vpop.f32.mrf.mxu1  ;;  %v28114_v29 = vpop.f32.mrf.mxu0 }
 0x27c   : > { %32605 = vst [vmem:[#allocation101_spill] sm:$0xff] %v28112_v40  ;;  %32606 = vst [vmem:[#allocation102_spill] sm:$0xff] %v28114_v29 }
 0x27d   : > { %v28116_v17 = vpop.f32.mrf.mxu1  ;;  %v24631_v32 = vpop.f32.mrf.mxu0 }
 0x27e   : > { %32607 = vst [vmem:[#allocation103_spill] sm:$0xff] %v28116_v17  ;;  %v28119_v25 = vadd.f32 %v24631_v32, %v27929_v50 }
 0x27f   : > { %v28121_v5 = vpop.f32.mrf.mxu1  ;;  %v28123_v41 = vpop.f32.mrf.mxu0 }
 0x280   : > { %32608 = vst [vmem:[#allocation104_spill] sm:$0xff] %v28119_v25  ;;  %32609 = vst [vmem:[#allocation105_spill] sm:$0xff] %v28121_v5 }
 0x281   : > { %32610 = vst [vmem:[#allocation106_spill] sm:$0xff] %v28123_v41  ;;  %v28125_v55 = vpop.f32.mrf.mxu1  ;;  %v24634_v10 = vpop.f32.mrf.mxu0 }
 0x282   : > { %32611 = vst [vmem:[#allocation107_spill] sm:$0xff] %v28125_v55  ;;  %v28128_v58 = vadd.f32 %v24634_v10, %v27943_v27 }
 0x283   : > { %v28130_v53 = vpop.f32.mrf.mxu1  ;;  %v28132_v40 = vpop.f32.mrf.mxu0 }
 0x284   : > { %32612 = vst [vmem:[#allocation108_spill] sm:$0xff] %v28128_v58  ;;  %32613 = vst [vmem:[#allocation109_spill] sm:$0xff] %v28130_v53 }
 0x285   : > { %32614 = vst [vmem:[#allocation110_spill] sm:$0xff] %v28132_v40  ;;  %v28134_v29 = vpop.f32.mrf.mxu1  ;;  %v28136_v43 = vpop.f32.mrf.mxu0 }
 0x286   : > { %32615 = vst [vmem:[#allocation111_spill] sm:$0xff] %v28134_v29  ;;  %32616 = vst [vmem:[#allocation112_spill] sm:$0xff] %v28136_v43 }
 0x287   : > { %v28138_v50 = vpop.f32.mrf.mxu1  ;;  %v28140_v32 = vpop.f32.mrf.mxu0 }
 0x288   : > { %32617 = vst [vmem:[#allocation113_spill] sm:$0xff] %v28138_v50  ;;  %32618 = vst [vmem:[#allocation114_spill] sm:$0xff] %v28140_v32 }
 0x289   : > { %v28142_v5 = vpop.f32.mrf.mxu1  ;;  %v24650_v41 = vpop.f32.mrf.mxu0 }
 0x28a   : > { %32619 = vst [vmem:[#allocation115_spill] sm:$0xff] %v28142_v5  ;;  %v28145_v9 = vadd.f32 %v24650_v41, %v27992_v57 }
 0x28b   : > { %v28147_v27 = vpop.f32.mrf.mxu1  ;;  %v28149_v10 = vpop.f32.mrf.mxu0 }
 0x28c   : > { %32620 = vst [vmem:[#allocation116_spill] sm:$0xff] %v28145_v9  ;;  %32621 = vst [vmem:[#allocation117_spill] sm:$0xff] %v28147_v27 }
 0x28d   : > { %32622 = vst [vmem:[#allocation118_spill] sm:$0xff] %v28149_v10  ;;  %v28151_v53 = vpop.f32.mrf.mxu1  ;;  %v28153_v40 = vpop.f32.mrf.mxu0 }
 0x28e   : > { %32623 = vst [vmem:[#allocation119_spill] sm:$0xff] %v28151_v53  ;;  %32624 = vst [vmem:[#allocation120_spill] sm:$0xff] %v28153_v40 }
 0x28f   : > { %v28155_v13 = vpop.f32.mrf.mxu1  ;;  %v28157_v63 = vpop.f32.mrf.mxu0 }
 0x290   : > { %32625 = vst [vmem:[#allocation121_spill] sm:$0xff] %v28155_v13  ;;  %32626 = vst [vmem:[#allocation122_spill] sm:$0xff] %v28157_v63 }
 0x291   : > { %v28159_v50 = vpop.f32.mrf.mxu1  ;;  %v28161_v32 = vpop.f32.mrf.mxu0 }
 0x292   : > { %32627 = vst [vmem:[#allocation123_spill] sm:$0xff] %v28159_v50  ;;  %32628 = vst [vmem:[#allocation124_spill] sm:$0xff] %v28161_v32 }
 0x293   : > { %v28163_v56 = vpop.f32.mrf.mxu1  ;;  %v28165_v57 = vpop.f32.mrf.mxu0 }
 0x294   : > { %32629 = vst [vmem:[#allocation125_spill] sm:$0xff] %v28163_v56  ;;  %32630 = vst [vmem:[#allocation126_spill] sm:$0xff] %v28165_v57 }
 0x295   : > { %v28167_v41 = vpop.f32.mrf.mxu1  ;;  %v28169_v27 = vpop.f32.mrf.mxu0 }
 0x296   : > { %32631 = vst [vmem:[#allocation127_spill] sm:$0xff] %v28167_v41  ;;  %32632 = vst [vmem:[#allocation128_spill] sm:$0xff] %v28169_v27 }
 0x297   : > { %v28171_v10 = vpop.f32.mrf.mxu0  ;;  %v28173_v46 = vpop.f32.mrf.mxu1 }
 0x298   : > { %32633 = vst [vmem:[#allocation129_spill] sm:$0xff] %v28171_v10  ;;  %32634 = vst [vmem:[#allocation130_spill] sm:$0xff] %v28173_v46 }
 0x299   : > { %v28175_v40 = vpop.f32.mrf.mxu0  ;;  %v28179_v63 = vpop.f32.mrf.mxu1 }
 0x29a   : > { %32635 = vst [vmem:[#allocation131_spill] sm:$0xff] %v28175_v40  ;;  %32637 = vst [vmem:[#allocation133_spill] sm:$0xff] %v28179_v63 }
 0x29b   : > { %v28177_v13 = vpop.f32.mrf.mxu0  ;;  %v28185_v56 = vpop.f32.mrf.mxu1 }
 0x29c   : > { %32636 = vst [vmem:[#allocation132_spill] sm:$0xff] %v28177_v13  ;;  %32640 = vst [vmem:[#allocation136_spill] sm:$0xff] %v28185_v56 }
 0x29d   : > { %v28181_v9 = vpop.f32.mrf.mxu0  ;;  %v28191_v27 = vpop.f32.mrf.mxu1 }
 0x29e   : > { %32638 = vst [vmem:[#allocation134_spill] sm:$0xff] %v28181_v9  ;;  %32643 = vst [vmem:[#allocation139_spill] sm:$0xff] %v28191_v27 }
 0x29f   : > { %v28183_v32 = vpop.f32.mrf.mxu0  ;;  %v28197_v40 = vpop.f32.mrf.mxu1 }
 0x2a0   : > { %32639 = vst [vmem:[#allocation135_spill] sm:$0xff] %v28183_v32  ;;  %32646 = vst [vmem:[#allocation142_spill] sm:$0xff] %v28197_v40 }
 0x2a1   : > { %v28187_v57 = vpop.f32.mrf.mxu0  ;;  %v28203_v9 = vpop.f32.mrf.mxu1 }
 0x2a2   : > { %32641 = vst [vmem:[#allocation137_spill] sm:$0xff] %v28187_v57  ;;  %32649 = vst [vmem:[#allocation145_spill] sm:$0xff] %v28203_v9 }
 0x2a3   : > { %v28189_v41 = vpop.f32.mrf.mxu0  ;;  %v28209_v57 = vpop.f32.mrf.mxu1 }
 0x2a4   : > { %32642 = vst [vmem:[#allocation138_spill] sm:$0xff] %v28189_v41  ;;  %32652 = vst [vmem:[#allocation148_spill] sm:$0xff] %v28209_v57 }
 0x2a5   : > { %v28193_v10 = vpop.f32.mrf.mxu0 }
 0x2a6   : > { %32644 = vst [vmem:[#allocation140_spill] sm:$0xff] %v28193_v10  ;;  %v28215_v10 = vpop.f32.mrf.mxu1 }
 0x2a7   : > { %v28195_v46 = vpop.f32.mrf.mxu0 }
 0x2a8   : > { %32645 = vst [vmem:[#allocation141_spill] sm:$0xff] %v28195_v46 }
 0x2a9   : > { %v28199_v13 = vpop.f32.mrf.mxu0 }
 0x2aa   : > { %32647 = vst [vmem:[#allocation143_spill] sm:$0xff] %v28199_v13  ;;  %v28221_v13 = vpop.f32.mrf.mxu1 }
 0x2ab   : > { %v28201_v63 = vpop.f32.mrf.mxu0  ;;  %32657 = vst [vmem:[#allocation153_spill] sm:$0xff] %v28221_v13 }
 0x2ac   : > { %32648 = vst [vmem:[#allocation144_spill] sm:$0xff] %v28201_v63 }
 0x2ad   : > { %v28205_v32 = vpop.f32.mrf.mxu0 }
 0x2ae   : > { %32650 = vst [vmem:[#allocation146_spill] sm:$0xff] %v28205_v32  ;;  %v28227_v32 = vpop.f32.mrf.mxu1 }
 0x2af   : > { %v28207_v56 = vpop.f32.mrf.mxu0 }
 0x2b0   : > { %32651 = vst [vmem:[#allocation147_spill] sm:$0xff] %v28207_v56  ;;  %v28231_v57 = vpop.f32.mrf.mxu1 }
 0x2b1   : > { %v28211_v41 = vpop.f32.mrf.mxu0  ;;  %32661 = vst [vmem:[#allocation157_spill] sm:$0xff] %v28231_v57 }
 0x2b2   : > { %32653 = vst [vmem:[#allocation149_spill] sm:$0xff] %v28211_v41 }
 0x2b3   : > { %v28213_v27 = vpop.f32.mrf.mxu0 }
 0x2b4   : > { %32654 = vst [vmem:[#allocation150_spill] sm:$0xff] %v28213_v27  ;;  %v28235_v27 = vpop.f32.mrf.mxu1 }
 0x2b5   : > { %v28217_v46 = vpop.f32.mrf.mxu0 }
 0x2b6   : > { %32655 = vst [vmem:[#allocation151_spill] sm:$0xff] %v28217_v46  ;;  %v28239_v46 = vpop.f32.mrf.mxu1 }
 0x2b7   : > { %v28219_v40 = vpop.f32.mrf.mxu0  ;;  %32664 = vst [vmem:[#allocation160_spill] sm:$0xff] %v28239_v46 }
 0x2b8   : > { %32656 = vst [vmem:[#allocation152_spill] sm:$0xff] %v28219_v40  ;;  %v28243_v13 = vpop.f32.mrf.mxu1 }
 0x2b9   : > { %v28223_v63 = vpop.f32.mrf.mxu0 }
 0x2ba   : > { %32658 = vst [vmem:[#allocation154_spill] sm:$0xff] %v28223_v63 }
 0x2bb   : > { %v28225_v9 = vpop.f32.mrf.mxu0 }
 0x2bc   : > { %32659 = vst [vmem:[#allocation155_spill] sm:$0xff] %v28225_v9  ;;  %v28247_v9 = vpop.f32.mrf.mxu1 }
 0x2bd   : > { %v28229_v56 = vpop.f32.mrf.mxu0  ;;  %32667 = vst [vmem:[#allocation163_spill] sm:$0xff] %v28247_v9 }
 0x2be   : > { %32660 = vst [vmem:[#allocation156_spill] sm:$0xff] %v28229_v56  ;;  %v28251_v56 = vpop.f32.mrf.mxu1 }
 0x2bf   : > { %v28233_v41 = vpop.f32.mrf.mxu0 }
 0x2c0   : > { %32662 = vst [vmem:[#allocation158_spill] sm:$0xff] %v28233_v41  ;;  %v28255_v41 = vpop.f32.mrf.mxu1 }
 0x2c1   : > { %v28237_v43 = vpop.f32.mrf.mxu0  ;;  %32670 = vst [vmem:[#allocation166_spill] sm:$0xff] %v28255_v41 }
 0x2c2   : > { %32663 = vst [vmem:[#allocation159_spill] sm:$0xff] %v28237_v43  ;;  %v28259_v43 = vpop.f32.mrf.mxu1 }
 0x2c3   : > { %v28241_v40 = vpop.f32.mrf.mxu0 }
 0x2c4   : > { %32665 = vst [vmem:[#allocation161_spill] sm:$0xff] %v28241_v40  ;;  %v28263_v40 = vpop.f32.mrf.mxu1 }
 0x2c5   : > { %v28245_v63 = vpop.f32.mrf.mxu0  ;;  %32673 = vst [vmem:[#allocation169_spill] sm:$0xff] %v28263_v40  ;;  %v28281_v40 = vpop.permute.xlu0 %6225 }
 0x2c6   : > { %32666 = vst [vmem:[#allocation162_spill] sm:$0xff] %v28245_v63  ;;  %v28267_v63 = vpop.f32.mrf.mxu1 }
 0x2c7   : > { %v28249_v38 = vpop.f32.mrf.mxu0  ;;  %32675 = vst [vmem:[#allocation171_spill] sm:$0xff] %v28267_v63 }
 0x2c8   : > { %32668 = vst [vmem:[#allocation164_spill] sm:$0xff] %v28249_v38  ;;  %v28271_v38 = vpop.f32.mrf.mxu1 }
 0x2c9   : > { %v28253_v57 = vpop.f32.mrf.mxu0  ;;  %32677 = vst [vmem:[#allocation173_spill] sm:$0xff] %v28271_v38 }
 0x2ca   : > { %32669 = vst [vmem:[#allocation165_spill] sm:$0xff] %v28253_v57  ;;  %v28275_v57 = vpop.f32.mrf.mxu1 }
 0x2cb   : > { %v28257_v58 = vpop.f32.mrf.mxu0  ;;  %32679 = vst [vmem:[#allocation175_spill] sm:$0xff] %v28275_v57 }
 0x2cc   : > { %32671 = vst [vmem:[#allocation167_spill] sm:$0xff] %v28257_v58  ;;  %v28277_v58 = vpop.permute.xlu1 %6223  ;;  %v28279_v5 = vpop.f32.mrf.mxu1 }
 0x2cd   : > { %v28261_v46 = vpop.f32.mrf.mxu0  ;;  %32680 = vst [vmem:[#allocation176_spill] sm:$0xff] %v28279_v5 }
 0x2ce   : > { %32672 = vst [vmem:[#allocation168_spill] sm:$0xff] %v28261_v46 }
 0x2cf   : > { %v28265_v50 = vpop.f32.mrf.mxu0 }
 0x2d0   : > { %32674 = vst [vmem:[#allocation170_spill] sm:$0xff] %v28265_v50 }
 0x2d2   : > { %v28269_v9 = vpop.f32.mrf.mxu0 }
 0x2d3   : > { %32676 = vst [vmem:[#allocation172_spill] sm:$0xff] %v28269_v9  ;;  %v28285_v9 = vpop.permute.xlu1 %6227 }
 0x2d4   : > { %v28273_v25 = vpop.f32.mrf.mxu0 }
 0x2d5   : > { %32678 = vst [vmem:[#allocation174_spill] sm:$0xff] %v28273_v25  ;;  %v28289_v25 = vpop.f32.mrf.mxu1 }
 0x2d6   : > { %32681 = vst [vmem:[#allocation177_spill] sm:$0xff] %v28289_v25 }
 0x2ee   : > { %v24837_v41 = vpop.f32.mrf.mxu0 }
 0x2f0   : > { %v6062_v53 = vpop.f32.mrf.mxu0 }
 0x2f1   : > { %24883 = vmatprep.subr.mxu1 %v6062_v53 }
 0x2f2   : > { %v24840_v50 = vpop.f32.mrf.mxu0  ;;  %24884 = vmatpush3.msra.mxu1 %v6062_v53  ;;  %v28295_v53 = vpop.f32.mrf.mxu1 }
 0x2f3   : > { %24886 = vmatmul.mubr.msk.f32.vlgmr.msra.gmra.mxu1 %vm522_vm0, %v28277_v58  ;;  %24891 = vmatprep.subr.mxu1 %v24837_v41  ;;  %32682 = vst [vmem:[#allocation178_spill] sm:$0xff] %v28295_v53 }
 0x2f4   : > { %v6072_v38 = vpop.f32.mrf.mxu0  ;;  %24888 = vmatprep.mubr.msk.f32.mxu1 %vm522_vm0, %v28281_v40  ;;  %24892 = vmatpush3.msra.mxu1 %v24837_v41  ;;  %v28305_v41 = vpop.f32.mrf.mxu1 }
 0x2f5   : > { %24899 = vmatprep.subr.mxu1 %v6072_v38  ;;  %32683 = vst [vmem:[#allocation179_spill] sm:$0xff] %v28305_v41 }
 0x2f6   : > { %v24843_v5 = vpop.f32.mrf.mxu0  ;;  %v28315_v18 = vpop.f32.mrf.mxu1 }
 0x2f7   : > { %24889 = vmatmul.mubr.msk.f32.gmra.mxu1 %vm522_vm0, %v28285_v9  ;;  %32684 = vst [vmem:[#allocation180_spill] sm:$0xff] %v28315_v18 }
 0x2f8   : > { %v6082_v46 = vpop.f32.mrf.mxu0  ;;  %24893 = vmatprep.mubr.msk.f32.mxu1 %vm522_vm0, %v28098_v0  ;;  %v28323_v41 = vpop.f32.mrf.mxu1 }
 0x2fa   : > { %v28297_v39 = vpop.f32.mrf.mxu0  ;;  %v28335_v42 = vpop.f32.mrf.mxu1 }
 0x2fb   : > { %24894 = vmatmul.mubr.msk.f32.vlgmr.msra.gmra.mxu1 %vm522_vm0, %v28277_v58  ;;  %32685 = vst [vmem:[#allocation181_spill] sm:$0xff] %v28335_v42 }
 0x2fc   : > { %v28301_v29 = vpop.f32.mrf.mxu0  ;;  %24896 = vmatprep.mubr.msk.f32.mxu1 %vm522_vm0, %v28281_v40  ;;  %24900 = vmatpush3.msra.mxu1 %v6072_v38  ;;  %v28347_v7 = vpop.f32.mrf.mxu1 }
 0x2fd   : > { %24907 = vmatprep.subr.mxu1 %v24840_v50 }
 0x2fe   : > { %v28307_v25 = vpop.f32.mrf.mxu0 }
 0x2ff   : > { %24897 = vmatmul.mubr.msk.f32.gmra.mxu1 %vm522_vm0, %v28285_v9 }
 0x300   : > { %v28311_v53 = vpop.f32.mrf.mxu0  ;;  %24901 = vmatprep.mubr.msk.f32.mxu1 %vm522_vm0, %v28098_v0 }
 0x302   : > { %v24852_v55 = vpop.f32.mrf.mxu0 }
 0x303   : > { %24902 = vmatmul.mubr.msk.f32.vlgmr.msra.gmra.mxu1 %vm522_vm0, %v28277_v58  ;;  %24971 = vmatprep.subr.mxu0 %v24852_v55 }
 0x304   : > { %24972 = vmatpush3.msra.mxu0 %v24852_v55  ;;  %24904 = vmatprep.mubr.msk.f32.mxu1 %vm522_vm0, %v28281_v40  ;;  %v28321_v38 = vpop.f32.mrf.mxu0 }
 0x305   : > { %24974 = vmatmul.mubr.msk.f32.vlgmr.msra.gmra.mxu0 %vm522_vm0, %v28277_v58  ;;  %24908 = vmatpush3.msra.mxu1 %v24840_v50 }
 0x306   : > { %24976 = vmatprep.mubr.msk.f32.mxu0 %vm522_vm0, %v28281_v40  ;;  %v24855_v18 = vpop.f32.mrf.mxu0  ;;  %24915 = vmatprep.subr.mxu1 %v6082_v46 }
 0x307   : > { %24905 = vmatmul.mubr.msk.f32.gmra.mxu1 %vm522_vm0, %v28285_v9  ;;  %24987 = vmatprep.subr.mxu0 %v24855_v18 }
 0x308   : > { %24909 = vmatprep.mubr.msk.f32.mxu1 %vm522_vm0, %v28098_v0  ;;  %24988 = vmatpush3.msra.mxu0 %v24855_v18  ;;  %v28333_v55 = vpop.f32.mrf.mxu0 }
 0x309   : > { %24977 = vmatmul.mubr.msk.f32.gmra.mxu0 %vm522_vm0, %v28285_v9 }
 0x30a   : > { %24989 = vmatprep.mubr.msk.f32.mxu0 %vm522_vm0, %v28098_v0  ;;  %v24858_v50 = vpop.f32.mrf.mxu0 }
 0x30b   : > { %24910 = vmatmul.mubr.msk.f32.vlgmr.msra.gmra.mxu1 %vm522_vm0, %v28277_v58  ;;  %25003 = vmatprep.subr.mxu0 %v24858_v50 }
 0x30c   : > { %24912 = vmatprep.mubr.msk.f32.mxu1 %vm522_vm0, %v28281_v40  ;;  %24916 = vmatpush3.msra.mxu1 %v6082_v46  ;;  %v28345_v18 = vpop.f32.mrf.mxu0  ;;  %v28357_v46 = vpop.f32.mrf.mxu1 }
 0x30d   : > { %24990 = vmatmul.mubr.msk.f32.vlgmr.msra.gmra.mxu0 %vm522_vm0, %v28277_v58  ;;  %24923 = vmatprep.subr.mxu1 %v24843_v5  ;;  %32686 = vst [vmem:[#allocation182_spill] sm:$0xff] %v28357_v46 }
 0x30e   : > { %24992 = vmatprep.mubr.msk.f32.mxu0 %vm522_vm0, %v28281_v40  ;;  %25004 = vmatpush3.msra.mxu0 %v24858_v50  ;;  %v28369_v3 = vpop.f32.mrf.mxu1 }
 0x30f   : > { %24913 = vmatmul.mubr.msk.f32.gmra.mxu1 %vm522_vm0, %v28285_v9  ;;  %v24861_v42 = vpop.f32.mrf.mxu0 }
 0x310   : > { %24917 = vmatprep.mubr.msk.f32.mxu1 %vm522_vm0, %v28098_v0  ;;  %25019 = vmatprep.subr.mxu0 %v24861_v42  ;;  %v28382_v46 = vpop.f32.mrf.mxu1 }
 0x311   : > { %24993 = vmatmul.mubr.msk.f32.gmra.mxu0 %vm522_vm0, %v28285_v9  ;;  %v28361_v17 = vpop.f32.mrf.mxu0  ;;  %32687 = vst [vmem:[#allocation183_spill] sm:$0xff] %v28382_v46 }
 0x312   : > { %25005 = vmatprep.mubr.msk.f32.mxu0 %vm522_vm0, %v28098_v0  ;;  %v28393_v49 = vpop.f32.mrf.mxu1 }
 0x313   : > { %24918 = vmatmul.mubr.msk.f32.vlgmr.msra.gmra.mxu1 %vm522_vm0, %v28277_v58  ;;  %v24864_v50 = vpop.f32.mrf.mxu0 }
 0x314   : > { %24920 = vmatprep.mubr.msk.f32.mxu1 %vm522_vm0, %v28281_v40  ;;  %24924 = vmatpush3.msra.mxu1 %v24843_v5  ;;  %v28406_v46 = vpop.f32.mrf.mxu1 }
 0x315   : > { %25006 = vmatmul.mubr.msk.f32.vlgmr.msra.gmra.mxu0 %vm522_vm0, %v28277_v58  ;;  %24931 = vmatprep.subr.mxu1 %v28301_v29  ;;  %v28380_v5 = vpop.f32.mrf.mxu0  ;;  %32688 = vst [vmem:[#allocation184_spill] sm:$0xff] %v28406_v46 }
 0x316   : > { %25008 = vmatprep.mubr.msk.f32.mxu0 %vm522_vm0, %v28281_v40  ;;  %25020 = vmatpush3.msra.mxu0 %v24861_v42  ;;  %v28417_v45 = vpop.f32.mrf.mxu1 }
 0x317   : > { %24921 = vmatmul.mubr.msk.f32.gmra.mxu1 %vm522_vm0, %v28285_v9  ;;  %25035 = vmatprep.subr.mxu0 %v24864_v50  ;;  %v24867_v42 = vpop.f32.mrf.mxu0 }
 0x318   : > { %24925 = vmatprep.mubr.msk.f32.mxu1 %vm522_vm0, %v28098_v0  ;;  %v28430_v46 = vpop.f32.mrf.mxu1 }
 0x319   : > { %25009 = vmatmul.mubr.msk.f32.gmra.mxu0 %vm522_vm0, %v28285_v9  ;;  %32689 = vst [vmem:[#allocation185_spill] sm:$0xff] %v28430_v46 }
 0x31a   : > { %25021 = vmatprep.mubr.msk.f32.mxu0 %vm522_vm0, %v28098_v0  ;;  %v28441_v57 = vpop.f32.mrf.mxu1 }
 0x31b   : > { %24926 = vmatmul.mubr.msk.f32.vlgmr.msra.gmra.mxu1 %vm522_vm0, %v28277_v58 }
 0x31c   : > { %24928 = vmatprep.mubr.msk.f32.mxu1 %vm522_vm0, %v28281_v40  ;;  %24932 = vmatpush3.msra.mxu1 %v28301_v29  ;;  %v28404_v29 = vpop.f32.mrf.mxu0  ;;  %v28454_v46 = vpop.f32.mrf.mxu1 }
 0x31d   : > { %25022 = vmatmul.mubr.msk.f32.vlgmr.msra.gmra.mxu0 %vm522_vm0, %v28277_v58  ;;  %24939 = vmatprep.subr.mxu1 %v28297_v39  ;;  %32690 = vst [vmem:[#allocation186_spill] sm:$0xff] %v28454_v46 }
 0x31e   : > { %25024 = vmatprep.mubr.msk.f32.mxu0 %vm522_vm0, %v28281_v40  ;;  %25036 = vmatpush3.msra.mxu0 %v24864_v50  ;;  %v24870_v50 = vpop.f32.mrf.mxu0  ;;  %v28465_v61 = vpop.f32.mrf.mxu1 }
 0x31f   : > { %24929 = vmatmul.mubr.msk.f32.gmra.mxu1 %vm522_vm0, %v28285_v9  ;;  %25051 = vmatprep.subr.mxu0 %v24867_v42 }
 0x320   : > { %24933 = vmatprep.mubr.msk.f32.mxu1 %vm522_vm0, %v28098_v0  ;;  %v28478_v46 = vpop.f32.mrf.mxu1 }
 0x321   : > { %25025 = vmatmul.mubr.msk.f32.gmra.mxu0 %vm522_vm0, %v28285_v9  ;;  %32691 = vst [vmem:[#allocation187_spill] sm:$0xff] %v28478_v46 }
 0x322   : > { %25037 = vmatprep.mubr.msk.f32.mxu0 %vm522_vm0, %v28098_v0  ;;  %v28489_v31 = vpop.f32.mrf.mxu1 }
 0x323   : > { %24934 = vmatmul.mubr.msk.f32.vlgmr.msra.gmra.mxu1 %vm522_vm0, %v28277_v58 }
 0x324   : > { %24936 = vmatprep.mubr.msk.f32.mxu1 %vm522_vm0, %v28281_v40  ;;  %24940 = vmatpush3.msra.mxu1 %v28297_v39  ;;  %v28428_v39 = vpop.f32.mrf.mxu0  ;;  %v28502_v46 = vpop.f32.mrf.mxu1 }
 0x325   : > { %25038 = vmatmul.mubr.msk.f32.vlgmr.msra.gmra.mxu0 %vm522_vm0, %v28277_v58  ;;  %24947 = vmatprep.subr.mxu1 %v28311_v53  ;;  %32692 = vst [vmem:[#allocation188_spill] sm:$0xff] %v28502_v46 }
 0x326   : > { %25040 = vmatprep.mubr.msk.f32.mxu0 %vm522_vm0, %v28281_v40  ;;  %25052 = vmatpush3.msra.mxu0 %v24867_v42  ;;  %v24873_v42 = vpop.f32.mrf.mxu0  ;;  %v28513_v63 = vpop.f32.mrf.mxu1 }
 0x327   : > { %24937 = vmatmul.mubr.msk.f32.gmra.mxu1 %vm522_vm0, %v28285_v9  ;;  %25067 = vmatprep.subr.mxu0 %v24870_v50 }
 0x328   : > { %24941 = vmatprep.mubr.msk.f32.mxu1 %vm522_vm0, %v28098_v0 }
 0x329   : > { %25041 = vmatmul.mubr.msk.f32.gmra.mxu0 %vm522_vm0, %v28285_v9 }
 0x32a   : > { %25053 = vmatprep.mubr.msk.f32.mxu0 %vm522_vm0, %v28098_v0 }
 0x32b   : > { %24942 = vmatmul.mubr.msk.f32.vlgmr.msra.gmra.mxu1 %vm522_vm0, %v28277_v58 }
 0x32c   : > { %24944 = vmatprep.mubr.msk.f32.mxu1 %vm522_vm0, %v28281_v40  ;;  %24948 = vmatpush3.msra.mxu1 %v28311_v53  ;;  %v28452_v53 = vpop.f32.mrf.mxu0 }
 0x32d   : > { %25054 = vmatmul.mubr.msk.f32.vlgmr.msra.gmra.mxu0 %vm522_vm0, %v28277_v58  ;;  %24955 = vmatprep.subr.mxu1 %v28307_v25 }
 0x32e   : > { %25056 = vmatprep.mubr.msk.f32.mxu0 %vm522_vm0, %v28281_v40  ;;  %25068 = vmatpush3.msra.mxu0 %v24870_v50  ;;  %v24876_v50 = vpop.f32.mrf.mxu0 }
 0x32f   : > { %24945 = vmatmul.mubr.msk.f32.gmra.mxu1 %vm522_vm0, %v28285_v9  ;;  %25083 = vmatprep.subr.mxu0 %v24873_v42 }
 0x330   : > { %24949 = vmatprep.mubr.msk.f32.mxu1 %vm522_vm0, %v28098_v0 }
 0x331   : > { %25057 = vmatmul.mubr.msk.f32.gmra.mxu0 %vm522_vm0, %v28285_v9 }
 0x332   : > { %25069 = vmatprep.mubr.msk.f32.mxu0 %vm522_vm0, %v28098_v0 }
 0x333   : > { %24950 = vmatmul.mubr.msk.f32.vlgmr.msra.gmra.mxu1 %vm522_vm0, %v28277_v58 }
 0x334   : > { %24952 = vmatprep.mubr.msk.f32.mxu1 %vm522_vm0, %v28281_v40  ;;  %24956 = vmatpush3.msra.mxu1 %v28307_v25  ;;  %v28476_v25 = vpop.f32.mrf.mxu0 }
 0x335   : > { %25070 = vmatmul.mubr.msk.f32.vlgmr.msra.gmra.mxu0 %vm522_vm0, %v28277_v58  ;;  %24963 = vmatprep.subr.mxu1 %v28321_v38 }
 0x336   : > { %25072 = vmatprep.mubr.msk.f32.mxu0 %vm522_vm0, %v28281_v40  ;;  %25084 = vmatpush3.msra.mxu0 %v24873_v42  ;;  %v24879_v42 = vpop.f32.mrf.mxu0 }
 0x337   : > { %24953 = vmatmul.mubr.msk.f32.gmra.mxu1 %vm522_vm0, %v28285_v9  ;;  %25099 = vmatprep.subr.mxu0 %v24876_v50 }
 0x338   : > { %24957 = vmatprep.mubr.msk.f32.mxu1 %vm522_vm0, %v28098_v0 }
 0x339   : > { %25073 = vmatmul.mubr.msk.f32.gmra.mxu0 %vm522_vm0, %v28285_v9 }
 0x33a   : > { %25085 = vmatprep.mubr.msk.f32.mxu0 %vm522_vm0, %v28098_v0 }
 0x33b   : > { %24958 = vmatmul.mubr.msk.f32.vlgmr.msra.gmra.mxu1 %vm522_vm0, %v28277_v58 }
 0x33c   : > { %24960 = vmatprep.mubr.msk.f32.mxu1 %vm522_vm0, %v28281_v40  ;;  %24964 = vmatpush3.msra.mxu1 %v28321_v38  ;;  %v28500_v38 = vpop.f32.mrf.mxu0 }
 0x33d   : > { %25086 = vmatmul.mubr.msk.f32.vlgmr.msra.gmra.mxu0 %vm522_vm0, %v28277_v58  ;;  %24979 = vmatprep.subr.mxu1 %v28333_v55 }
 0x33e   : > { %25088 = vmatprep.mubr.msk.f32.mxu0 %vm522_vm0, %v28281_v40  ;;  %25100 = vmatpush3.msra.mxu0 %v24876_v50  ;;  %v24882_v50 = vpop.f32.mrf.mxu0 }
 0x33f   : > { %24961 = vmatmul.mubr.msk.f32.gmra.mxu1 %vm522_vm0, %v28285_v9  ;;  %25115 = vmatprep.subr.mxu0 %v24879_v42 }
 0x340   : > { %24965 = vmatprep.mubr.msk.f32.mxu1 %vm522_vm0, %v28098_v0 }
 0x341   : > { %25089 = vmatmul.mubr.msk.f32.gmra.mxu0 %vm522_vm0, %v28285_v9 }
 0x342   : > { %25101 = vmatprep.mubr.msk.f32.mxu0 %vm522_vm0, %v28098_v0 }
 0x343   : > { %24966 = vmatmul.mubr.msk.f32.vlgmr.msra.gmra.mxu1 %vm522_vm0, %v28277_v58 }
 0x344   : > { %24968 = vmatprep.mubr.msk.f32.mxu1 %vm522_vm0, %v28281_v40  ;;  %24980 = vmatpush3.msra.mxu1 %v28333_v55  ;;  %v28524_v55 = vpop.f32.mrf.mxu1 }
 0x345   : > { %25102 = vmatmul.mubr.msk.f32.vlgmr.msra.gmra.mxu0 %vm522_vm0, %v28277_v58  ;;  %24995 = vmatprep.subr.mxu1 %v28345_v18  ;;  %32693 = vst [vmem:[#allocation189_spill] sm:$0xff] %v28524_v55 }
 0x346   : > { %25104 = vmatprep.mubr.msk.f32.mxu0 %vm522_vm0, %v28281_v40  ;;  %25116 = vmatpush3.msra.mxu0 %v24879_v42  ;;  %v28535_v42 = vpop.f32.mrf.mxu1 }
 0x347   : > { %24969 = vmatmul.mubr.msk.f32.gmra.mxu1 %vm522_vm0, %v28285_v9  ;;  %25131 = vmatprep.subr.mxu0 %v24882_v50 }
 0x348   : > { %24981 = vmatprep.mubr.msk.f32.mxu1 %vm522_vm0, %v28098_v0  ;;  %v28546_v55 = vpop.f32.mrf.mxu1 }
 0x349   : > { %25105 = vmatmul.mubr.msk.f32.gmra.mxu0 %vm522_vm0, %v28285_v9  ;;  %32694 = vst [vmem:[#allocation190_spill] sm:$0xff] %v28546_v55 }
 0x34a   : > { %25117 = vmatprep.mubr.msk.f32.mxu0 %vm522_vm0, %v28098_v0 }
 0x34b   : > { %24982 = vmatmul.mubr.msk.f32.vlgmr.msra.gmra.mxu1 %vm522_vm0, %v28277_v58 }
 0x34c   : > { %24984 = vmatprep.mubr.msk.f32.mxu1 %vm522_vm0, %v28281_v40  ;;  %24996 = vmatpush3.msra.mxu1 %v28345_v18  ;;  %v28557_v18 = vpop.f32.mrf.mxu1 }
 0x34d   : > { %25118 = vmatmul.mubr.msk.f32.vlgmr.msra.gmra.mxu0 %vm522_vm0, %v28277_v58  ;;  %25011 = vmatprep.subr.mxu1 %v28361_v17 }
 0x34e   : > { %25120 = vmatprep.mubr.msk.f32.mxu0 %vm522_vm0, %v28281_v40  ;;  %25132 = vmatpush3.msra.mxu0 %v24882_v50  ;;  %v28568_v50 = vpop.f32.mrf.mxu1 }
 0x34f   : > { %24985 = vmatmul.mubr.msk.f32.gmra.mxu1 %vm522_vm0, %v28285_v9  ;;  %32695 = vst [vmem:[#allocation191_spill] sm:$0xff] %v28568_v50 }
 0x350   : > { %24997 = vmatprep.mubr.msk.f32.mxu1 %vm522_vm0, %v28098_v0 }
 0x351   : > { %25121 = vmatmul.mubr.msk.f32.gmra.mxu0 %vm522_vm0, %v28285_v9 }
 0x352   : > { %25133 = vmatprep.mubr.msk.f32.mxu0 %vm522_vm0, %v28098_v0 }
 0x353   : > { %24998 = vmatmul.mubr.msk.f32.vlgmr.msra.gmra.mxu1 %vm522_vm0, %v28277_v58 }
 0x354   : > { %25000 = vmatprep.mubr.msk.f32.mxu1 %vm522_vm0, %v28281_v40  ;;  %25012 = vmatpush3.msra.mxu1 %v28361_v17  ;;  %v28577_v17 = vpop.f32.mrf.mxu1 }
 0x355   : > { %25134 = vmatmul.mubr.msk.f32.vlgmr.msra.gmra.mxu0 %vm522_vm0, %v28277_v58  ;;  %25027 = vmatprep.subr.mxu1 %v28380_v5 }
 0x356   : > { %25136 = vmatprep.mubr.msk.f32.mxu0 %vm522_vm0, %v28281_v40  ;;  %v28584_v50 = vpop.f32.mrf.mxu1 }
 0x357   : > { %25001 = vmatmul.mubr.msk.f32.gmra.mxu1 %vm522_vm0, %v28285_v9  ;;  %32696 = vst [vmem:[#allocation192_spill] sm:$0xff] %v28584_v50 }
 0x358   : > { %25013 = vmatprep.mubr.msk.f32.mxu1 %vm522_vm0, %v28098_v0 }
 0x359   : > { %25137 = vmatmul.mubr.msk.f32.gmra.mxu0 %vm522_vm0, %v28285_v9 }
 0x35b   : > { %25014 = vmatmul.mubr.msk.f32.vlgmr.msra.gmra.mxu1 %vm522_vm0, %v28277_v58 }
 0x35c   : > { %25016 = vmatprep.mubr.msk.f32.mxu1 %vm522_vm0, %v28281_v40  ;;  %25028 = vmatpush3.msra.mxu1 %v28380_v5  ;;  %v28591_v5 = vpop.f32.mrf.mxu1 }
 0x35d   : > { %25043 = vmatprep.subr.mxu1 %v28404_v29 }
 0x35e   : > { %v28598_v55 = vpop.f32.mrf.mxu1 }
 0x35f   : > { %25017 = vmatmul.mubr.msk.f32.gmra.mxu1 %vm522_vm0, %v28285_v9  ;;  %32697 = vst [vmem:[#allocation193_spill] sm:$0xff] %v28598_v55 }
 0x360   : > { %25029 = vmatprep.mubr.msk.f32.mxu1 %vm522_vm0, %v28098_v0 }
 0x363   : > { %25030 = vmatmul.mubr.msk.f32.vlgmr.msra.gmra.mxu1 %vm522_vm0, %v28277_v58 }
 0x364   : > { %25032 = vmatprep.mubr.msk.f32.mxu1 %vm522_vm0, %v28281_v40  ;;  %25044 = vmatpush3.msra.mxu1 %v28404_v29  ;;  %v28605_v29 = vpop.f32.mrf.mxu1 }
 0x365   : > { %25059 = vmatprep.subr.mxu1 %v28428_v39 }
 0x366   : > { %v28612_v50 = vpop.f32.mrf.mxu1 }
 0x367   : > { %25033 = vmatmul.mubr.msk.f32.gmra.mxu1 %vm522_vm0, %v28285_v9  ;;  %32698 = vst [vmem:[#allocation194_spill] sm:$0xff] %v28612_v50 }
 0x368   : > { %25045 = vmatprep.mubr.msk.f32.mxu1 %vm522_vm0, %v28098_v0 }
 0x36b   : > { %25046 = vmatmul.mubr.msk.f32.vlgmr.msra.gmra.mxu1 %vm522_vm0, %v28277_v58 }
 0x36c   : > { %25048 = vmatprep.mubr.msk.f32.mxu1 %vm522_vm0, %v28281_v40  ;;  %25060 = vmatpush3.msra.mxu1 %v28428_v39  ;;  %v28619_v39 = vpop.f32.mrf.mxu1 }
 0x36d   : > { %25075 = vmatprep.subr.mxu1 %v28452_v53  ;;  %32699 = vst [vmem:[#allocation195_spill] sm:$0xff] %v28619_v39 }
 0x36e   : > { %v28626_v55 = vpop.f32.mrf.mxu1 }
 0x36f   : > { %25049 = vmatmul.mubr.msk.f32.gmra.mxu1 %vm522_vm0, %v28285_v9  ;;  %32700 = vst [vmem:[#allocation196_spill] sm:$0xff] %v28626_v55  ;;  %v6212_v55 = vpop.f32.mrf.mxu0 }
 0x370   : > { %25061 = vmatprep.mubr.msk.f32.mxu1 %vm522_vm0, %v28098_v0 }
 0x373   : > { %25062 = vmatmul.mubr.msk.f32.vlgmr.msra.gmra.mxu1 %vm522_vm0, %v28277_v58 }
 0x374   : > { %25064 = vmatprep.mubr.msk.f32.mxu1 %vm522_vm0, %v28281_v40  ;;  %25076 = vmatpush3.msra.mxu1 %v28452_v53  ;;  %v28633_v53 = vpop.f32.mrf.mxu1 }
 0x375   : > { %25091 = vmatprep.subr.mxu1 %v28476_v25  ;;  %32701 = vst [vmem:[#allocation197_spill] sm:$0xff] %v28633_v53  ;;  %v9101_v53 = vld [vmem:[#allocation5 + $0x178] sm:$0xff] }
 0x376   : > { %v28640_v50 = vpop.f32.mrf.mxu1 }
 0x377   : > { %25065 = vmatmul.mubr.msk.f32.gmra.mxu1 %vm522_vm0, %v28285_v9  ;;  %32702 = vst [vmem:[#allocation198_spill] sm:$0xff] %v28640_v50  ;;  %v26592_v50 = vld [vmem:[%s32478_s2 + $0x8] sm:$0xff] }
 0x378   : > { %25077 = vmatprep.mubr.msk.f32.mxu1 %vm522_vm0, %v28098_v0  ;;  %v28650_v46 = vpop.f32.mrf.mxu1  ;;  %9329 = vrot.lane.b32.xlu1 %v26592_v50, %s26829_s26 }
 0x379   : > { %32703 = vst [vmem:[#allocation199_spill] sm:$0xff] %v28650_v46  ;;  %v26594_v46 = vld [vmem:[%s32478_s2 + $0x18] sm:$0xff] }
 0x37b   : > { %25078 = vmatmul.mubr.msk.f32.vlgmr.msra.gmra.mxu1 %vm522_vm0, %v28277_v58 }
 0x37c   : > { %25080 = vmatprep.mubr.msk.f32.mxu1 %vm522_vm0, %v28281_v40  ;;  %25092 = vmatpush3.msra.mxu1 %v28476_v25  ;;  %v26591_v25 = vld [vmem:[%s32478_s2] sm:$0xff] }
 0x37d   : > { %25107 = vmatprep.subr.mxu1 %v28500_v38  ;;  %9327 = vrot.lane.b32.xlu0 %v26591_v25, %s26829_s26  ;;  %v26593_v25 = vld [vmem:[%s32478_s2 + $0x10] sm:$0xff] }
 0x37e   : > { %9333 = vrot.lane.b32.xlu1 %v26594_v46, %s26829_s26  ;;  %v9100_v46 = vld [vmem:[#allocation5 + $0x170] sm:$0xff] }
 0x37f   : > { %25081 = vmatmul.mubr.msk.f32.gmra.mxu1 %vm522_vm0, %v28285_v9 }
 0x380   : > { %25093 = vmatprep.mubr.msk.f32.mxu1 %vm522_vm0, %v28098_v0 }
 0x381   : > { %9331 = vrot.lane.b32.xlu0 %v26593_v25, %s26829_s26 }
 0x383   : > { %25094 = vmatmul.mubr.msk.f32.vlgmr.msra.gmra.mxu1 %vm522_vm0, %v28277_v58 }
 0x384   : > { %25096 = vmatprep.mubr.msk.f32.mxu1 %vm522_vm0, %v28281_v40  ;;  %25108 = vmatpush3.msra.mxu1 %v28500_v38  ;;  %v28662_v38 = vpop.f32.mrf.mxu1 }
 0x385   : > { %25123 = vmatprep.subr.mxu1 %v6212_v55  ;;  %32704 = vst [vmem:[#allocation200_spill] sm:$0xff] %v28662_v38 }
 0x386   : > { %v28671_v50 = vpop.f32.mrf.mxu1 }
 0x387   : > { %25097 = vmatmul.mubr.msk.f32.gmra.mxu1 %vm522_vm0, %v28285_v9  ;;  %32705 = vst [vmem:[#allocation201_spill] sm:$0xff] %v28671_v50  ;;  %v9098_v50 = vld [vmem:[#allocation5 + $0x160] sm:$0xff] }
 0x388   : > { %25109 = vmatprep.mubr.msk.f32.mxu1 %vm522_vm0, %v28098_v0  ;;  %v28677_v25 = vpop.f32.mrf.mxu1 }
 0x389   : > { %32706 = vst [vmem:[#allocation202_spill] sm:$0xff] %v28677_v25  ;;  %v26595_v25 = vld [vmem:[%s26988_s13] sm:$0xff] }
 0x38a   : > { %v28683_v38 = vpop.f32.mrf.mxu1 }
 0x38b   : > { %25110 = vmatmul.mubr.msk.f32.vlgmr.msra.gmra.mxu1 %vm522_vm0, %v28277_v58 }
 0x38c   : > { %25112 = vmatprep.mubr.msk.f32.mxu1 %vm522_vm0, %v28281_v40  ;;  %25124 = vmatpush3.msra.mxu1 %v6212_v55  ;;  %v9099_v55 = vld [vmem:[#allocation5 + $0x168] sm:$0xff]  ;;  %v28688_v39 = vpop.f32.mrf.mxu1 }
 0x38d   : > { %25139 = vmatprep.subr.mxu1 %v9101_v53  ;;  %32707 = vst [vmem:[#allocation203_spill] sm:$0xff] %v28688_v39 }
 0x38f   : > { %25113 = vmatmul.mubr.msk.f32.gmra.mxu1 %vm522_vm0, %v28285_v9 }
 0x390   : > { %25125 = vmatprep.mubr.msk.f32.mxu1 %vm522_vm0, %v28098_v0  ;;  %v9097_v0 = vld [vmem:[#allocation5 + $0x158] sm:$0xff] }
 0x393   : > { %25126 = vmatmul.mubr.msk.f32.vlgmr.msra.gmra.mxu1 %vm522_vm0, %v28277_v58  ;;  %v9096_v58 = vld [vmem:[#allocation5 + $0x150] sm:$0xff] }
 0x394   : > { %25140 = vmatpush3.msra.mxu1 %v9101_v53  ;;  %25128 = vmatprep.mubr.msk.f32.mxu1 %vm522_vm0, %v28281_v40  ;;  %v9095_v40 = vld [vmem:[#allocation5 + $0x148] sm:$0xff]  ;;  %v28690_v53 = vpop.f32.mrf.mxu1 }
 0x395   : > { %25141 = vmatprep.subr.mxu1 %v9100_v46  ;;  %32708 = vst [vmem:[#allocation204_spill] sm:$0xff] %v28690_v53 }
 0x396   : > { %25142 = vmatpush3.msra.mxu1 %v9100_v46  ;;  %v9094_v46 = vld [vmem:[#allocation5 + $0x140] sm:$0xff] }
 0x397   : > { %25143 = vmatprep.subr.mxu1 %v9099_v55  ;;  %25129 = vmatmul.mubr.msk.f32.gmra.mxu1 %vm522_vm0, %v28285_v9  ;;  %v9093_v9 = vld [vmem:[#allocation5 + $0x138] sm:$0xff] }
 0x398   : > { %25144 = vmatpush3.msra.mxu1 %v9099_v55  ;;  %25171 = vmatprep.mubr.f32.mxu1 %v26595_v25  ;;  %v28692_v55 = vpop.f32.mrf.mxu1  ;;  %v9092_v25 = vld [vmem:[#allocation5 + $0x130] sm:$0xff] }
 0x399   : > { %25145 = vmatprep.subr.mxu1 %v9098_v50  ;;  %32709 = vst [vmem:[#allocation205_spill] sm:$0xff] %v28692_v55 }
 0x39a   : > { %25146 = vmatpush3.msra.mxu1 %v9098_v50  ;;  %v9091_v50 = vld [vmem:[#allocation5 + $0x128] sm:$0xff]  ;;  %v28694_v39 = vpop.f32.mrf.mxu1 }
 0x39b   : > { %25147 = vmatprep.subr.mxu1 %v9097_v0  ;;  %32710 = vst [vmem:[#allocation206_spill] sm:$0xff] %v28694_v39 }
 0x39c   : > { %25148 = vmatpush3.msra.mxu1 %v9097_v0  ;;  %v9090_v0 = vld [vmem:[#allocation5 + $0x120] sm:$0xff]  ;;  %v28696_v53 = vpop.f32.mrf.mxu1 }
 0x39d   : > { %25149 = vmatprep.subr.mxu1 %v9096_v58  ;;  %32711 = vst [vmem:[#allocation207_spill] sm:$0xff] %v28696_v53  ;;  %v26596_v53 = vld [vmem:[%s26988_s13 + $0x8] sm:$0xff] }
 0x39e   : > { %25150 = vmatpush3.msra.mxu1 %v9096_v58  ;;  %v9089_v58 = vld [vmem:[#allocation5 + $0x118] sm:$0xff] }
 0x39f   : > { %25151 = vmatprep.subr.mxu1 %v9095_v40 }
 0x3a0   : > { %25152 = vmatpush3.msra.mxu1 %v9095_v40  ;;  %v9088_v40 = vld [vmem:[#allocation5 + $0x110] sm:$0xff] }
 0x3a1   : > { %25153 = vmatprep.subr.mxu1 %v9094_v46 }
 0x3a2   : > { %25154 = vmatpush3.msra.mxu1 %v9094_v46  ;;  %v9087_v46 = vld [vmem:[#allocation5 + $0x108] sm:$0xff] }
 0x3a3   : > { %25155 = vmatprep.subr.mxu1 %v9093_v9 }
 0x3a4   : > { %25156 = vmatpush3.msra.mxu1 %v9093_v9  ;;  %v28698_v9 = vpop.f32.mrf.mxu1 }
 0x3a5   : > { %25157 = vmatprep.subr.mxu1 %v9092_v25  ;;  %32712 = vst [vmem:[#allocation208_spill] sm:$0xff] %v28698_v9  ;;  %v26597_v9 = vld [vmem:[%s26988_s13 + $0x10] sm:$0xff] }
 0x3a6   : > { %25158 = vmatpush3.msra.mxu1 %v9092_v25  ;;  %v9086_v25 = vld [vmem:[#allocation5 + $0x100] sm:$0xff] }
 0x3a7   : > { %25159 = vmatprep.subr.mxu1 %v9091_v50 }
 0x3a8   : > { %25160 = vmatpush3.msra.mxu1 %v9091_v50  ;;  %v28700_v50 = vpop.f32.mrf.mxu1 }
 0x3a9   : > { %25161 = vmatprep.subr.mxu1 %v9090_v0  ;;  %32713 = vst [vmem:[#allocation209_spill] sm:$0xff] %v28700_v50  ;;  %v26598_v50 = vld [vmem:[%s26988_s13 + $0x18] sm:$0xff] }
 0x3aa   : > { %25162 = vmatpush3.msra.mxu1 %v9090_v0  ;;  %v3331_v0 = vadd.f32 %v28008_v59, %v27607_v4  ;;  %v26599_v59 = vld [vmem:[%s26988_s13 + $0x20] sm:$0xff] }
 0x3ab   : > { %25163 = vmatprep.subr.mxu1 %v9089_v58 }
 0x3ac   : > { %25164 = vmatpush3.msra.mxu1 %v9089_v58 }
 0x3ad   : > { %25165 = vmatprep.subr.mxu1 %v9088_v40 }
 0x3ae   : > { %25166 = vmatpush3.msra.mxu1 %v9088_v40 }
 0x3af   : > { %25167 = vmatprep.subr.mxu1 %v9087_v46 }
 0x3b0   : > { %25168 = vmatpush3.msra.mxu1 %v9087_v46  ;;  %v3341_v46 = vadd.f32 %v28022_v6, %v27619_v22  ;;  %v26601_v22 = vld [vmem:[%s26988_s13 + $0x30] sm:$0xff] }
 0x3b1   : > { %25169 = vmatprep.subr.mxu1 %v9086_v25 }
 0x3b2   : > { %25170 = vmatpush3.msra.mxu1 %v9086_v25  ;;  %v3416_v25 = vadd.f32 %v28215_v10, %v27635_v24  ;;  %v26603_v24 = vld [vmem:[%s26988_s13 + $0x40] sm:$0xff] }
 0x3b3   : > { %25172 = vmatmul.mubr.f32.vlgmr.msra.gmra.mxu1 %v26596_v53  ;;  %v24887_v58 = vpop.f32.mrf.mxu1 }
 0x3b4   : > { %v28705_v55 = vadd.f32 %v24887_v58, %v3331_v0  ;;  %25174 = vmatprep.mubr.f32.mxu1 %v26597_v9  ;;  %v26600_v9 = vld [vmem:[%s26988_s13 + $0x28] sm:$0xff] }
 0x3b5   : > { %v28708_v40 = vpop.f32.mrf.mxu1 }
 0x3b7   : > { %25175 = vmatmul.mubr.f32.gmra.mxu1 %v26598_v50  ;;  %v24890_v39 = vpop.f32.mrf.mxu1  ;;  %v26602_v50 = vld [vmem:[%s26988_s13 + $0x38] sm:$0xff] }
 0x3b8   : > { %v28713_v4 = vadd.f32 %v24890_v39, %v3341_v46  ;;  %25177 = vmatprep.mubr.f32.mxu1 %v26599_v59  ;;  %v3426_v39 = vadd.f32 %v28227_v32, %v27647_v26  ;;  %v4266_v26 = vadd.f32 %v28323_v41, %v27962_v52  ;;  %v4276_v52 = vadd.f32 %v28347_v7, %v27976_v37 }
 0x3b9   : > { %v28716_v53 = vpop.f32.mrf.mxu1  ;;  %v4436_v7 = vadd.f32 %v28369_v3, %v28006_v33  ;;  %v4446_v33 = vadd.f32 %v28393_v49, %v28020_v14  ;;  %v4606_v49 = vadd.f32 %v28417_v45, %v28034_v60  ;;  %v4616_v60 = vadd.f32 %v28441_v57, %v28048_v19 }
 0x3ba   : > { %v4776_v19 = vadd.f32 %v28465_v61, %v28060_v35  ;;  %v4786_v61 = vadd.f32 %v28489_v31, %v28070_v11  ;;  %v4946_v31 = vadd.f32 %v28513_v63, %v28078_v16  ;;  %v4956_v63 = vadd.f32 %v28535_v42, %v28086_v1 }
 0x3bb   : > { %25178 = vmatmul.mubr.f32.gmra.mxu1 %v26600_v9  ;;  %v24895_v0 = vpop.f32.mrf.mxu1  ;;  %v26604_v9 = vld [vmem:[%s26988_s13 + $0x48] sm:$0xff] }
 0x3bc   : > { %v28721_v58 = vadd.f32 %v24895_v0, %v3416_v25  ;;  %25180 = vmatprep.mubr.f32.mxu1 %v26601_v22  ;;  %v3501_v25 = vadd.f32 %v28036_v23, %v27663_v28  ;;  %v26605_v22 = vld [vmem:[%s26988_s13 + $0x50] sm:$0xff]  ;;  %v26606_v23 = vld [vmem:[%s26988_s13 + $0x58] sm:$0xff] }
 0x3bd   : > { %v28724_v6 = vpop.f32.mrf.mxu1 }
 0x3be   : > { %32714 = vst [vmem:[#allocation210_spill] sm:$0xff] %v28724_v6 }
 0x3bf   : > { %25181 = vmatmul.mubr.f32.gmra.mxu1 %v26602_v50  ;;  %v24898_v46 = vpop.f32.mrf.mxu1 }
 0x3c0   : > { %v28729_v59 = vadd.f32 %v24898_v46, %v3426_v39  ;;  %25183 = vmatprep.mubr.f32.mxu1 %v26603_v24  ;;  %v3511_v46 = vadd.f32 %v28050_v34, %v27677_v30  ;;  %v3586_v30 = vadd.f32 %v28235_v27, %v27692_v36  ;;  %v3596_v36 = vadd.f32 %v28243_v13, %v27710_v44 }
 0x3c1   : > { %v28732_v10 = vpop.f32.mrf.mxu1  ;;  %v3671_v44 = vadd.f32 %v28062_v15, %v27727_v54  ;;  %v3681_v54 = vadd.f32 %v28072_v12, %v27743_v62  ;;  %v3756_v62 = vadd.f32 %v28251_v56, %v27757_v2  ;;  %v3766_v56 = vadd.f32 %v28259_v43, %v27779_v8 }
 0x3c2   : > { %32715 = vst [vmem:[#allocation211_spill] sm:$0xff] %v28732_v10  ;;  %v3841_v8 = vadd.f32 %v28080_v47, %v27803_v20  ;;  %v3851_v20 = vadd.f32 %v28088_v21, %v27815_v51  ;;  %v32735_v51 = vld [vmem:[#allocation171_spill] sm:$0xff] }
 0x3c3   : > { %25184 = vmatmul.mubr.f32.gmra.mxu1 %v26604_v9  ;;  %v24903_v0 = vpop.f32.mrf.mxu1  ;;  %v3926_v21 = vadd.f32 %v32735_v51, %v27829_v48  ;;  %v32740_v48 = vld [vmem:[#allocation175_spill] sm:$0xff] }
 0x3c4   : > { %v28739_v32 = vadd.f32 %v24903_v0, %v3501_v25  ;;  %25186 = vmatprep.mubr.f32.mxu1 %v26605_v22  ;;  %v26607_v25 = vld [vmem:[%s26988_s13 + $0x60] sm:$0xff] }
 0x3c5   : > { %v28742_v39 = vpop.f32.mrf.mxu1  ;;  %v24975_v50 = vpop.f32.mrf.mxu0 }
 0x3c6   : > { %32716 = vst [vmem:[#allocation212_spill] sm:$0xff] %v28742_v39  ;;  %v28746_v24 = vadd.f32 %v24975_v50, %v4266_v26  ;;  %v32792_v39 = vld [vmem:[#allocation206_spill] sm:$0xff] }
 0x3c7   : > { %25187 = vmatmul.mubr.f32.gmra.mxu1 %v26606_v23  ;;  %v24906_v28 = vpop.f32.mrf.mxu1  ;;  %v28749_v9 = vpop.f32.mrf.mxu0  ;;  %v26608_v23 = vld [vmem:[%s26988_s13 + $0x68] sm:$0xff] }
 0x3c8   : > { %32717 = vst [vmem:[#allocation213_spill] sm:$0xff] %v28749_v9  ;;  %v28753_v41 = vadd.f32 %v24906_v28, %v3511_v46  ;;  %25189 = vmatprep.mubr.f32.mxu1 %v26607_v25  ;;  %v26609_v46 = vld [vmem:[%s26988_s13 + $0x70] sm:$0xff] }
 0x3c9   : > { %v28756_v0 = vpop.f32.mrf.mxu1  ;;  %v24978_v22 = vpop.f32.mrf.mxu0 }
 0x3ca   : > { %32718 = vst [vmem:[#allocation214_spill] sm:$0xff] %v28756_v0  ;;  %v28760_v34 = vadd.f32 %v24978_v22, %v4276_v52  ;;  %v32782_v0 = vld [vmem:[#allocation133_spill] sm:$0xff] }
 0x3cb   : > { %v24911_v26 = vpop.f32.mrf.mxu1  ;;  %v28762_v50 = vpop.f32.mrf.mxu0  ;;  %25190 = vmatmul.mubr.f32.gmra.mxu1 %v26608_v23  ;;  %v26610_v23 = vld [vmem:[%s26988_s13 + $0x78] sm:$0xff] }
 0x3cc   : > { %32719 = vst [vmem:[#allocation215_spill] sm:$0xff] %v28762_v50  ;;  %v28767_v37 = vadd.f32 %v24911_v26, %v3586_v30  ;;  %25192 = vmatprep.mubr.f32.mxu1 %v26609_v46  ;;  %v26611_v30 = vld [vmem:[%s26988_s13 + $0x80] sm:$0xff] }
 0x3cd   : > { %v28770_v28 = vpop.f32.mrf.mxu1  ;;  %v24991_v25 = vpop.f32.mrf.mxu0 }
 0x3ce   : > { %32720 = vst [vmem:[#allocation216_spill] sm:$0xff] %v28770_v28  ;;  %v28774_v27 = vadd.f32 %v24991_v25, %v4436_v7 }
 0x3cf   : > { %v24914_v52 = vpop.f32.mrf.mxu1  ;;  %v28776_v22 = vpop.f32.mrf.mxu0  ;;  %25193 = vmatmul.mubr.f32.gmra.mxu1 %v26610_v23  ;;  %v26612_v23 = vld [vmem:[%s26988_s13 + $0x88] sm:$0xff] }
 0x3d0   : > { %32721 = vst [vmem:[#allocation217_spill] sm:$0xff] %v28776_v22  ;;  %v28781_v3 = vadd.f32 %v24914_v52, %v3596_v36  ;;  %25195 = vmatprep.mubr.f32.mxu1 %v26611_v30  ;;  %v26613_v36 = vld [vmem:[%s26988_s13 + $0x90] sm:$0xff] }
 0x3d1   : > { %v28784_v26 = vpop.f32.mrf.mxu1  ;;  %v24994_v46 = vpop.f32.mrf.mxu0 }
 0x3d2   : > { %32722 = vst [vmem:[#allocation218_spill] sm:$0xff] %v28784_v26  ;;  %v28788_v13 = vadd.f32 %v24994_v46, %v4446_v33 }
 0x3d3   : > { %v24919_v7 = vpop.f32.mrf.mxu1  ;;  %v28790_v25 = vpop.f32.mrf.mxu0  ;;  %25196 = vmatmul.mubr.f32.gmra.mxu1 %v26612_v23  ;;  %v26614_v23 = vld [vmem:[%s26988_s13 + $0x98] sm:$0xff] }
 0x3d4   : > { %32723 = vst [vmem:[#allocation219_spill] sm:$0xff] %v28790_v25  ;;  %v28795_v14 = vadd.f32 %v24919_v7, %v3671_v44  ;;  %25198 = vmatprep.mubr.f32.mxu1 %v26613_v36  ;;  %v26615_v44 = vld [vmem:[%s26988_s13 + $0xa0] sm:$0xff] }
 0x3d5   : > { %v28798_v52 = vpop.f32.mrf.mxu1  ;;  %v25007_v30 = vpop.f32.mrf.mxu0 }
 0x3d6   : > { %32724 = vst [vmem:[#allocation220_spill] sm:$0xff] %v28798_v52  ;;  %v28802_v15 = vadd.f32 %v25007_v30, %v4606_v49 }
 0x3d7   : > { %v24922_v33 = vpop.f32.mrf.mxu1  ;;  %v28804_v46 = vpop.f32.mrf.mxu0  ;;  %25199 = vmatmul.mubr.f32.gmra.mxu1 %v26614_v23  ;;  %v26616_v23 = vld [vmem:[%s26988_s13 + $0xa8] sm:$0xff] }
 0x3d8   : > { %32725 = vst [vmem:[#allocation221_spill] sm:$0xff] %v28804_v46  ;;  %v28809_v45 = vadd.f32 %v24922_v33, %v3681_v54  ;;  %25201 = vmatprep.mubr.f32.mxu1 %v26615_v44  ;;  %v26617_v54 = vld [vmem:[%s26988_s13 + $0xb0] sm:$0xff] }
 0x3d9   : > { %v28812_v7 = vpop.f32.mrf.mxu1  ;;  %v25010_v36 = vpop.f32.mrf.mxu0 }
 0x3da   : > { %32726 = vst [vmem:[#allocation222_spill] sm:$0xff] %v28812_v7  ;;  %v28816_v12 = vadd.f32 %v25010_v36, %v4616_v60 }
 0x3db   : > { %v24927_v49 = vpop.f32.mrf.mxu1  ;;  %v28818_v30 = vpop.f32.mrf.mxu0  ;;  %25202 = vmatmul.mubr.f32.gmra.mxu1 %v26616_v23  ;;  %v26618_v23 = vld [vmem:[%s26988_s13 + $0xb8] sm:$0xff] }
 0x3dc   : > { %32727 = vst [vmem:[#allocation223_spill] sm:$0xff] %v28818_v30  ;;  %v28823_v57 = vadd.f32 %v24927_v49, %v3756_v62  ;;  %25204 = vmatprep.mubr.f32.mxu1 %v26617_v54  ;;  %v26619_v62 = vld [vmem:[%s26988_s13 + $0xc0] sm:$0xff] }
 0x3dd   : > { %v28826_v33 = vpop.f32.mrf.mxu1  ;;  %v25023_v44 = vpop.f32.mrf.mxu0 }
 0x3de   : > { %32728 = vst [vmem:[#allocation224_spill] sm:$0xff] %v28826_v33  ;;  %v28830_v2 = vadd.f32 %v25023_v44, %v4776_v19 }
 0x3df   : > { %v24930_v60 = vpop.f32.mrf.mxu1  ;;  %v28832_v36 = vpop.f32.mrf.mxu0  ;;  %25205 = vmatmul.mubr.f32.gmra.mxu1 %v26618_v23  ;;  %v26620_v23 = vld [vmem:[%s26988_s13 + $0xc8] sm:$0xff] }
 0x3e0   : > { %32729 = vst [vmem:[#allocation225_spill] sm:$0xff] %v28832_v36  ;;  %v28837_v35 = vadd.f32 %v24930_v60, %v3766_v56  ;;  %25207 = vmatprep.mubr.f32.mxu1 %v26619_v62  ;;  %v26621_v56 = vld [vmem:[%s26988_s13 + $0xd0] sm:$0xff] }
 0x3e1   : > { %v28840_v49 = vpop.f32.mrf.mxu1  ;;  %v25026_v54 = vpop.f32.mrf.mxu0 }
 0x3e2   : > { %32730 = vst [vmem:[#allocation226_spill] sm:$0xff] %v28840_v49  ;;  %v28844_v43 = vadd.f32 %v25026_v54, %v4786_v61 }
 0x3e3   : > { %v24935_v19 = vpop.f32.mrf.mxu1  ;;  %v28846_v44 = vpop.f32.mrf.mxu0  ;;  %25208 = vmatmul.mubr.f32.gmra.mxu1 %v26620_v23  ;;  %v26622_v23 = vld [vmem:[%s26988_s13 + $0xd8] sm:$0xff] }
 0x3e4   : > { %32731 = vst [vmem:[#allocation227_spill] sm:$0xff] %v28846_v44  ;;  %v28851_v11 = vadd.f32 %v24935_v19, %v3841_v8  ;;  %25210 = vmatprep.mubr.f32.mxu1 %v26621_v56  ;;  %v26623_v8 = vld [vmem:[%s26988_s13 + $0xe0] sm:$0xff] }
 0x3e5   : > { %v28854_v60 = vpop.f32.mrf.mxu1  ;;  %v25039_v62 = vpop.f32.mrf.mxu0 }
 0x3e6   : > { %32732 = vst [vmem:[#allocation228_spill] sm:$0xff] %v28854_v60  ;;  %v28858_v47 = vadd.f32 %v25039_v62, %v4946_v31  ;;  %v32737_v60 = vld [vmem:[#allocation95_spill] sm:$0xff] }
 0x3e7   : > { %v24938_v61 = vpop.f32.mrf.mxu1  ;;  %v28860_v54 = vpop.f32.mrf.mxu0  ;;  %25211 = vmatmul.mubr.f32.gmra.mxu1 %v26622_v23  ;;  %v26624_v23 = vld [vmem:[%s26988_s13 + $0xe8] sm:$0xff]  ;;  %v5116_v1 = vadd.f32 %v28557_v18, %v32737_v60 }
 0x3e8   : > { %32733 = vst [vmem:[#allocation229_spill] sm:$0xff] %v28860_v54  ;;  %v28865_v16 = vadd.f32 %v24938_v61, %v3851_v20  ;;  %25213 = vmatprep.mubr.f32.mxu1 %v26623_v8  ;;  %v26625_v20 = vld [vmem:[%s26988_s13 + $0xf0] sm:$0xff] }
 0x3e9   : > { %v28868_v19 = vpop.f32.mrf.mxu1  ;;  %v25042_v56 = vpop.f32.mrf.mxu0 }
 0x3ea   : > { %32734 = vst [vmem:[#allocation230_spill] sm:$0xff] %v28868_v19  ;;  %v28872_v31 = vadd.f32 %v25042_v56, %v4956_v63  ;;  %v32739_v19 = vld [vmem:[#allocation44_spill] sm:$0xff] }
 0x3eb   : > { %v24943_v62 = vpop.f32.mrf.mxu1  ;;  %v28874_v54 = vpop.f32.mrf.mxu0  ;;  %25214 = vmatmul.mubr.f32.gmra.mxu1 %v26624_v23  ;;  %v3936_v51 = vadd.f32 %v32740_v48, %v32739_v19  ;;  %v32742_v23 = vld [vmem:[#allocation99_spill] sm:$0xff] }
 0x3ec   : > { %32736 = vst [vmem:[#allocation171_spill] sm:$0xff] %v28874_v54  ;;  %v28879_v42 = vadd.f32 %v24943_v62, %v3926_v21  ;;  %25216 = vmatprep.mubr.f32.mxu1 %v26625_v20  ;;  %v26626_v54 = vld [vmem:[%s26988_s13 + $0xf8] sm:$0xff]  ;;  %v5126_v18 = vadd.f32 %v28577_v17, %v32742_v23  ;;  %v32744_v20 = vld [vmem:[#allocation48_spill] sm:$0xff] }
 0x3ed   : > { %v28882_v61 = vpop.f32.mrf.mxu1  ;;  %v25055_v8 = vpop.f32.mrf.mxu0 }
 0x3ee   : > { %32738 = vst [vmem:[#allocation95_spill] sm:$0xff] %v28882_v61  ;;  %v28886_v63 = vadd.f32 %v25055_v8, %v5116_v1  ;;  %v32745_v61 = vld [vmem:[#allocation96_spill] sm:$0xff]  ;;  %v32747_v8 = vld [vmem:[#allocation103_spill] sm:$0xff] }
 0x3ef   : > { %v24946_v56 = vpop.f32.mrf.mxu1  ;;  %v28888_v44 = vpop.f32.mrf.mxu0  ;;  %25217 = vmatmul.mubr.f32.gmra.mxu1 %v26626_v54  ;;  %v4011_v49 = vadd.f32 %v32745_v61, %v32744_v20  ;;  %v5286_v48 = vadd.f32 %v28591_v5, %v32747_v8  ;;  %v32752_v5 = vld [vmem:[#allocation107_spill] sm:$0xff]  ;;  %v32754_v8 = vld [vmem:[#allocation56_spill] sm:$0xff] }
 0x3f0   : > { %32741 = vst [vmem:[#allocation44_spill] sm:$0xff] %v28888_v44  ;;  %v28893_v60 = vadd.f32 %v24946_v56, %v3936_v51  ;;  %v32749_v51 = vld [vmem:[#allocation52_spill] sm:$0xff]  ;;  %v28913_v33 = vpop.permute.xlu0 %9327 }
 0x3f1   : > { %v28895_v21 = vpop.f32.mrf.mxu1  ;;  %v25058_v62 = vpop.f32.mrf.mxu0  ;;  %v32750_v56 = vld [vmem:[#allocation100_spill] sm:$0xff]  ;;  %25221 = vmatprep.mubr.msk.f32.mxu0 %vm522_vm0, %v28913_v33  ;;  %25309 = vmatprep.mubr.msk.f32.mxu1 %vm522_vm0, %v28913_v33 }
 0x3f2   : > { %32743 = vst [vmem:[#allocation175_spill] sm:$0xff] %v28895_v21  ;;  %v28899_v36 = vadd.f32 %v25058_v62, %v5126_v18  ;;  %v4021_v23 = vadd.f32 %v32750_v56, %v32749_v51 }
 0x3f3   : > { %v24951_v19 = vpop.f32.mrf.mxu1  ;;  %v28901_v1 = vpop.f32.mrf.mxu0 }
 0x3f4   : > { %32746 = vst [vmem:[#allocation99_spill] sm:$0xff] %v28901_v1  ;;  %v28905_v54 = vadd.f32 %v24951_v19, %v4011_v49  ;;  %v5296_v49 = vadd.f32 %v28605_v29, %v32752_v5  ;;  %v32758_v1 = vld [vmem:[#allocation195_spill] sm:$0xff] }
 0x3f5   : > { %v28907_v44 = vpop.f32.mrf.mxu1  ;;  %v25071_v17 = vpop.f32.mrf.mxu0 }
 0x3f6   : > { %32748 = vst [vmem:[#allocation48_spill] sm:$0xff] %v28907_v44  ;;  %v28911_v21 = vadd.f32 %v25071_v17, %v5286_v48  ;;  %v32755_v48 = vld [vmem:[#allocation177_spill] sm:$0xff]  ;;  %v32757_v44 = vld [vmem:[#allocation111_spill] sm:$0xff] }
 0x3f7   : > { %v24954_v61 = vpop.f32.mrf.mxu1  ;;  %v28915_v18 = vpop.f32.mrf.mxu0  ;;  %v4096_v17 = vadd.f32 %v32755_v48, %v32754_v8  ;;  %v5456_v30 = vadd.f32 %v32758_v1, %v32757_v44 }
 0x3f8   : > { %32751 = vst [vmem:[#allocation96_spill] sm:$0xff] %v28915_v18  ;;  %v28923_v62 = vadd.f32 %v24954_v61, %v4021_v23  ;;  %v32760_v23 = vld [vmem:[#allocation60_spill] sm:$0xff]  ;;  %v32761_v61 = vld [vmem:[#allocation179_spill] sm:$0xff] }
 0x3f9   : > { %v28925_v20 = vpop.f32.mrf.mxu1  ;;  %v25074_v19 = vpop.f32.mrf.mxu0  ;;  %v4106_v5 = vadd.f32 %v32761_v61, %v32760_v23  ;;  %v32768_v23 = vld [vmem:[#allocation199_spill] sm:$0xff] }
 0x3fa   : > { %32753 = vst [vmem:[#allocation103_spill] sm:$0xff] %v28925_v20  ;;  %v28929_v51 = vadd.f32 %v25074_v19, %v5296_v49  ;;  %v32763_v49 = vld [vmem:[#allocation115_spill] sm:$0xff]  ;;  %v32764_v19 = vld [vmem:[#allocation197_spill] sm:$0xff] }
 0x3fb   : > { %v24959_v56 = vpop.f32.mrf.mxu1  ;;  %v28931_v18 = vpop.f32.mrf.mxu0  ;;  %v5466_v48 = vadd.f32 %v32764_v19, %v32763_v49  ;;  %v32772_v19 = vld [vmem:[#allocation123_spill] sm:$0xff] }
 0x3fc   : > { %32756 = vst [vmem:[#allocation52_spill] sm:$0xff] %v28931_v18  ;;  %v28935_v7 = vadd.f32 %v24959_v56, %v4096_v17 }
 0x3fd   : > { %v28937_v46 = vpop.f32.mrf.mxu1  ;;  %v25087_v29 = vpop.f32.mrf.mxu0 }
 0x3fe   : > { %32759 = vst [vmem:[#allocation100_spill] sm:$0xff] %v28937_v46  ;;  %v28941_v20 = vadd.f32 %v25087_v29, %v5456_v30  ;;  %v32767_v46 = vld [vmem:[#allocation119_spill] sm:$0xff]  ;;  %v32769_v29 = vld [vmem:[#allocation104_spill] sm:$0xff] }
 0x3ff   : > { %v24962_v52 = vpop.f32.mrf.mxu1  ;;  %v28943_v8 = vpop.f32.mrf.mxu0  ;;  %v5626_v30 = vadd.f32 %v32768_v23, %v32767_v46  ;;  %v32776_v23 = vld [vmem:[#allocation17_spill] sm:$0xff] }
 0x400   : > { %32762 = vst [vmem:[#allocation107_spill] sm:$0xff] %v28943_v8  ;;  %v28947_v18 = vadd.f32 %v24962_v52, %v4106_v5 }
 0x401   : > { %v28949_v25 = vpop.f32.mrf.mxu1  ;;  %v25090_v44 = vpop.f32.mrf.mxu0 }
 0x402   : > { %32765 = vst [vmem:[#allocation56_spill] sm:$0xff] %v28949_v25  ;;  %v28951_v1 = vadd.f32 %v25090_v44, %v5466_v48  ;;  %v32773_v48 = vld [vmem:[#allocation201_spill] sm:$0xff]  ;;  %v32774_v25 = vld [vmem:[#allocation108_spill] sm:$0xff] }
 0x403   : > { %v24967_v17 = vpop.f32.mrf.mxu1  ;;  %v28953_v56 = vpop.f32.mrf.mxu0  ;;  %v5636_v44 = vadd.f32 %v32773_v48, %v32772_v19 }
 0x404   : > { %32766 = vst [vmem:[#allocation177_spill] sm:$0xff] %v28953_v56  ;;  %v28958_v61 = vadd.f32 %v24967_v17, %v32769_v29  ;;  %v32777_v17 = vld [vmem:[#allocation112_spill] sm:$0xff] }
 0x405   : > { %v28960_v8 = vpop.f32.mrf.mxu1  ;;  %v25103_v26 = vpop.f32.mrf.mxu0  ;;  %v4351_v29 = vadd.f32 %v32777_v17, %v32776_v23  ;;  %v32783_v23 = vld [vmem:[#allocation204_spill] sm:$0xff] }
 0x406   : > { %32770 = vst [vmem:[#allocation111_spill] sm:$0xff] %v28960_v8  ;;  %v28962_v49 = vadd.f32 %v25103_v26, %v5626_v30  ;;  %v32779_v30 = vld [vmem:[#allocation127_spill] sm:$0xff] }
 0x407   : > { %v24970_v52 = vpop.f32.mrf.mxu1  ;;  %v28964_v5 = vpop.f32.mrf.mxu0 }
 0x408   : > { %32771 = vst [vmem:[#allocation195_spill] sm:$0xff] %v28964_v5  ;;  %v28969_v22 = vadd.f32 %v24970_v52, %v32774_v25  ;;  %v5796_v5 = vadd.f32 %v28683_v38, %v32779_v30  ;;  %v32787_v38 = vld [vmem:[#allocation20_spill] sm:$0xff] }
 0x409   : > { %v28971_v56 = vpop.f32.mrf.mxu1  ;;  %v25106_v46 = vpop.f32.mrf.mxu0 }
 0x40a   : > { %32775 = vst [vmem:[#allocation60_spill] sm:$0xff] %v28971_v56  ;;  %v28975_v28 = vadd.f32 %v25106_v46, %v5636_v44  ;;  %v5806_v44 = vadd.f32 %v32783_v23, %v32782_v0  ;;  %v32784_v46 = vld [vmem:[#allocation116_spill] sm:$0xff]  ;;  %v32795_v23 = vld [vmem:[#allocation23_spill] sm:$0xff] }
 0x40b   : > { %v24983_v8 = vpop.f32.mrf.mxu1  ;;  %v28977_v26 = vpop.f32.mrf.mxu0 }
 0x40c   : > { %32778 = vst [vmem:[#allocation179_spill] sm:$0xff] %v28977_v26  ;;  %v28981_v50 = vadd.f32 %v24983_v8, %v4351_v29  ;;  %v32788_v8 = vld [vmem:[#allocation120_spill] sm:$0xff] }
 0x40d   : > { %v28983_v19 = vpop.f32.mrf.mxu1  ;;  %v25119_v25 = vpop.f32.mrf.mxu0  ;;  %v4521_v29 = vadd.f32 %v32788_v8, %v32787_v38 }
 0x40e   : > { %32780 = vst [vmem:[#allocation115_spill] sm:$0xff] %v28983_v19  ;;  %v28985_v52 = vadd.f32 %v25119_v25, %v5796_v5  ;;  %v32791_v25 = vld [vmem:[#allocation139_spill] sm:$0xff] }
 0x40f   : > { %v24986_v48 = vpop.f32.mrf.mxu1  ;;  %v28987_v56 = vpop.f32.mrf.mxu0 }
 0x410   : > { %32781 = vst [vmem:[#allocation197_spill] sm:$0xff] %v28987_v56  ;;  %v28992_v17 = vadd.f32 %v24986_v48, %v32784_v46  ;;  %v5966_v56 = vadd.f32 %v32792_v39, %v32791_v25  ;;  %v32796_v46 = vld [vmem:[#allocation124_spill] sm:$0xff] }
 0x411   : > { %v28994_v26 = vpop.f32.mrf.mxu1  ;;  %v25122_v9 = vpop.f32.mrf.mxu0 }
 0x412   : > { %32785 = vst [vmem:[#allocation119_spill] sm:$0xff] %v28992_v17  ;;  %32786 = vst [vmem:[#allocation199_spill] sm:$0xff] %v28994_v26  ;;  %v28998_v30 = vadd.f32 %v25122_v9, %v5806_v44  ;;  %v4531_v26 = vadd.f32 %v32796_v46, %v32795_v23  ;;  %v32799_v9 = vld [vmem:[#allocation145_spill] sm:$0xff]  ;;  %v32800_v44 = vld [vmem:[#allocation208_spill] sm:$0xff] }
 0x413   : > { %v24999_v19 = vpop.f32.mrf.mxu1  ;;  %v29000_v5 = vpop.f32.mrf.mxu0  ;;  %v5976_v8 = vadd.f32 %v32800_v44, %v32799_v9  ;;  %v32807_v46 = vld [vmem:[#allocation131_spill] sm:$0xff]  ;;  %v32811_v44 = vld [vmem:[#allocation134_spill] sm:$0xff] }
 0x414   : > { %32789 = vst [vmem:[#allocation104_spill] sm:$0xff] %v28998_v30  ;;  %32790 = vst [vmem:[#allocation123_spill] sm:$0xff] %v29000_v5  ;;  %v29004_v10 = vadd.f32 %v24999_v19, %v4521_v29  ;;  %v32803_v19 = vld [vmem:[#allocation26_spill] sm:$0xff]  ;;  %v32804_v29 = vld [vmem:[#allocation128_spill] sm:$0xff] }
 0x415   : > { %v29006_v0 = vpop.f32.mrf.mxu1  ;;  %v25135_v48 = vpop.f32.mrf.mxu0  ;;  %v4691_v25 = vadd.f32 %v32804_v29, %v32803_v19 }
 0x416   : > { %32793 = vst [vmem:[#allocation201_spill] sm:$0xff] %v29004_v10  ;;  %32794 = vst [vmem:[#allocation108_spill] sm:$0xff] %v29006_v0  ;;  %v29010_v6 = vadd.f32 %v25135_v48, %v5966_v56  ;;  %v32806_v48 = vld [vmem:[#allocation29_spill] sm:$0xff] }
 0x417   : > { %v25002_v17 = vpop.f32.mrf.mxu1  ;;  %v29012_v38 = vpop.f32.mrf.mxu0 }
 0x418   : > { %32797 = vst [vmem:[#allocation17_spill] sm:$0xff] %v29010_v6  ;;  %32798 = vst [vmem:[#allocation112_spill] sm:$0xff] %v29012_v38  ;;  %v29016_v5 = vadd.f32 %v25002_v17, %v4531_v26  ;;  %v4701_v38 = vadd.f32 %v32807_v46, %v32806_v48  ;;  %v32810_v17 = vld [vmem:[#allocation32_spill] sm:$0xff] }
 0x419   : > { %v29018_v30 = vpop.f32.mrf.mxu1  ;;  %v25138_v39 = vpop.f32.mrf.mxu0 }
 0x41a   : > { %32801 = vst [vmem:[#allocation127_spill] sm:$0xff] %v29016_v5  ;;  %32802 = vst [vmem:[#allocation133_spill] sm:$0xff] %v29018_v30  ;;  %v29022_v0 = vadd.f32 %v25138_v39, %v5976_v8  ;;  %v4861_v30 = vadd.f32 %v32811_v44, %v32810_v17  ;;  %v32815_v39 = vld [vmem:[#allocation137_spill] sm:$0xff] }
 0x41b   : > { %v25015_v10 = vpop.f32.mrf.mxu1 }
 0x41c   : > { %v29024_v23 = vadd.f32 %v25015_v10, %v4691_v25  ;;  %v32814_v10 = vld [vmem:[#allocation35_spill] sm:$0xff] }
 0x41d   : > { %v29026_v56 = vpop.f32.mrf.mxu1  ;;  %v4871_v29 = vadd.f32 %v32815_v39, %v32814_v10  ;;  %v32826_v39 = vld [vmem:[#allocation45_spill] sm:$0xff] }
 0x41e   : > { %32805 = vst [vmem:[#allocation204_spill] sm:$0xff] %v29026_v56 }
 0x41f   : > { %v25018_v6 = vpop.f32.mrf.mxu1 }
 0x420   : > { %v29030_v9 = vadd.f32 %v25018_v6, %v4701_v38  ;;  %v32818_v6 = vld [vmem:[#allocation38_spill] sm:$0xff]  ;;  %v32819_v38 = vld [vmem:[#allocation140_spill] sm:$0xff] }
 0x421   : > { %v29032_v26 = vpop.f32.mrf.mxu1  ;;  %v5031_v46 = vadd.f32 %v32819_v38, %v32818_v6  ;;  %v32831_v38 = vld [vmem:[#allocation149_spill] sm:$0xff] }
 0x422   : > { %32808 = vst [vmem:[#allocation116_spill] sm:$0xff] %v29030_v9  ;;  %32809 = vst [vmem:[#allocation20_spill] sm:$0xff] %v29032_v26 }
 0x423   : > { %v25031_v5 = vpop.f32.mrf.mxu1 }
 0x424   : > { %v29036_v19 = vadd.f32 %v25031_v5, %v4861_v30  ;;  %v32822_v30 = vld [vmem:[#allocation41_spill] sm:$0xff]  ;;  %v32823_v5 = vld [vmem:[#allocation143_spill] sm:$0xff] }
 0x425   : > { %v29038_v8 = vpop.f32.mrf.mxu1  ;;  %v5041_v44 = vadd.f32 %v32823_v5, %v32822_v30  ;;  %v32835_v5 = vld [vmem:[#allocation151_spill] sm:$0xff] }
 0x426   : > { %32812 = vst [vmem:[#allocation120_spill] sm:$0xff] %v29036_v19  ;;  %32813 = vst [vmem:[#allocation139_spill] sm:$0xff] %v29038_v8 }
 0x427   : > { %v25034_v25 = vpop.f32.mrf.mxu1 }
 0x428   : > { %v29042_v56 = vadd.f32 %v25034_v25, %v4871_v29  ;;  %v32827_v29 = vld [vmem:[#allocation146_spill] sm:$0xff] }
 0x429   : > { %v29044_v48 = vpop.f32.mrf.mxu1  ;;  %v5201_v25 = vadd.f32 %v32827_v29, %v32826_v39  ;;  %v32839_v29 = vld [vmem:[#allocation154_spill] sm:$0xff] }
 0x42a   : > { %32816 = vst [vmem:[#allocation206_spill] sm:$0xff] %v29042_v56  ;;  %32817 = vst [vmem:[#allocation23_spill] sm:$0xff] %v29044_v48 }
 0x42b   : > { %v25047_v26 = vpop.f32.mrf.mxu1 }
 0x42c   : > { %v29048_v9 = vadd.f32 %v25047_v26, %v5031_v46  ;;  %v32830_v26 = vld [vmem:[#allocation49_spill] sm:$0xff] }
 0x42d   : > { %v29050_v17 = vpop.f32.mrf.mxu1  ;;  %v5211_v46 = vadd.f32 %v32831_v38, %v32830_v26  ;;  %v32843_v38 = vld [vmem:[#allocation156_spill] sm:$0xff] }
 0x42e   : > { %32820 = vst [vmem:[#allocation124_spill] sm:$0xff] %v29048_v9  ;;  %32821 = vst [vmem:[#allocation145_spill] sm:$0xff] %v29050_v17 }
 0x42f   : > { %v25050_v8 = vpop.f32.mrf.mxu1 }
 0x430   : > { %v29054_v19 = vadd.f32 %v25050_v8, %v5041_v44  ;;  %v32834_v8 = vld [vmem:[#allocation53_spill] sm:$0xff] }
 0x431   : > { %v29056_v10 = vpop.f32.mrf.mxu1  ;;  %v5371_v44 = vadd.f32 %v32835_v5, %v32834_v8  ;;  %v32847_v5 = vld [vmem:[#allocation159_spill] sm:$0xff] }
 0x432   : > { %32824 = vst [vmem:[#allocation208_spill] sm:$0xff] %v29054_v19  ;;  %32825 = vst [vmem:[#allocation26_spill] sm:$0xff] %v29056_v10 }
 0x433   : > { %v25063_v48 = vpop.f32.mrf.mxu1 }
 0x434   : > { %v29060_v56 = vadd.f32 %v25063_v48, %v5201_v25  ;;  %v32838_v48 = vld [vmem:[#allocation57_spill] sm:$0xff] }
 0x435   : > { %v29062_v6 = vpop.f32.mrf.mxu1  ;;  %v5381_v25 = vadd.f32 %v32839_v29, %v32838_v48  ;;  %v32851_v29 = vld [vmem:[#allocation162_spill] sm:$0xff] }
 0x436   : > { %32828 = vst [vmem:[#allocation128_spill] sm:$0xff] %v29060_v56  ;;  %32829 = vst [vmem:[#allocation29_spill] sm:$0xff] %v29062_v6 }
 0x437   : > { %v25066_v17 = vpop.f32.mrf.mxu1 }
 0x438   : > { %v29066_v9 = vadd.f32 %v25066_v17, %v5211_v46  ;;  %v32842_v17 = vld [vmem:[#allocation61_spill] sm:$0xff] }
 0x439   : > { %v29068_v30 = vpop.f32.mrf.mxu1  ;;  %v5541_v46 = vadd.f32 %v32843_v38, %v32842_v17  ;;  %v32855_v38 = vld [vmem:[#allocation165_spill] sm:$0xff] }
 0x43a   : > { %32832 = vst [vmem:[#allocation131_spill] sm:$0xff] %v29066_v9  ;;  %32833 = vst [vmem:[#allocation32_spill] sm:$0xff] %v29068_v30 }
 0x43b   : > { %v25079_v10 = vpop.f32.mrf.mxu1 }
 0x43c   : > { %v29072_v19 = vadd.f32 %v25079_v10, %v5371_v44  ;;  %v32846_v10 = vld [vmem:[#allocation64_spill] sm:$0xff] }
 0x43d   : > { %v29074_v39 = vpop.f32.mrf.mxu1  ;;  %v5551_v44 = vadd.f32 %v32847_v5, %v32846_v10  ;;  %v32858_v5 = vld [vmem:[#allocation168_spill] sm:$0xff] }
 0x43e   : > { %32836 = vst [vmem:[#allocation134_spill] sm:$0xff] %v29072_v19  ;;  %32837 = vst [vmem:[#allocation35_spill] sm:$0xff] %v29074_v39 }
 0x43f   : > { %v25082_v6 = vpop.f32.mrf.mxu1 }
 0x440   : > { %v29078_v56 = vadd.f32 %v25082_v6, %v5381_v25  ;;  %v32850_v6 = vld [vmem:[#allocation67_spill] sm:$0xff] }
 0x441   : > { %v29080_v26 = vpop.f32.mrf.mxu1  ;;  %v5711_v25 = vadd.f32 %v32851_v29, %v32850_v6  ;;  %v32861_v29 = vld [vmem:[#allocation172_spill] sm:$0xff] }
 0x442   : > { %32840 = vst [vmem:[#allocation137_spill] sm:$0xff] %v29078_v56  ;;  %32841 = vst [vmem:[#allocation38_spill] sm:$0xff] %v29080_v26 }
 0x443   : > { %v25095_v30 = vpop.f32.mrf.mxu1 }
 0x444   : > { %v29084_v9 = vadd.f32 %v25095_v30, %v5541_v46  ;;  %v32854_v30 = vld [vmem:[#allocation70_spill] sm:$0xff] }
 0x445   : > { %v29086_v8 = vpop.f32.mrf.mxu1  ;;  %v5721_v46 = vadd.f32 %v32855_v38, %v32854_v30  ;;  %v29118_v38 = vpop.permute.xlu1 %9329 }
 0x446   : > { %32844 = vst [vmem:[#allocation140_spill] sm:$0xff] %v29084_v9  ;;  %32845 = vst [vmem:[#allocation41_spill] sm:$0xff] %v29086_v8 }
 0x447   : > { %v25098_v39 = vpop.f32.mrf.mxu1 }
 0x448   : > { %v29090_v19 = vadd.f32 %v25098_v39, %v5551_v44  ;;  %v32857_v39 = vld [vmem:[#allocation73_spill] sm:$0xff] }
 0x449   : > { %v29092_v48 = vpop.f32.mrf.mxu1  ;;  %v5881_v44 = vadd.f32 %v32858_v5, %v32857_v39  ;;  %v29124_v5 = vpop.permute.xlu1 %9333 }
 0x44a   : > { %32848 = vst [vmem:[#allocation143_spill] sm:$0xff] %v29090_v19  ;;  %32849 = vst [vmem:[#allocation45_spill] sm:$0xff] %v29092_v48 }
 0x44b   : > { %v25111_v26 = vpop.f32.mrf.mxu1 }
 0x44c   : > { %v29096_v56 = vadd.f32 %v25111_v26, %v5711_v25  ;;  %v32860_v26 = vld [vmem:[#allocation76_spill] sm:$0xff] }
 0x44d   : > { %v29098_v17 = vpop.f32.mrf.mxu1  ;;  %v5891_v25 = vadd.f32 %v32861_v29, %v32860_v26 }
 0x44e   : > { %32852 = vst [vmem:[#allocation146_spill] sm:$0xff] %v29096_v56  ;;  %32853 = vst [vmem:[#allocation49_spill] sm:$0xff] %v29098_v17 }
 0x44f   : > { %v25114_v8 = vpop.f32.mrf.mxu1 }
 0x450   : > { %v29102_v9 = vadd.f32 %v25114_v8, %v5721_v46 }
 0x451   : > { %v29104_v10 = vpop.f32.mrf.mxu1 }
 0x452   : > { %32856 = vst [vmem:[#allocation149_spill] sm:$0xff] %v29104_v10  ;;  %v29120_v10 = vpop.permute.xlu0 %9331 }
 0x453   : > { %v25127_v48 = vpop.f32.mrf.mxu1 }
 0x454   : > { %v29108_v19 = vadd.f32 %v25127_v48, %v5881_v44 }
 0x455   : > { %v29110_v6 = vpop.f32.mrf.mxu1 }
 0x456   : > { %32859 = vst [vmem:[#allocation53_spill] sm:$0xff] %v29110_v6 }
 0x457   : > { %v25130_v17 = vpop.f32.mrf.mxu1 }
 0x458   : > { %v29114_v56 = vadd.f32 %v25130_v17, %v5891_v25 }
 0x459   : > { %v29116_v30 = vpop.f32.mrf.mxu1 }
 0x45a   : > { %32862 = vst [vmem:[#allocation151_spill] sm:$0xff] %v29114_v56  ;;  %32863 = vst [vmem:[#allocation57_spill] sm:$0xff] %v29116_v30 }
 0x473   : > { %v25173_v8 = vpop.f32.mrf.mxu1 }
 0x475   : > { %v9168_v46 = vpop.f32.mrf.mxu1 }
 0x476   : > { %25219 = vmatprep.subr.mxu0 %v9168_v46 }
 0x477   : > { %v25176_v39 = vpop.f32.mrf.mxu1  ;;  %25220 = vmatpush3.msra.mxu0 %v9168_v46 }
 0x478   : > { %25222 = vmatmul.mubr.msk.f32.vlgmr.msra.gmra.mxu0 %vm522_vm0, %v29118_v38  ;;  %25227 = vmatprep.subr.mxu0 %v25173_v8 }
 0x479   : > { %v9178_v48 = vpop.f32.mrf.mxu1  ;;  %25224 = vmatprep.mubr.msk.f32.mxu0 %vm522_vm0, %v29120_v10  ;;  %25228 = vmatpush3.msra.mxu0 %v25173_v8 }
 0x47a   : > { %25235 = vmatprep.subr.mxu0 %v9178_v48 }
 0x47b   : > { %v25179_v17 = vpop.f32.mrf.mxu1 }
 0x47c   : > { %25225 = vmatmul.mubr.msk.f32.gmra.mxu0 %vm522_vm0, %v29124_v5 }
 0x47d   : > { %v9188_v44 = vpop.f32.mrf.mxu1  ;;  %25229 = vmatprep.mubr.msk.f32.mxu0 %vm522_vm0, %v28913_v33 }
 0x47f   : > { %v29132_v26 = vpop.f32.mrf.mxu1 }
 0x480   : > { %25230 = vmatmul.mubr.msk.f32.vlgmr.msra.gmra.mxu0 %vm522_vm0, %v29118_v38 }
 0x481   : > { %v9198_v29 = vpop.f32.mrf.mxu1  ;;  %25232 = vmatprep.mubr.msk.f32.mxu0 %vm522_vm0, %v29120_v10  ;;  %25236 = vmatpush3.msra.mxu0 %v9178_v48 }
 0x482   : > { %25243 = vmatprep.subr.mxu0 %v25176_v39 }
 0x483   : > { %v29138_v25 = vpop.f32.mrf.mxu1 }
 0x484   : > { %25233 = vmatmul.mubr.msk.f32.gmra.mxu0 %vm522_vm0, %v29124_v5 }
 0x485   : > { %v29142_v8 = vpop.f32.mrf.mxu1  ;;  %25237 = vmatprep.mubr.msk.f32.mxu0 %vm522_vm0, %v28913_v33 }
 0x487   : > { %v25188_v46 = vpop.f32.mrf.mxu1 }
 0x488   : > { %25238 = vmatmul.mubr.msk.f32.vlgmr.msra.gmra.mxu0 %vm522_vm0, %v29118_v38  ;;  %25307 = vmatprep.subr.mxu1 %v25188_v46 }
 0x489   : > { %25308 = vmatpush3.msra.mxu1 %v25188_v46  ;;  %25240 = vmatprep.mubr.msk.f32.mxu0 %vm522_vm0, %v29120_v10  ;;  %v29150_v48 = vpop.f32.mrf.mxu1 }
 0x48a   : > { %25310 = vmatmul.mubr.msk.f32.vlgmr.msra.gmra.mxu1 %vm522_vm0, %v29118_v38  ;;  %25244 = vmatpush3.msra.mxu0 %v25176_v39 }
 0x48b   : > { %25312 = vmatprep.mubr.msk.f32.mxu1 %vm522_vm0, %v29120_v10  ;;  %v25191_v30 = vpop.f32.mrf.mxu1  ;;  %25251 = vmatprep.subr.mxu0 %v9188_v44 }
 0x48c   : > { %25241 = vmatmul.mubr.msk.f32.gmra.mxu0 %vm522_vm0, %v29124_v5  ;;  %25323 = vmatprep.subr.mxu1 %v25191_v30 }
 0x48d   : > { %25245 = vmatprep.mubr.msk.f32.mxu0 %vm522_vm0, %v28913_v33  ;;  %25324 = vmatpush3.msra.mxu1 %v25191_v30  ;;  %v29160_v46 = vpop.f32.mrf.mxu1 }
 0x48e   : > { %25313 = vmatmul.mubr.msk.f32.gmra.mxu1 %vm522_vm0, %v29124_v5 }
 0x48f   : > { %25325 = vmatprep.mubr.msk.f32.mxu1 %vm522_vm0, %v28913_v33  ;;  %v25194_v39 = vpop.f32.mrf.mxu1 }
 0x490   : > { %25246 = vmatmul.mubr.msk.f32.vlgmr.msra.gmra.mxu0 %vm522_vm0, %v29118_v38  ;;  %25339 = vmatprep.subr.mxu1 %v25194_v39 }
 0x491   : > { %25248 = vmatprep.mubr.msk.f32.mxu0 %vm522_vm0, %v29120_v10  ;;  %25252 = vmatpush3.msra.mxu0 %v9188_v44  ;;  %v29170_v6 = vpop.f32.mrf.mxu1 }
 0x492   : > { %25326 = vmatmul.mubr.msk.f32.vlgmr.msra.gmra.mxu1 %vm522_vm0, %v29118_v38  ;;  %25259 = vmatprep.subr.mxu0 %v25179_v17 }
 0x493   : > { %25328 = vmatprep.mubr.msk.f32.mxu1 %vm522_vm0, %v29120_v10  ;;  %25340 = vmatpush3.msra.mxu1 %v25194_v39  ;;  %v25197_v30 = vpop.f32.mrf.mxu1 }
 0x494   : > { %25249 = vmatmul.mubr.msk.f32.gmra.mxu0 %vm522_vm0, %v29124_v5  ;;  %25355 = vmatprep.subr.mxu1 %v25197_v30 }
 0x495   : > { %25253 = vmatprep.mubr.msk.f32.mxu0 %vm522_vm0, %v28913_v33  ;;  %v29180_v56 = vpop.f32.mrf.mxu1 }
 0x496   : > { %25329 = vmatmul.mubr.msk.f32.gmra.mxu1 %vm522_vm0, %v29124_v5 }
 0x497   : > { %25341 = vmatprep.mubr.msk.f32.mxu1 %vm522_vm0, %v28913_v33  ;;  %v25200_v44 = vpop.f32.mrf.mxu1 }
 0x498   : > { %25254 = vmatmul.mubr.msk.f32.vlgmr.msra.gmra.mxu0 %vm522_vm0, %v29118_v38 }
 0x499   : > { %25256 = vmatprep.mubr.msk.f32.mxu0 %vm522_vm0, %v29120_v10  ;;  %25260 = vmatpush3.msra.mxu0 %v25179_v17  ;;  %v29198_v39 = vpop.f32.mrf.mxu1 }
 0x49a   : > { %25342 = vmatmul.mubr.msk.f32.vlgmr.msra.gmra.mxu1 %vm522_vm0, %v29118_v38  ;;  %25267 = vmatprep.subr.mxu0 %v9198_v29 }
 0x49b   : > { %25344 = vmatprep.mubr.msk.f32.mxu1 %vm522_vm0, %v29120_v10  ;;  %25356 = vmatpush3.msra.mxu1 %v25197_v30  ;;  %v25203_v17 = vpop.f32.mrf.mxu1 }
 0x49c   : > { %25257 = vmatmul.mubr.msk.f32.gmra.mxu0 %vm522_vm0, %v29124_v5  ;;  %25371 = vmatprep.subr.mxu1 %v25200_v44 }
 0x49d   : > { %25261 = vmatprep.mubr.msk.f32.mxu0 %vm522_vm0, %v28913_v33  ;;  %v29217_v30 = vpop.f32.mrf.mxu1 }
 0x49e   : > { %25345 = vmatmul.mubr.msk.f32.gmra.mxu1 %vm522_vm0, %v29124_v5 }
 0x49f   : > { %25357 = vmatprep.mubr.msk.f32.mxu1 %vm522_vm0, %v28913_v33 }
 0x4a0   : > { %25262 = vmatmul.mubr.msk.f32.vlgmr.msra.gmra.mxu0 %vm522_vm0, %v29118_v38 }
 0x4a1   : > { %25264 = vmatprep.mubr.msk.f32.mxu0 %vm522_vm0, %v29120_v10  ;;  %25268 = vmatpush3.msra.mxu0 %v9198_v29  ;;  %v25206_v29 = vpop.f32.mrf.mxu1 }
 0x4a2   : > { %25358 = vmatmul.mubr.msk.f32.vlgmr.msra.gmra.mxu1 %vm522_vm0, %v29118_v38  ;;  %25275 = vmatprep.subr.mxu0 %v29132_v26 }
 0x4a3   : > { %25360 = vmatprep.mubr.msk.f32.mxu1 %vm522_vm0, %v29120_v10  ;;  %25372 = vmatpush3.msra.mxu1 %v25200_v44  ;;  %v29237_v44 = vpop.f32.mrf.mxu1 }
 0x4a4   : > { %25265 = vmatmul.mubr.msk.f32.gmra.mxu0 %vm522_vm0, %v29124_v5  ;;  %25387 = vmatprep.subr.mxu1 %v25203_v17 }
 0x4a5   : > { %25269 = vmatprep.mubr.msk.f32.mxu0 %vm522_vm0, %v28913_v33 }
 0x4a6   : > { %25361 = vmatmul.mubr.msk.f32.gmra.mxu1 %vm522_vm0, %v29124_v5 }
 0x4a7   : > { %25373 = vmatprep.mubr.msk.f32.mxu1 %vm522_vm0, %v28913_v33 }
 0x4a8   : > { %25270 = vmatmul.mubr.msk.f32.vlgmr.msra.gmra.mxu0 %vm522_vm0, %v29118_v38 }
 0x4a9   : > { %25272 = vmatprep.mubr.msk.f32.mxu0 %vm522_vm0, %v29120_v10  ;;  %25276 = vmatpush3.msra.mxu0 %v29132_v26  ;;  %v25209_v26 = vpop.f32.mrf.mxu1 }
 0x4aa   : > { %25374 = vmatmul.mubr.msk.f32.vlgmr.msra.gmra.mxu1 %vm522_vm0, %v29118_v38  ;;  %25283 = vmatprep.subr.mxu0 %v29142_v8 }
 0x4ab   : > { %25376 = vmatprep.mubr.msk.f32.mxu1 %vm522_vm0, %v29120_v10  ;;  %25388 = vmatpush3.msra.mxu1 %v25203_v17  ;;  %v29257_v17 = vpop.f32.mrf.mxu1 }
 0x4ac   : > { %25273 = vmatmul.mubr.msk.f32.gmra.mxu0 %vm522_vm0, %v29124_v5  ;;  %25403 = vmatprep.subr.mxu1 %v25206_v29 }
 0x4ad   : > { %25277 = vmatprep.mubr.msk.f32.mxu0 %vm522_vm0, %v28913_v33 }
 0x4ae   : > { %25377 = vmatmul.mubr.msk.f32.gmra.mxu1 %vm522_vm0, %v29124_v5 }
 0x4af   : > { %25389 = vmatprep.mubr.msk.f32.mxu1 %vm522_vm0, %v28913_v33 }
 0x4b0   : > { %25278 = vmatmul.mubr.msk.f32.vlgmr.msra.gmra.mxu0 %vm522_vm0, %v29118_v38 }
 0x4b1   : > { %25280 = vmatprep.mubr.msk.f32.mxu0 %vm522_vm0, %v29120_v10  ;;  %25284 = vmatpush3.msra.mxu0 %v29142_v8  ;;  %v25212_v8 = vpop.f32.mrf.mxu1 }
 0x4b2   : > { %25390 = vmatmul.mubr.msk.f32.vlgmr.msra.gmra.mxu1 %vm522_vm0, %v29118_v38  ;;  %25291 = vmatprep.subr.mxu0 %v29138_v25 }
 0x4b3   : > { %25392 = vmatprep.mubr.msk.f32.mxu1 %vm522_vm0, %v29120_v10  ;;  %25404 = vmatpush3.msra.mxu1 %v25206_v29  ;;  %v29277_v29 = vpop.f32.mrf.mxu1 }
 0x4b4   : > { %25281 = vmatmul.mubr.msk.f32.gmra.mxu0 %vm522_vm0, %v29124_v5  ;;  %25419 = vmatprep.subr.mxu1 %v25209_v26 }
 0x4b5   : > { %25285 = vmatprep.mubr.msk.f32.mxu0 %vm522_vm0, %v28913_v33 }
 0x4b6   : > { %25393 = vmatmul.mubr.msk.f32.gmra.mxu1 %vm522_vm0, %v29124_v5 }
 0x4b7   : > { %25405 = vmatprep.mubr.msk.f32.mxu1 %vm522_vm0, %v28913_v33 }
 0x4b8   : > { %25286 = vmatmul.mubr.msk.f32.vlgmr.msra.gmra.mxu0 %vm522_vm0, %v29118_v38 }
 0x4b9   : > { %25288 = vmatprep.mubr.msk.f32.mxu0 %vm522_vm0, %v29120_v10  ;;  %25292 = vmatpush3.msra.mxu0 %v29138_v25  ;;  %v25215_v25 = vpop.f32.mrf.mxu1 }
 0x4ba   : > { %25406 = vmatmul.mubr.msk.f32.vlgmr.msra.gmra.mxu1 %vm522_vm0, %v29118_v38  ;;  %25299 = vmatprep.subr.mxu0 %v29150_v48 }
 0x4bb   : > { %25408 = vmatprep.mubr.msk.f32.mxu1 %vm522_vm0, %v29120_v10  ;;  %25420 = vmatpush3.msra.mxu1 %v25209_v26  ;;  %v29297_v26 = vpop.f32.mrf.mxu1 }
 0x4bc   : > { %25289 = vmatmul.mubr.msk.f32.gmra.mxu0 %vm522_vm0, %v29124_v5  ;;  %25435 = vmatprep.subr.mxu1 %v25212_v8 }
 0x4bd   : > { %25293 = vmatprep.mubr.msk.f32.mxu0 %vm522_vm0, %v28913_v33 }
 0x4be   : > { %25409 = vmatmul.mubr.msk.f32.gmra.mxu1 %vm522_vm0, %v29124_v5 }
 0x4bf   : > { %25421 = vmatprep.mubr.msk.f32.mxu1 %vm522_vm0, %v28913_v33 }
 0x4c0   : > { %25294 = vmatmul.mubr.msk.f32.vlgmr.msra.gmra.mxu0 %vm522_vm0, %v29118_v38 }
 0x4c1   : > { %25296 = vmatprep.mubr.msk.f32.mxu0 %vm522_vm0, %v29120_v10  ;;  %25300 = vmatpush3.msra.mxu0 %v29150_v48  ;;  %v25218_v48 = vpop.f32.mrf.mxu1 }
 0x4c2   : > { %25422 = vmatmul.mubr.msk.f32.vlgmr.msra.gmra.mxu1 %vm522_vm0, %v29118_v38  ;;  %25315 = vmatprep.subr.mxu0 %v29160_v46 }
 0x4c3   : > { %25424 = vmatprep.mubr.msk.f32.mxu1 %vm522_vm0, %v29120_v10  ;;  %25436 = vmatpush3.msra.mxu1 %v25212_v8  ;;  %v12205_v8 = vld [vmem:[#allocation5 + $0x1e8] sm:$0xff] }
 0x4c4   : > { %25297 = vmatmul.mubr.msk.f32.gmra.mxu0 %vm522_vm0, %v29124_v5  ;;  %25451 = vmatprep.subr.mxu1 %v25215_v25 }
 0x4c5   : > { %25301 = vmatprep.mubr.msk.f32.mxu0 %vm522_vm0, %v28913_v33 }
 0x4c6   : > { %25425 = vmatmul.mubr.msk.f32.gmra.mxu1 %vm522_vm0, %v29124_v5 }
 0x4c7   : > { %25437 = vmatprep.mubr.msk.f32.mxu1 %vm522_vm0, %v28913_v33 }
 0x4c8   : > { %25302 = vmatmul.mubr.msk.f32.vlgmr.msra.gmra.mxu0 %vm522_vm0, %v29118_v38 }
 0x4c9   : > { %25304 = vmatprep.mubr.msk.f32.mxu0 %vm522_vm0, %v29120_v10  ;;  %25316 = vmatpush3.msra.mxu0 %v29160_v46  ;;  %v29419_v46 = vld [vmem:[%s32478_s2 + $0x8] sm:$0xff] }
 0x4ca   : > { %25438 = vmatmul.mubr.msk.f32.vlgmr.msra.gmra.mxu1 %vm522_vm0, %v29118_v38  ;;  %25331 = vmatprep.subr.mxu0 %v29170_v6 }
 0x4cb   : > { %25440 = vmatprep.mubr.msk.f32.mxu1 %vm522_vm0, %v29120_v10  ;;  %25452 = vmatpush3.msra.mxu1 %v25215_v25  ;;  %v12203_v25 = vld [vmem:[#allocation5 + $0x1d8] sm:$0xff] }
 0x4cc   : > { %25305 = vmatmul.mubr.msk.f32.gmra.mxu0 %vm522_vm0, %v29124_v5  ;;  %25467 = vmatprep.subr.mxu1 %v25218_v48 }
 0x4cd   : > { %25317 = vmatprep.mubr.msk.f32.mxu0 %vm522_vm0, %v28913_v33  ;;  %12435 = vrot.lane.b32.xlu1 %v29419_v46, %s26830_s12 }
 0x4ce   : > { %25441 = vmatmul.mubr.msk.f32.gmra.mxu1 %vm522_vm0, %v29124_v5 }
 0x4cf   : > { %25453 = vmatprep.mubr.msk.f32.mxu1 %vm522_vm0, %v28913_v33 }
 0x4d0   : > { %25318 = vmatmul.mubr.msk.f32.vlgmr.msra.gmra.mxu0 %vm522_vm0, %v29118_v38 }
 0x4d1   : > { %25320 = vmatprep.mubr.msk.f32.mxu0 %vm522_vm0, %v29120_v10  ;;  %25332 = vmatpush3.msra.mxu0 %v29170_v6  ;;  %v29410_v6 = vld [vmem:[%s32478_s2] sm:$0xff] }
 0x4d2   : > { %25454 = vmatmul.mubr.msk.f32.vlgmr.msra.gmra.mxu1 %vm522_vm0, %v29118_v38  ;;  %25347 = vmatprep.subr.mxu0 %v29180_v56 }
 0x4d3   : > { %25456 = vmatprep.mubr.msk.f32.mxu1 %vm522_vm0, %v29120_v10  ;;  %25468 = vmatpush3.msra.mxu1 %v25218_v48  ;;  %v12199_v48 = vld [vmem:[#allocation5 + $0x1b8] sm:$0xff] }
 0x4d4   : > { %25321 = vmatmul.mubr.msk.f32.gmra.mxu0 %vm522_vm0, %v29124_v5  ;;  %12433 = vrot.lane.b32.xlu0 %v29410_v6, %s26830_s12 }
 0x4d5   : > { %25333 = vmatprep.mubr.msk.f32.mxu0 %vm522_vm0, %v28913_v33 }
 0x4d6   : > { %25457 = vmatmul.mubr.msk.f32.gmra.mxu1 %vm522_vm0, %v29124_v5 }
 0x4d7   : > { %25469 = vmatprep.mubr.msk.f32.mxu1 %vm522_vm0, %v28913_v33 }
 0x4d8   : > { %25334 = vmatmul.mubr.msk.f32.vlgmr.msra.gmra.mxu0 %vm522_vm0, %v29118_v38 }
 0x4d9   : > { %25336 = vmatprep.mubr.msk.f32.mxu0 %vm522_vm0, %v29120_v10  ;;  %25348 = vmatpush3.msra.mxu0 %v29180_v56  ;;  %v9318_v56 = vpop.f32.mrf.mxu1 }
 0x4da   : > { %25470 = vmatmul.mubr.msk.f32.vlgmr.msra.gmra.mxu1 %vm522_vm0, %v29118_v38  ;;  %25363 = vmatprep.subr.mxu0 %v29198_v39 }
 0x4db   : > { %25472 = vmatprep.mubr.msk.f32.mxu1 %vm522_vm0, %v29120_v10 }
 0x4dc   : > { %25337 = vmatmul.mubr.msk.f32.gmra.mxu0 %vm522_vm0, %v29124_v5 }
 0x4dd   : > { %25349 = vmatprep.mubr.msk.f32.mxu0 %vm522_vm0, %v28913_v33 }
 0x4de   : > { %25473 = vmatmul.mubr.msk.f32.gmra.mxu1 %vm522_vm0, %v29124_v5 }
 0x4e0   : > { %25350 = vmatmul.mubr.msk.f32.vlgmr.msra.gmra.mxu0 %vm522_vm0, %v29118_v38 }
 0x4e1   : > { %25352 = vmatprep.mubr.msk.f32.mxu0 %vm522_vm0, %v29120_v10  ;;  %25364 = vmatpush3.msra.mxu0 %v29198_v39  ;;  %v29427_v39 = vld [vmem:[%s32478_s2 + $0x10] sm:$0xff] }
 0x4e2   : > { %25379 = vmatprep.subr.mxu0 %v29217_v30  ;;  %12437 = vrot.lane.b32.xlu0 %v29427_v39, %s26830_s12 }
 0x4e4   : > { %25353 = vmatmul.mubr.msk.f32.gmra.mxu0 %vm522_vm0, %v29124_v5 }
 0x4e5   : > { %25365 = vmatprep.mubr.msk.f32.mxu0 %vm522_vm0, %v28913_v33 }
 0x4e6   : > { %15539 = vrot.lane.b32.xlu0 %v29410_v6, %s26831_s28  ;;  %v15312_v6 = vld [vmem:[#allocation5 + $0x270] sm:$0xff] }
 0x4e8   : > { %25366 = vmatmul.mubr.msk.f32.vlgmr.msra.gmra.mxu0 %vm522_vm0, %v29118_v38 }
 0x4e9   : > { %25368 = vmatprep.mubr.msk.f32.mxu0 %vm522_vm0, %v29120_v10  ;;  %25380 = vmatpush3.msra.mxu0 %v29217_v30  ;;  %v29435_v30 = vld [vmem:[%s32478_s2 + $0x18] sm:$0xff] }
 0x4ea   : > { %25395 = vmatprep.subr.mxu0 %v29237_v44  ;;  %12439 = vrot.lane.b32.xlu1 %v29435_v30, %s26830_s12  ;;  %s32428_s12 = scalar_lea.hbm %s32480_s4, %s22802_s20 }
 0x4eb   : > { %15543 = vrot.lane.b32.xlu0 %v29427_v39, %s26831_s28  ;;  %v15310_v39 = vld [vmem:[#allocation5 + $0x260] sm:$0xff] }
 0x4ec   : > { %25369 = vmatmul.mubr.msk.f32.gmra.mxu0 %vm522_vm0, %v29124_v5 }
 0x4ed   : > { %25381 = vmatprep.mubr.msk.f32.mxu0 %vm522_vm0, %v28913_v33 }
 0x4ee   : > { %15541 = vrot.lane.b32.xlu1 %v29419_v46, %s26831_s28  ;;  %v15311_v46 = vld [vmem:[#allocation5 + $0x268] sm:$0xff] }
 0x4f0   : > { %25382 = vmatmul.mubr.msk.f32.vlgmr.msra.gmra.mxu0 %vm522_vm0, %v29118_v38 }
 0x4f1   : > { %25384 = vmatprep.mubr.msk.f32.mxu0 %vm522_vm0, %v29120_v10  ;;  %25396 = vmatpush3.msra.mxu0 %v29237_v44  ;;  %v12207_v44 = vld [vmem:[#allocation5 + $0x1f8] sm:$0xff] }
 0x4f2   : > { %25411 = vmatprep.subr.mxu0 %v29257_v17  ;;  %15545 = vrot.lane.b32.xlu1 %v29435_v30, %s26831_s28  ;;  %v15309_v30 = vld [vmem:[#allocation5 + $0x258] sm:$0xff] }
 0x4f4   : > { %25385 = vmatmul.mubr.msk.f32.gmra.mxu0 %vm522_vm0, %v29124_v5 }
 0x4f5   : > { %25397 = vmatprep.mubr.msk.f32.mxu0 %vm522_vm0, %v28913_v33 }
 0x4f8   : > { %25398 = vmatmul.mubr.msk.f32.vlgmr.msra.gmra.mxu0 %vm522_vm0, %v29118_v38 }
 0x4f9   : > { %25400 = vmatprep.mubr.msk.f32.mxu0 %vm522_vm0, %v29120_v10  ;;  %25412 = vmatpush3.msra.mxu0 %v29257_v17  ;;  %v12206_v17 = vld [vmem:[#allocation5 + $0x1f0] sm:$0xff] }
 0x4fa   : > { %25427 = vmatprep.subr.mxu0 %v29277_v29 }
 0x4fc   : > { %25401 = vmatmul.mubr.msk.f32.gmra.mxu0 %vm522_vm0, %v29124_v5 }
 0x4fd   : > { %25413 = vmatprep.mubr.msk.f32.mxu0 %vm522_vm0, %v28913_v33 }
 0x500   : > { %25414 = vmatmul.mubr.msk.f32.vlgmr.msra.gmra.mxu0 %vm522_vm0, %v29118_v38 }
 0x501   : > { %25416 = vmatprep.mubr.msk.f32.mxu0 %vm522_vm0, %v29120_v10  ;;  %25428 = vmatpush3.msra.mxu0 %v29277_v29  ;;  %v12204_v29 = vld [vmem:[#allocation5 + $0x1e0] sm:$0xff] }
 0x502   : > { %25443 = vmatprep.subr.mxu0 %v29297_v26 }
 0x504   : > { %25417 = vmatmul.mubr.msk.f32.gmra.mxu0 %vm522_vm0, %v29124_v5 }
 0x505   : > { %25429 = vmatprep.mubr.msk.f32.mxu0 %vm522_vm0, %v28913_v33 }
 0x508   : > { %25430 = vmatmul.mubr.msk.f32.vlgmr.msra.gmra.mxu0 %vm522_vm0, %v29118_v38 }
 0x509   : > { %25432 = vmatprep.mubr.msk.f32.mxu0 %vm522_vm0, %v29120_v10  ;;  %25444 = vmatpush3.msra.mxu0 %v29297_v26  ;;  %v29453_v26 = vld [vmem:[%s26988_s13] sm:$0xff] }
 0x50a   : > { %25459 = vmatprep.subr.mxu0 %v9318_v56  ;;  %32864 = vst [vmem:[#allocation154_spill] sm:$0xff] %v29453_v26 }
 0x50c   : > { %25433 = vmatmul.mubr.msk.f32.gmra.mxu0 %vm522_vm0, %v29124_v5 }
 0x50d   : > { %25445 = vmatprep.mubr.msk.f32.mxu0 %vm522_vm0, %v28913_v33 }
 0x510   : > { %25446 = vmatmul.mubr.msk.f32.vlgmr.msra.gmra.mxu0 %vm522_vm0, %v29118_v38 }
 0x511   : > { %25448 = vmatprep.mubr.msk.f32.mxu0 %vm522_vm0, %v29120_v10  ;;  %25460 = vmatpush3.msra.mxu0 %v9318_v56  ;;  %v12197_v56 = vld [vmem:[#allocation5 + $0x1a8] sm:$0xff] }
 0x512   : > { %25475 = vmatprep.subr.mxu0 %v12207_v44 }
 0x514   : > { %25449 = vmatmul.mubr.msk.f32.gmra.mxu0 %vm522_vm0, %v29124_v5 }
 0x515   : > { %25461 = vmatprep.mubr.msk.f32.mxu0 %vm522_vm0, %v28913_v33  ;;  %v12202_v33 = vld [vmem:[#allocation5 + $0x1d0] sm:$0xff] }
 0x518   : > { %25462 = vmatmul.mubr.msk.f32.vlgmr.msra.gmra.mxu0 %vm522_vm0, %v29118_v38  ;;  %v12200_v38 = vld [vmem:[#allocation5 + $0x1c0] sm:$0xff] }
 0x519   : > { %25476 = vmatpush3.msra.mxu0 %v12207_v44  ;;  %25464 = vmatprep.mubr.msk.f32.mxu0 %vm522_vm0, %v29120_v10  ;;  %v12201_v10 = vld [vmem:[#allocation5 + $0x1c8] sm:$0xff]  ;;  %v12196_v44 = vld [vmem:[#allocation5 + $0x1a0] sm:$0xff] }
 0x51a   : > { %25477 = vmatprep.subr.mxu0 %v12206_v17 }
 0x51b   : > { %25478 = vmatpush3.msra.mxu0 %v12206_v17  ;;  %v12195_v17 = vld [vmem:[#allocation5 + $0x198] sm:$0xff] }
 0x51c   : > { %25479 = vmatprep.subr.mxu0 %v12205_v8  ;;  %25465 = vmatmul.mubr.msk.f32.gmra.mxu0 %vm522_vm0, %v29124_v5  ;;  %v12198_v5 = vld [vmem:[#allocation5 + $0x1b0] sm:$0xff] }
 0x51d   : > { %25480 = vmatpush3.msra.mxu0 %v12205_v8  ;;  %25507 = vmatprep.mubr.f32.mxu0 %v29453_v26  ;;  %v12194_v8 = vld [vmem:[#allocation5 + $0x190] sm:$0xff]  ;;  %v29477_v26 = vld [vmem:[%s26988_s13 + $0x18] sm:$0xff] }
 0x51e   : > { %25481 = vmatprep.subr.mxu0 %v12204_v29 }
 0x51f   : > { %25482 = vmatpush3.msra.mxu0 %v12204_v29  ;;  %v12193_v29 = vld [vmem:[#allocation5 + $0x188] sm:$0xff] }
 0x520   : > { %25483 = vmatprep.subr.mxu0 %v12203_v25 }
 0x521   : > { %25484 = vmatpush3.msra.mxu0 %v12203_v25  ;;  %v12192_v25 = vld [vmem:[#allocation5 + $0x180] sm:$0xff] }
 0x522   : > { %25485 = vmatprep.subr.mxu0 %v12202_v33 }
 0x523   : > { %25486 = vmatpush3.msra.mxu0 %v12202_v33  ;;  %v29456_v33 = vpop.f32.mrf.mxu0 }
 0x524   : > { %25487 = vmatprep.subr.mxu0 %v12201_v10  ;;  %32865 = vst [vmem:[#allocation61_spill] sm:$0xff] %v29456_v33  ;;  %v32869_v33 = vld [vmem:[#allocation12_spill] sm:$0xff] }
 0x525   : > { %25488 = vmatpush3.msra.mxu0 %v12201_v10  ;;  %v32866_v10 = vld [vmem:[#allocation11_spill] sm:$0xff] }
 0x526   : > { %25489 = vmatprep.subr.mxu0 %v12200_v38 }
 0x527   : > { %25490 = vmatpush3.msra.mxu0 %v12200_v38  ;;  %v32867_v38 = vld [vmem:[#allocation80_spill] sm:$0xff] }
 0x528   : > { %25491 = vmatprep.subr.mxu0 %v12199_v48 }
 0x529   : > { %25492 = vmatpush3.msra.mxu0 %v12199_v48  ;;  %v3326_v48 = vadd.f32 %v32867_v38, %v32866_v10  ;;  %v32870_v10 = vld [vmem:[#allocation82_spill] sm:$0xff] }
 0x52a   : > { %25493 = vmatprep.subr.mxu0 %v12198_v5 }
 0x52b   : > { %25494 = vmatpush3.msra.mxu0 %v12198_v5  ;;  %v29461_v5 = vld [vmem:[%s26988_s13 + $0x8] sm:$0xff] }
 0x52c   : > { %25495 = vmatprep.subr.mxu0 %v12197_v56 }
 0x52d   : > { %25496 = vmatpush3.msra.mxu0 %v12197_v56 }
 0x52e   : > { %25497 = vmatprep.subr.mxu0 %v12196_v44 }
 0x52f   : > { %25498 = vmatpush3.msra.mxu0 %v12196_v44  ;;  %v8957_v44 = vadd.f32 %v28708_v40, %v3326_v48 }
 0x530   : > { %25499 = vmatprep.subr.mxu0 %v12195_v17 }
 0x531   : > { %25500 = vmatpush3.msra.mxu0 %v12195_v17 }
 0x532   : > { %25501 = vmatprep.subr.mxu0 %v12194_v8 }
 0x533   : > { %25502 = vmatpush3.msra.mxu0 %v12194_v8  ;;  %v29469_v8 = vld [vmem:[%s26988_s13 + $0x10] sm:$0xff] }
 0x534   : > { %25503 = vmatprep.subr.mxu0 %v12193_v29  ;;  %32868 = vst [vmem:[#allocation156_spill] sm:$0xff] %v29469_v8 }
 0x535   : > { %25504 = vmatpush3.msra.mxu0 %v12193_v29 }
 0x536   : > { %25505 = vmatprep.subr.mxu0 %v12192_v25 }
 0x537   : > { %25506 = vmatpush3.msra.mxu0 %v12192_v25  ;;  %v3336_v25 = vadd.f32 %v32870_v10, %v32869_v33 }
 0x538   : > { %25508 = vmatmul.mubr.f32.vlgmr.msra.gmra.mxu0 %v29461_v5  ;;  %v25223_v56 = vpop.f32.mrf.mxu0 }
 0x539   : > { %v29466_v17 = vadd.f32 %v25223_v56, %v28705_v55  ;;  %25510 = vmatprep.mubr.f32.mxu0 %v29469_v8  ;;  %v8959_v55 = vadd.f32 %v28716_v53, %v3336_v25  ;;  %v29485_v56 = vld [vmem:[%s26988_s13 + $0x20] sm:$0xff]  ;;  %v29504_v25 = vld [vmem:[%s26988_s13 + $0x38] sm:$0xff] }
 0x53a   : > { %v9409_v29 = vpop.f32.mrf.mxu0  ;;  %32873 = vst [vmem:[#allocation67_spill] sm:$0xff] %v29504_v25 }
 0x53b   : > { %v29474_v38 = vadd.f32 %v9409_v29, %v8957_v44  ;;  %v29491_v44 = vld [vmem:[%s26988_s13 + $0x28] sm:$0xff] }
 0x53c   : > { %25511 = vmatmul.mubr.f32.gmra.mxu0 %v29477_v26  ;;  %v25226_v40 = vpop.f32.mrf.mxu0 }
 0x53d   : > { %v29482_v48 = vadd.f32 %v25226_v40, %v28713_v4  ;;  %25513 = vmatprep.mubr.f32.mxu0 %v29485_v56  ;;  %v29498_v4 = vld [vmem:[%s26988_s13 + $0x30] sm:$0xff] }
 0x53e   : > { %v9419_v8 = vpop.f32.mrf.mxu0  ;;  %32871 = vst [vmem:[#allocation64_spill] sm:$0xff] %v29498_v4 }
 0x53f   : > { %v29488_v33 = vadd.f32 %v9419_v8, %v8959_v55  ;;  %v29511_v55 = vld [vmem:[%s26988_s13 + $0x40] sm:$0xff] }
 0x540   : > { %25514 = vmatmul.mubr.f32.gmra.mxu0 %v29491_v44  ;;  %v25231_v29 = vpop.f32.mrf.mxu0  ;;  %32875 = vst [vmem:[#allocation70_spill] sm:$0xff] %v29511_v55 }
 0x541   : > { %v29495_v53 = vadd.f32 %v25231_v29, %v28721_v58  ;;  %25516 = vmatprep.mubr.f32.mxu0 %v29498_v4  ;;  %v29517_v29 = vld [vmem:[%s26988_s13 + $0x48] sm:$0xff] }
 0x542   : > { %v29501_v10 = vpop.f32.mrf.mxu0  ;;  %32877 = vst [vmem:[#allocation73_spill] sm:$0xff] %v29517_v29 }
 0x543   : > { %32872 = vst [vmem:[#allocation159_spill] sm:$0xff] %v29501_v10 }
 0x544   : > { %25517 = vmatmul.mubr.f32.gmra.mxu0 %v29504_v25  ;;  %v25234_v8 = vpop.f32.mrf.mxu0  ;;  %v29524_v25 = vld [vmem:[%s26988_s13 + $0x50] sm:$0xff] }
 0x545   : > { %v29508_v40 = vadd.f32 %v25234_v8, %v28729_v59  ;;  %25519 = vmatprep.mubr.f32.mxu0 %v29511_v55  ;;  %32878 = vst [vmem:[#allocation168_spill] sm:$0xff] %v29524_v25 }
 0x546   : > { %v29514_v58 = vpop.f32.mrf.mxu0 }
 0x547   : > { %32874 = vst [vmem:[#allocation162_spill] sm:$0xff] %v29508_v40  ;;  %32876 = vst [vmem:[#allocation165_spill] sm:$0xff] %v29514_v58  ;;  %v29533_v58 = vld [vmem:[%s26988_s13 + $0x58] sm:$0xff] }
 0x548   : > { %25520 = vmatmul.mubr.f32.gmra.mxu0 %v29517_v29  ;;  %v25239_v10 = vpop.f32.mrf.mxu0  ;;  %32881 = vst [vmem:[#allocation11_spill] sm:$0xff] %v29533_v58 }
 0x549   : > { %v29521_v4 = vadd.f32 %v25239_v10, %v28739_v32  ;;  %25522 = vmatprep.mubr.f32.mxu0 %v29524_v25  ;;  %v29542_v10 = vld [vmem:[%s26988_s13 + $0x60] sm:$0xff]  ;;  %v29553_v25 = vld [vmem:[%s26988_s13 + $0x68] sm:$0xff] }
 0x54a   : > { %v29527_v59 = vpop.f32.mrf.mxu0  ;;  %v25311_v8 = vpop.f32.mrf.mxu1 }
 0x54b   : > { %32879 = vst [vmem:[#allocation76_spill] sm:$0xff] %v29527_v59  ;;  %v29530_v55 = vadd.f32 %v25311_v8, %v28746_v24 }
 0x54c   : > { %25523 = vmatmul.mubr.f32.gmra.mxu0 %v29533_v58  ;;  %v25242_v29 = vpop.f32.mrf.mxu0  ;;  %v29536_v40 = vpop.f32.mrf.mxu1 }
 0x54d   : > { %32880 = vst [vmem:[#allocation172_spill] sm:$0xff] %v29530_v55  ;;  %32882 = vst [vmem:[#allocation80_spill] sm:$0xff] %v29536_v40  ;;  %v29539_v32 = vadd.f32 %v25242_v29, %v28753_v41  ;;  %25525 = vmatprep.mubr.f32.mxu0 %v29542_v10  ;;  %v29560_v29 = vld [vmem:[%s26988_s13 + $0x70] sm:$0xff] }
 0x54e   : > { %v29545_v59 = vpop.f32.mrf.mxu0  ;;  %v25314_v24 = vpop.f32.mrf.mxu1  ;;  %32886 = vst [vmem:[#allocation232_spill] sm:$0xff] %v29560_v29 }
 0x54f   : > { %32883 = vst [vmem:[#allocation12_spill] sm:$0xff] %v29545_v59  ;;  %v29548_v8 = vadd.f32 %v25314_v24, %v28760_v34 }
 0x550   : > { %v25247_v55 = vpop.f32.mrf.mxu0  ;;  %v29550_v58 = vpop.f32.mrf.mxu1  ;;  %25526 = vmatmul.mubr.f32.gmra.mxu0 %v29553_v25 }
 0x551   : > { %32884 = vst [vmem:[#allocation82_spill] sm:$0xff] %v29548_v8  ;;  %32885 = vst [vmem:[#allocation231_spill] sm:$0xff] %v29550_v58  ;;  %v29557_v41 = vadd.f32 %v25247_v55, %v28767_v37  ;;  %25528 = vmatprep.mubr.f32.mxu0 %v29560_v29  ;;  %v29571_v8 = vld [vmem:[%s26988_s13 + $0x78] sm:$0xff]  ;;  %v29578_v55 = vld [vmem:[%s26988_s13 + $0x80] sm:$0xff] }
 0x552   : > { %v29563_v59 = vpop.f32.mrf.mxu0  ;;  %v25327_v34 = vpop.f32.mrf.mxu1  ;;  %32890 = vst [vmem:[#allocation236_spill] sm:$0xff] %v29578_v55  ;;  %v29589_v29 = vld [vmem:[%s26988_s13 + $0x88] sm:$0xff] }
 0x553   : > { %32887 = vst [vmem:[#allocation233_spill] sm:$0xff] %v29563_v59  ;;  %v29566_v24 = vadd.f32 %v25327_v34, %v28774_v27 }
 0x554   : > { %v25250_v58 = vpop.f32.mrf.mxu0  ;;  %v29568_v40 = vpop.f32.mrf.mxu1  ;;  %25529 = vmatmul.mubr.f32.gmra.mxu0 %v29571_v8 }
 0x555   : > { %32888 = vst [vmem:[#allocation234_spill] sm:$0xff] %v29566_v24  ;;  %32889 = vst [vmem:[#allocation235_spill] sm:$0xff] %v29568_v40  ;;  %v29575_v37 = vadd.f32 %v25250_v58, %v28781_v3  ;;  %25531 = vmatprep.mubr.f32.mxu0 %v29578_v55  ;;  %v29596_v58 = vld [vmem:[%s26988_s13 + $0x90] sm:$0xff]  ;;  %v29607_v55 = vld [vmem:[%s26988_s13 + $0x98] sm:$0xff] }
 0x556   : > { %v29581_v59 = vpop.f32.mrf.mxu0  ;;  %v25330_v27 = vpop.f32.mrf.mxu1  ;;  %32894 = vst [vmem:[#allocation240_spill] sm:$0xff] %v29596_v58 }
 0x557   : > { %32891 = vst [vmem:[#allocation237_spill] sm:$0xff] %v29581_v59  ;;  %v29584_v34 = vadd.f32 %v25330_v27, %v28788_v13 }
 0x558   : > { %v25255_v40 = vpop.f32.mrf.mxu0  ;;  %v29586_v24 = vpop.f32.mrf.mxu1  ;;  %25532 = vmatmul.mubr.f32.gmra.mxu0 %v29589_v29 }
 0x559   : > { %32892 = vst [vmem:[#allocation238_spill] sm:$0xff] %v29584_v34  ;;  %32893 = vst [vmem:[#allocation239_spill] sm:$0xff] %v29586_v24  ;;  %v29593_v3 = vadd.f32 %v25255_v40, %v28795_v14  ;;  %25534 = vmatprep.mubr.f32.mxu0 %v29596_v58  ;;  %v29614_v40 = vld [vmem:[%s26988_s13 + $0xa0] sm:$0xff]  ;;  %v29625_v58 = vld [vmem:[%s26988_s13 + $0xa8] sm:$0xff] }
 0x55a   : > { %v29599_v59 = vpop.f32.mrf.mxu0  ;;  %v25343_v13 = vpop.f32.mrf.mxu1  ;;  %32898 = vst [vmem:[#allocation244_spill] sm:$0xff] %v29614_v40 }
 0x55b   : > { %32895 = vst [vmem:[#allocation241_spill] sm:$0xff] %v29599_v59  ;;  %v29602_v27 = vadd.f32 %v25343_v13, %v28802_v15 }
 0x55c   : > { %v25258_v24 = vpop.f32.mrf.mxu0  ;;  %v29604_v34 = vpop.f32.mrf.mxu1  ;;  %25535 = vmatmul.mubr.f32.gmra.mxu0 %v29607_v55 }
 0x55d   : > { %32896 = vst [vmem:[#allocation242_spill] sm:$0xff] %v29602_v27  ;;  %32897 = vst [vmem:[#allocation243_spill] sm:$0xff] %v29604_v34  ;;  %v29611_v14 = vadd.f32 %v25258_v24, %v28809_v45  ;;  %25537 = vmatprep.mubr.f32.mxu0 %v29614_v40  ;;  %v29632_v24 = vld [vmem:[%s26988_s13 + $0xb0] sm:$0xff]  ;;  %v29643_v40 = vld [vmem:[%s26988_s13 + $0xb8] sm:$0xff] }
 0x55e   : > { %v29617_v59 = vpop.f32.mrf.mxu0  ;;  %v25346_v15 = vpop.f32.mrf.mxu1  ;;  %32902 = vst [vmem:[#allocation248_spill] sm:$0xff] %v29632_v24 }
 0x55f   : > { %32899 = vst [vmem:[#allocation245_spill] sm:$0xff] %v29617_v59  ;;  %v29620_v13 = vadd.f32 %v25346_v15, %v28816_v12 }
 0x560   : > { %v25263_v34 = vpop.f32.mrf.mxu0  ;;  %v29622_v27 = vpop.f32.mrf.mxu1  ;;  %25538 = vmatmul.mubr.f32.gmra.mxu0 %v29625_v58 }
 0x561   : > { %32900 = vst [vmem:[#allocation246_spill] sm:$0xff] %v29620_v13  ;;  %32901 = vst [vmem:[#allocation247_spill] sm:$0xff] %v29622_v27  ;;  %v29629_v45 = vadd.f32 %v25263_v34, %v28823_v57  ;;  %25540 = vmatprep.mubr.f32.mxu0 %v29632_v24  ;;  %v29650_v34 = vld [vmem:[%s26988_s13 + $0xc0] sm:$0xff]  ;;  %v29661_v24 = vld [vmem:[%s26988_s13 + $0xc8] sm:$0xff] }
 0x562   : > { %v29635_v59 = vpop.f32.mrf.mxu0  ;;  %v25359_v12 = vpop.f32.mrf.mxu1  ;;  %32906 = vst [vmem:[#allocation252_spill] sm:$0xff] %v29650_v34 }
 0x563   : > { %32903 = vst [vmem:[#allocation249_spill] sm:$0xff] %v29635_v59  ;;  %v29638_v15 = vadd.f32 %v25359_v12, %v28830_v2 }
 0x564   : > { %v25266_v27 = vpop.f32.mrf.mxu0  ;;  %v29640_v13 = vpop.f32.mrf.mxu1  ;;  %25541 = vmatmul.mubr.f32.gmra.mxu0 %v29643_v40 }
 0x565   : > { %32904 = vst [vmem:[#allocation250_spill] sm:$0xff] %v29638_v15  ;;  %32905 = vst [vmem:[#allocation251_spill] sm:$0xff] %v29640_v13  ;;  %v29647_v57 = vadd.f32 %v25266_v27, %v28837_v35  ;;  %25543 = vmatprep.mubr.f32.mxu0 %v29650_v34  ;;  %v29668_v27 = vld [vmem:[%s26988_s13 + $0xd0] sm:$0xff]  ;;  %v29679_v34 = vld [vmem:[%s26988_s13 + $0xd8] sm:$0xff] }
 0x566   : > { %v29653_v59 = vpop.f32.mrf.mxu0  ;;  %v25362_v2 = vpop.f32.mrf.mxu1  ;;  %32910 = vst [vmem:[#allocation256_spill] sm:$0xff] %v29668_v27 }
 0x567   : > { %32907 = vst [vmem:[#allocation253_spill] sm:$0xff] %v29653_v59  ;;  %v29656_v12 = vadd.f32 %v25362_v2, %v28844_v43 }
 0x568   : > { %v25271_v13 = vpop.f32.mrf.mxu0  ;;  %v29658_v15 = vpop.f32.mrf.mxu1  ;;  %25544 = vmatmul.mubr.f32.gmra.mxu0 %v29661_v24 }
 0x569   : > { %32908 = vst [vmem:[#allocation254_spill] sm:$0xff] %v29656_v12  ;;  %32909 = vst [vmem:[#allocation255_spill] sm:$0xff] %v29658_v15  ;;  %v29665_v35 = vadd.f32 %v25271_v13, %v28851_v11  ;;  %25546 = vmatprep.mubr.f32.mxu0 %v29668_v27  ;;  %v29686_v13 = vld [vmem:[%s26988_s13 + $0xe0] sm:$0xff]  ;;  %v29697_v27 = vld [vmem:[%s26988_s13 + $0xe8] sm:$0xff] }
 0x56a   : > { %v29671_v59 = vpop.f32.mrf.mxu0  ;;  %v25375_v43 = vpop.f32.mrf.mxu1  ;;  %32914 = vst [vmem:[#allocation260_spill] sm:$0xff] %v29686_v13  ;;  %32918 = vst [vmem:[#allocation264_spill] sm:$0xff] %v29697_v27 }
 0x56b   : > { %32911 = vst [vmem:[#allocation257_spill] sm:$0xff] %v29671_v59  ;;  %v29674_v2 = vadd.f32 %v25375_v43, %v28858_v47 }
 0x56c   : > { %v25274_v15 = vpop.f32.mrf.mxu0  ;;  %v29676_v12 = vpop.f32.mrf.mxu1  ;;  %25547 = vmatmul.mubr.f32.gmra.mxu0 %v29679_v34 }
 0x56d   : > { %32912 = vst [vmem:[#allocation258_spill] sm:$0xff] %v29674_v2  ;;  %32913 = vst [vmem:[#allocation259_spill] sm:$0xff] %v29676_v12  ;;  %v29683_v11 = vadd.f32 %v25274_v15, %v28865_v16  ;;  %25549 = vmatprep.mubr.f32.mxu0 %v29686_v13  ;;  %v29704_v15 = vld [vmem:[%s26988_s13 + $0xf0] sm:$0xff] }
 0x56e   : > { %v29689_v59 = vpop.f32.mrf.mxu0  ;;  %v25378_v47 = vpop.f32.mrf.mxu1  ;;  %32920 = vst [vmem:[#allocation266_spill] sm:$0xff] %v29704_v15 }
 0x56f   : > { %32915 = vst [vmem:[#allocation261_spill] sm:$0xff] %v29689_v59  ;;  %v29692_v43 = vadd.f32 %v25378_v47, %v28872_v31 }
 0x570   : > { %v25279_v2 = vpop.f32.mrf.mxu0  ;;  %v29694_v12 = vpop.f32.mrf.mxu1  ;;  %25550 = vmatmul.mubr.f32.gmra.mxu0 %v29697_v27 }
 0x571   : > { %32916 = vst [vmem:[#allocation262_spill] sm:$0xff] %v29692_v43  ;;  %32917 = vst [vmem:[#allocation263_spill] sm:$0xff] %v29694_v12  ;;  %v29701_v16 = vadd.f32 %v25279_v2, %v28879_v42  ;;  %25552 = vmatprep.mubr.f32.mxu0 %v29704_v15  ;;  %v29715_v12 = vld [vmem:[%s26988_s13 + $0xf8] sm:$0xff] }
 0x572   : > { %v29707_v13 = vpop.f32.mrf.mxu0  ;;  %v25391_v59 = vpop.f32.mrf.mxu1  ;;  %32923 = vst [vmem:[#allocation269_spill] sm:$0xff] %v29715_v12 }
 0x573   : > { %32919 = vst [vmem:[#allocation265_spill] sm:$0xff] %v29701_v16  ;;  %32921 = vst [vmem:[#allocation267_spill] sm:$0xff] %v29707_v13  ;;  %v29710_v31 = vadd.f32 %v25391_v59, %v28886_v63 }
 0x574   : > { %v25282_v47 = vpop.f32.mrf.mxu0  ;;  %v29712_v43 = vpop.f32.mrf.mxu1  ;;  %25553 = vmatmul.mubr.f32.gmra.mxu0 %v29715_v12 }
 0x575   : > { %32922 = vst [vmem:[#allocation268_spill] sm:$0xff] %v29712_v43  ;;  %v29719_v42 = vadd.f32 %v25282_v47, %v28893_v60  ;;  %v29736_v60 = vpop.permute.xlu0 %12433 }
 0x576   : > { %v29721_v2 = vpop.f32.mrf.mxu0  ;;  %v25394_v16 = vpop.f32.mrf.mxu1  ;;  %25557 = vmatprep.mubr.msk.f32.mxu1 %vm522_vm0, %v29736_v60  ;;  %25645 = vmatprep.mubr.msk.f32.mxu0 %vm522_vm0, %v29736_v60 }
 0x577   : > { %32924 = vst [vmem:[#allocation270_spill] sm:$0xff] %v29721_v2  ;;  %v29724_v15 = vadd.f32 %v25394_v16, %v28899_v36 }
 0x578   : > { %v25287_v13 = vpop.f32.mrf.mxu0  ;;  %v29726_v27 = vpop.f32.mrf.mxu1 }
 0x579   : > { %32925 = vst [vmem:[#allocation271_spill] sm:$0xff] %v29726_v27  ;;  %v29729_v63 = vadd.f32 %v25287_v13, %v28905_v54 }
 0x57a   : > { %v29731_v59 = vpop.f32.mrf.mxu0  ;;  %v25407_v43 = vpop.f32.mrf.mxu1 }
 0x57b   : > { %32926 = vst [vmem:[#allocation272_spill] sm:$0xff] %v29731_v59  ;;  %v29734_v12 = vadd.f32 %v25407_v43, %v28911_v21 }
 0x57c   : > { %v25290_v47 = vpop.f32.mrf.mxu0  ;;  %v29738_v2 = vpop.f32.mrf.mxu1 }
 0x57d   : > { %32927 = vst [vmem:[#allocation273_spill] sm:$0xff] %v29734_v12  ;;  %32928 = vst [vmem:[#allocation274_spill] sm:$0xff] %v29738_v2  ;;  %v29745_v36 = vadd.f32 %v25290_v47, %v28923_v62 }
 0x57e   : > { %v29747_v54 = vpop.f32.mrf.mxu0  ;;  %v25410_v13 = vpop.f32.mrf.mxu1 }
 0x57f   : > { %32929 = vst [vmem:[#allocation275_spill] sm:$0xff] %v29747_v54  ;;  %v29750_v21 = vadd.f32 %v25410_v13, %v28929_v51 }
 0x580   : > { %v25295_v43 = vpop.f32.mrf.mxu0  ;;  %v29752_v16 = vpop.f32.mrf.mxu1 }
 0x581   : > { %32930 = vst [vmem:[#allocation276_spill] sm:$0xff] %v29752_v16  ;;  %v29755_v2 = vadd.f32 %v25295_v43, %v28935_v7 }
 0x582   : > { %v29757_v59 = vpop.f32.mrf.mxu0  ;;  %v25423_v27 = vpop.f32.mrf.mxu1 }
 0x583   : > { %32931 = vst [vmem:[#allocation277_spill] sm:$0xff] %v29757_v59  ;;  %v29760_v12 = vadd.f32 %v25423_v27, %v28941_v20 }
 0x584   : > { %v25298_v62 = vpop.f32.mrf.mxu0  ;;  %v29762_v47 = vpop.f32.mrf.mxu1 }
 0x585   : > { %32932 = vst [vmem:[#allocation278_spill] sm:$0xff] %v29762_v47  ;;  %v29765_v54 = vadd.f32 %v25298_v62, %v28947_v18 }
 0x586   : > { %v29767_v51 = vpop.f32.mrf.mxu0  ;;  %v25426_v13 = vpop.f32.mrf.mxu1 }
 0x587   : > { %32933 = vst [vmem:[#allocation279_spill] sm:$0xff] %v29767_v51  ;;  %v29770_v16 = vadd.f32 %v25426_v13, %v28951_v1 }
 0x588   : > { %v25303_v7 = vpop.f32.mrf.mxu0  ;;  %v29772_v43 = vpop.f32.mrf.mxu1 }
 0x589   : > { %32934 = vst [vmem:[#allocation280_spill] sm:$0xff] %v29772_v43  ;;  %v29775_v59 = vadd.f32 %v25303_v7, %v28958_v61 }
 0x58a   : > { %v29777_v20 = vpop.f32.mrf.mxu0  ;;  %v25439_v27 = vpop.f32.mrf.mxu1 }
 0x58b   : > { %32935 = vst [vmem:[#allocation281_spill] sm:$0xff] %v29777_v20  ;;  %v29780_v47 = vadd.f32 %v25439_v27, %v28962_v49 }
 0x58c   : > { %v25306_v18 = vpop.f32.mrf.mxu0  ;;  %v29782_v62 = vpop.f32.mrf.mxu1 }
 0x58d   : > { %32936 = vst [vmem:[#allocation282_spill] sm:$0xff] %v29782_v62  ;;  %v29785_v51 = vadd.f32 %v25306_v18, %v28969_v22 }
 0x58e   : > { %v29787_v1 = vpop.f32.mrf.mxu0  ;;  %v25442_v13 = vpop.f32.mrf.mxu1 }
 0x58f   : > { %32937 = vst [vmem:[#allocation283_spill] sm:$0xff] %v29785_v51  ;;  %32938 = vst [vmem:[#allocation284_spill] sm:$0xff] %v29787_v1  ;;  %v29790_v43 = vadd.f32 %v25442_v13, %v28975_v28  ;;  %v32945_v1 = vld [vmem:[#allocation119_spill] sm:$0xff] }
 0x590   : > { %v25319_v61 = vpop.f32.mrf.mxu0  ;;  %v29792_v7 = vpop.f32.mrf.mxu1 }
 0x591   : > { %32939 = vst [vmem:[#allocation285_spill] sm:$0xff] %v29790_v43  ;;  %32940 = vst [vmem:[#allocation286_spill] sm:$0xff] %v29792_v7  ;;  %v29795_v20 = vadd.f32 %v25319_v61, %v28981_v50  ;;  %v32948_v43 = vld [vmem:[#allocation104_spill] sm:$0xff] }
 0x592   : > { %v29797_v49 = vpop.f32.mrf.mxu0  ;;  %v25455_v27 = vpop.f32.mrf.mxu1 }
 0x593   : > { %32941 = vst [vmem:[#allocation287_spill] sm:$0xff] %v29795_v20  ;;  %32942 = vst [vmem:[#allocation288_spill] sm:$0xff] %v29797_v49  ;;  %v29800_v62 = vadd.f32 %v25455_v27, %v28985_v52  ;;  %v32950_v49 = vld [vmem:[#allocation201_spill] sm:$0xff] }
 0x594   : > { %v25322_v22 = vpop.f32.mrf.mxu0  ;;  %v29802_v18 = vpop.f32.mrf.mxu1 }
 0x595   : > { %32943 = vst [vmem:[#allocation289_spill] sm:$0xff] %v29800_v62  ;;  %32944 = vst [vmem:[#allocation290_spill] sm:$0xff] %v29802_v18  ;;  %v29805_v51 = vadd.f32 %v25322_v22, %v32945_v1  ;;  %v32952_v62 = vld [vmem:[#allocation17_spill] sm:$0xff] }
 0x596   : > { %v29807_v28 = vpop.f32.mrf.mxu0  ;;  %v25458_v13 = vpop.f32.mrf.mxu1 }
 0x597   : > { %32946 = vst [vmem:[#allocation119_spill] sm:$0xff] %v29805_v51  ;;  %32947 = vst [vmem:[#allocation291_spill] sm:$0xff] %v29807_v28  ;;  %v29810_v7 = vadd.f32 %v25458_v13, %v32948_v43  ;;  %v32955_v28 = vld [vmem:[#allocation127_spill] sm:$0xff] }
 0x598   : > { %v25335_v50 = vpop.f32.mrf.mxu0  ;;  %v29812_v61 = vpop.f32.mrf.mxu1 }
 0x599   : > { %32949 = vst [vmem:[#allocation104_spill] sm:$0xff] %v29812_v61  ;;  %v29815_v20 = vadd.f32 %v25335_v50, %v32950_v49 }
 0x59a   : > { %v29817_v52 = vpop.f32.mrf.mxu0  ;;  %v25471_v27 = vpop.f32.mrf.mxu1 }
 0x59b   : > { %32951 = vst [vmem:[#allocation201_spill] sm:$0xff] %v29817_v52  ;;  %v29820_v18 = vadd.f32 %v25471_v27, %v32952_v62  ;;  %v32961_v27 = vld [vmem:[#allocation116_spill] sm:$0xff] }
 0x59c   : > { %v25338_v1 = vpop.f32.mrf.mxu0  ;;  %v29822_v22 = vpop.f32.mrf.mxu1 }
 0x59d   : > { %32953 = vst [vmem:[#allocation17_spill] sm:$0xff] %v29820_v18  ;;  %32954 = vst [vmem:[#allocation292_spill] sm:$0xff] %v29822_v22  ;;  %v29825_v51 = vadd.f32 %v25338_v1, %v32955_v28  ;;  %v32964_v1 = vld [vmem:[#allocation120_spill] sm:$0xff] }
 0x59e   : > { %v29827_v43 = vpop.f32.mrf.mxu0  ;;  %v25474_v13 = vpop.f32.mrf.mxu1 }
 0x59f   : > { %32956 = vst [vmem:[#allocation127_spill] sm:$0xff] %v29825_v51  ;;  %32957 = vst [vmem:[#allocation293_spill] sm:$0xff] %v29827_v43  ;;  %v29830_v61 = vadd.f32 %v25474_v13, %v29022_v0  ;;  %v32967_v13 = vld [vmem:[#allocation206_spill] sm:$0xff] }
 0x5a0   : > { %v25351_v49 = vpop.f32.mrf.mxu0 }
 0x5a1   : > { %32958 = vst [vmem:[#allocation294_spill] sm:$0xff] %v29830_v61  ;;  %v29833_v50 = vadd.f32 %v25351_v49, %v29024_v23 }
 0x5a2   : > { %v29835_v52 = vpop.f32.mrf.mxu0 }
 0x5a3   : > { %32959 = vst [vmem:[#allocation295_spill] sm:$0xff] %v29833_v50  ;;  %32960 = vst [vmem:[#allocation296_spill] sm:$0xff] %v29835_v52  ;;  %v32970_v52 = vld [vmem:[#allocation124_spill] sm:$0xff] }
 0x5a4   : > { %v25354_v62 = vpop.f32.mrf.mxu0 }
 0x5a5   : > { %v29838_v18 = vadd.f32 %v25354_v62, %v32961_v27 }
 0x5a6   : > { %v29840_v22 = vpop.f32.mrf.mxu0 }
 0x5a7   : > { %32962 = vst [vmem:[#allocation116_spill] sm:$0xff] %v29838_v18  ;;  %32963 = vst [vmem:[#allocation297_spill] sm:$0xff] %v29840_v22  ;;  %v32973_v22 = vld [vmem:[#allocation208_spill] sm:$0xff] }
 0x5a8   : > { %v25367_v28 = vpop.f32.mrf.mxu0 }
 0x5a9   : > { %v29843_v51 = vadd.f32 %v25367_v28, %v32964_v1 }
 0x5aa   : > { %v29845_v43 = vpop.f32.mrf.mxu0 }
 0x5ab   : > { %32965 = vst [vmem:[#allocation120_spill] sm:$0xff] %v29843_v51  ;;  %32966 = vst [vmem:[#allocation298_spill] sm:$0xff] %v29845_v43  ;;  %v32976_v43 = vld [vmem:[#allocation128_spill] sm:$0xff] }
 0x5ac   : > { %v25370_v0 = vpop.f32.mrf.mxu0 }
 0x5ad   : > { %v29848_v61 = vadd.f32 %v25370_v0, %v32967_v13 }
 0x5ae   : > { %v29850_v23 = vpop.f32.mrf.mxu0 }
 0x5af   : > { %32968 = vst [vmem:[#allocation206_spill] sm:$0xff] %v29848_v61  ;;  %32969 = vst [vmem:[#allocation299_spill] sm:$0xff] %v29850_v23  ;;  %v32979_v23 = vld [vmem:[#allocation131_spill] sm:$0xff] }
 0x5b0   : > { %v25383_v49 = vpop.f32.mrf.mxu0 }
 0x5b1   : > { %v29853_v50 = vadd.f32 %v25383_v49, %v32970_v52 }
 0x5b2   : > { %v29855_v62 = vpop.f32.mrf.mxu0 }
 0x5b3   : > { %32971 = vst [vmem:[#allocation124_spill] sm:$0xff] %v29853_v50  ;;  %32972 = vst [vmem:[#allocation300_spill] sm:$0xff] %v29855_v62  ;;  %v32982_v62 = vld [vmem:[#allocation134_spill] sm:$0xff] }
 0x5b4   : > { %v25386_v27 = vpop.f32.mrf.mxu0 }
 0x5b5   : > { %v29858_v18 = vadd.f32 %v25386_v27, %v32973_v22 }
 0x5b6   : > { %v29860_v28 = vpop.f32.mrf.mxu0 }
 0x5b7   : > { %32974 = vst [vmem:[#allocation208_spill] sm:$0xff] %v29858_v18  ;;  %32975 = vst [vmem:[#allocation301_spill] sm:$0xff] %v29860_v28  ;;  %v32985_v28 = vld [vmem:[#allocation137_spill] sm:$0xff] }
 0x5b8   : > { %v25399_v1 = vpop.f32.mrf.mxu0 }
 0x5b9   : > { %v29863_v51 = vadd.f32 %v25399_v1, %v32976_v43 }
 0x5ba   : > { %v29865_v0 = vpop.f32.mrf.mxu0 }
 0x5bb   : > { %32977 = vst [vmem:[#allocation128_spill] sm:$0xff] %v29863_v51  ;;  %32978 = vst [vmem:[#allocation302_spill] sm:$0xff] %v29865_v0  ;;  %v32987_v0 = vld [vmem:[#allocation140_spill] sm:$0xff] }
 0x5bc   : > { %v25402_v13 = vpop.f32.mrf.mxu0 }
 0x5bd   : > { %v29868_v61 = vadd.f32 %v25402_v13, %v32979_v23 }
 0x5be   : > { %v29870_v52 = vpop.f32.mrf.mxu0 }
 0x5bf   : > { %32980 = vst [vmem:[#allocation131_spill] sm:$0xff] %v29868_v61  ;;  %32981 = vst [vmem:[#allocation303_spill] sm:$0xff] %v29870_v52  ;;  %v32989_v52 = vld [vmem:[#allocation143_spill] sm:$0xff] }
 0x5c0   : > { %v25415_v49 = vpop.f32.mrf.mxu0 }
 0x5c1   : > { %v29873_v50 = vadd.f32 %v25415_v49, %v32982_v62 }
 0x5c2   : > { %v29875_v22 = vpop.f32.mrf.mxu0 }
 0x5c3   : > { %32983 = vst [vmem:[#allocation134_spill] sm:$0xff] %v29873_v50  ;;  %32984 = vst [vmem:[#allocation304_spill] sm:$0xff] %v29875_v22  ;;  %v32992_v22 = vld [vmem:[#allocation146_spill] sm:$0xff] }
 0x5c4   : > { %v25418_v27 = vpop.f32.mrf.mxu0 }
 0x5c5   : > { %v29878_v18 = vadd.f32 %v25418_v27, %v32985_v28 }
 0x5c6   : > { %v29880_v43 = vpop.f32.mrf.mxu0 }
 0x5c7   : > { %32986 = vst [vmem:[#allocation137_spill] sm:$0xff] %v29880_v43 }
 0x5c8   : > { %v25431_v1 = vpop.f32.mrf.mxu0 }
 0x5c9   : > { %v29883_v51 = vadd.f32 %v25431_v1, %v32987_v0 }
 0x5ca   : > { %v29885_v23 = vpop.f32.mrf.mxu0 }
 0x5cb   : > { %32988 = vst [vmem:[#allocation140_spill] sm:$0xff] %v29885_v23 }
 0x5cc   : > { %v25434_v13 = vpop.f32.mrf.mxu0 }
 0x5cd   : > { %v29888_v61 = vadd.f32 %v25434_v13, %v32989_v52 }
 0x5ce   : > { %v29890_v62 = vpop.f32.mrf.mxu0 }
 0x5cf   : > { %32990 = vst [vmem:[#allocation143_spill] sm:$0xff] %v29888_v61  ;;  %32991 = vst [vmem:[#allocation305_spill] sm:$0xff] %v29890_v62  ;;  %v32999_v62 = vld [vmem:[#allocation151_spill] sm:$0xff] }
 0x5d0   : > { %v25447_v49 = vpop.f32.mrf.mxu0 }
 0x5d1   : > { %v29893_v50 = vadd.f32 %v25447_v49, %v32992_v22 }
 0x5d2   : > { %v29895_v28 = vpop.f32.mrf.mxu0 }
 0x5d3   : > { %32993 = vst [vmem:[#allocation146_spill] sm:$0xff] %v29893_v50  ;;  %32994 = vst [vmem:[#allocation306_spill] sm:$0xff] %v29895_v28  ;;  %v29912_v28 = vpop.permute.xlu1 %12435 }
 0x5d4   : > { %v25450_v27 = vpop.f32.mrf.mxu0 }
 0x5d5   : > { %v29898_v43 = vadd.f32 %v25450_v27, %v29102_v9  ;;  %v29914_v9 = vpop.permute.xlu0 %12437 }
 0x5d6   : > { %v29900_v0 = vpop.f32.mrf.mxu0 }
 0x5d7   : > { %32995 = vst [vmem:[#allocation307_spill] sm:$0xff] %v29898_v43  ;;  %32996 = vst [vmem:[#allocation308_spill] sm:$0xff] %v29900_v0 }
 0x5d8   : > { %v25463_v1 = vpop.f32.mrf.mxu0 }
 0x5d9   : > { %v29903_v23 = vadd.f32 %v25463_v1, %v29108_v19  ;;  %v29918_v1 = vpop.permute.xlu1 %12439 }
 0x5da   : > { %v29905_v52 = vpop.f32.mrf.mxu0 }
 0x5db   : > { %32997 = vst [vmem:[#allocation309_spill] sm:$0xff] %v29903_v23  ;;  %32998 = vst [vmem:[#allocation310_spill] sm:$0xff] %v29905_v52 }
 0x5dc   : > { %v25466_v13 = vpop.f32.mrf.mxu0 }
 0x5dd   : > { %v29908_v61 = vadd.f32 %v25466_v13, %v32999_v62 }
 0x5de   : > { %v29910_v22 = vpop.f32.mrf.mxu0 }
 0x5df   : > { %33000 = vst [vmem:[#allocation151_spill] sm:$0xff] %v29908_v61  ;;  %33001 = vst [vmem:[#allocation311_spill] sm:$0xff] %v29910_v22 }
 0x5f8   : > { %v25509_v49 = vpop.f32.mrf.mxu0 }
 0x5fa   : > { %v12274_v50 = vpop.f32.mrf.mxu0 }
 0x5fb   : > { %25555 = vmatprep.subr.mxu1 %v12274_v50 }
 0x5fc   : > { %v25512_v27 = vpop.f32.mrf.mxu0  ;;  %25556 = vmatpush3.msra.mxu1 %v12274_v50 }
 0x5fd   : > { %25558 = vmatmul.mubr.msk.f32.vlgmr.msra.gmra.mxu1 %vm522_vm0, %v29912_v28  ;;  %25563 = vmatprep.subr.mxu1 %v25509_v49 }
 0x5fe   : > { %v12284_v19 = vpop.f32.mrf.mxu0  ;;  %25560 = vmatprep.mubr.msk.f32.mxu1 %vm522_vm0, %v29914_v9  ;;  %25564 = vmatpush3.msra.mxu1 %v25509_v49 }
 0x5ff   : > { %25571 = vmatprep.subr.mxu1 %v12284_v19 }
 0x600   : > { %v25515_v62 = vpop.f32.mrf.mxu0 }
 0x601   : > { %25561 = vmatmul.mubr.msk.f32.gmra.mxu1 %vm522_vm0, %v29918_v1 }
 0x602   : > { %v12294_v13 = vpop.f32.mrf.mxu0  ;;  %25565 = vmatprep.mubr.msk.f32.mxu1 %vm522_vm0, %v29736_v60 }
 0x604   : > { %v29926_v50 = vpop.f32.mrf.mxu0 }
 0x605   : > { %25566 = vmatmul.mubr.msk.f32.vlgmr.msra.gmra.mxu1 %vm522_vm0, %v29912_v28 }
 0x606   : > { %v12304_v22 = vpop.f32.mrf.mxu0  ;;  %25568 = vmatprep.mubr.msk.f32.mxu1 %vm522_vm0, %v29914_v9  ;;  %25572 = vmatpush3.msra.mxu1 %v12284_v19 }
 0x607   : > { %25579 = vmatprep.subr.mxu1 %v25512_v27 }
 0x608   : > { %v29932_v49 = vpop.f32.mrf.mxu0 }
 0x609   : > { %25569 = vmatmul.mubr.msk.f32.gmra.mxu1 %vm522_vm0, %v29918_v1 }
 0x60a   : > { %v29936_v52 = vpop.f32.mrf.mxu0  ;;  %25573 = vmatprep.mubr.msk.f32.mxu1 %vm522_vm0, %v29736_v60 }
 0x60c   : > { %v25524_v0 = vpop.f32.mrf.mxu0 }
 0x60d   : > { %25574 = vmatmul.mubr.msk.f32.vlgmr.msra.gmra.mxu1 %vm522_vm0, %v29912_v28  ;;  %25643 = vmatprep.subr.mxu0 %v25524_v0 }
 0x60e   : > { %25644 = vmatpush3.msra.mxu0 %v25524_v0  ;;  %25576 = vmatprep.mubr.msk.f32.mxu1 %vm522_vm0, %v29914_v9  ;;  %v29944_v19 = vpop.f32.mrf.mxu0 }
 0x60f   : > { %25646 = vmatmul.mubr.msk.f32.vlgmr.msra.gmra.mxu0 %vm522_vm0, %v29912_v28  ;;  %25580 = vmatpush3.msra.mxu1 %v25512_v27 }
 0x610   : > { %25648 = vmatprep.mubr.msk.f32.mxu0 %vm522_vm0, %v29914_v9  ;;  %v25527_v61 = vpop.f32.mrf.mxu0  ;;  %25587 = vmatprep.subr.mxu1 %v12294_v13 }
 0x611   : > { %25577 = vmatmul.mubr.msk.f32.gmra.mxu1 %vm522_vm0, %v29918_v1  ;;  %25659 = vmatprep.subr.mxu0 %v25527_v61 }
 0x612   : > { %25581 = vmatprep.mubr.msk.f32.mxu1 %vm522_vm0, %v29736_v60  ;;  %25660 = vmatpush3.msra.mxu0 %v25527_v61  ;;  %v29954_v0 = vpop.f32.mrf.mxu0 }
 0x613   : > { %25649 = vmatmul.mubr.msk.f32.gmra.mxu0 %vm522_vm0, %v29918_v1 }
 0x614   : > { %25661 = vmatprep.mubr.msk.f32.mxu0 %vm522_vm0, %v29736_v60  ;;  %v25530_v27 = vpop.f32.mrf.mxu0 }
 0x615   : > { %25582 = vmatmul.mubr.msk.f32.vlgmr.msra.gmra.mxu1 %vm522_vm0, %v29912_v28  ;;  %25675 = vmatprep.subr.mxu0 %v25530_v27 }
 0x616   : > { %25584 = vmatprep.mubr.msk.f32.mxu1 %vm522_vm0, %v29914_v9  ;;  %25588 = vmatpush3.msra.mxu1 %v12294_v13  ;;  %v29964_v23 = vpop.f32.mrf.mxu0 }
 0x617   : > { %25662 = vmatmul.mubr.msk.f32.vlgmr.msra.gmra.mxu0 %vm522_vm0, %v29912_v28  ;;  %25595 = vmatprep.subr.mxu1 %v25515_v62 }
 0x618   : > { %25664 = vmatprep.mubr.msk.f32.mxu0 %vm522_vm0, %v29914_v9  ;;  %25676 = vmatpush3.msra.mxu0 %v25530_v27  ;;  %v25533_v61 = vpop.f32.mrf.mxu0 }
 0x619   : > { %25585 = vmatmul.mubr.msk.f32.gmra.mxu1 %vm522_vm0, %v29918_v1  ;;  %25691 = vmatprep.subr.mxu0 %v25533_v61 }
 0x61a   : > { %25589 = vmatprep.mubr.msk.f32.mxu1 %vm522_vm0, %v29736_v60  ;;  %v29974_v43 = vpop.f32.mrf.mxu0 }
 0x61b   : > { %25665 = vmatmul.mubr.msk.f32.gmra.mxu0 %vm522_vm0, %v29918_v1 }
 0x61c   : > { %25677 = vmatprep.mubr.msk.f32.mxu0 %vm522_vm0, %v29736_v60  ;;  %v25536_v13 = vpop.f32.mrf.mxu0 }
 0x61d   : > { %25590 = vmatmul.mubr.msk.f32.vlgmr.msra.gmra.mxu1 %vm522_vm0, %v29912_v28 }
 0x61e   : > { %25592 = vmatprep.mubr.msk.f32.mxu1 %vm522_vm0, %v29914_v9  ;;  %25596 = vmatpush3.msra.mxu1 %v25515_v62  ;;  %v29992_v27 = vpop.f32.mrf.mxu0 }
 0x61f   : > { %25678 = vmatmul.mubr.msk.f32.vlgmr.msra.gmra.mxu0 %vm522_vm0, %v29912_v28  ;;  %25603 = vmatprep.subr.mxu1 %v12304_v22 }
 0x620   : > { %25680 = vmatprep.mubr.msk.f32.mxu0 %vm522_vm0, %v29914_v9  ;;  %25692 = vmatpush3.msra.mxu0 %v25533_v61  ;;  %v25539_v62 = vpop.f32.mrf.mxu0 }
 0x621   : > { %25593 = vmatmul.mubr.msk.f32.gmra.mxu1 %vm522_vm0, %v29918_v1  ;;  %25707 = vmatprep.subr.mxu0 %v25536_v13 }
 0x622   : > { %25597 = vmatprep.mubr.msk.f32.mxu1 %vm522_vm0, %v29736_v60  ;;  %v30011_v61 = vpop.f32.mrf.mxu0 }
 0x623   : > { %25681 = vmatmul.mubr.msk.f32.gmra.mxu0 %vm522_vm0, %v29918_v1 }
 0x624   : > { %25693 = vmatprep.mubr.msk.f32.mxu0 %vm522_vm0, %v29736_v60 }
 0x625   : > { %25598 = vmatmul.mubr.msk.f32.vlgmr.msra.gmra.mxu1 %vm522_vm0, %v29912_v28 }
 0x626   : > { %25600 = vmatprep.mubr.msk.f32.mxu1 %vm522_vm0, %v29914_v9  ;;  %25604 = vmatpush3.msra.mxu1 %v12304_v22  ;;  %v25542_v22 = vpop.f32.mrf.mxu0 }
 0x627   : > { %25694 = vmatmul.mubr.msk.f32.vlgmr.msra.gmra.mxu0 %vm522_vm0, %v29912_v28  ;;  %25611 = vmatprep.subr.mxu1 %v29926_v50 }
 0x628   : > { %25696 = vmatprep.mubr.msk.f32.mxu0 %vm522_vm0, %v29914_v9  ;;  %25708 = vmatpush3.msra.mxu0 %v25536_v13  ;;  %v30031_v13 = vpop.f32.mrf.mxu0 }
 0x629   : > { %25601 = vmatmul.mubr.msk.f32.gmra.mxu1 %vm522_vm0, %v29918_v1  ;;  %25723 = vmatprep.subr.mxu0 %v25539_v62 }
 0x62a   : > { %25605 = vmatprep.mubr.msk.f32.mxu1 %vm522_vm0, %v29736_v60 }
 0x62b   : > { %25697 = vmatmul.mubr.msk.f32.gmra.mxu0 %vm522_vm0, %v29918_v1 }
 0x62c   : > { %25709 = vmatprep.mubr.msk.f32.mxu0 %vm522_vm0, %v29736_v60 }
 0x62d   : > { %25606 = vmatmul.mubr.msk.f32.vlgmr.msra.gmra.mxu1 %vm522_vm0, %v29912_v28 }
 0x62e   : > { %25608 = vmatprep.mubr.msk.f32.mxu1 %vm522_vm0, %v29914_v9  ;;  %25612 = vmatpush3.msra.mxu1 %v29926_v50  ;;  %v25545_v50 = vpop.f32.mrf.mxu0 }
 0x62f   : > { %25710 = vmatmul.mubr.msk.f32.vlgmr.msra.gmra.mxu0 %vm522_vm0, %v29912_v28  ;;  %25619 = vmatprep.subr.mxu1 %v29936_v52 }
 0x630   : > { %25712 = vmatprep.mubr.msk.f32.mxu0 %vm522_vm0, %v29914_v9  ;;  %25724 = vmatpush3.msra.mxu0 %v25539_v62  ;;  %v30051_v62 = vpop.f32.mrf.mxu0 }
 0x631   : > { %25609 = vmatmul.mubr.msk.f32.gmra.mxu1 %vm522_vm0, %v29918_v1  ;;  %25739 = vmatprep.subr.mxu0 %v25542_v22 }
 0x632   : > { %25613 = vmatprep.mubr.msk.f32.mxu1 %vm522_vm0, %v29736_v60 }
 0x633   : > { %25713 = vmatmul.mubr.msk.f32.gmra.mxu0 %vm522_vm0, %v29918_v1 }
 0x634   : > { %25725 = vmatprep.mubr.msk.f32.mxu0 %vm522_vm0, %v29736_v60 }
 0x635   : > { %25614 = vmatmul.mubr.msk.f32.vlgmr.msra.gmra.mxu1 %vm522_vm0, %v29912_v28 }
 0x636   : > { %25616 = vmatprep.mubr.msk.f32.mxu1 %vm522_vm0, %v29914_v9  ;;  %25620 = vmatpush3.msra.mxu1 %v29936_v52  ;;  %v25548_v52 = vpop.f32.mrf.mxu0 }
 0x637   : > { %25726 = vmatmul.mubr.msk.f32.vlgmr.msra.gmra.mxu0 %vm522_vm0, %v29912_v28  ;;  %25627 = vmatprep.subr.mxu1 %v29932_v49 }
 0x638   : > { %25728 = vmatprep.mubr.msk.f32.mxu0 %vm522_vm0, %v29914_v9  ;;  %25740 = vmatpush3.msra.mxu0 %v25542_v22  ;;  %v30071_v22 = vpop.f32.mrf.mxu0 }
 0x639   : > { %25617 = vmatmul.mubr.msk.f32.gmra.mxu1 %vm522_vm0, %v29918_v1  ;;  %25755 = vmatprep.subr.mxu0 %v25545_v50 }
 0x63a   : > { %25621 = vmatprep.mubr.msk.f32.mxu1 %vm522_vm0, %v29736_v60 }
 0x63b   : > { %25729 = vmatmul.mubr.msk.f32.gmra.mxu0 %vm522_vm0, %v29918_v1 }
 0x63c   : > { %25741 = vmatprep.mubr.msk.f32.mxu0 %vm522_vm0, %v29736_v60 }
 0x63d   : > { %25622 = vmatmul.mubr.msk.f32.vlgmr.msra.gmra.mxu1 %vm522_vm0, %v29912_v28 }
 0x63e   : > { %25624 = vmatprep.mubr.msk.f32.mxu1 %vm522_vm0, %v29914_v9  ;;  %25628 = vmatpush3.msra.mxu1 %v29932_v49  ;;  %v25551_v49 = vpop.f32.mrf.mxu0 }
 0x63f   : > { %25742 = vmatmul.mubr.msk.f32.vlgmr.msra.gmra.mxu0 %vm522_vm0, %v29912_v28  ;;  %25635 = vmatprep.subr.mxu1 %v29944_v19 }
 0x640   : > { %25744 = vmatprep.mubr.msk.f32.mxu0 %vm522_vm0, %v29914_v9  ;;  %25756 = vmatpush3.msra.mxu0 %v25545_v50  ;;  %v30091_v50 = vpop.f32.mrf.mxu0 }
 0x641   : > { %25625 = vmatmul.mubr.msk.f32.gmra.mxu1 %vm522_vm0, %v29918_v1  ;;  %25771 = vmatprep.subr.mxu0 %v25548_v52 }
 0x642   : > { %25629 = vmatprep.mubr.msk.f32.mxu1 %vm522_vm0, %v29736_v60 }
 0x643   : > { %25745 = vmatmul.mubr.msk.f32.gmra.mxu0 %vm522_vm0, %v29918_v1 }
 0x644   : > { %25757 = vmatprep.mubr.msk.f32.mxu0 %vm522_vm0, %v29736_v60 }
 0x645   : > { %25630 = vmatmul.mubr.msk.f32.vlgmr.msra.gmra.mxu1 %vm522_vm0, %v29912_v28 }
 0x646   : > { %25632 = vmatprep.mubr.msk.f32.mxu1 %vm522_vm0, %v29914_v9  ;;  %25636 = vmatpush3.msra.mxu1 %v29944_v19  ;;  %v25554_v19 = vpop.f32.mrf.mxu0 }
 0x647   : > { %25758 = vmatmul.mubr.msk.f32.vlgmr.msra.gmra.mxu0 %vm522_vm0, %v29912_v28  ;;  %25651 = vmatprep.subr.mxu1 %v29954_v0 }
 0x648   : > { %25760 = vmatprep.mubr.msk.f32.mxu0 %vm522_vm0, %v29914_v9  ;;  %25772 = vmatpush3.msra.mxu0 %v25548_v52  ;;  %v15300_v52 = vld [vmem:[#allocation5 + $0x210] sm:$0xff] }
 0x649   : > { %25633 = vmatmul.mubr.msk.f32.gmra.mxu1 %vm522_vm0, %v29918_v1  ;;  %25787 = vmatprep.subr.mxu0 %v25551_v49 }
 0x64a   : > { %25637 = vmatprep.mubr.msk.f32.mxu1 %vm522_vm0, %v29736_v60 }
 0x64b   : > { %25761 = vmatmul.mubr.msk.f32.gmra.mxu0 %vm522_vm0, %v29918_v1 }
 0x64c   : > { %25773 = vmatprep.mubr.msk.f32.mxu0 %vm522_vm0, %v29736_v60 }
 0x64d   : > { %25638 = vmatmul.mubr.msk.f32.vlgmr.msra.gmra.mxu1 %vm522_vm0, %v29912_v28 }
 0x64e   : > { %25640 = vmatprep.mubr.msk.f32.mxu1 %vm522_vm0, %v29914_v9  ;;  %25652 = vmatpush3.msra.mxu1 %v29954_v0  ;;  %v33002_v0 = vld [vmem:[#allocation154_spill] sm:$0xff] }
 0x64f   : > { %25774 = vmatmul.mubr.msk.f32.vlgmr.msra.gmra.mxu0 %vm522_vm0, %v29912_v28  ;;  %25667 = vmatprep.subr.mxu1 %v29964_v23 }
 0x650   : > { %25776 = vmatprep.mubr.msk.f32.mxu0 %vm522_vm0, %v29914_v9  ;;  %25788 = vmatpush3.msra.mxu0 %v25551_v49  ;;  %v15298_v49 = vld [vmem:[#allocation5 + $0x200] sm:$0xff] }
 0x651   : > { %25641 = vmatmul.mubr.msk.f32.gmra.mxu1 %vm522_vm0, %v29918_v1  ;;  %25803 = vmatprep.subr.mxu0 %v25554_v19 }
 0x652   : > { %25653 = vmatprep.mubr.msk.f32.mxu1 %vm522_vm0, %v29736_v60 }
 0x653   : > { %25777 = vmatmul.mubr.msk.f32.gmra.mxu0 %vm522_vm0, %v29918_v1 }
 0x654   : > { %25789 = vmatprep.mubr.msk.f32.mxu0 %vm522_vm0, %v29736_v60 }
 0x655   : > { %25654 = vmatmul.mubr.msk.f32.vlgmr.msra.gmra.mxu1 %vm522_vm0, %v29912_v28 }
 0x656   : > { %25656 = vmatprep.mubr.msk.f32.mxu1 %vm522_vm0, %v29914_v9  ;;  %25668 = vmatpush3.msra.mxu1 %v29964_v23  ;;  %v15313_v23 = vld [vmem:[#allocation5 + $0x278] sm:$0xff] }
 0x657   : > { %25790 = vmatmul.mubr.msk.f32.vlgmr.msra.gmra.mxu0 %vm522_vm0, %v29912_v28  ;;  %25683 = vmatprep.subr.mxu1 %v29974_v43 }
 0x658   : > { %25792 = vmatprep.mubr.msk.f32.mxu0 %vm522_vm0, %v29914_v9  ;;  %25804 = vmatpush3.msra.mxu0 %v25554_v19 }
 0x659   : > { %25657 = vmatmul.mubr.msk.f32.gmra.mxu1 %vm522_vm0, %v29918_v1 }
 0x65a   : > { %25669 = vmatprep.mubr.msk.f32.mxu1 %vm522_vm0, %v29736_v60 }
 0x65b   : > { %25793 = vmatmul.mubr.msk.f32.gmra.mxu0 %vm522_vm0, %v29918_v1 }
 0x65c   : > { %25805 = vmatprep.mubr.msk.f32.mxu0 %vm522_vm0, %v29736_v60 }
 0x65d   : > { %25670 = vmatmul.mubr.msk.f32.vlgmr.msra.gmra.mxu1 %vm522_vm0, %v29912_v28 }
 0x65e   : > { %25672 = vmatprep.mubr.msk.f32.mxu1 %vm522_vm0, %v29914_v9  ;;  %25684 = vmatpush3.msra.mxu1 %v29974_v43  ;;  %v12424_v43 = vpop.f32.mrf.mxu0 }
 0x65f   : > { %25806 = vmatmul.mubr.msk.f32.vlgmr.msra.gmra.mxu0 %vm522_vm0, %v29912_v28  ;;  %25699 = vmatprep.subr.mxu1 %v29992_v27 }
 0x660   : > { %25808 = vmatprep.mubr.msk.f32.mxu0 %vm522_vm0, %v29914_v9 }
 0x661   : > { %25673 = vmatmul.mubr.msk.f32.gmra.mxu1 %vm522_vm0, %v29918_v1 }
 0x662   : > { %25685 = vmatprep.mubr.msk.f32.mxu1 %vm522_vm0, %v29736_v60 }
 0x663   : > { %25809 = vmatmul.mubr.msk.f32.gmra.mxu0 %vm522_vm0, %v29918_v1 }
 0x665   : > { %25686 = vmatmul.mubr.msk.f32.vlgmr.msra.gmra.mxu1 %vm522_vm0, %v29912_v28 }
 0x666   : > { %25688 = vmatprep.mubr.msk.f32.mxu1 %vm522_vm0, %v29914_v9  ;;  %25700 = vmatpush3.msra.mxu1 %v29992_v27  ;;  %v15305_v27 = vld [vmem:[#allocation5 + $0x238] sm:$0xff] }
 0x667   : > { %25715 = vmatprep.subr.mxu1 %v30011_v61 }
 0x669   : > { %25689 = vmatmul.mubr.msk.f32.gmra.mxu1 %vm522_vm0, %v29918_v1 }
 0x66a   : > { %25701 = vmatprep.mubr.msk.f32.mxu1 %vm522_vm0, %v29736_v60 }
 0x66d   : > { %25702 = vmatmul.mubr.msk.f32.vlgmr.msra.gmra.mxu1 %vm522_vm0, %v29912_v28 }
 0x66e   : > { %25704 = vmatprep.mubr.msk.f32.mxu1 %vm522_vm0, %v29914_v9  ;;  %25716 = vmatpush3.msra.mxu1 %v30011_v61  ;;  %v15304_v61 = vld [vmem:[#allocation5 + $0x230] sm:$0xff] }
 0x66f   : > { %25731 = vmatprep.subr.mxu1 %v30031_v13 }
 0x671   : > { %25705 = vmatmul.mubr.msk.f32.gmra.mxu1 %vm522_vm0, %v29918_v1 }
 0x672   : > { %25717 = vmatprep.mubr.msk.f32.mxu1 %vm522_vm0, %v29736_v60 }
 0x675   : > { %25718 = vmatmul.mubr.msk.f32.vlgmr.msra.gmra.mxu1 %vm522_vm0, %v29912_v28 }
 0x676   : > { %25720 = vmatprep.mubr.msk.f32.mxu1 %vm522_vm0, %v29914_v9  ;;  %25732 = vmatpush3.msra.mxu1 %v30031_v13  ;;  %v15302_v13 = vld [vmem:[#allocation5 + $0x220] sm:$0xff] }
 0x677   : > { %25747 = vmatprep.subr.mxu1 %v30051_v62 }
 0x679   : > { %25721 = vmatmul.mubr.msk.f32.gmra.mxu1 %vm522_vm0, %v29918_v1 }
 0x67a   : > { %25733 = vmatprep.mubr.msk.f32.mxu1 %vm522_vm0, %v29736_v60 }
 0x67d   : > { %25734 = vmatmul.mubr.msk.f32.vlgmr.msra.gmra.mxu1 %vm522_vm0, %v29912_v28 }
 0x67e   : > { %25736 = vmatprep.mubr.msk.f32.mxu1 %vm522_vm0, %v29914_v9  ;;  %25748 = vmatpush3.msra.mxu1 %v30051_v62  ;;  %v15301_v62 = vld [vmem:[#allocation5 + $0x218] sm:$0xff] }
 0x67f   : > { %25763 = vmatprep.subr.mxu1 %v30071_v22 }
 0x681   : > { %25737 = vmatmul.mubr.msk.f32.gmra.mxu1 %vm522_vm0, %v29918_v1 }
 0x682   : > { %25749 = vmatprep.mubr.msk.f32.mxu1 %vm522_vm0, %v29736_v60 }
 0x685   : > { %25750 = vmatmul.mubr.msk.f32.vlgmr.msra.gmra.mxu1 %vm522_vm0, %v29912_v28 }
 0x686   : > { %25752 = vmatprep.mubr.msk.f32.mxu1 %vm522_vm0, %v29914_v9  ;;  %25764 = vmatpush3.msra.mxu1 %v30071_v22  ;;  %v15299_v22 = vld [vmem:[#allocation5 + $0x208] sm:$0xff] }
 0x687   : > { %25779 = vmatprep.subr.mxu1 %v30091_v50 }
 0x689   : > { %25753 = vmatmul.mubr.msk.f32.gmra.mxu1 %vm522_vm0, %v29918_v1 }
 0x68a   : > { %25765 = vmatprep.mubr.msk.f32.mxu1 %vm522_vm0, %v29736_v60 }
 0x68d   : > { %25766 = vmatmul.mubr.msk.f32.vlgmr.msra.gmra.mxu1 %vm522_vm0, %v29912_v28 }
 0x68e   : > { %25768 = vmatprep.mubr.msk.f32.mxu1 %vm522_vm0, %v29914_v9  ;;  %25780 = vmatpush3.msra.mxu1 %v30091_v50  ;;  %v30227_v50 = vpop.f32.mrf.mxu1 }
 0x68f   : > { %25795 = vmatprep.subr.mxu1 %v12424_v43  ;;  %33003 = vst [vmem:[#allocation154_spill] sm:$0xff] %v30227_v50 }
 0x691   : > { %25769 = vmatmul.mubr.msk.f32.gmra.mxu1 %vm522_vm0, %v29918_v1 }
 0x692   : > { %25781 = vmatprep.mubr.msk.f32.mxu1 %vm522_vm0, %v29736_v60 }
 0x695   : > { %25782 = vmatmul.mubr.msk.f32.vlgmr.msra.gmra.mxu1 %vm522_vm0, %v29912_v28 }
 0x696   : > { %25784 = vmatprep.mubr.msk.f32.mxu1 %vm522_vm0, %v29914_v9  ;;  %25796 = vmatpush3.msra.mxu1 %v12424_v43 }
 0x697   : > { %25811 = vmatprep.subr.mxu1 %v15313_v23 }
 0x699   : > { %25785 = vmatmul.mubr.msk.f32.gmra.mxu1 %vm522_vm0, %v29918_v1 }
 0x69a   : > { %25797 = vmatprep.mubr.msk.f32.mxu1 %vm522_vm0, %v29736_v60  ;;  %v15308_v60 = vld [vmem:[#allocation5 + $0x250] sm:$0xff] }
 0x69d   : > { %25798 = vmatmul.mubr.msk.f32.vlgmr.msra.gmra.mxu1 %vm522_vm0, %v29912_v28  ;;  %v15307_v28 = vld [vmem:[#allocation5 + $0x248] sm:$0xff] }
 0x69e   : > { %25812 = vmatpush3.msra.mxu1 %v15313_v23  ;;  %25800 = vmatprep.mubr.msk.f32.mxu1 %vm522_vm0, %v29914_v9  ;;  %v15306_v9 = vld [vmem:[#allocation5 + $0x240] sm:$0xff]  ;;  %v33004_v23 = vld [vmem:[#allocation156_spill] sm:$0xff] }
 0x69f   : > { %25813 = vmatprep.subr.mxu1 %v15312_v6 }
 0x6a0   : > { %25814 = vmatpush3.msra.mxu1 %v15312_v6 }
 0x6a1   : > { %25815 = vmatprep.subr.mxu1 %v15311_v46  ;;  %25801 = vmatmul.mubr.msk.f32.gmra.mxu1 %vm522_vm0, %v29918_v1  ;;  %v15303_v1 = vld [vmem:[#allocation5 + $0x228] sm:$0xff] }
 0x6a2   : > { %25816 = vmatpush3.msra.mxu1 %v15311_v46  ;;  %25843 = vmatprep.mubr.f32.mxu1 %v33002_v0 }
 0x6a3   : > { %25817 = vmatprep.subr.mxu1 %v15310_v39 }
 0x6a4   : > { %25818 = vmatpush3.msra.mxu1 %v15310_v39 }
 0x6a5   : > { %25819 = vmatprep.subr.mxu1 %v15309_v30 }
 0x6a6   : > { %25820 = vmatpush3.msra.mxu1 %v15309_v30 }
 0x6a7   : > { %25821 = vmatprep.subr.mxu1 %v15308_v60 }
 0x6a8   : > { %25822 = vmatpush3.msra.mxu1 %v15308_v60 }
 0x6a9   : > { %25823 = vmatprep.subr.mxu1 %v15307_v28 }
 0x6aa   : > { %25824 = vmatpush3.msra.mxu1 %v15307_v28 }
 0x6ab   : > { %25825 = vmatprep.subr.mxu1 %v15306_v9 }
 0x6ac   : > { %25826 = vmatpush3.msra.mxu1 %v15306_v9  ;;  %v33008_v9 = vld [vmem:[#allocation162_spill] sm:$0xff] }
 0x6ad   : > { %25827 = vmatprep.subr.mxu1 %v15305_v27 }
 0x6ae   : > { %25828 = vmatpush3.msra.mxu1 %v15305_v27 }
 0x6af   : > { %25829 = vmatprep.subr.mxu1 %v15304_v61 }
 0x6b0   : > { %25830 = vmatpush3.msra.mxu1 %v15304_v61  ;;  %v33011_v61 = vld [vmem:[#allocation73_spill] sm:$0xff] }
 0x6b1   : > { %25831 = vmatprep.subr.mxu1 %v15303_v1 }
 0x6b2   : > { %25832 = vmatpush3.msra.mxu1 %v15303_v1  ;;  %v33012_v1 = vld [vmem:[#allocation168_spill] sm:$0xff] }
 0x6b3   : > { %25833 = vmatprep.subr.mxu1 %v15302_v13 }
 0x6b4   : > { %25834 = vmatpush3.msra.mxu1 %v15302_v13 }
 0x6b5   : > { %25835 = vmatprep.subr.mxu1 %v15301_v62 }
 0x6b6   : > { %25836 = vmatpush3.msra.mxu1 %v15301_v62 }
 0x6b7   : > { %25837 = vmatprep.subr.mxu1 %v15300_v52 }
 0x6b8   : > { %25838 = vmatpush3.msra.mxu1 %v15300_v52  ;;  %v33014_v52 = vld [vmem:[#allocation172_spill] sm:$0xff] }
 0x6b9   : > { %25839 = vmatprep.subr.mxu1 %v15299_v22 }
 0x6ba   : > { %25840 = vmatpush3.msra.mxu1 %v15299_v22 }
 0x6bb   : > { %25841 = vmatprep.subr.mxu1 %v15298_v49 }
 0x6bc   : > { %25842 = vmatpush3.msra.mxu1 %v15298_v49  ;;  %v33015_v49 = vld [vmem:[#allocation11_spill] sm:$0xff] }
 0x6bd   : > { %25844 = vmatmul.mubr.f32.vlgmr.msra.gmra.mxu1 %v29461_v5  ;;  %v25559_v19 = vpop.f32.mrf.mxu1 }
 0x6be   : > { %v30231_v43 = vadd.f32 %v25559_v19, %v29466_v17  ;;  %25846 = vmatprep.mubr.f32.mxu1 %v33004_v23 }
 0x6bf   : > { %v12515_v6 = vpop.f32.mrf.mxu1 }
 0x6c0   : > { %v30235_v46 = vadd.f32 %v12515_v6, %v29474_v38  ;;  %v33005_v38 = vld [vmem:[#allocation64_spill] sm:$0xff] }
 0x6c1   : > { %25847 = vmatmul.mubr.f32.gmra.mxu1 %v29477_v26  ;;  %v25562_v39 = vpop.f32.mrf.mxu1  ;;  %v33007_v26 = vld [vmem:[#allocation67_spill] sm:$0xff] }
 0x6c2   : > { %v30239_v30 = vadd.f32 %v25562_v39, %v29482_v48  ;;  %25849 = vmatprep.mubr.f32.mxu1 %v29485_v56  ;;  %v33009_v56 = vld [vmem:[#allocation70_spill] sm:$0xff] }
 0x6c3   : > { %v12525_v0 = vpop.f32.mrf.mxu1 }
 0x6c4   : > { %v30243_v5 = vadd.f32 %v12525_v0, %v29488_v33  ;;  %v33018_v0 = vld [vmem:[#allocation82_spill] sm:$0xff] }
 0x6c5   : > { %25850 = vmatmul.mubr.f32.gmra.mxu1 %v29491_v44  ;;  %v25567_v17 = vpop.f32.mrf.mxu1 }
 0x6c6   : > { %v30247_v60 = vadd.f32 %v25567_v17, %v29495_v53  ;;  %25852 = vmatprep.mubr.f32.mxu1 %v33005_v38 }
 0x6c7   : > { %v30250_v28 = vpop.f32.mrf.mxu1 }
 0x6c8   : > { %33006 = vst [vmem:[#allocation156_spill] sm:$0xff] %v30250_v28  ;;  %v33090_v28 = vld [vmem:[#allocation294_spill] sm:$0xff] }
 0x6c9   : > { %25853 = vmatmul.mubr.f32.gmra.mxu1 %v33007_v26  ;;  %v25570_v48 = vpop.f32.mrf.mxu1 }
 0x6ca   : > { %v30254_v27 = vadd.f32 %v25570_v48, %v33008_v9  ;;  %25855 = vmatprep.mubr.f32.mxu1 %v33009_v56  ;;  %v33020_v9 = vld [vmem:[#allocation232_spill] sm:$0xff] }
 0x6cb   : > { %v30257_v33 = vpop.f32.mrf.mxu1 }
 0x6cc   : > { %33010 = vst [vmem:[#allocation64_spill] sm:$0xff] %v30257_v33 }
 0x6cd   : > { %25856 = vmatmul.mubr.f32.gmra.mxu1 %v33011_v61  ;;  %v25575_v44 = vpop.f32.mrf.mxu1 }
 0x6ce   : > { %v30261_v53 = vadd.f32 %v25575_v44, %v29521_v4  ;;  %25858 = vmatprep.mubr.f32.mxu1 %v33012_v1 }
 0x6cf   : > { %v30264_v13 = vpop.f32.mrf.mxu1  ;;  %v25647_v62 = vpop.f32.mrf.mxu0 }
 0x6d0   : > { %33013 = vst [vmem:[#allocation67_spill] sm:$0xff] %v30264_v13  ;;  %v30267_v22 = vadd.f32 %v25647_v62, %v33014_v52  ;;  %v33084_v13 = vld [vmem:[#allocation17_spill] sm:$0xff] }
 0x6d1   : > { %25859 = vmatmul.mubr.f32.gmra.mxu1 %v33015_v49  ;;  %v25578_v19 = vpop.f32.mrf.mxu1  ;;  %v30270_v23 = vpop.f32.mrf.mxu0  ;;  %v33026_v49 = vld [vmem:[#allocation238_spill] sm:$0xff] }
 0x6d2   : > { %33016 = vst [vmem:[#allocation162_spill] sm:$0xff] %v30270_v23  ;;  %v30273_v6 = vadd.f32 %v25578_v19, %v29539_v32  ;;  %25861 = vmatprep.mubr.f32.mxu1 %v29542_v10  ;;  %v33022_v10 = vld [vmem:[#allocation234_spill] sm:$0xff] }
 0x6d3   : > { %v30276_v4 = vpop.f32.mrf.mxu1  ;;  %v25650_v39 = vpop.f32.mrf.mxu0 }
 0x6d4   : > { %33017 = vst [vmem:[#allocation70_spill] sm:$0xff] %v30276_v4  ;;  %v30279_v17 = vadd.f32 %v25650_v39, %v33018_v0  ;;  %v33077_v4 = vld [vmem:[#allocation289_spill] sm:$0xff] }
 0x6d5   : > { %v25583_v38 = vpop.f32.mrf.mxu1  ;;  %v30281_v26 = vpop.f32.mrf.mxu0  ;;  %25862 = vmatmul.mubr.f32.gmra.mxu1 %v29553_v25  ;;  %v33024_v25 = vld [vmem:[#allocation236_spill] sm:$0xff] }
 0x6d6   : > { %33019 = vst [vmem:[#allocation73_spill] sm:$0xff] %v30281_v26  ;;  %v30285_v48 = vadd.f32 %v25583_v38, %v29557_v41  ;;  %25864 = vmatprep.mubr.f32.mxu1 %v33020_v9 }
 0x6d7   : > { %v30288_v32 = vpop.f32.mrf.mxu1  ;;  %v25663_v56 = vpop.f32.mrf.mxu0 }
 0x6d8   : > { %33021 = vst [vmem:[#allocation168_spill] sm:$0xff] %v30288_v32  ;;  %v30291_v61 = vadd.f32 %v25663_v56, %v33022_v10  ;;  %v33030_v56 = vld [vmem:[#allocation242_spill] sm:$0xff]  ;;  %v33073_v32 = vld [vmem:[#allocation285_spill] sm:$0xff] }
 0x6d9   : > { %v25586_v44 = vpop.f32.mrf.mxu1  ;;  %v30293_v1 = vpop.f32.mrf.mxu0  ;;  %25865 = vmatmul.mubr.f32.gmra.mxu1 %v29571_v8  ;;  %v33028_v8 = vld [vmem:[#allocation240_spill] sm:$0xff] }
 0x6da   : > { %33023 = vst [vmem:[#allocation172_spill] sm:$0xff] %v30293_v1  ;;  %v30297_v62 = vadd.f32 %v25586_v44, %v29575_v37  ;;  %25867 = vmatprep.mubr.f32.mxu1 %v33024_v25 }
 0x6db   : > { %v30300_v41 = vpop.f32.mrf.mxu1  ;;  %v25666_v52 = vpop.f32.mrf.mxu0 }
 0x6dc   : > { %33025 = vst [vmem:[#allocation11_spill] sm:$0xff] %v30300_v41  ;;  %v30303_v19 = vadd.f32 %v25666_v52, %v33026_v49 }
 0x6dd   : > { %v25591_v39 = vpop.f32.mrf.mxu1  ;;  %v30305_v0 = vpop.f32.mrf.mxu0  ;;  %25868 = vmatmul.mubr.f32.gmra.mxu1 %v29589_v29  ;;  %v33032_v29 = vld [vmem:[#allocation244_spill] sm:$0xff] }
 0x6de   : > { %33027 = vst [vmem:[#allocation82_spill] sm:$0xff] %v30305_v0  ;;  %v30309_v38 = vadd.f32 %v25591_v39, %v29593_v3  ;;  %25870 = vmatprep.mubr.f32.mxu1 %v33028_v8  ;;  %v33034_v39 = vld [vmem:[#allocation246_spill] sm:$0xff] }
 0x6df   : > { %v30312_v37 = vpop.f32.mrf.mxu1  ;;  %v25679_v9 = vpop.f32.mrf.mxu0 }
 0x6e0   : > { %33029 = vst [vmem:[#allocation232_spill] sm:$0xff] %v30312_v37  ;;  %v30315_v10 = vadd.f32 %v25679_v9, %v33030_v56 }
 0x6e1   : > { %v25594_v44 = vpop.f32.mrf.mxu1  ;;  %v30317_v25 = vpop.f32.mrf.mxu0  ;;  %25871 = vmatmul.mubr.f32.gmra.mxu1 %v29607_v55  ;;  %v33036_v55 = vld [vmem:[#allocation248_spill] sm:$0xff] }
 0x6e2   : > { %33031 = vst [vmem:[#allocation234_spill] sm:$0xff] %v30317_v25  ;;  %v30321_v52 = vadd.f32 %v25594_v44, %v29611_v14  ;;  %25873 = vmatprep.mubr.f32.mxu1 %v33032_v29  ;;  %v33038_v44 = vld [vmem:[#allocation250_spill] sm:$0xff] }
 0x6e3   : > { %v30324_v3 = vpop.f32.mrf.mxu1  ;;  %v25682_v49 = vpop.f32.mrf.mxu0 }
 0x6e4   : > { %33033 = vst [vmem:[#allocation236_spill] sm:$0xff] %v30324_v3  ;;  %v30327_v8 = vadd.f32 %v25682_v49, %v33034_v39  ;;  %v33042_v39 = vld [vmem:[#allocation254_spill] sm:$0xff] }
 0x6e5   : > { %v25599_v50 = vpop.f32.mrf.mxu1  ;;  %v30329_v37 = vpop.f32.mrf.mxu0  ;;  %25874 = vmatmul.mubr.f32.gmra.mxu1 %v29625_v58  ;;  %v33040_v58 = vld [vmem:[#allocation252_spill] sm:$0xff] }
 0x6e6   : > { %33035 = vst [vmem:[#allocation238_spill] sm:$0xff] %v30329_v37  ;;  %v30333_v9 = vadd.f32 %v25599_v50, %v29629_v45  ;;  %25876 = vmatprep.mubr.f32.mxu1 %v33036_v55 }
 0x6e7   : > { %v30336_v14 = vpop.f32.mrf.mxu1  ;;  %v25695_v56 = vpop.f32.mrf.mxu0 }
 0x6e8   : > { %33037 = vst [vmem:[#allocation240_spill] sm:$0xff] %v30336_v14  ;;  %v30339_v29 = vadd.f32 %v25695_v56, %v33038_v44  ;;  %v33046_v44 = vld [vmem:[#allocation258_spill] sm:$0xff] }
 0x6e9   : > { %v25602_v3 = vpop.f32.mrf.mxu1  ;;  %v30341_v25 = vpop.f32.mrf.mxu0  ;;  %25877 = vmatmul.mubr.f32.gmra.mxu1 %v29643_v40  ;;  %v33044_v40 = vld [vmem:[#allocation256_spill] sm:$0xff] }
 0x6ea   : > { %33039 = vst [vmem:[#allocation242_spill] sm:$0xff] %v30341_v25  ;;  %v30345_v49 = vadd.f32 %v25602_v3, %v29647_v57  ;;  %25879 = vmatprep.mubr.f32.mxu1 %v33040_v58 }
 0x6eb   : > { %v30348_v45 = vpop.f32.mrf.mxu1  ;;  %v25698_v50 = vpop.f32.mrf.mxu0 }
 0x6ec   : > { %33041 = vst [vmem:[#allocation244_spill] sm:$0xff] %v30348_v45  ;;  %v30351_v55 = vadd.f32 %v25698_v50, %v33042_v39  ;;  %v33050_v39 = vld [vmem:[#allocation262_spill] sm:$0xff] }
 0x6ed   : > { %v25607_v14 = vpop.f32.mrf.mxu1  ;;  %v30353_v37 = vpop.f32.mrf.mxu0  ;;  %25880 = vmatmul.mubr.f32.gmra.mxu1 %v29661_v24  ;;  %v33048_v24 = vld [vmem:[#allocation260_spill] sm:$0xff] }
 0x6ee   : > { %33043 = vst [vmem:[#allocation246_spill] sm:$0xff] %v30353_v37  ;;  %v30357_v56 = vadd.f32 %v25607_v14, %v29665_v35  ;;  %25882 = vmatprep.mubr.f32.mxu1 %v33044_v40 }
 0x6ef   : > { %v30360_v57 = vpop.f32.mrf.mxu1  ;;  %v25711_v3 = vpop.f32.mrf.mxu0 }
 0x6f0   : > { %33045 = vst [vmem:[#allocation248_spill] sm:$0xff] %v30360_v57  ;;  %v30363_v58 = vadd.f32 %v25711_v3, %v33046_v44  ;;  %v33052_v3 = vld [vmem:[#allocation264_spill] sm:$0xff]  ;;  %v33053_v44 = vld [vmem:[#allocation265_spill] sm:$0xff] }
 0x6f1   : > { %v25610_v45 = vpop.f32.mrf.mxu1  ;;  %v30365_v25 = vpop.f32.mrf.mxu0  ;;  %25883 = vmatmul.mubr.f32.gmra.mxu1 %v29679_v34  ;;  %v33054_v34 = vld [vmem:[#allocation266_spill] sm:$0xff] }
 0x6f2   : > { %33047 = vst [vmem:[#allocation250_spill] sm:$0xff] %v30365_v25  ;;  %v30369_v50 = vadd.f32 %v25610_v45, %v29683_v11  ;;  %25885 = vmatprep.mubr.f32.mxu1 %v33048_v24 }
 0x6f3   : > { %v30372_v35 = vpop.f32.mrf.mxu1  ;;  %v25714_v14 = vpop.f32.mrf.mxu0 }
 0x6f4   : > { %33049 = vst [vmem:[#allocation252_spill] sm:$0xff] %v30372_v35  ;;  %v30375_v40 = vadd.f32 %v25714_v14, %v33050_v39  ;;  %v33057_v14 = vld [vmem:[#allocation269_spill] sm:$0xff] }
 0x6f5   : > { %v25615_v57 = vpop.f32.mrf.mxu1  ;;  %v30377_v37 = vpop.f32.mrf.mxu0  ;;  %25886 = vmatmul.mubr.f32.gmra.mxu1 %v33052_v3 }
 0x6f6   : > { %33051 = vst [vmem:[#allocation254_spill] sm:$0xff] %v30377_v37  ;;  %v30381_v25 = vadd.f32 %v25615_v57, %v33053_v44  ;;  %25888 = vmatprep.mubr.f32.mxu1 %v33054_v34  ;;  %v33061_v37 = vld [vmem:[#allocation273_spill] sm:$0xff] }
 0x6f7   : > { %v30384_v11 = vpop.f32.mrf.mxu1  ;;  %v25727_v45 = vpop.f32.mrf.mxu0 }
 0x6f8   : > { %33055 = vst [vmem:[#allocation256_spill] sm:$0xff] %v30384_v11  ;;  %v30387_v24 = vadd.f32 %v25727_v45, %v29710_v31 }
 0x6f9   : > { %v25618_v35 = vpop.f32.mrf.mxu1  ;;  %v30389_v0 = vpop.f32.mrf.mxu0  ;;  %25889 = vmatmul.mubr.f32.gmra.mxu1 %v33057_v14 }
 0x6fa   : > { %33056 = vst [vmem:[#allocation258_spill] sm:$0xff] %v30389_v0  ;;  %v30393_v39 = vadd.f32 %v25618_v35, %v29719_v42  ;;  %v30410_v42 = vpop.permute.xlu0 %15539 }
 0x6fb   : > { %v30395_v3 = vpop.f32.mrf.mxu1  ;;  %v25730_v57 = vpop.f32.mrf.mxu0  ;;  %25893 = vmatprep.mubr.msk.f32.mxu0 %vm522_vm0, %v30410_v42  ;;  %25981 = vmatprep.mubr.msk.f32.mxu1 %vm522_vm0, %v30410_v42 }
 0x6fc   : > { %33058 = vst [vmem:[#allocation260_spill] sm:$0xff] %v30395_v3  ;;  %v30398_v44 = vadd.f32 %v25730_v57, %v29724_v15 }
 0x6fd   : > { %v25623_v34 = vpop.f32.mrf.mxu1  ;;  %v30400_v11 = vpop.f32.mrf.mxu0 }
 0x6fe   : > { %33059 = vst [vmem:[#allocation262_spill] sm:$0xff] %v30400_v11  ;;  %v30403_v31 = vadd.f32 %v25623_v34, %v29729_v63 }
 0x6ff   : > { %v30405_v45 = vpop.f32.mrf.mxu1  ;;  %v25743_v0 = vpop.f32.mrf.mxu0 }
 0x700   : > { %33060 = vst [vmem:[#allocation264_spill] sm:$0xff] %v30405_v45  ;;  %v30408_v14 = vadd.f32 %v25743_v0, %v33061_v37 }
 0x701   : > { %v25626_v35 = vpop.f32.mrf.mxu1  ;;  %v30412_v3 = vpop.f32.mrf.mxu0 }
 0x702   : > { %33062 = vst [vmem:[#allocation265_spill] sm:$0xff] %v30412_v3  ;;  %v30419_v15 = vadd.f32 %v25626_v35, %v29745_v36 }
 0x703   : > { %v30421_v63 = vpop.f32.mrf.mxu1  ;;  %v25746_v57 = vpop.f32.mrf.mxu0 }
 0x704   : > { %33063 = vst [vmem:[#allocation266_spill] sm:$0xff] %v30421_v63  ;;  %v30424_v0 = vadd.f32 %v25746_v57, %v29750_v21 }
 0x705   : > { %v25631_v37 = vpop.f32.mrf.mxu1  ;;  %v30426_v34 = vpop.f32.mrf.mxu0 }
 0x706   : > { %33064 = vst [vmem:[#allocation269_spill] sm:$0xff] %v30426_v34  ;;  %v30429_v3 = vadd.f32 %v25631_v37, %v29755_v2 }
 0x707   : > { %v30431_v45 = vpop.f32.mrf.mxu1  ;;  %v25759_v11 = vpop.f32.mrf.mxu0 }
 0x708   : > { %33065 = vst [vmem:[#allocation273_spill] sm:$0xff] %v30431_v45  ;;  %v30434_v41 = vadd.f32 %v25759_v11, %v29760_v12 }
 0x709   : > { %v25634_v36 = vpop.f32.mrf.mxu1  ;;  %v30436_v35 = vpop.f32.mrf.mxu0 }
 0x70a   : > { %33066 = vst [vmem:[#allocation312_spill] sm:$0xff] %v30436_v35  ;;  %v30439_v63 = vadd.f32 %v25634_v36, %v29765_v54 }
 0x70b   : > { %v30441_v21 = vpop.f32.mrf.mxu1  ;;  %v25762_v57 = vpop.f32.mrf.mxu0 }
 0x70c   : > { %33067 = vst [vmem:[#allocation313_spill] sm:$0xff] %v30441_v21  ;;  %v30444_v34 = vadd.f32 %v25762_v57, %v29770_v16  ;;  %v33071_v21 = vld [vmem:[#allocation283_spill] sm:$0xff] }
 0x70d   : > { %v25639_v2 = vpop.f32.mrf.mxu1  ;;  %v30446_v37 = vpop.f32.mrf.mxu0 }
 0x70e   : > { %33068 = vst [vmem:[#allocation314_spill] sm:$0xff] %v30446_v37  ;;  %v30449_v45 = vadd.f32 %v25639_v2, %v29775_v59 }
 0x70f   : > { %v30451_v12 = vpop.f32.mrf.mxu1  ;;  %v25775_v11 = vpop.f32.mrf.mxu0 }
 0x710   : > { %33069 = vst [vmem:[#allocation315_spill] sm:$0xff] %v30451_v12  ;;  %v30454_v35 = vadd.f32 %v25775_v11, %v29780_v47  ;;  %v33075_v12 = vld [vmem:[#allocation287_spill] sm:$0xff] }
 0x711   : > { %v25642_v54 = vpop.f32.mrf.mxu1  ;;  %v30456_v36 = vpop.f32.mrf.mxu0 }
 0x712   : > { %33070 = vst [vmem:[#allocation316_spill] sm:$0xff] %v30456_v36  ;;  %v30459_v1 = vadd.f32 %v25642_v54, %v33071_v21 }
 0x713   : > { %v30461_v16 = vpop.f32.mrf.mxu1  ;;  %v25778_v57 = vpop.f32.mrf.mxu0 }
 0x714   : > { %33072 = vst [vmem:[#allocation283_spill] sm:$0xff] %v30461_v16  ;;  %v30464_v37 = vadd.f32 %v25778_v57, %v33073_v32  ;;  %v33079_v16 = vld [vmem:[#allocation119_spill] sm:$0xff] }
 0x715   : > { %v25655_v59 = vpop.f32.mrf.mxu1  ;;  %v30466_v2 = vpop.f32.mrf.mxu0 }
 0x716   : > { %33074 = vst [vmem:[#allocation285_spill] sm:$0xff] %v30466_v2  ;;  %v30469_v26 = vadd.f32 %v25655_v59, %v33075_v12 }
 0x717   : > { %v30471_v47 = vpop.f32.mrf.mxu1  ;;  %v25791_v11 = vpop.f32.mrf.mxu0 }
 0x718   : > { %33076 = vst [vmem:[#allocation287_spill] sm:$0xff] %v30471_v47  ;;  %v30474_v36 = vadd.f32 %v25791_v11, %v33077_v4 }
 0x719   : > { %v25658_v21 = vpop.f32.mrf.mxu1  ;;  %v30476_v54 = vpop.f32.mrf.mxu0 }
 0x71a   : > { %33078 = vst [vmem:[#allocation289_spill] sm:$0xff] %v30476_v54  ;;  %v30479_v23 = vadd.f32 %v25658_v21, %v33079_v16 }
 0x71b   : > { %v30481_v32 = vpop.f32.mrf.mxu1  ;;  %v25794_v57 = vpop.f32.mrf.mxu0 }
 0x71c   : > { %33080 = vst [vmem:[#allocation119_spill] sm:$0xff] %v30481_v32  ;;  %v30484_v2 = vadd.f32 %v25794_v57, %v29810_v7  ;;  %v33087_v32 = vld [vmem:[#allocation127_spill] sm:$0xff] }
 0x71d   : > { %v25671_v12 = vpop.f32.mrf.mxu1  ;;  %v30486_v59 = vpop.f32.mrf.mxu0 }
 0x71e   : > { %33081 = vst [vmem:[#allocation317_spill] sm:$0xff] %v30486_v59  ;;  %v30489_v47 = vadd.f32 %v25671_v12, %v29815_v20  ;;  %v33092_v12 = vld [vmem:[#allocation295_spill] sm:$0xff] }
 0x71f   : > { %v30491_v4 = vpop.f32.mrf.mxu1  ;;  %v25807_v11 = vpop.f32.mrf.mxu0 }
 0x720   : > { %33082 = vst [vmem:[#allocation318_spill] sm:$0xff] %v30489_v47  ;;  %33083 = vst [vmem:[#allocation319_spill] sm:$0xff] %v30491_v4  ;;  %v30494_v54 = vadd.f32 %v25807_v11, %v33084_v13  ;;  %v33095_v11 = vld [vmem:[#allocation116_spill] sm:$0xff] }
 0x721   : > { %v25674_v16 = vpop.f32.mrf.mxu1  ;;  %v30496_v21 = vpop.f32.mrf.mxu0 }
 0x722   : > { %33085 = vst [vmem:[#allocation17_spill] sm:$0xff] %v30494_v54  ;;  %33086 = vst [vmem:[#allocation320_spill] sm:$0xff] %v30496_v21  ;;  %v30499_v33 = vadd.f32 %v25674_v16, %v33087_v32  ;;  %v33098_v16 = vld [vmem:[#allocation120_spill] sm:$0xff] }
 0x723   : > { %v30501_v7 = vpop.f32.mrf.mxu1  ;;  %v25810_v57 = vpop.f32.mrf.mxu0 }
 0x724   : > { %33088 = vst [vmem:[#allocation127_spill] sm:$0xff] %v30499_v33  ;;  %33089 = vst [vmem:[#allocation321_spill] sm:$0xff] %v30501_v7  ;;  %v30504_v59 = vadd.f32 %v25810_v57, %v33090_v28  ;;  %v33101_v57 = vld [vmem:[#allocation206_spill] sm:$0xff] }
 0x725   : > { %v25687_v20 = vpop.f32.mrf.mxu1 }
 0x726   : > { %33091 = vst [vmem:[#allocation294_spill] sm:$0xff] %v30504_v59  ;;  %v30507_v47 = vadd.f32 %v25687_v20, %v33092_v12 }
 0x727   : > { %v30509_v4 = vpop.f32.mrf.mxu1 }
 0x728   : > { %33093 = vst [vmem:[#allocation295_spill] sm:$0xff] %v30507_v47  ;;  %33094 = vst [vmem:[#allocation322_spill] sm:$0xff] %v30509_v4  ;;  %v33104_v4 = vld [vmem:[#allocation124_spill] sm:$0xff] }
 0x729   : > { %v25690_v13 = vpop.f32.mrf.mxu1 }
 0x72a   : > { %v30512_v54 = vadd.f32 %v25690_v13, %v33095_v11 }
 0x72b   : > { %v30514_v21 = vpop.f32.mrf.mxu1 }
 0x72c   : > { %33096 = vst [vmem:[#allocation116_spill] sm:$0xff] %v30512_v54  ;;  %33097 = vst [vmem:[#allocation323_spill] sm:$0xff] %v30514_v21  ;;  %v33107_v21 = vld [vmem:[#allocation208_spill] sm:$0xff] }
 0x72d   : > { %v25703_v32 = vpop.f32.mrf.mxu1 }
 0x72e   : > { %v30517_v33 = vadd.f32 %v25703_v32, %v33098_v16 }
 0x72f   : > { %v30519_v7 = vpop.f32.mrf.mxu1 }
 0x730   : > { %33099 = vst [vmem:[#allocation120_spill] sm:$0xff] %v30517_v33  ;;  %33100 = vst [vmem:[#allocation324_spill] sm:$0xff] %v30519_v7  ;;  %v33109_v7 = vld [vmem:[#allocation128_spill] sm:$0xff] }
 0x731   : > { %v25706_v28 = vpop.f32.mrf.mxu1 }
 0x732   : > { %v30522_v59 = vadd.f32 %v25706_v28, %v33101_v57 }
 0x733   : > { %v30524_v20 = vpop.f32.mrf.mxu1 }
 0x734   : > { %33102 = vst [vmem:[#allocation206_spill] sm:$0xff] %v30522_v59  ;;  %33103 = vst [vmem:[#allocation325_spill] sm:$0xff] %v30524_v20  ;;  %v33111_v20 = vld [vmem:[#allocation131_spill] sm:$0xff] }
 0x735   : > { %v25719_v12 = vpop.f32.mrf.mxu1 }
 0x736   : > { %v30527_v47 = vadd.f32 %v25719_v12, %v33104_v4 }
 0x737   : > { %v30529_v13 = vpop.f32.mrf.mxu1 }
 0x738   : > { %33105 = vst [vmem:[#allocation124_spill] sm:$0xff] %v30527_v47  ;;  %33106 = vst [vmem:[#allocation326_spill] sm:$0xff] %v30529_v13  ;;  %v33114_v13 = vld [vmem:[#allocation134_spill] sm:$0xff] }
 0x739   : > { %v25722_v11 = vpop.f32.mrf.mxu1 }
 0x73a   : > { %v30532_v54 = vadd.f32 %v25722_v11, %v33107_v21 }
 0x73b   : > { %v30534_v32 = vpop.f32.mrf.mxu1 }
 0x73c   : > { %33108 = vst [vmem:[#allocation208_spill] sm:$0xff] %v30534_v32 }
 0x73d   : > { %v25735_v16 = vpop.f32.mrf.mxu1 }
 0x73e   : > { %v30537_v33 = vadd.f32 %v25735_v16, %v33109_v7 }
 0x73f   : > { %v30539_v28 = vpop.f32.mrf.mxu1 }
 0x740   : > { %33110 = vst [vmem:[#allocation128_spill] sm:$0xff] %v30539_v28 }
 0x741   : > { %v25738_v57 = vpop.f32.mrf.mxu1 }
 0x742   : > { %v30542_v59 = vadd.f32 %v25738_v57, %v33111_v20 }
 0x743   : > { %v30544_v4 = vpop.f32.mrf.mxu1 }
 0x744   : > { %33112 = vst [vmem:[#allocation131_spill] sm:$0xff] %v30542_v59  ;;  %33113 = vst [vmem:[#allocation327_spill] sm:$0xff] %v30544_v4  ;;  %v33121_v4 = vld [vmem:[#allocation143_spill] sm:$0xff] }
 0x745   : > { %v25751_v12 = vpop.f32.mrf.mxu1 }
 0x746   : > { %v30547_v47 = vadd.f32 %v25751_v12, %v33114_v13 }
 0x747   : > { %v30549_v21 = vpop.f32.mrf.mxu1 }
 0x748   : > { %33115 = vst [vmem:[#allocation134_spill] sm:$0xff] %v30547_v47  ;;  %33116 = vst [vmem:[#allocation328_spill] sm:$0xff] %v30549_v21  ;;  %v33124_v21 = vld [vmem:[#allocation146_spill] sm:$0xff] }
 0x749   : > { %v25754_v11 = vpop.f32.mrf.mxu1 }
 0x74a   : > { %v30552_v32 = vadd.f32 %v25754_v11, %v29878_v18 }
 0x74b   : > { %v30554_v7 = vpop.f32.mrf.mxu1 }
 0x74c   : > { %33117 = vst [vmem:[#allocation329_spill] sm:$0xff] %v30552_v32  ;;  %33118 = vst [vmem:[#allocation330_spill] sm:$0xff] %v30554_v7  ;;  %v33127_v7 = vld [vmem:[#allocation307_spill] sm:$0xff] }
 0x74d   : > { %v25767_v16 = vpop.f32.mrf.mxu1 }
 0x74e   : > { %v30557_v28 = vadd.f32 %v25767_v16, %v29883_v51 }
 0x74f   : > { %v30559_v20 = vpop.f32.mrf.mxu1 }
 0x750   : > { %33119 = vst [vmem:[#allocation331_spill] sm:$0xff] %v30557_v28  ;;  %33120 = vst [vmem:[#allocation332_spill] sm:$0xff] %v30559_v20  ;;  %v33130_v20 = vld [vmem:[#allocation309_spill] sm:$0xff] }
 0x751   : > { %v25770_v57 = vpop.f32.mrf.mxu1 }
 0x752   : > { %v30562_v59 = vadd.f32 %v25770_v57, %v33121_v4 }
 0x753   : > { %v30564_v13 = vpop.f32.mrf.mxu1 }
 0x754   : > { %33122 = vst [vmem:[#allocation143_spill] sm:$0xff] %v30562_v59  ;;  %33123 = vst [vmem:[#allocation333_spill] sm:$0xff] %v30564_v13  ;;  %v33133_v13 = vld [vmem:[#allocation151_spill] sm:$0xff] }
 0x755   : > { %v25783_v12 = vpop.f32.mrf.mxu1 }
 0x756   : > { %v30567_v47 = vadd.f32 %v25783_v12, %v33124_v21 }
 0x757   : > { %v30569_v18 = vpop.f32.mrf.mxu1 }
 0x758   : > { %33125 = vst [vmem:[#allocation146_spill] sm:$0xff] %v30567_v47  ;;  %33126 = vst [vmem:[#allocation334_spill] sm:$0xff] %v30569_v18  ;;  %v30586_v18 = vpop.permute.xlu1 %15541 }
 0x759   : > { %v25786_v11 = vpop.f32.mrf.mxu1 }
 0x75a   : > { %v30572_v32 = vadd.f32 %v25786_v11, %v33127_v7  ;;  %v30588_v7 = vpop.permute.xlu0 %15543 }
 0x75b   : > { %v30574_v51 = vpop.f32.mrf.mxu1 }
 0x75c   : > { %33128 = vst [vmem:[#allocation307_spill] sm:$0xff] %v30572_v32  ;;  %33129 = vst [vmem:[#allocation335_spill] sm:$0xff] %v30574_v51 }
 0x75d   : > { %v25799_v16 = vpop.f32.mrf.mxu1 }
 0x75e   : > { %v30577_v28 = vadd.f32 %v25799_v16, %v33130_v20  ;;  %v30592_v16 = vpop.permute.xlu1 %15545 }
 0x75f   : > { %v30579_v4 = vpop.f32.mrf.mxu1 }
 0x760   : > { %33131 = vst [vmem:[#allocation309_spill] sm:$0xff] %v30577_v28  ;;  %33132 = vst [vmem:[#allocation336_spill] sm:$0xff] %v30579_v4 }
 0x761   : > { %v25802_v57 = vpop.f32.mrf.mxu1 }
 0x762   : > { %v30582_v59 = vadd.f32 %v25802_v57, %v33133_v13 }
 0x763   : > { %v30584_v21 = vpop.f32.mrf.mxu1 }
 0x764   : > { %33134 = vst [vmem:[#allocation151_spill] sm:$0xff] %v30582_v59  ;;  %33135 = vst [vmem:[#allocation337_spill] sm:$0xff] %v30584_v21 }
 0x77d   : > { %v25845_v12 = vpop.f32.mrf.mxu1 }
 0x77f   : > { %v15380_v47 = vpop.f32.mrf.mxu1 }
 0x780   : > { %25891 = vmatprep.subr.mxu0 %v15380_v47 }
 0x781   : > { %v25848_v11 = vpop.f32.mrf.mxu1  ;;  %25892 = vmatpush3.msra.mxu0 %v15380_v47 }
 0x782   : > { %25894 = vmatmul.mubr.msk.f32.vlgmr.msra.gmra.mxu0 %vm522_vm0, %v30586_v18  ;;  %25899 = vmatprep.subr.mxu0 %v25845_v12 }
 0x783   : > { %v15390_v20 = vpop.f32.mrf.mxu1  ;;  %25896 = vmatprep.mubr.msk.f32.mxu0 %vm522_vm0, %v30588_v7  ;;  %25900 = vmatpush3.msra.mxu0 %v25845_v12 }
 0x784   : > { %25907 = vmatprep.subr.mxu0 %v15390_v20 }
 0x785   : > { %v25851_v13 = vpop.f32.mrf.mxu1 }
 0x786   : > { %25897 = vmatmul.mubr.msk.f32.gmra.mxu0 %vm522_vm0, %v30592_v16 }
 0x787   : > { %v15400_v57 = vpop.f32.mrf.mxu1  ;;  %25901 = vmatprep.mubr.msk.f32.mxu0 %vm522_vm0, %v30410_v42 }
 0x789   : > { %v30600_v47 = vpop.f32.mrf.mxu1 }
 0x78a   : > { %25902 = vmatmul.mubr.msk.f32.vlgmr.msra.gmra.mxu0 %vm522_vm0, %v30586_v18 }
 0x78b   : > { %v15410_v21 = vpop.f32.mrf.mxu1  ;;  %25904 = vmatprep.mubr.msk.f32.mxu0 %vm522_vm0, %v30588_v7  ;;  %25908 = vmatpush3.msra.mxu0 %v15390_v20 }
 0x78c   : > { %25915 = vmatprep.subr.mxu0 %v25848_v11 }
 0x78d   : > { %v30606_v12 = vpop.f32.mrf.mxu1 }
 0x78e   : > { %25905 = vmatmul.mubr.msk.f32.gmra.mxu0 %vm522_vm0, %v30592_v16 }
 0x78f   : > { %v30610_v4 = vpop.f32.mrf.mxu1  ;;  %25909 = vmatprep.mubr.msk.f32.mxu0 %vm522_vm0, %v30410_v42 }
 0x791   : > { %v25860_v51 = vpop.f32.mrf.mxu1 }
 0x792   : > { %25910 = vmatmul.mubr.msk.f32.vlgmr.msra.gmra.mxu0 %vm522_vm0, %v30586_v18  ;;  %25979 = vmatprep.subr.mxu1 %v25860_v51 }
 0x793   : > { %25980 = vmatpush3.msra.mxu1 %v25860_v51  ;;  %25912 = vmatprep.mubr.msk.f32.mxu0 %vm522_vm0, %v30588_v7  ;;  %v30618_v20 = vpop.f32.mrf.mxu1 }
 0x794   : > { %25982 = vmatmul.mubr.msk.f32.vlgmr.msra.gmra.mxu1 %vm522_vm0, %v30586_v18  ;;  %25916 = vmatpush3.msra.mxu0 %v25848_v11 }
 0x795   : > { %25984 = vmatprep.mubr.msk.f32.mxu1 %vm522_vm0, %v30588_v7  ;;  %v25863_v59 = vpop.f32.mrf.mxu1  ;;  %25923 = vmatprep.subr.mxu0 %v15400_v57 }
 0x796   : > { %25913 = vmatmul.mubr.msk.f32.gmra.mxu0 %vm522_vm0, %v30592_v16  ;;  %25995 = vmatprep.subr.mxu1 %v25863_v59 }
 0x797   : > { %25917 = vmatprep.mubr.msk.f32.mxu0 %vm522_vm0, %v30410_v42  ;;  %25996 = vmatpush3.msra.mxu1 %v25863_v59  ;;  %v30628_v51 = vpop.f32.mrf.mxu1 }
 0x798   : > { %25985 = vmatmul.mubr.msk.f32.gmra.mxu1 %vm522_vm0, %v30592_v16 }
 0x799   : > { %25997 = vmatprep.mubr.msk.f32.mxu1 %vm522_vm0, %v30410_v42  ;;  %v25866_v11 = vpop.f32.mrf.mxu1 }
 0x79a   : > { %25918 = vmatmul.mubr.msk.f32.vlgmr.msra.gmra.mxu0 %vm522_vm0, %v30586_v18  ;;  %26011 = vmatprep.subr.mxu1 %v25866_v11 }
 0x79b   : > { %25920 = vmatprep.mubr.msk.f32.mxu0 %vm522_vm0, %v30588_v7  ;;  %25924 = vmatpush3.msra.mxu0 %v15400_v57  ;;  %v30638_v28 = vpop.f32.mrf.mxu1 }
 0x79c   : > { %25998 = vmatmul.mubr.msk.f32.vlgmr.msra.gmra.mxu1 %vm522_vm0, %v30586_v18  ;;  %25931 = vmatprep.subr.mxu0 %v25851_v13 }
 0x79d   : > { %26000 = vmatprep.mubr.msk.f32.mxu1 %vm522_vm0, %v30588_v7  ;;  %26012 = vmatpush3.msra.mxu1 %v25866_v11  ;;  %v25869_v59 = vpop.f32.mrf.mxu1 }
 0x79e   : > { %25921 = vmatmul.mubr.msk.f32.gmra.mxu0 %vm522_vm0, %v30592_v16  ;;  %26027 = vmatprep.subr.mxu1 %v25869_v59 }
 0x79f   : > { %25925 = vmatprep.mubr.msk.f32.mxu0 %vm522_vm0, %v30410_v42  ;;  %v30648_v32 = vpop.f32.mrf.mxu1 }
 0x7a0   : > { %26001 = vmatmul.mubr.msk.f32.gmra.mxu1 %vm522_vm0, %v30592_v16 }
 0x7a1   : > { %26013 = vmatprep.mubr.msk.f32.mxu1 %vm522_vm0, %v30410_v42  ;;  %v25872_v57 = vpop.f32.mrf.mxu1 }
 0x7a2   : > { %25926 = vmatmul.mubr.msk.f32.vlgmr.msra.gmra.mxu0 %vm522_vm0, %v30586_v18 }
 0x7a3   : > { %25928 = vmatprep.mubr.msk.f32.mxu0 %vm522_vm0, %v30588_v7  ;;  %25932 = vmatpush3.msra.mxu0 %v25851_v13  ;;  %v30666_v11 = vpop.f32.mrf.mxu1 }
 0x7a4   : > { %26014 = vmatmul.mubr.msk.f32.vlgmr.msra.gmra.mxu1 %vm522_vm0, %v30586_v18  ;;  %25939 = vmatprep.subr.mxu0 %v15410_v21 }
 0x7a5   : > { %26016 = vmatprep.mubr.msk.f32.mxu1 %vm522_vm0, %v30588_v7  ;;  %26028 = vmatpush3.msra.mxu1 %v25869_v59  ;;  %v25875_v13 = vpop.f32.mrf.mxu1 }
 0x7a6   : > { %25929 = vmatmul.mubr.msk.f32.gmra.mxu0 %vm522_vm0, %v30592_v16  ;;  %26043 = vmatprep.subr.mxu1 %v25872_v57 }
 0x7a7   : > { %25933 = vmatprep.mubr.msk.f32.mxu0 %vm522_vm0, %v30410_v42  ;;  %v30685_v59 = vpop.f32.mrf.mxu1 }
 0x7a8   : > { %26017 = vmatmul.mubr.msk.f32.gmra.mxu1 %vm522_vm0, %v30592_v16 }
 0x7a9   : > { %26029 = vmatprep.mubr.msk.f32.mxu1 %vm522_vm0, %v30410_v42 }
 0x7aa   : > { %25934 = vmatmul.mubr.msk.f32.vlgmr.msra.gmra.mxu0 %vm522_vm0, %v30586_v18 }
 0x7ab   : > { %25936 = vmatprep.mubr.msk.f32.mxu0 %vm522_vm0, %v30588_v7  ;;  %25940 = vmatpush3.msra.mxu0 %v15410_v21  ;;  %v25878_v21 = vpop.f32.mrf.mxu1 }
 0x7ac   : > { %26030 = vmatmul.mubr.msk.f32.vlgmr.msra.gmra.mxu1 %vm522_vm0, %v30586_v18  ;;  %25947 = vmatprep.subr.mxu0 %v30600_v47 }
 0x7ad   : > { %26032 = vmatprep.mubr.msk.f32.mxu1 %vm522_vm0, %v30588_v7  ;;  %26044 = vmatpush3.msra.mxu1 %v25872_v57  ;;  %v30705_v57 = vpop.f32.mrf.mxu1 }
 0x7ae   : > { %25937 = vmatmul.mubr.msk.f32.gmra.mxu0 %vm522_vm0, %v30592_v16  ;;  %26059 = vmatprep.subr.mxu1 %v25875_v13 }
 0x7af   : > { %25941 = vmatprep.mubr.msk.f32.mxu0 %vm522_vm0, %v30410_v42 }
 0x7b0   : > { %26033 = vmatmul.mubr.msk.f32.gmra.mxu1 %vm522_vm0, %v30592_v16 }
 0x7b1   : > { %26045 = vmatprep.mubr.msk.f32.mxu1 %vm522_vm0, %v30410_v42 }
 0x7b2   : > { %25942 = vmatmul.mubr.msk.f32.vlgmr.msra.gmra.mxu0 %vm522_vm0, %v30586_v18 }
 0x7b3   : > { %25944 = vmatprep.mubr.msk.f32.mxu0 %vm522_vm0, %v30588_v7  ;;  %25948 = vmatpush3.msra.mxu0 %v30600_v47  ;;  %v25881_v47 = vpop.f32.mrf.mxu1 }
 0x7b4   : > { %26046 = vmatmul.mubr.msk.f32.vlgmr.msra.gmra.mxu1 %vm522_vm0, %v30586_v18  ;;  %25955 = vmatprep.subr.mxu0 %v30610_v4 }
 0x7b5   : > { %26048 = vmatprep.mubr.msk.f32.mxu1 %vm522_vm0, %v30588_v7  ;;  %26060 = vmatpush3.msra.mxu1 %v25875_v13  ;;  %v30725_v13 = vpop.f32.mrf.mxu1 }
 0x7b6   : > { %25945 = vmatmul.mubr.msk.f32.gmra.mxu0 %vm522_vm0, %v30592_v16  ;;  %26075 = vmatprep.subr.mxu1 %v25878_v21 }
 0x7b7   : > { %25949 = vmatprep.mubr.msk.f32.mxu0 %vm522_vm0, %v30410_v42 }
 0x7b8   : > { %26049 = vmatmul.mubr.msk.f32.gmra.mxu1 %vm522_vm0, %v30592_v16 }
 0x7b9   : > { %26061 = vmatprep.mubr.msk.f32.mxu1 %vm522_vm0, %v30410_v42 }
 0x7ba   : > { %25950 = vmatmul.mubr.msk.f32.vlgmr.msra.gmra.mxu0 %vm522_vm0, %v30586_v18 }
 0x7bb   : > { %25952 = vmatprep.mubr.msk.f32.mxu0 %vm522_vm0, %v30588_v7  ;;  %25956 = vmatpush3.msra.mxu0 %v30610_v4  ;;  %v25884_v4 = vpop.f32.mrf.mxu1 }
 0x7bc   : > { %26062 = vmatmul.mubr.msk.f32.vlgmr.msra.gmra.mxu1 %vm522_vm0, %v30586_v18  ;;  %25963 = vmatprep.subr.mxu0 %v30606_v12 }
 0x7bd   : > { %26064 = vmatprep.mubr.msk.f32.mxu1 %vm522_vm0, %v30588_v7  ;;  %26076 = vmatpush3.msra.mxu1 %v25878_v21  ;;  %v30745_v21 = vpop.f32.mrf.mxu1 }
 0x7be   : > { %25953 = vmatmul.mubr.msk.f32.gmra.mxu0 %vm522_vm0, %v30592_v16  ;;  %26091 = vmatprep.subr.mxu1 %v25881_v47 }
 0x7bf   : > { %25957 = vmatprep.mubr.msk.f32.mxu0 %vm522_vm0, %v30410_v42 }
 0x7c0   : > { %26065 = vmatmul.mubr.msk.f32.gmra.mxu1 %vm522_vm0, %v30592_v16 }
 0x7c1   : > { %26077 = vmatprep.mubr.msk.f32.mxu1 %vm522_vm0, %v30410_v42 }
 0x7c2   : > { %25958 = vmatmul.mubr.msk.f32.vlgmr.msra.gmra.mxu0 %vm522_vm0, %v30586_v18 }
 0x7c3   : > { %25960 = vmatprep.mubr.msk.f32.mxu0 %vm522_vm0, %v30588_v7  ;;  %25964 = vmatpush3.msra.mxu0 %v30606_v12  ;;  %v25887_v12 = vpop.f32.mrf.mxu1 }
 0x7c4   : > { %26078 = vmatmul.mubr.msk.f32.vlgmr.msra.gmra.mxu1 %vm522_vm0, %v30586_v18  ;;  %25971 = vmatprep.subr.mxu0 %v30618_v20 }
 0x7c5   : > { %26080 = vmatprep.mubr.msk.f32.mxu1 %vm522_vm0, %v30588_v7  ;;  %26092 = vmatpush3.msra.mxu1 %v25881_v47  ;;  %v30765_v47 = vpop.f32.mrf.mxu1 }
 0x7c6   : > { %25961 = vmatmul.mubr.msk.f32.gmra.mxu0 %vm522_vm0, %v30592_v16  ;;  %26107 = vmatprep.subr.mxu1 %v25884_v4 }
 0x7c7   : > { %25965 = vmatprep.mubr.msk.f32.mxu0 %vm522_vm0, %v30410_v42 }
 0x7c8   : > { %26081 = vmatmul.mubr.msk.f32.gmra.mxu1 %vm522_vm0, %v30592_v16 }
 0x7c9   : > { %26093 = vmatprep.mubr.msk.f32.mxu1 %vm522_vm0, %v30410_v42 }
 0x7ca   : > { %25966 = vmatmul.mubr.msk.f32.vlgmr.msra.gmra.mxu0 %vm522_vm0, %v30586_v18 }
 0x7cb   : > { %25968 = vmatprep.mubr.msk.f32.mxu0 %vm522_vm0, %v30588_v7  ;;  %25972 = vmatpush3.msra.mxu0 %v30618_v20  ;;  %v25890_v20 = vpop.f32.mrf.mxu1 }
 0x7cc   : > { %26094 = vmatmul.mubr.msk.f32.vlgmr.msra.gmra.mxu1 %vm522_vm0, %v30586_v18  ;;  %25987 = vmatprep.subr.mxu0 %v30628_v51 }
 0x7cd   : > { %26096 = vmatprep.mubr.msk.f32.mxu1 %vm522_vm0, %v30588_v7  ;;  %26108 = vmatpush3.msra.mxu1 %v25884_v4  ;;  %v18417_v4 = vld [vmem:[#allocation5 + $0x2e8] sm:$0xff] }
 0x7ce   : > { %25969 = vmatmul.mubr.msk.f32.gmra.mxu0 %vm522_vm0, %v30592_v16  ;;  %26123 = vmatprep.subr.mxu1 %v25887_v12 }
 0x7cf   : > { %25973 = vmatprep.mubr.msk.f32.mxu0 %vm522_vm0, %v30410_v42 }
 0x7d0   : > { %26097 = vmatmul.mubr.msk.f32.gmra.mxu1 %vm522_vm0, %v30592_v16 }
 0x7d1   : > { %26109 = vmatprep.mubr.msk.f32.mxu1 %vm522_vm0, %v30410_v42 }
 0x7d2   : > { %25974 = vmatmul.mubr.msk.f32.vlgmr.msra.gmra.mxu0 %vm522_vm0, %v30586_v18 }
 0x7d3   : > { %25976 = vmatprep.mubr.msk.f32.mxu0 %vm522_vm0, %v30588_v7  ;;  %25988 = vmatpush3.msra.mxu0 %v30628_v51  ;;  %v26664_v51 = vld [vmem:[%s32478_s2 + $0x8] sm:$0xff] }
 0x7d4   : > { %26110 = vmatmul.mubr.msk.f32.vlgmr.msra.gmra.mxu1 %vm522_vm0, %v30586_v18  ;;  %26003 = vmatprep.subr.mxu0 %v30638_v28 }
 0x7d5   : > { %26112 = vmatprep.mubr.msk.f32.mxu1 %vm522_vm0, %v30588_v7  ;;  %26124 = vmatpush3.msra.mxu1 %v25887_v12  ;;  %v18415_v12 = vld [vmem:[#allocation5 + $0x2d8] sm:$0xff] }
 0x7d6   : > { %25977 = vmatmul.mubr.msk.f32.gmra.mxu0 %vm522_vm0, %v30592_v16  ;;  %26139 = vmatprep.subr.mxu1 %v25890_v20 }
 0x7d7   : > { %25989 = vmatprep.mubr.msk.f32.mxu0 %vm522_vm0, %v30410_v42  ;;  %18647 = vrot.lane.b32.xlu1 %v26664_v51, %s26832_s11  ;;  %v18407_v51 = vld [vmem:[#allocation5 + $0x298] sm:$0xff] }
 0x7d8   : > { %26113 = vmatmul.mubr.msk.f32.gmra.mxu1 %vm522_vm0, %v30592_v16 }
 0x7d9   : > { %26125 = vmatprep.mubr.msk.f32.mxu1 %vm522_vm0, %v30410_v42 }
 0x7da   : > { %25990 = vmatmul.mubr.msk.f32.vlgmr.msra.gmra.mxu0 %vm522_vm0, %v30586_v18 }
 0x7db   : > { %25992 = vmatprep.mubr.msk.f32.mxu0 %vm522_vm0, %v30588_v7  ;;  %26004 = vmatpush3.msra.mxu0 %v30638_v28  ;;  %v26663_v28 = vld [vmem:[%s32478_s2] sm:$0xff] }
 0x7dc   : > { %26126 = vmatmul.mubr.msk.f32.vlgmr.msra.gmra.mxu1 %vm522_vm0, %v30586_v18  ;;  %26019 = vmatprep.subr.mxu0 %v30648_v32 }
 0x7dd   : > { %26128 = vmatprep.mubr.msk.f32.mxu1 %vm522_vm0, %v30588_v7  ;;  %26140 = vmatpush3.msra.mxu1 %v25890_v20  ;;  %v18411_v20 = vld [vmem:[#allocation5 + $0x2b8] sm:$0xff] }
 0x7de   : > { %25993 = vmatmul.mubr.msk.f32.gmra.mxu0 %vm522_vm0, %v30592_v16  ;;  %18645 = vrot.lane.b32.xlu0 %v26663_v28, %s26832_s11  ;;  %v18408_v28 = vld [vmem:[#allocation5 + $0x2a0] sm:$0xff] }
 0x7df   : > { %26005 = vmatprep.mubr.msk.f32.mxu0 %vm522_vm0, %v30410_v42 }
 0x7e0   : > { %26129 = vmatmul.mubr.msk.f32.gmra.mxu1 %vm522_vm0, %v30592_v16 }
 0x7e1   : > { %26141 = vmatprep.mubr.msk.f32.mxu1 %vm522_vm0, %v30410_v42 }
 0x7e2   : > { %26006 = vmatmul.mubr.msk.f32.vlgmr.msra.gmra.mxu0 %vm522_vm0, %v30586_v18 }
 0x7e3   : > { %26008 = vmatprep.mubr.msk.f32.mxu0 %vm522_vm0, %v30588_v7  ;;  %26020 = vmatpush3.msra.mxu0 %v30648_v32  ;;  %v15530_v32 = vpop.f32.mrf.mxu1 }
 0x7e4   : > { %26142 = vmatmul.mubr.msk.f32.vlgmr.msra.gmra.mxu1 %vm522_vm0, %v30586_v18  ;;  %26035 = vmatprep.subr.mxu0 %v30666_v11 }
 0x7e5   : > { %26144 = vmatprep.mubr.msk.f32.mxu1 %vm522_vm0, %v30588_v7 }
 0x7e6   : > { %26009 = vmatmul.mubr.msk.f32.gmra.mxu0 %vm522_vm0, %v30592_v16 }
 0x7e7   : > { %26021 = vmatprep.mubr.msk.f32.mxu0 %vm522_vm0, %v30410_v42 }
 0x7e8   : > { %26145 = vmatmul.mubr.msk.f32.gmra.mxu1 %vm522_vm0, %v30592_v16 }
 0x7ea   : > { %26022 = vmatmul.mubr.msk.f32.vlgmr.msra.gmra.mxu0 %vm522_vm0, %v30586_v18 }
 0x7eb   : > { %26024 = vmatprep.mubr.msk.f32.mxu0 %vm522_vm0, %v30588_v7  ;;  %26036 = vmatpush3.msra.mxu0 %v30666_v11  ;;  %v26665_v11 = vld [vmem:[%s32478_s2 + $0x10] sm:$0xff] }
 0x7ec   : > { %26051 = vmatprep.subr.mxu0 %v30685_v59  ;;  %18649 = vrot.lane.b32.xlu0 %v26665_v11, %s26832_s11  ;;  %v18406_v11 = vld [vmem:[#allocation5 + $0x290] sm:$0xff] }
 0x7ee   : > { %26025 = vmatmul.mubr.msk.f32.gmra.mxu0 %vm522_vm0, %v30592_v16 }
 0x7ef   : > { %26037 = vmatprep.mubr.msk.f32.mxu0 %vm522_vm0, %v30410_v42 }
 0x7f2   : > { %26038 = vmatmul.mubr.msk.f32.vlgmr.msra.gmra.mxu0 %vm522_vm0, %v30586_v18 }
 0x7f3   : > { %26040 = vmatprep.mubr.msk.f32.mxu0 %vm522_vm0, %v30588_v7  ;;  %26052 = vmatpush3.msra.mxu0 %v30685_v59  ;;  %v26666_v59 = vld [vmem:[%s32478_s2 + $0x18] sm:$0xff] }
 0x7f4   : > { %26067 = vmatprep.subr.mxu0 %v30705_v57  ;;  %18651 = vrot.lane.b32.xlu1 %v26666_v59, %s26832_s11  ;;  %v18405_v59 = vld [vmem:[#allocation5 + $0x288] sm:$0xff]  ;;  %s31702_s11 = scalar_lea.vmem [#allocation7], %s21897_s14 }
 0x7f5   : > { %s21804_s25 = sshll.u32 %s31702_s11, 4  ;;  %s32430_s25 = int_to_ptr.vmem [resolvable:$true] %s21804_s25 }
 0x7f6   : > { %26041 = vmatmul.mubr.msk.f32.gmra.mxu0 %vm522_vm0, %v30592_v16  ;;  %s26753_s21 = scalar_lea.vmem %s32430_s25, 16384 }
 0x7f7   : > { %26053 = vmatprep.mubr.msk.f32.mxu0 %vm522_vm0, %v30410_v42  ;;  %p26754_p3 = scmp.ne.s32.totalorder %s32430_s25, %s26753_s21 }
 0x7f9   : > { %p26755_p7 = pnand %p26754_p3, %p33709_p11 }
 0x7fa   : > { %26054 = vmatmul.mubr.msk.f32.vlgmr.msra.gmra.mxu0 %vm522_vm0, %v30586_v18 }
 0x7fb   : > { %26056 = vmatprep.mubr.msk.f32.mxu0 %vm522_vm0, %v30588_v7  ;;  %26068 = vmatpush3.msra.mxu0 %v30705_v57  ;;  %v18419_v57 = vld [vmem:[#allocation5 + $0x2f8] sm:$0xff]  ;;  %p26756_p9 = pneg %p26755_p7 }
 0x7fc   : > { %26083 = vmatprep.subr.mxu0 %v30725_v13 }
 0x7fe   : > { %26057 = vmatmul.mubr.msk.f32.gmra.mxu0 %vm522_vm0, %v30592_v16 }
 0x7ff   : > { %26069 = vmatprep.mubr.msk.f32.mxu0 %vm522_vm0, %v30410_v42 }
 0x802   : > { %26070 = vmatmul.mubr.msk.f32.vlgmr.msra.gmra.mxu0 %vm522_vm0, %v30586_v18 }
 0x803   : > { %26072 = vmatprep.mubr.msk.f32.mxu0 %vm522_vm0, %v30588_v7  ;;  %26084 = vmatpush3.msra.mxu0 %v30725_v13  ;;  %v18418_v13 = vld [vmem:[#allocation5 + $0x2f0] sm:$0xff] }
 0x804   : > { %26099 = vmatprep.subr.mxu0 %v30745_v21 }
 0x806   : > { %26073 = vmatmul.mubr.msk.f32.gmra.mxu0 %vm522_vm0, %v30592_v16 }
 0x807   : > { %26085 = vmatprep.mubr.msk.f32.mxu0 %vm522_vm0, %v30410_v42 }
 0x80a   : > { %26086 = vmatmul.mubr.msk.f32.vlgmr.msra.gmra.mxu0 %vm522_vm0, %v30586_v18 }
 0x80b   : > { %26088 = vmatprep.mubr.msk.f32.mxu0 %vm522_vm0, %v30588_v7  ;;  %26100 = vmatpush3.msra.mxu0 %v30745_v21  ;;  %v18416_v21 = vld [vmem:[#allocation5 + $0x2e0] sm:$0xff] }
 0x80c   : > { %26115 = vmatprep.subr.mxu0 %v30765_v47 }
 0x80e   : > { %26089 = vmatmul.mubr.msk.f32.gmra.mxu0 %vm522_vm0, %v30592_v16 }
 0x80f   : > { %26101 = vmatprep.mubr.msk.f32.mxu0 %vm522_vm0, %v30410_v42 }
 0x812   : > { %26102 = vmatmul.mubr.msk.f32.vlgmr.msra.gmra.mxu0 %vm522_vm0, %v30586_v18 }
 0x813   : > { %26104 = vmatprep.mubr.msk.f32.mxu0 %vm522_vm0, %v30588_v7  ;;  %26116 = vmatpush3.msra.mxu0 %v30765_v47  ;;  %v26667_v47 = vld [vmem:[%s26988_s13] sm:$0xff] }
 0x814   : > { %26131 = vmatprep.subr.mxu0 %v15530_v32 }
 0x816   : > { %26105 = vmatmul.mubr.msk.f32.gmra.mxu0 %vm522_vm0, %v30592_v16 }
 0x817   : > { %26117 = vmatprep.mubr.msk.f32.mxu0 %vm522_vm0, %v30410_v42 }
 0x81a   : > { %26118 = vmatmul.mubr.msk.f32.vlgmr.msra.gmra.mxu0 %vm522_vm0, %v30586_v18 }
 0x81b   : > { %26120 = vmatprep.mubr.msk.f32.mxu0 %vm522_vm0, %v30588_v7  ;;  %26132 = vmatpush3.msra.mxu0 %v15530_v32  ;;  %v18410_v32 = vld [vmem:[#allocation5 + $0x2b0] sm:$0xff] }
 0x81c   : > { %26147 = vmatprep.subr.mxu0 %v18419_v57 }
 0x81e   : > { %26121 = vmatmul.mubr.msk.f32.gmra.mxu0 %vm522_vm0, %v30592_v16 }
 0x81f   : > { %26133 = vmatprep.mubr.msk.f32.mxu0 %vm522_vm0, %v30410_v42  ;;  %v18414_v42 = vld [vmem:[#allocation5 + $0x2d0] sm:$0xff] }
 0x822   : > { %26134 = vmatmul.mubr.msk.f32.vlgmr.msra.gmra.mxu0 %vm522_vm0, %v30586_v18  ;;  %v18413_v18 = vld [vmem:[#allocation5 + $0x2c8] sm:$0xff] }
 0x823   : > { %26148 = vmatpush3.msra.mxu0 %v18419_v57  ;;  %26136 = vmatprep.mubr.msk.f32.mxu0 %vm522_vm0, %v30588_v7  ;;  %v18412_v7 = vld [vmem:[#allocation5 + $0x2c0] sm:$0xff] }
 0x824   : > { %26149 = vmatprep.subr.mxu0 %v18418_v13  ;;  %v18404_v57 = vld [vmem:[#allocation5 + $0x280] sm:$0xff] }
 0x825   : > { %26150 = vmatpush3.msra.mxu0 %v18418_v13  ;;  %v30909_v13 = vpop.f32.mrf.mxu0 }
 0x826   : > { %26151 = vmatprep.subr.mxu0 %v18417_v4  ;;  %26137 = vmatmul.mubr.msk.f32.gmra.mxu0 %vm522_vm0, %v30592_v16  ;;  %v18409_v16 = vld [vmem:[#allocation5 + $0x2a8] sm:$0xff]  ;;  %33136 = vst [vmem:[#allocation338_spill] sm:$0xff] %v30909_v13  ;;  %v26682_v13 = vld [vmem:[%s26988_s13 + $0x78] sm:$0xff] }
 0x827   : > { %26152 = vmatpush3.msra.mxu0 %v18417_v4  ;;  %26179 = vmatprep.mubr.f32.mxu0 %v26667_v47  ;;  %v26668_v4 = vld [vmem:[%s26988_s13 + $0x8] sm:$0xff]  ;;  %v26669_v47 = vld [vmem:[%s26988_s13 + $0x10] sm:$0xff] }
 0x828   : > { %26153 = vmatprep.subr.mxu0 %v18416_v21 }
 0x829   : > { %26154 = vmatpush3.msra.mxu0 %v18416_v21 }
 0x82a   : > { %26155 = vmatprep.subr.mxu0 %v18415_v12 }
 0x82b   : > { %26156 = vmatpush3.msra.mxu0 %v18415_v12 }
 0x82c   : > { %26157 = vmatprep.subr.mxu0 %v18414_v42 }
 0x82d   : > { %26158 = vmatpush3.msra.mxu0 %v18414_v42 }
 0x82e   : > { %26159 = vmatprep.subr.mxu0 %v18413_v18 }
 0x82f   : > { %26160 = vmatpush3.msra.mxu0 %v18413_v18 }
 0x830   : > { %26161 = vmatprep.subr.mxu0 %v18412_v7 }
 0x831   : > { %26162 = vmatpush3.msra.mxu0 %v18412_v7  ;;  %v26670_v7 = vld [vmem:[%s26988_s13 + $0x18] sm:$0xff] }
 0x832   : > { %26163 = vmatprep.subr.mxu0 %v18411_v20 }
 0x833   : > { %26164 = vmatpush3.msra.mxu0 %v18411_v20 }
 0x834   : > { %26165 = vmatprep.subr.mxu0 %v18410_v32 }
 0x835   : > { %26166 = vmatpush3.msra.mxu0 %v18410_v32 }
 0x836   : > { %26167 = vmatprep.subr.mxu0 %v18409_v16 }
 0x837   : > { %26168 = vmatpush3.msra.mxu0 %v18409_v16  ;;  %v26671_v16 = vld [vmem:[%s26988_s13 + $0x20] sm:$0xff] }
 0x838   : > { %26169 = vmatprep.subr.mxu0 %v18408_v28 }
 0x839   : > { %26170 = vmatpush3.msra.mxu0 %v18408_v28 }
 0x83a   : > { %26171 = vmatprep.subr.mxu0 %v18407_v51 }
 0x83b   : > { %26172 = vmatpush3.msra.mxu0 %v18407_v51  ;;  %v26672_v51 = vld [vmem:[%s26988_s13 + $0x28] sm:$0xff] }
 0x83c   : > { %26173 = vmatprep.subr.mxu0 %v18406_v11 }
 0x83d   : > { %26174 = vmatpush3.msra.mxu0 %v18406_v11 }
 0x83e   : > { %26175 = vmatprep.subr.mxu0 %v18405_v59 }
 0x83f   : > { %26176 = vmatpush3.msra.mxu0 %v18405_v59  ;;  %v26673_v59 = vld [vmem:[%s26988_s13 + $0x30] sm:$0xff] }
 0x840   : > { %26177 = vmatprep.subr.mxu0 %v18404_v57 }
 0x841   : > { %26178 = vmatpush3.msra.mxu0 %v18404_v57 }
 0x842   : > { %26180 = vmatmul.mubr.f32.vlgmr.msra.gmra.mxu0 %v26668_v4  ;;  %v25895_v21 = vpop.f32.mrf.mxu0 }
 0x843   : > { %v30913_v12 = vadd.f32 %v25895_v21, %v30231_v43  ;;  %26182 = vmatprep.mubr.f32.mxu0 %v26669_v47 }
 0x844   : > { %v15621_v42 = vpop.f32.mrf.mxu0 }
 0x845   : > { %v30917_v18 = vadd.f32 %v15621_v42, %v30235_v46  ;;  %v26676_v42 = vld [vmem:[%s26988_s13 + $0x48] sm:$0xff] }
 0x846   : > { %26183 = vmatmul.mubr.f32.gmra.mxu0 %v26670_v7  ;;  %v25898_v20 = vpop.f32.mrf.mxu0 }
 0x847   : > { %v30921_v32 = vadd.f32 %v25898_v20, %v30239_v30  ;;  %26185 = vmatprep.mubr.f32.mxu0 %v26671_v16  ;;  %v26674_v30 = vld [vmem:[%s26988_s13 + $0x38] sm:$0xff]  ;;  %v26677_v20 = vld [vmem:[%s26988_s13 + $0x50] sm:$0xff] }
 0x848   : > { %v15631_v28 = vpop.f32.mrf.mxu0 }
 0x849   : > { %v30925_v43 = vadd.f32 %v15631_v28, %v30243_v5  ;;  %v26675_v5 = vld [vmem:[%s26988_s13 + $0x40] sm:$0xff] }
 0x84a   : > { %26186 = vmatmul.mubr.f32.gmra.mxu0 %v26672_v51  ;;  %v25903_v11 = vpop.f32.mrf.mxu0  ;;  %v26678_v51 = vld [vmem:[%s26988_s13 + $0x58] sm:$0xff] }
 0x84b   : > { %v30929_v46 = vadd.f32 %v25903_v11, %v30247_v60  ;;  %26188 = vmatprep.mubr.f32.mxu0 %v26673_v59 }
 0x84c   : > { %v30932_v57 = vpop.f32.mrf.mxu0 }
 0x84e   : > { %26189 = vmatmul.mubr.f32.gmra.mxu0 %v26674_v30  ;;  %v25906_v4 = vpop.f32.mrf.mxu0 }
 0x84f   : > { %v30936_v21 = vadd.f32 %v25906_v4, %v30254_v27  ;;  %26191 = vmatprep.mubr.f32.mxu0 %v26675_v5 }
 0x850   : > { %v30939_v47 = vpop.f32.mrf.mxu0 }
 0x852   : > { %26192 = vmatmul.mubr.f32.gmra.mxu0 %v26676_v42  ;;  %v25911_v60 = vpop.f32.mrf.mxu0 }
 0x853   : > { %v30943_v7 = vadd.f32 %v25911_v60, %v30261_v53  ;;  %26194 = vmatprep.mubr.f32.mxu0 %v26677_v20  ;;  %v26679_v53 = vld [vmem:[%s26988_s13 + $0x60] sm:$0xff]  ;;  %v26680_v20 = vld [vmem:[%s26988_s13 + $0x68] sm:$0xff] }
 0x854   : > { %v30946_v16 = vpop.f32.mrf.mxu0  ;;  %v25983_v28 = vpop.f32.mrf.mxu1 }
 0x855   : > { %v30949_v27 = vadd.f32 %v25983_v28, %v30267_v22 }
 0x856   : > { %26195 = vmatmul.mubr.f32.gmra.mxu0 %v26678_v51  ;;  %v25914_v11 = vpop.f32.mrf.mxu0  ;;  %v30952_v59 = vpop.f32.mrf.mxu1 }
 0x857   : > { %v30955_v30 = vadd.f32 %v25914_v11, %v30273_v6  ;;  %26197 = vmatprep.mubr.f32.mxu0 %v26679_v53  ;;  %v26681_v6 = vld [vmem:[%s26988_s13 + $0x70] sm:$0xff] }
 0x858   : > { %v30958_v4 = vpop.f32.mrf.mxu0  ;;  %v25986_v5 = vpop.f32.mrf.mxu1 }
 0x859   : > { %v30961_v42 = vadd.f32 %v25986_v5, %v30279_v17 }
 0x85a   : > { %v25919_v22 = vpop.f32.mrf.mxu0  ;;  %v30963_v60 = vpop.f32.mrf.mxu1  ;;  %26198 = vmatmul.mubr.f32.gmra.mxu0 %v26680_v20 }
 0x85b   : > { %v30967_v28 = vadd.f32 %v25919_v22, %v30285_v48  ;;  %26200 = vmatprep.mubr.f32.mxu0 %v26681_v6  ;;  %v26683_v48 = vld [vmem:[%s26988_s13 + $0x80] sm:$0xff] }
 0x85c   : > { %v30970_v51 = vpop.f32.mrf.mxu0  ;;  %v25999_v11 = vpop.f32.mrf.mxu1 }
 0x85d   : > { %33137 = vst [vmem:[#allocation339_spill] sm:$0xff] %v30967_v28  ;;  %v30973_v53 = vadd.f32 %v25999_v11, %v30291_v61 }
 0x85e   : > { %v25922_v17 = vpop.f32.mrf.mxu0  ;;  %v30975_v5 = vpop.f32.mrf.mxu1  ;;  %26201 = vmatmul.mubr.f32.gmra.mxu0 %v26682_v13 }
 0x85f   : > { %33138 = vst [vmem:[#allocation340_spill] sm:$0xff] %v30973_v53  ;;  %v30979_v20 = vadd.f32 %v25922_v17, %v30297_v62  ;;  %26203 = vmatprep.mubr.f32.mxu0 %v26683_v48  ;;  %v26684_v53 = vld [vmem:[%s26988_s13 + $0x88] sm:$0xff]  ;;  %v26685_v62 = vld [vmem:[%s26988_s13 + $0x90] sm:$0xff] }
 0x860   : > { %v30982_v22 = vpop.f32.mrf.mxu0  ;;  %v26002_v6 = vpop.f32.mrf.mxu1 }
 0x861   : > { %33139 = vst [vmem:[#allocation341_spill] sm:$0xff] %v30979_v20  ;;  %v30985_v28 = vadd.f32 %v26002_v6, %v30303_v19 }
 0x862   : > { %v25927_v61 = vpop.f32.mrf.mxu0  ;;  %v30987_v11 = vpop.f32.mrf.mxu1  ;;  %26204 = vmatmul.mubr.f32.gmra.mxu0 %v26684_v53 }
 0x863   : > { %33140 = vst [vmem:[#allocation342_spill] sm:$0xff] %v30985_v28  ;;  %v30991_v13 = vadd.f32 %v25927_v61, %v30309_v38  ;;  %26206 = vmatprep.mubr.f32.mxu0 %v26685_v62  ;;  %v26686_v28 = vld [vmem:[%s26988_s13 + $0x98] sm:$0xff]  ;;  %v26687_v38 = vld [vmem:[%s26988_s13 + $0xa0] sm:$0xff] }
 0x864   : > { %v30994_v17 = vpop.f32.mrf.mxu0  ;;  %v26015_v48 = vpop.f32.mrf.mxu1 }
 0x865   : > { %33141 = vst [vmem:[#allocation343_spill] sm:$0xff] %v30991_v13  ;;  %v30997_v20 = vadd.f32 %v26015_v48, %v30315_v10 }
 0x866   : > { %v25930_v19 = vpop.f32.mrf.mxu0  ;;  %v30999_v6 = vpop.f32.mrf.mxu1  ;;  %26207 = vmatmul.mubr.f32.gmra.mxu0 %v26686_v28 }
 0x867   : > { %33142 = vst [vmem:[#allocation344_spill] sm:$0xff] %v30997_v20  ;;  %v31003_v53 = vadd.f32 %v25930_v19, %v30321_v52  ;;  %26209 = vmatprep.mubr.f32.mxu0 %v26687_v38  ;;  %v26688_v20 = vld [vmem:[%s26988_s13 + $0xa8] sm:$0xff]  ;;  %v26689_v52 = vld [vmem:[%s26988_s13 + $0xb0] sm:$0xff] }
 0x868   : > { %v31006_v61 = vpop.f32.mrf.mxu0  ;;  %v26018_v62 = vpop.f32.mrf.mxu1 }
 0x869   : > { %33143 = vst [vmem:[#allocation345_spill] sm:$0xff] %v31003_v53  ;;  %v31009_v13 = vadd.f32 %v26018_v62, %v30327_v8 }
 0x86a   : > { %v25935_v10 = vpop.f32.mrf.mxu0  ;;  %v31011_v48 = vpop.f32.mrf.mxu1  ;;  %26210 = vmatmul.mubr.f32.gmra.mxu0 %v26688_v20 }
 0x86b   : > { %33144 = vst [vmem:[#allocation346_spill] sm:$0xff] %v31009_v13  ;;  %v31015_v28 = vadd.f32 %v25935_v10, %v30333_v9  ;;  %26212 = vmatprep.mubr.f32.mxu0 %v26689_v52  ;;  %v26690_v13 = vld [vmem:[%s26988_s13 + $0xb8] sm:$0xff]  ;;  %v26691_v9 = vld [vmem:[%s26988_s13 + $0xc0] sm:$0xff] }
 0x86c   : > { %v31018_v19 = vpop.f32.mrf.mxu0  ;;  %v26031_v38 = vpop.f32.mrf.mxu1 }
 0x86d   : > { %33145 = vst [vmem:[#allocation347_spill] sm:$0xff] %v31015_v28  ;;  %v31021_v53 = vadd.f32 %v26031_v38, %v30339_v29 }
 0x86e   : > { %v25938_v8 = vpop.f32.mrf.mxu0  ;;  %v31023_v62 = vpop.f32.mrf.mxu1  ;;  %26213 = vmatmul.mubr.f32.gmra.mxu0 %v26690_v13 }
 0x86f   : > { %33146 = vst [vmem:[#allocation348_spill] sm:$0xff] %v31021_v53  ;;  %v31027_v20 = vadd.f32 %v25938_v8, %v30345_v49  ;;  %26215 = vmatprep.mubr.f32.mxu0 %v26691_v9  ;;  %v26692_v53 = vld [vmem:[%s26988_s13 + $0xc8] sm:$0xff]  ;;  %v26693_v49 = vld [vmem:[%s26988_s13 + $0xd0] sm:$0xff] }
 0x870   : > { %v31030_v10 = vpop.f32.mrf.mxu0  ;;  %v26034_v52 = vpop.f32.mrf.mxu1 }
 0x871   : > { %33147 = vst [vmem:[#allocation349_spill] sm:$0xff] %v31027_v20  ;;  %v31033_v28 = vadd.f32 %v26034_v52, %v30351_v55 }
 0x872   : > { %v25943_v29 = vpop.f32.mrf.mxu0  ;;  %v31035_v38 = vpop.f32.mrf.mxu1  ;;  %26216 = vmatmul.mubr.f32.gmra.mxu0 %v26692_v53 }
 0x873   : > { %33148 = vst [vmem:[#allocation350_spill] sm:$0xff] %v31033_v28  ;;  %33149 = vst [vmem:[#allocation351_spill] sm:$0xff] %v31035_v38  ;;  %v31039_v13 = vadd.f32 %v25943_v29, %v30357_v56  ;;  %26218 = vmatprep.mubr.f32.mxu0 %v26693_v49  ;;  %v26694_v28 = vld [vmem:[%s26988_s13 + $0xd8] sm:$0xff]  ;;  %v26695_v56 = vld [vmem:[%s26988_s13 + $0xe0] sm:$0xff] }
 0x874   : > { %v31042_v8 = vpop.f32.mrf.mxu0  ;;  %v26047_v9 = vpop.f32.mrf.mxu1 }
 0x875   : > { %33150 = vst [vmem:[#allocation352_spill] sm:$0xff] %v31039_v13  ;;  %33151 = vst [vmem:[#allocation353_spill] sm:$0xff] %v31042_v8  ;;  %v31045_v20 = vadd.f32 %v26047_v9, %v30363_v58 }
 0x876   : > { %v25946_v55 = vpop.f32.mrf.mxu0  ;;  %v31047_v52 = vpop.f32.mrf.mxu1  ;;  %26219 = vmatmul.mubr.f32.gmra.mxu0 %v26694_v28  ;;  %v26697_v28 = vld [vmem:[%s26988_s13 + $0xf0] sm:$0xff] }
 0x877   : > { %33152 = vst [vmem:[#allocation354_spill] sm:$0xff] %v31045_v20  ;;  %33153 = vst [vmem:[#allocation355_spill] sm:$0xff] %v31047_v52  ;;  %v31051_v53 = vadd.f32 %v25946_v55, %v30369_v50  ;;  %26221 = vmatprep.mubr.f32.mxu0 %v26695_v56  ;;  %v26696_v20 = vld [vmem:[%s26988_s13 + $0xe8] sm:$0xff] }
 0x878   : > { %v31054_v29 = vpop.f32.mrf.mxu0  ;;  %v26050_v49 = vpop.f32.mrf.mxu1 }
 0x879   : > { %33154 = vst [vmem:[#allocation356_spill] sm:$0xff] %v31051_v53  ;;  %33155 = vst [vmem:[#allocation357_spill] sm:$0xff] %v31054_v29  ;;  %v31057_v13 = vadd.f32 %v26050_v49, %v30375_v40  ;;  %v26698_v40 = vld [vmem:[%s26988_s13 + $0xf8] sm:$0xff]  ;;  %s26834_s13 = smov [#allocation7]  }
 0x87a   : > { %v25951_v58 = vpop.f32.mrf.mxu0  ;;  %v31059_v9 = vpop.f32.mrf.mxu1  ;;  %26222 = vmatmul.mubr.f32.gmra.mxu0 %v26696_v20  ;;  %s26757_s23 = sshll.u32 %s26834_s13, 4  ;;  %s26758_s23 = int_to_ptr.vmem [resolvable:$false] %s26757_s23 }
 0x87b   : > { %33156 = vst [vmem:[#allocation358_spill] sm:$0xff] %v31057_v13  ;;  %33157 = vst [vmem:[#allocation359_spill] sm:$0xff] %v31059_v9  ;;  %v31063_v52 = vadd.f32 %v25951_v58, %v30381_v25  ;;  %26224 = vmatprep.mubr.f32.mxu0 %v26697_v28  ;;  %v33333_v13 = vld [vmem:[#allocation156_spill] sm:$0xff]  ;;  %v33336_v9 = vld [vmem:[#allocation87_spill] sm:$0xff]  ;;  %s26759_s5 = scalar_lea.vmem %s26758_s23, 32768  ;;  %p26760_p10 = scmp.lt.s32.totalorder %s32430_s25, %s26758_s23 }
 0x87c   : > { %v31066_v50 = vpop.f32.mrf.mxu0  ;;  %v26063_v55 = vpop.f32.mrf.mxu1  ;;  %p26761_p12 = scmp.lt.s32.totalorder %s26759_s5, %s26753_s21 }
 0x87d   : > { %33158 = vst [vmem:[#allocation360_spill] sm:$0xff] %v31063_v52  ;;  %33159 = vst [vmem:[#allocation361_spill] sm:$0xff] %v31066_v50  ;;  %v31069_v56 = vadd.f32 %v26063_v55, %v30387_v24 }
 0x87e   : > { %v25954_v53 = vpop.f32.mrf.mxu0  ;;  %v31071_v29 = vpop.f32.mrf.mxu1  ;;  %26225 = vmatmul.mubr.f32.gmra.mxu0 %v26698_v40  ;;  %p26762_p13 = por %p26761_p12, %p26760_p10 }
 0x87f   : > { %33160 = vst [vmem:[#allocation362_spill] sm:$0xff] %v31069_v56  ;;  %33161 = vst [vmem:[#allocation363_spill] sm:$0xff] %v31071_v29  ;;  %v31075_v49 = vadd.f32 %v25954_v53, %v30393_v39  ;;  %v31092_v39 = vpop.permute.xlu0 %18645 }
 0x880   : > { %v31077_v20 = vpop.f32.mrf.mxu0  ;;  %v26066_v25 = vpop.f32.mrf.mxu1  ;;  %26229 = vmatprep.mubr.msk.f32.mxu1 %vm522_vm0, %v31092_v39  ;;  %26317 = vmatprep.mubr.msk.f32.mxu0 %vm522_vm0, %v31092_v39  ;;  %p26763_p0 = pnand %p26762_p13, %p26756_p9 }
 0x881   : > { %33162 = vst [vmem:[#allocation364_spill] sm:$0xff] %v31075_v49  ;;  %33163 = vst [vmem:[#allocation365_spill] sm:$0xff] %v31077_v20  ;;  %v31080_v58 = vadd.f32 %v26066_v25, %v30398_v44 }
 0x882   : > { %v25959_v28 = vpop.f32.mrf.mxu0  ;;  %v31082_v52 = vpop.f32.mrf.mxu1 }
 0x883   : > { %33164 = vst [vmem:[#allocation366_spill] sm:$0xff] %v31080_v58  ;;  %33165 = vst [vmem:[#allocation367_spill] sm:$0xff] %v31082_v52  ;;  %v31085_v24 = vadd.f32 %v25959_v28, %v30403_v31  ;;  %v33303_v58 = vld [vmem:[#allocation163_spill] sm:$0xff] }
 0x884   : > { %v31087_v55 = vpop.f32.mrf.mxu0  ;;  %v26079_v56 = vpop.f32.mrf.mxu1 }
 0x885   : > { %33166 = vst [vmem:[#allocation368_spill] sm:$0xff] %v31085_v24  ;;  %33167 = vst [vmem:[#allocation369_spill] sm:$0xff] %v31087_v55  ;;  %v31090_v40 = vadd.f32 %v26079_v56, %v30408_v14 }
 0x886   : > { %v25962_v53 = vpop.f32.mrf.mxu0  ;;  %v31094_v49 = vpop.f32.mrf.mxu1 }
 0x887   : > { %33168 = vst [vmem:[#allocation370_spill] sm:$0xff] %v31090_v40  ;;  %33169 = vst [vmem:[#allocation371_spill] sm:$0xff] %v31094_v49  ;;  %v31101_v44 = vadd.f32 %v25962_v53, %v30419_v15 }
 0x888   : > { %v31103_v31 = vpop.f32.mrf.mxu0  ;;  %v26082_v25 = vpop.f32.mrf.mxu1 }
 0x889   : > { %33170 = vst [vmem:[#allocation372_spill] sm:$0xff] %v31101_v44  ;;  %33171 = vst [vmem:[#allocation373_spill] sm:$0xff] %v31103_v31  ;;  %v31106_v14 = vadd.f32 %v26082_v25, %v30424_v0  ;;  %v33302_v31 = vld [vmem:[#allocation21_spill] sm:$0xff] }
 0x88a   : > { %v25967_v56 = vpop.f32.mrf.mxu0  ;;  %v31108_v28 = vpop.f32.mrf.mxu1 }
 0x88b   : > { %33172 = vst [vmem:[#allocation374_spill] sm:$0xff] %v31106_v14  ;;  %33173 = vst [vmem:[#allocation375_spill] sm:$0xff] %v31108_v28  ;;  %v31111_v40 = vadd.f32 %v25967_v56, %v30429_v3 }
 0x88c   : > { %v31113_v49 = vpop.f32.mrf.mxu0  ;;  %v26095_v24 = vpop.f32.mrf.mxu1 }
 0x88d   : > { %33174 = vst [vmem:[#allocation376_spill] sm:$0xff] %v31111_v40  ;;  %33175 = vst [vmem:[#allocation377_spill] sm:$0xff] %v31113_v49  ;;  %v31116_v55 = vadd.f32 %v26095_v24, %v30434_v41 }
 0x88e   : > { %v25970_v15 = vpop.f32.mrf.mxu0  ;;  %v31118_v53 = vpop.f32.mrf.mxu1 }
 0x88f   : > { %33176 = vst [vmem:[#allocation378_spill] sm:$0xff] %v31116_v55  ;;  %33177 = vst [vmem:[#allocation379_spill] sm:$0xff] %v31118_v53  ;;  %v31121_v44 = vadd.f32 %v25970_v15, %v30439_v63 }
 0x890   : > { %v31123_v0 = vpop.f32.mrf.mxu0  ;;  %v26098_v25 = vpop.f32.mrf.mxu1 }
 0x891   : > { %33178 = vst [vmem:[#allocation380_spill] sm:$0xff] %v31121_v44  ;;  %33179 = vst [vmem:[#allocation381_spill] sm:$0xff] %v31123_v0  ;;  %v31126_v14 = vadd.f32 %v26098_v25, %v30444_v34  ;;  %v33287_v0 = vld [vmem:[#allocation22_spill] sm:$0xff] }
 0x892   : > { %v25975_v3 = vpop.f32.mrf.mxu0  ;;  %v31128_v56 = vpop.f32.mrf.mxu1 }
 0x893   : > { %33180 = vst [vmem:[#allocation382_spill] sm:$0xff] %v31126_v14  ;;  %33181 = vst [vmem:[#allocation383_spill] sm:$0xff] %v31128_v56  ;;  %v31131_v40 = vadd.f32 %v25975_v3, %v30449_v45  ;;  %v33284_v56 = vld [vmem:[#allocation77_spill] sm:$0xff] }
 0x894   : > { %v31133_v41 = vpop.f32.mrf.mxu0  ;;  %v26111_v24 = vpop.f32.mrf.mxu1 }
 0x895   : > { %33182 = vst [vmem:[#allocation384_spill] sm:$0xff] %v31131_v40  ;;  %33183 = vst [vmem:[#allocation385_spill] sm:$0xff] %v31133_v41  ;;  %v31136_v55 = vadd.f32 %v26111_v24, %v30454_v35  ;;  %v33281_v41 = vld [vmem:[#allocation19_spill] sm:$0xff] }
 0x896   : > { %v25978_v63 = vpop.f32.mrf.mxu0  ;;  %v31138_v15 = vpop.f32.mrf.mxu1 }
 0x897   : > { %33184 = vst [vmem:[#allocation386_spill] sm:$0xff] %v31136_v55  ;;  %33185 = vst [vmem:[#allocation387_spill] sm:$0xff] %v31138_v15  ;;  %v31141_v44 = vadd.f32 %v25978_v63, %v30459_v1 }
 0x898   : > { %v31143_v34 = vpop.f32.mrf.mxu0  ;;  %v26114_v25 = vpop.f32.mrf.mxu1 }
 0x899   : > { %33186 = vst [vmem:[#allocation388_spill] sm:$0xff] %v31141_v44  ;;  %33187 = vst [vmem:[#allocation389_spill] sm:$0xff] %v31143_v34  ;;  %v31146_v14 = vadd.f32 %v26114_v25, %v30464_v37  ;;  %v33276_v34 = vld [vmem:[#allocation106_spill] sm:$0xff] }
 0x89a   : > { %v25991_v45 = vpop.f32.mrf.mxu0  ;;  %v31148_v3 = vpop.f32.mrf.mxu1 }
 0x89b   : > { %33188 = vst [vmem:[#allocation390_spill] sm:$0xff] %v31146_v14  ;;  %33189 = vst [vmem:[#allocation391_spill] sm:$0xff] %v31148_v3  ;;  %v31151_v40 = vadd.f32 %v25991_v45, %v30469_v26  ;;  %v33273_v3 = vld [vmem:[#allocation102_spill] sm:$0xff] }
 0x89c   : > { %v31153_v35 = vpop.f32.mrf.mxu0  ;;  %v26127_v24 = vpop.f32.mrf.mxu1 }
 0x89d   : > { %33190 = vst [vmem:[#allocation392_spill] sm:$0xff] %v31151_v40  ;;  %33191 = vst [vmem:[#allocation393_spill] sm:$0xff] %v31153_v35  ;;  %v31156_v55 = vadd.f32 %v26127_v24, %v30474_v36  ;;  %v33198_v40 = vld [vmem:[#allocation318_spill] sm:$0xff] }
 0x89e   : > { %v25994_v1 = vpop.f32.mrf.mxu0  ;;  %v31158_v63 = vpop.f32.mrf.mxu1 }
 0x89f   : > { %33192 = vst [vmem:[#allocation394_spill] sm:$0xff] %v31156_v55  ;;  %33193 = vst [vmem:[#allocation395_spill] sm:$0xff] %v31158_v63  ;;  %v31161_v44 = vadd.f32 %v25994_v1, %v30479_v23  ;;  %v33201_v55 = vld [vmem:[#allocation17_spill] sm:$0xff] }
 0x8a0   : > { %v31163_v37 = vpop.f32.mrf.mxu0  ;;  %v26130_v25 = vpop.f32.mrf.mxu1 }
 0x8a1   : > { %33194 = vst [vmem:[#allocation396_spill] sm:$0xff] %v31161_v44  ;;  %33195 = vst [vmem:[#allocation397_spill] sm:$0xff] %v31163_v37  ;;  %v31166_v14 = vadd.f32 %v26130_v25, %v30484_v2  ;;  %v33204_v44 = vld [vmem:[#allocation127_spill] sm:$0xff] }
 0x8a2   : > { %v26007_v26 = vpop.f32.mrf.mxu0  ;;  %v31168_v45 = vpop.f32.mrf.mxu1 }
 0x8a3   : > { %33196 = vst [vmem:[#allocation398_spill] sm:$0xff] %v31166_v14  ;;  %33197 = vst [vmem:[#allocation399_spill] sm:$0xff] %v31168_v45  ;;  %v31171_v35 = vadd.f32 %v26007_v26, %v33198_v40  ;;  %v33207_v14 = vld [vmem:[#allocation294_spill] sm:$0xff]  ;;  %v33209_v26 = vld [vmem:[#allocation295_spill] sm:$0xff] }
 0x8a4   : > { %v31173_v36 = vpop.f32.mrf.mxu0  ;;  %v26143_v24 = vpop.f32.mrf.mxu1 }
 0x8a5   : > { %33199 = vst [vmem:[#allocation318_spill] sm:$0xff] %v31171_v35  ;;  %33200 = vst [vmem:[#allocation400_spill] sm:$0xff] %v31173_v36  ;;  %v31176_v63 = vadd.f32 %v26143_v24, %v33201_v55  ;;  %v33212_v24 = vld [vmem:[#allocation116_spill] sm:$0xff] }
 0x8a6   : > { %v26010_v23 = vpop.f32.mrf.mxu0  ;;  %v31178_v1 = vpop.f32.mrf.mxu1 }
 0x8a7   : > { %33202 = vst [vmem:[#allocation17_spill] sm:$0xff] %v31176_v63  ;;  %33203 = vst [vmem:[#allocation401_spill] sm:$0xff] %v31178_v1  ;;  %v31181_v37 = vadd.f32 %v26010_v23, %v33204_v44  ;;  %v33215_v23 = vld [vmem:[#allocation120_spill] sm:$0xff] }
 0x8a8   : > { %v31183_v2 = vpop.f32.mrf.mxu0  ;;  %v26146_v25 = vpop.f32.mrf.mxu1 }
 0x8a9   : > { %33205 = vst [vmem:[#allocation127_spill] sm:$0xff] %v31181_v37  ;;  %33206 = vst [vmem:[#allocation402_spill] sm:$0xff] %v31183_v2  ;;  %v31186_v45 = vadd.f32 %v26146_v25, %v33207_v14  ;;  %v33218_v25 = vld [vmem:[#allocation206_spill] sm:$0xff] }
 0x8aa   : > { %v26023_v40 = vpop.f32.mrf.mxu0 }
 0x8ab   : > { %33208 = vst [vmem:[#allocation294_spill] sm:$0xff] %v31186_v45  ;;  %v31189_v35 = vadd.f32 %v26023_v40, %v33209_v26 }
 0x8ac   : > { %v31191_v36 = vpop.f32.mrf.mxu0 }
 0x8ad   : > { %33210 = vst [vmem:[#allocation295_spill] sm:$0xff] %v31189_v35  ;;  %33211 = vst [vmem:[#allocation403_spill] sm:$0xff] %v31191_v36  ;;  %v33221_v35 = vld [vmem:[#allocation124_spill] sm:$0xff] }
 0x8ae   : > { %v26026_v55 = vpop.f32.mrf.mxu0 }
 0x8af   : > { %v31194_v63 = vadd.f32 %v26026_v55, %v33212_v24 }
 0x8b0   : > { %v31196_v1 = vpop.f32.mrf.mxu0 }
 0x8b1   : > { %33213 = vst [vmem:[#allocation116_spill] sm:$0xff] %v31194_v63  ;;  %33214 = vst [vmem:[#allocation404_spill] sm:$0xff] %v31196_v1  ;;  %v33270_v1 = vld [vmem:[#allocation98_spill] sm:$0xff] }
 0x8b2   : > { %v26039_v44 = vpop.f32.mrf.mxu0 }
 0x8b3   : > { %v31199_v37 = vadd.f32 %v26039_v44, %v33215_v23 }
 0x8b4   : > { %v31201_v2 = vpop.f32.mrf.mxu0 }
 0x8b5   : > { %33216 = vst [vmem:[#allocation120_spill] sm:$0xff] %v31199_v37  ;;  %33217 = vst [vmem:[#allocation405_spill] sm:$0xff] %v31201_v2  ;;  %v33267_v2 = vld [vmem:[#allocation94_spill] sm:$0xff] }
 0x8b6   : > { %v26042_v14 = vpop.f32.mrf.mxu0 }
 0x8b7   : > { %v31204_v45 = vadd.f32 %v26042_v14, %v33218_v25 }
 0x8b8   : > { %v31206_v40 = vpop.f32.mrf.mxu0 }
 0x8b9   : > { %33219 = vst [vmem:[#allocation206_spill] sm:$0xff] %v31204_v45  ;;  %33220 = vst [vmem:[#allocation406_spill] sm:$0xff] %v31206_v40  ;;  %v33228_v45 = vld [vmem:[#allocation131_spill] sm:$0xff] }
 0x8ba   : > { %v26055_v26 = vpop.f32.mrf.mxu0 }
 0x8bb   : > { %v31209_v36 = vadd.f32 %v26055_v26, %v33221_v35 }
 0x8bc   : > { %v31211_v55 = vpop.f32.mrf.mxu0 }
 0x8bd   : > { %33222 = vst [vmem:[#allocation124_spill] sm:$0xff] %v31209_v36  ;;  %33223 = vst [vmem:[#allocation407_spill] sm:$0xff] %v31211_v55  ;;  %v33231_v36 = vld [vmem:[#allocation134_spill] sm:$0xff] }
 0x8be   : > { %v26058_v24 = vpop.f32.mrf.mxu0 }
 0x8bf   : > { %v31214_v63 = vadd.f32 %v26058_v24, %v30532_v54  ;;  %v26833_v24 = vmov 0  }
 0x8c0   : > { %v31216_v44 = vpop.f32.mrf.mxu0  ;;  %26554 = vset.pattern.permute.xlu1 %v26833_v24  ;;  %26553 = vset.pattern.permute.xlu0 %v26833_v24 }
 0x8c1   : > { %33224 = vst [vmem:[#allocation408_spill] sm:$0xff] %v31214_v63  ;;  %33225 = vst [vmem:[#allocation409_spill] sm:$0xff] %v31216_v44 }
 0x8c2   : > { %v26071_v23 = vpop.f32.mrf.mxu0 }
 0x8c3   : > { %v31219_v37 = vadd.f32 %v26071_v23, %v30537_v33  ;;  %v21510_v33 = vld [vmem:[%s32479_s3 + $0x8] sm:$0xff] }
 0x8c4   : > { %v31221_v14 = vpop.f32.mrf.mxu0  ;;  %21520 = vperm.xlu1 %26554, %v21510_v33  }
 0x8c5   : > { %33226 = vst [vmem:[#allocation410_spill] sm:$0xff] %v31219_v37  ;;  %33227 = vst [vmem:[#allocation411_spill] sm:$0xff] %v31221_v14  ;;  %v33243_v37 = vld [vmem:[#allocation146_spill] sm:$0xff] }
 0x8c6   : > { %v26074_v25 = vpop.f32.mrf.mxu0 }
 0x8c7   : > { %v31224_v40 = vadd.f32 %v26074_v25, %v33228_v45  ;;  %v21509_v45 = vld [vmem:[%s32479_s3] sm:$0xff]  ;;  %v33234_v25 = vld [vmem:[#allocation329_spill] sm:$0xff] }
 0x8c8   : > { %v31226_v35 = vpop.f32.mrf.mxu0  ;;  %21515 = vperm.xlu0 %26553, %v21509_v45  }
 0x8c9   : > { %33229 = vst [vmem:[#allocation131_spill] sm:$0xff] %v31224_v40  ;;  %33230 = vst [vmem:[#allocation412_spill] sm:$0xff] %v31226_v35  ;;  %v21511_v35 = vld [vmem:[%s32479_s3 + $0x10] sm:$0xff] }
 0x8ca   : > { %v26087_v26 = vpop.f32.mrf.mxu0  ;;  %21525 = vperm.xlu1 %26554, %v21511_v35   ;;  %v33249_v35 = vld [vmem:[#allocation309_spill] sm:$0xff] }
 0x8cb   : > { %v31229_v55 = vadd.f32 %v26087_v26, %v33231_v36  ;;  %v21512_v26 = vld [vmem:[%s32479_s3 + $0x18] sm:$0xff] }
 0x8cc   : > { %v31231_v54 = vpop.f32.mrf.mxu0  ;;  %21530 = vperm.xlu0 %26553, %v21512_v26  }
 0x8cd   : > { %33232 = vst [vmem:[#allocation134_spill] sm:$0xff] %v31229_v55  ;;  %33233 = vst [vmem:[#allocation413_spill] sm:$0xff] %v31231_v54  ;;  %v33237_v55 = vld [vmem:[#allocation331_spill] sm:$0xff] }
 0x8ce   : > { %v26090_v23 = vpop.f32.mrf.mxu0 }
 0x8cf   : > { %v31240_v40 = vadd.f32 %v26090_v23, %v33234_v25  ;;  %v33240_v23 = vld [vmem:[#allocation143_spill] sm:$0xff] }
 0x8d0   : > { %v31242_v36 = vpop.f32.mrf.mxu0 }
 0x8d1   : > { %33235 = vst [vmem:[#allocation329_spill] sm:$0xff] %v31240_v40  ;;  %33236 = vst [vmem:[#allocation414_spill] sm:$0xff] %v31242_v36 }
 0x8d2   : > { %v26103_v24 = vpop.f32.mrf.mxu0 }
 0x8d3   : > { %v31248_v54 = vadd.f32 %v26103_v24, %v33237_v55  ;;  %v33246_v24 = vld [vmem:[#allocation307_spill] sm:$0xff] }
 0x8d4   : > { %v31253_v33 = vpop.f32.mrf.mxu0 }
 0x8d5   : > { %33238 = vst [vmem:[#allocation331_spill] sm:$0xff] %v31248_v54  ;;  %33239 = vst [vmem:[#allocation415_spill] sm:$0xff] %v31253_v33 }
 0x8d6   : > { %v26106_v45 = vpop.f32.mrf.mxu0 }
 0x8d7   : > { %v31256_v25 = vadd.f32 %v26106_v45, %v33240_v23 }
 0x8d8   : > { %v31258_v40 = vpop.f32.mrf.mxu0 }
 0x8d9   : > { %33241 = vst [vmem:[#allocation143_spill] sm:$0xff] %v31256_v25  ;;  %33242 = vst [vmem:[#allocation416_spill] sm:$0xff] %v31258_v40  ;;  %v33252_v25 = vld [vmem:[#allocation151_spill] sm:$0xff] }
 0x8da   : > { %v26119_v36 = vpop.f32.mrf.mxu0 }
 0x8db   : > { %v31261_v14 = vadd.f32 %v26119_v36, %v33243_v37 }
 0x8dc   : > { %v31263_v26 = vpop.f32.mrf.mxu0 }
 0x8dd   : > { %33244 = vst [vmem:[#allocation146_spill] sm:$0xff] %v31261_v14  ;;  %33245 = vst [vmem:[#allocation417_spill] sm:$0xff] %v31263_v26  ;;  %v31280_v14 = vpop.permute.xlu1 %18647 }
 0x8de   : > { %v26122_v55 = vpop.f32.mrf.mxu0 }
 0x8df   : > { %v31266_v54 = vadd.f32 %v26122_v55, %v33246_v24  ;;  %v31282_v55 = vpop.permute.xlu0 %18649 }
 0x8e0   : > { %v31268_v63 = vpop.f32.mrf.mxu0 }
 0x8e1   : > { %33247 = vst [vmem:[#allocation307_spill] sm:$0xff] %v31266_v54  ;;  %33248 = vst [vmem:[#allocation418_spill] sm:$0xff] %v31268_v63 }
 0x8e2   : > { %v26135_v33 = vpop.f32.mrf.mxu0 }
 0x8e3   : > { %v31271_v44 = vadd.f32 %v26135_v33, %v33249_v35  ;;  %v31286_v35 = vpop.permute.xlu1 %18651 }
 0x8e4   : > { %v31273_v45 = vpop.f32.mrf.mxu0 }
 0x8e5   : > { %33250 = vst [vmem:[#allocation309_spill] sm:$0xff] %v31271_v44  ;;  %33251 = vst [vmem:[#allocation419_spill] sm:$0xff] %v31273_v45 }
 0x8e6   : > { %v26138_v23 = vpop.f32.mrf.mxu0 }
 0x8e7   : > { %v31276_v40 = vadd.f32 %v26138_v23, %v33252_v25 }
 0x8e8   : > { %v31278_v37 = vpop.f32.mrf.mxu0 }
 0x8e9   : > { %33253 = vst [vmem:[#allocation151_spill] sm:$0xff] %v31276_v40  ;;  %33254 = vst [vmem:[#allocation420_spill] sm:$0xff] %v31278_v37 }
 0x902   : > { %v26181_v36 = vpop.f32.mrf.mxu0 }
 0x904   : > { %v18486_v26 = vpop.f32.mrf.mxu0 }
 0x905   : > { %26227 = vmatprep.subr.mxu1 %v18486_v26 }
 0x906   : > { %v26184_v24 = vpop.f32.mrf.mxu0  ;;  %26228 = vmatpush3.msra.mxu1 %v18486_v26 }
 0x907   : > { %26230 = vmatmul.mubr.msk.f32.vlgmr.msra.gmra.mxu1 %vm522_vm0, %v31280_v14  ;;  %26235 = vmatprep.subr.mxu1 %v26181_v36 }
 0x908   : > { %v18496_v33 = vpop.f32.mrf.mxu0  ;;  %26232 = vmatprep.mubr.msk.f32.mxu1 %vm522_vm0, %v31282_v55  ;;  %26236 = vmatpush3.msra.mxu1 %v26181_v36 }
 0x909   : > { %26243 = vmatprep.subr.mxu1 %v18496_v33 }
 0x90a   : > { %v26187_v25 = vpop.f32.mrf.mxu0 }
 0x90b   : > { %26233 = vmatmul.mubr.msk.f32.gmra.mxu1 %vm522_vm0, %v31286_v35 }
 0x90c   : > { %v18506_v23 = vpop.f32.mrf.mxu0  ;;  %26237 = vmatprep.mubr.msk.f32.mxu1 %vm522_vm0, %v31092_v39 }
 0x90e   : > { %v31294_v26 = vpop.f32.mrf.mxu0 }
 0x90f   : > { %26238 = vmatmul.mubr.msk.f32.vlgmr.msra.gmra.mxu1 %vm522_vm0, %v31280_v14 }
 0x910   : > { %v18516_v40 = vpop.f32.mrf.mxu0  ;;  %26240 = vmatprep.mubr.msk.f32.mxu1 %vm522_vm0, %v31282_v55  ;;  %26244 = vmatpush3.msra.mxu1 %v18496_v33 }
 0x911   : > { %26251 = vmatprep.subr.mxu1 %v26184_v24 }
 0x912   : > { %v31300_v36 = vpop.f32.mrf.mxu0 }
 0x913   : > { %26241 = vmatmul.mubr.msk.f32.gmra.mxu1 %vm522_vm0, %v31286_v35 }
 0x914   : > { %v31304_v37 = vpop.f32.mrf.mxu0  ;;  %26245 = vmatprep.mubr.msk.f32.mxu1 %vm522_vm0, %v31092_v39 }
 0x916   : > { %v26196_v44 = vpop.f32.mrf.mxu0 }
 0x917   : > { %26246 = vmatmul.mubr.msk.f32.vlgmr.msra.gmra.mxu1 %vm522_vm0, %v31280_v14  ;;  %26315 = vmatprep.subr.mxu0 %v26196_v44 }
 0x918   : > { %26316 = vmatpush3.msra.mxu0 %v26196_v44  ;;  %26248 = vmatprep.mubr.msk.f32.mxu1 %vm522_vm0, %v31282_v55  ;;  %v31312_v33 = vpop.f32.mrf.mxu0 }
 0x919   : > { %26318 = vmatmul.mubr.msk.f32.vlgmr.msra.gmra.mxu0 %vm522_vm0, %v31280_v14  ;;  %26252 = vmatpush3.msra.mxu1 %v26184_v24 }
 0x91a   : > { %26320 = vmatprep.mubr.msk.f32.mxu0 %vm522_vm0, %v31282_v55  ;;  %v26199_v45 = vpop.f32.mrf.mxu0  ;;  %26259 = vmatprep.subr.mxu1 %v18506_v23 }
 0x91b   : > { %26249 = vmatmul.mubr.msk.f32.gmra.mxu1 %vm522_vm0, %v31286_v35  ;;  %26331 = vmatprep.subr.mxu0 %v26199_v45 }
 0x91c   : > { %26253 = vmatprep.mubr.msk.f32.mxu1 %vm522_vm0, %v31092_v39  ;;  %26332 = vmatpush3.msra.mxu0 %v26199_v45  ;;  %v31322_v44 = vpop.f32.mrf.mxu0 }
 0x91d   : > { %26321 = vmatmul.mubr.msk.f32.gmra.mxu0 %vm522_vm0, %v31286_v35 }
 0x91e   : > { %26333 = vmatprep.mubr.msk.f32.mxu0 %vm522_vm0, %v31092_v39  ;;  %v26202_v24 = vpop.f32.mrf.mxu0 }
 0x91f   : > { %26254 = vmatmul.mubr.msk.f32.vlgmr.msra.gmra.mxu1 %vm522_vm0, %v31280_v14  ;;  %26347 = vmatprep.subr.mxu0 %v26202_v24 }
 0x920   : > { %26256 = vmatprep.mubr.msk.f32.mxu1 %vm522_vm0, %v31282_v55  ;;  %26260 = vmatpush3.msra.mxu1 %v18506_v23  ;;  %v31332_v54 = vpop.f32.mrf.mxu0 }
 0x921   : > { %26334 = vmatmul.mubr.msk.f32.vlgmr.msra.gmra.mxu0 %vm522_vm0, %v31280_v14  ;;  %26267 = vmatprep.subr.mxu1 %v26187_v25 }
 0x922   : > { %26336 = vmatprep.mubr.msk.f32.mxu0 %vm522_vm0, %v31282_v55  ;;  %26348 = vmatpush3.msra.mxu0 %v26202_v24  ;;  %v26205_v45 = vpop.f32.mrf.mxu0 }
 0x923   : > { %26257 = vmatmul.mubr.msk.f32.gmra.mxu1 %vm522_vm0, %v31286_v35  ;;  %26363 = vmatprep.subr.mxu0 %v26205_v45 }
 0x924   : > { %26261 = vmatprep.mubr.msk.f32.mxu1 %vm522_vm0, %v31092_v39  ;;  %v31342_v63 = vpop.f32.mrf.mxu0 }
 0x925   : > { %26337 = vmatmul.mubr.msk.f32.gmra.mxu0 %vm522_vm0, %v31286_v35 }
 0x926   : > { %26349 = vmatprep.mubr.msk.f32.mxu0 %vm522_vm0, %v31092_v39  ;;  %v26208_v23 = vpop.f32.mrf.mxu0 }
 0x927   : > { %26262 = vmatmul.mubr.msk.f32.vlgmr.msra.gmra.mxu1 %vm522_vm0, %v31280_v14 }
 0x928   : > { %26264 = vmatprep.mubr.msk.f32.mxu1 %vm522_vm0, %v31282_v55  ;;  %26268 = vmatpush3.msra.mxu1 %v26187_v25  ;;  %v31360_v24 = vpop.f32.mrf.mxu0 }
 0x929   : > { %26350 = vmatmul.mubr.msk.f32.vlgmr.msra.gmra.mxu0 %vm522_vm0, %v31280_v14  ;;  %26275 = vmatprep.subr.mxu1 %v18516_v40 }
 0x92a   : > { %26352 = vmatprep.mubr.msk.f32.mxu0 %vm522_vm0, %v31282_v55  ;;  %26364 = vmatpush3.msra.mxu0 %v26205_v45  ;;  %v26211_v25 = vpop.f32.mrf.mxu0 }
 0x92b   : > { %26265 = vmatmul.mubr.msk.f32.gmra.mxu1 %vm522_vm0, %v31286_v35  ;;  %26379 = vmatprep.subr.mxu0 %v26208_v23 }
 0x92c   : > { %26269 = vmatprep.mubr.msk.f32.mxu1 %vm522_vm0, %v31092_v39  ;;  %v31379_v45 = vpop.f32.mrf.mxu0 }
 0x92d   : > { %26353 = vmatmul.mubr.msk.f32.gmra.mxu0 %vm522_vm0, %v31286_v35 }
 0x92e   : > { %26365 = vmatprep.mubr.msk.f32.mxu0 %vm522_vm0, %v31092_v39 }
 0x92f   : > { %26270 = vmatmul.mubr.msk.f32.vlgmr.msra.gmra.mxu1 %vm522_vm0, %v31280_v14 }
 0x930   : > { %26272 = vmatprep.mubr.msk.f32.mxu1 %vm522_vm0, %v31282_v55  ;;  %26276 = vmatpush3.msra.mxu1 %v18516_v40  ;;  %v26214_v40 = vpop.f32.mrf.mxu0 }
 0x931   : > { %26366 = vmatmul.mubr.msk.f32.vlgmr.msra.gmra.mxu0 %vm522_vm0, %v31280_v14  ;;  %26283 = vmatprep.subr.mxu1 %v31294_v26 }
 0x932   : > { %26368 = vmatprep.mubr.msk.f32.mxu0 %vm522_vm0, %v31282_v55  ;;  %26380 = vmatpush3.msra.mxu0 %v26208_v23  ;;  %v31399_v23 = vpop.f32.mrf.mxu0 }
 0x933   : > { %26273 = vmatmul.mubr.msk.f32.gmra.mxu1 %vm522_vm0, %v31286_v35  ;;  %26395 = vmatprep.subr.mxu0 %v26211_v25 }
 0x934   : > { %26277 = vmatprep.mubr.msk.f32.mxu1 %vm522_vm0, %v31092_v39 }
 0x935   : > { %26369 = vmatmul.mubr.msk.f32.gmra.mxu0 %vm522_vm0, %v31286_v35 }
 0x936   : > { %26381 = vmatprep.mubr.msk.f32.mxu0 %vm522_vm0, %v31092_v39 }
 0x937   : > { %26278 = vmatmul.mubr.msk.f32.vlgmr.msra.gmra.mxu1 %vm522_vm0, %v31280_v14 }
 0x938   : > { %26280 = vmatprep.mubr.msk.f32.mxu1 %vm522_vm0, %v31282_v55  ;;  %26284 = vmatpush3.msra.mxu1 %v31294_v26  ;;  %v26217_v26 = vpop.f32.mrf.mxu0 }
 0x939   : > { %26382 = vmatmul.mubr.msk.f32.vlgmr.msra.gmra.mxu0 %vm522_vm0, %v31280_v14  ;;  %26291 = vmatprep.subr.mxu1 %v31304_v37 }
 0x93a   : > { %26384 = vmatprep.mubr.msk.f32.mxu0 %vm522_vm0, %v31282_v55  ;;  %26396 = vmatpush3.msra.mxu0 %v26211_v25  ;;  %v31419_v25 = vpop.f32.mrf.mxu0 }
 0x93b   : > { %26281 = vmatmul.mubr.msk.f32.gmra.mxu1 %vm522_vm0, %v31286_v35  ;;  %26411 = vmatprep.subr.mxu0 %v26214_v40 }
 0x93c   : > { %26285 = vmatprep.mubr.msk.f32.mxu1 %vm522_vm0, %v31092_v39 }
 0x93d   : > { %26385 = vmatmul.mubr.msk.f32.gmra.mxu0 %vm522_vm0, %v31286_v35 }
 0x93e   : > { %26397 = vmatprep.mubr.msk.f32.mxu0 %vm522_vm0, %v31092_v39 }
 0x93f   : > { %26286 = vmatmul.mubr.msk.f32.vlgmr.msra.gmra.mxu1 %vm522_vm0, %v31280_v14 }
 0x940   : > { %26288 = vmatprep.mubr.msk.f32.mxu1 %vm522_vm0, %v31282_v55  ;;  %26292 = vmatpush3.msra.mxu1 %v31304_v37  ;;  %v26220_v37 = vpop.f32.mrf.mxu0 }
 0x941   : > { %26398 = vmatmul.mubr.msk.f32.vlgmr.msra.gmra.mxu0 %vm522_vm0, %v31280_v14  ;;  %26299 = vmatprep.subr.mxu1 %v31300_v36 }
 0x942   : > { %26400 = vmatprep.mubr.msk.f32.mxu0 %vm522_vm0, %v31282_v55  ;;  %26412 = vmatpush3.msra.mxu0 %v26214_v40  ;;  %v31439_v40 = vpop.f32.mrf.mxu0 }
 0x943   : > { %26289 = vmatmul.mubr.msk.f32.gmra.mxu1 %vm522_vm0, %v31286_v35  ;;  %26427 = vmatprep.subr.mxu0 %v26217_v26 }
 0x944   : > { %26293 = vmatprep.mubr.msk.f32.mxu1 %vm522_vm0, %v31092_v39 }
 0x945   : > { %26401 = vmatmul.mubr.msk.f32.gmra.mxu0 %vm522_vm0, %v31286_v35 }
 0x946   : > { %26413 = vmatprep.mubr.msk.f32.mxu0 %vm522_vm0, %v31092_v39 }
 0x947   : > { %26294 = vmatmul.mubr.msk.f32.vlgmr.msra.gmra.mxu1 %vm522_vm0, %v31280_v14 }
 0x948   : > { %26296 = vmatprep.mubr.msk.f32.mxu1 %vm522_vm0, %v31282_v55  ;;  %26300 = vmatpush3.msra.mxu1 %v31300_v36  ;;  %v26223_v36 = vpop.f32.mrf.mxu0 }
 0x949   : > { %26414 = vmatmul.mubr.msk.f32.vlgmr.msra.gmra.mxu0 %vm522_vm0, %v31280_v14  ;;  %26307 = vmatprep.subr.mxu1 %v31312_v33 }
 0x94a   : > { %26416 = vmatprep.mubr.msk.f32.mxu0 %vm522_vm0, %v31282_v55  ;;  %26428 = vmatpush3.msra.mxu0 %v26217_v26  ;;  %v31459_v26 = vpop.f32.mrf.mxu0 }
 0x94b   : > { %26297 = vmatmul.mubr.msk.f32.gmra.mxu1 %vm522_vm0, %v31286_v35  ;;  %26443 = vmatprep.subr.mxu0 %v26220_v37 }
 0x94c   : > { %26301 = vmatprep.mubr.msk.f32.mxu1 %vm522_vm0, %v31092_v39 }
 0x94d   : > { %26417 = vmatmul.mubr.msk.f32.gmra.mxu0 %vm522_vm0, %v31286_v35 }
 0x94e   : > { %26429 = vmatprep.mubr.msk.f32.mxu0 %vm522_vm0, %v31092_v39 }
 0x94f   : > { %26302 = vmatmul.mubr.msk.f32.vlgmr.msra.gmra.mxu1 %vm522_vm0, %v31280_v14 }
 0x950   : > { %26304 = vmatprep.mubr.msk.f32.mxu1 %vm522_vm0, %v31282_v55  ;;  %26308 = vmatpush3.msra.mxu1 %v31312_v33  ;;  %v26226_v33 = vpop.f32.mrf.mxu0 }
 0x951   : > { %26430 = vmatmul.mubr.msk.f32.vlgmr.msra.gmra.mxu0 %vm522_vm0, %v31280_v14  ;;  %26323 = vmatprep.subr.mxu1 %v31322_v44 }
 0x952   : > { %26432 = vmatprep.mubr.msk.f32.mxu0 %vm522_vm0, %v31282_v55  ;;  %26444 = vmatpush3.msra.mxu0 %v26220_v37  ;;  %v33259_v37 = vld [vmem:[#allocation24_spill] sm:$0xff] }
 0x953   : > { %26305 = vmatmul.mubr.msk.f32.gmra.mxu1 %vm522_vm0, %v31286_v35  ;;  %26459 = vmatprep.subr.mxu0 %v26223_v36 }
 0x954   : > { %26309 = vmatprep.mubr.msk.f32.mxu1 %vm522_vm0, %v31092_v39 }
 0x955   : > { %26433 = vmatmul.mubr.msk.f32.gmra.mxu0 %vm522_vm0, %v31286_v35 }
 0x956   : > { %26445 = vmatprep.mubr.msk.f32.mxu0 %vm522_vm0, %v31092_v39 }
 0x957   : > { %26310 = vmatmul.mubr.msk.f32.vlgmr.msra.gmra.mxu1 %vm522_vm0, %v31280_v14 }
 0x958   : > { %26312 = vmatprep.mubr.msk.f32.mxu1 %vm522_vm0, %v31282_v55  ;;  %26324 = vmatpush3.msra.mxu1 %v31322_v44  ;;  %v33256_v44 = vld [vmem:[#allocation84_spill] sm:$0xff] }
 0x959   : > { %26446 = vmatmul.mubr.msk.f32.vlgmr.msra.gmra.mxu0 %vm522_vm0, %v31280_v14  ;;  %26339 = vmatprep.subr.mxu1 %v31332_v54 }
 0x95a   : > { %26448 = vmatprep.mubr.msk.f32.mxu0 %vm522_vm0, %v31282_v55  ;;  %26460 = vmatpush3.msra.mxu0 %v26223_v36  ;;  %v33261_v36 = vld [vmem:[#allocation27_spill] sm:$0xff] }
 0x95b   : > { %26313 = vmatmul.mubr.msk.f32.gmra.mxu1 %vm522_vm0, %v31286_v35  ;;  %26475 = vmatprep.subr.mxu0 %v26226_v33 }
 0x95c   : > { %26325 = vmatprep.mubr.msk.f32.mxu1 %vm522_vm0, %v31092_v39 }
 0x95d   : > { %26449 = vmatmul.mubr.msk.f32.gmra.mxu0 %vm522_vm0, %v31286_v35 }
 0x95e   : > { %26461 = vmatprep.mubr.msk.f32.mxu0 %vm522_vm0, %v31092_v39 }
 0x95f   : > { %26326 = vmatmul.mubr.msk.f32.vlgmr.msra.gmra.mxu1 %vm522_vm0, %v31280_v14 }
 0x960   : > { %26328 = vmatprep.mubr.msk.f32.mxu1 %vm522_vm0, %v31282_v55  ;;  %26340 = vmatpush3.msra.mxu1 %v31332_v54  ;;  %v33255_v54 = vld [vmem:[#allocation15_spill] sm:$0xff] }
 0x961   : > { %26462 = vmatmul.mubr.msk.f32.vlgmr.msra.gmra.mxu0 %vm522_vm0, %v31280_v14  ;;  %26355 = vmatprep.subr.mxu1 %v31342_v63 }
 0x962   : > { %26464 = vmatprep.mubr.msk.f32.mxu0 %vm522_vm0, %v31282_v55  ;;  %26476 = vmatpush3.msra.mxu0 %v26226_v33  ;;  %v33264_v33 = vld [vmem:[#allocation92_spill] sm:$0xff] }
 0x963   : > { %26329 = vmatmul.mubr.msk.f32.gmra.mxu1 %vm522_vm0, %v31286_v35 }
 0x964   : > { %26341 = vmatprep.mubr.msk.f32.mxu1 %vm522_vm0, %v31092_v39 }
 0x965   : > { %26465 = vmatmul.mubr.msk.f32.gmra.mxu0 %vm522_vm0, %v31286_v35 }
 0x966   : > { %26477 = vmatprep.mubr.msk.f32.mxu0 %vm522_vm0, %v31092_v39 }
 0x967   : > { %26342 = vmatmul.mubr.msk.f32.vlgmr.msra.gmra.mxu1 %vm522_vm0, %v31280_v14 }
 0x968   : > { %26344 = vmatprep.mubr.msk.f32.mxu1 %vm522_vm0, %v31282_v55  ;;  %26356 = vmatpush3.msra.mxu1 %v31342_v63  ;;  %v18636_v63 = vpop.f32.mrf.mxu0 }
 0x969   : > { %26478 = vmatmul.mubr.msk.f32.vlgmr.msra.gmra.mxu0 %vm522_vm0, %v31280_v14  ;;  %26371 = vmatprep.subr.mxu1 %v31360_v24 }
 0x96a   : > { %26480 = vmatprep.mubr.msk.f32.mxu0 %vm522_vm0, %v31282_v55 }
 0x96b   : > { %26345 = vmatmul.mubr.msk.f32.gmra.mxu1 %vm522_vm0, %v31286_v35 }
 0x96c   : > { %26357 = vmatprep.mubr.msk.f32.mxu1 %vm522_vm0, %v31092_v39 }
 0x96d   : > { %26481 = vmatmul.mubr.msk.f32.gmra.mxu0 %vm522_vm0, %v31286_v35 }
 0x96f   : > { %26358 = vmatmul.mubr.msk.f32.vlgmr.msra.gmra.mxu1 %vm522_vm0, %v31280_v14 }
 0x970   : > { %26360 = vmatprep.mubr.msk.f32.mxu1 %vm522_vm0, %v31282_v55  ;;  %26372 = vmatpush3.msra.mxu1 %v31360_v24  ;;  %v31592_v24 = vadd.f32 %v33256_v44, %v33255_v54  ;;  %v31612_v54 = vpop.permute.xlu0 %21515  ;;  %v33266_v44 = vld [vmem:[#allocation39_spill] sm:$0xff] }
 0x971   : > { %26387 = vmatprep.subr.mxu1 %v31379_v45 }
 0x973   : > { %26361 = vmatmul.mubr.msk.f32.gmra.mxu1 %vm522_vm0, %v31286_v35 }
 0x974   : > { %26373 = vmatprep.mubr.msk.f32.mxu1 %vm522_vm0, %v31092_v39 }
 0x977   : > { %26374 = vmatmul.mubr.msk.f32.vlgmr.msra.gmra.mxu1 %vm522_vm0, %v31280_v14 }
 0x978   : > { %26376 = vmatprep.mubr.msk.f32.mxu1 %vm522_vm0, %v31282_v55  ;;  %26388 = vmatpush3.msra.mxu1 %v31379_v45  ;;  %v33257_v45 = vld [vmem:[#allocation16_spill] sm:$0xff] }
 0x979   : > { %26403 = vmatprep.subr.mxu1 %v31399_v23 }
 0x97b   : > { %26377 = vmatmul.mubr.msk.f32.gmra.mxu1 %vm522_vm0, %v31286_v35 }
 0x97c   : > { %26389 = vmatprep.mubr.msk.f32.mxu1 %vm522_vm0, %v31092_v39 }
 0x97f   : > { %26390 = vmatmul.mubr.msk.f32.vlgmr.msra.gmra.mxu1 %vm522_vm0, %v31280_v14 }
 0x980   : > { %26392 = vmatprep.mubr.msk.f32.mxu1 %vm522_vm0, %v31282_v55  ;;  %26404 = vmatpush3.msra.mxu1 %v31399_v23  ;;  %v33258_v23 = vld [vmem:[#allocation86_spill] sm:$0xff] }
 0x981   : > { %26419 = vmatprep.subr.mxu1 %v31419_v25 }
 0x983   : > { %26393 = vmatmul.mubr.msk.f32.gmra.mxu1 %vm522_vm0, %v31286_v35 }
 0x984   : > { %26405 = vmatprep.mubr.msk.f32.mxu1 %vm522_vm0, %v31092_v39 }
 0x987   : > { %26406 = vmatmul.mubr.msk.f32.vlgmr.msra.gmra.mxu1 %vm522_vm0, %v31280_v14 }
 0x988   : > { %26408 = vmatprep.mubr.msk.f32.mxu1 %vm522_vm0, %v31282_v55  ;;  %26420 = vmatpush3.msra.mxu1 %v31419_v25  ;;  %v31596_v25 = vadd.f32 %v33258_v23, %v33257_v45  ;;  %v31616_v45 = vadd.f32 %v33267_v2, %v33266_v44  ;;  %v33269_v23 = vld [vmem:[#allocation50_spill] sm:$0xff] }
 0x989   : > { %26435 = vmatprep.subr.mxu1 %v31439_v40  ;;  %v33282_v2 = vld [vmem:[#allocation114_spill] sm:$0xff] }
 0x98a   : > { %33268 = vst [vmem:[#allocation84_spill] sm:$0xff] %v31616_v45  ;;  %v31637_v44 = vadd.f32 %v33282_v2, %v33281_v41  ;;  %v33296_v41 = vld [vmem:[#allocation13_spill] sm:$0xff] }
 0x98b   : > { %26409 = vmatmul.mubr.msk.f32.gmra.mxu1 %vm522_vm0, %v31286_v35  ;;  %v33297_v2 = vld [vmem:[#allocation153_spill] sm:$0xff] }
 0x98c   : > { %26421 = vmatprep.mubr.msk.f32.mxu1 %vm522_vm0, %v31092_v39  ;;  %33283 = vst [vmem:[#allocation27_spill] sm:$0xff] %v31637_v44  ;;  %v3411_v44 = vadd.f32 %v33297_v2, %v33296_v41  ;;  %v33307_v41 = vld [vmem:[#allocation169_spill] sm:$0xff] }
 0x98f   : > { %26422 = vmatmul.mubr.msk.f32.vlgmr.msra.gmra.mxu1 %vm522_vm0, %v31280_v14 }
 0x990   : > { %26424 = vmatprep.mubr.msk.f32.mxu1 %vm522_vm0, %v31282_v55  ;;  %26436 = vmatpush3.msra.mxu1 %v31439_v40  ;;  %v33260_v40 = vld [vmem:[#allocation88_spill] sm:$0xff] }
 0x991   : > { %26451 = vmatprep.subr.mxu1 %v31459_v26 }
 0x993   : > { %26425 = vmatmul.mubr.msk.f32.gmra.mxu1 %vm522_vm0, %v31286_v35 }
 0x994   : > { %26437 = vmatprep.mubr.msk.f32.mxu1 %vm522_vm0, %v31092_v39 }
 0x997   : > { %26438 = vmatmul.mubr.msk.f32.vlgmr.msra.gmra.mxu1 %vm522_vm0, %v31280_v14 }
 0x998   : > { %26440 = vmatprep.mubr.msk.f32.mxu1 %vm522_vm0, %v31282_v55  ;;  %26452 = vmatpush3.msra.mxu1 %v31459_v26 }
 0x999   : > { %26467 = vmatprep.subr.mxu1 %v18636_v63 }
 0x99b   : > { %26441 = vmatmul.mubr.msk.f32.gmra.mxu1 %vm522_vm0, %v31286_v35 }
 0x99c   : > { %26453 = vmatprep.mubr.msk.f32.mxu1 %vm522_vm0, %v31092_v39 }
 0x99f   : > { %26454 = vmatmul.mubr.msk.f32.vlgmr.msra.gmra.mxu1 %vm522_vm0, %v31280_v14 }
 0x9a0   : > { %26456 = vmatprep.mubr.msk.f32.mxu1 %vm522_vm0, %v31282_v55  ;;  %26468 = vmatpush3.msra.mxu1 %v18636_v63 }
 0x9a3   : > { %26457 = vmatmul.mubr.msk.f32.gmra.mxu1 %vm522_vm0, %v31286_v35 }
 0x9a4   : > { %26469 = vmatprep.mubr.msk.f32.mxu1 %vm522_vm0, %v31092_v39  ;;  %v31600_v39 = vadd.f32 %v33260_v40, %v33259_v37  ;;  %v31620_v37 = vadd.f32 %v33270_v1, %v33269_v23  ;;  %v33272_v40 = vld [vmem:[#allocation54_spill] sm:$0xff] }
 0x9a5   : > { %v33285_v1 = vld [vmem:[#allocation118_spill] sm:$0xff] }
 0x9a6   : > { %33271 = vst [vmem:[#allocation16_spill] sm:$0xff] %v31620_v37  ;;  %v31641_v23 = vadd.f32 %v33285_v1, %v33284_v56  ;;  %v33298_v1 = vld [vmem:[#allocation14_spill] sm:$0xff]  ;;  %v33328_v37 = vld [vmem:[#allocation81_spill] sm:$0xff] }
 0x9a7   : > { %26470 = vmatmul.mubr.msk.f32.vlgmr.msra.gmra.mxu1 %vm522_vm0, %v31280_v14  ;;  %v33262_v14 = vld [vmem:[#allocation90_spill] sm:$0xff] }
 0x9a8   : > { %26472 = vmatprep.mubr.msk.f32.mxu1 %vm522_vm0, %v31282_v55  ;;  %v31604_v26 = vadd.f32 %v33262_v14, %v33261_v36  ;;  %v33263_v55 = vld [vmem:[#allocation36_spill] sm:$0xff]  ;;  %v31624_v36 = vadd.f32 %v33273_v3, %v33272_v40  ;;  %v33275_v14 = vld [vmem:[#allocation65_spill] sm:$0xff]  ;;  %33286 = vst [vmem:[#allocation90_spill] sm:$0xff] %v31641_v23  ;;  %v33288_v3 = vld [vmem:[#allocation122_spill] sm:$0xff] }
 0x9a9   : > { %v31608_v63 = vadd.f32 %v33264_v33, %v33263_v55  ;;  %v31628_v55 = vadd.f32 %v33276_v34, %v33275_v14  ;;  %v33278_v33 = vld [vmem:[#allocation68_spill] sm:$0xff]  ;;  %v31645_v40 = vadd.f32 %v33288_v3, %v33287_v0  ;;  %v31647_v34 = vpop.permute.xlu1 %21520  ;;  %v33290_v14 = vld [vmem:[#allocation25_spill] sm:$0xff]  ;;  %v33300_v3 = vld [vmem:[#allocation18_spill] sm:$0xff] }
 0x9aa   : > { %33274 = vst [vmem:[#allocation86_spill] sm:$0xff] %v31624_v36  ;;  %v33299_v23 = vld [vmem:[#allocation157_spill] sm:$0xff] }
 0x9ab   : > { %26473 = vmatmul.mubr.msk.f32.gmra.mxu1 %vm522_vm0, %v31286_v35  ;;  %v31610_v35 = vpop.f32.mrf.mxu1  ;;  %33277 = vst [vmem:[#allocation24_spill] sm:$0xff] %v31628_v55  ;;  %33289 = vst [vmem:[#allocation36_spill] sm:$0xff] %v31645_v40  ;;  %v33291_v55 = vld [vmem:[#allocation126_spill] sm:$0xff]  ;;  %v3421_v0 = vadd.f32 %v33299_v23, %v33298_v1  ;;  %v33301_v40 = vld [vmem:[#allocation160_spill] sm:$0xff] }
 0x9ac   : > { %33265 = vst [vmem:[#allocation15_spill] sm:$0xff] %v31610_v35  ;;  %v33279_v35 = vld [vmem:[#allocation110_spill] sm:$0xff]  ;;  %v31651_v49 = vadd.f32 %v33291_v55, %v33290_v14  ;;  %v31664_v28 = vadd.f32 %v33301_v40, %v33300_v3  ;;  %v31668_v55 = vadd.f32 %v33303_v58, %v33302_v31  ;;  %v33310_v3 = vld [vmem:[#allocation173_spill] sm:$0xff]  ;;  %v33313_v31 = vld [vmem:[#allocation176_spill] sm:$0xff] }
 0x9ad   : > { %v31633_v15 = vadd.f32 %v33279_v35, %v33278_v33  ;;  %v33293_v35 = vld [vmem:[#allocation28_spill] sm:$0xff]  ;;  %v33294_v33 = vld [vmem:[#allocation129_spill] sm:$0xff]  ;;  %v33304_v14 = vld [vmem:[#allocation30_spill] sm:$0xff] }
 0x9ae   : > { %33292 = vst [vmem:[#allocation92_spill] sm:$0xff] %v31651_v49  ;;  %v33305_v49 = vld [vmem:[#allocation166_spill] sm:$0xff] }
 0x9af   : > { %33280 = vst [vmem:[#allocation88_spill] sm:$0xff] %v31633_v15  ;;  %v31655_v15 = vadd.f32 %v33294_v33, %v33293_v35  ;;  %v31672_v35 = vadd.f32 %v33305_v49, %v33304_v14  ;;  %v33309_v1 = vld [vmem:[#allocation42_spill] sm:$0xff] }
 0x9b0   : > { %v31683_v52 = vadd.f32 %v33310_v3, %v33309_v1  ;;  %v33312_v58 = vld [vmem:[#allocation46_spill] sm:$0xff]  ;;  %v33323_v1 = vld [vmem:[#allocation159_spill] sm:$0xff] }
 0x9b1   : > { %33295 = vst [vmem:[#allocation39_spill] sm:$0xff] %v31655_v15  ;;  %v33306_v15 = vld [vmem:[#allocation33_spill] sm:$0xff]  ;;  %v31687_v36 = vadd.f32 %v33313_v31, %v33312_v58  ;;  %v33315_v49 = vld [vmem:[#allocation58_spill] sm:$0xff] }
 0x9b2   : > { %v31676_v2 = vadd.f32 %v33307_v41, %v33306_v15  ;;  %33311 = vst [vmem:[#allocation94_spill] sm:$0xff] %v31683_v52  ;;  %v33316_v14 = vld [vmem:[#allocation178_spill] sm:$0xff]  ;;  %v33319_v41 = vld [vmem:[#allocation180_spill] sm:$0xff] }
 0x9b3   : > { %33314 = vst [vmem:[#allocation50_spill] sm:$0xff] %v31687_v36  ;;  %v31691_v20 = vadd.f32 %v33316_v14, %v33315_v49  ;;  %v33318_v15 = vld [vmem:[#allocation62_spill] sm:$0xff]  ;;  %v33337_v36 = vld [vmem:[#allocation187_spill] sm:$0xff]  ;;  %v33339_v52 = vld [vmem:[#allocation188_spill] sm:$0xff] }
 0x9b4   : > { %v31695_v29 = vadd.f32 %v33319_v41, %v33318_v15  ;;  %v33324_v49 = vld [vmem:[#allocation74_spill] sm:$0xff]  ;;  %v33326_v41 = vld [vmem:[#allocation79_spill] sm:$0xff] }
 0x9b5   : > { %33317 = vst [vmem:[#allocation98_spill] sm:$0xff] %v31691_v20  ;;  %v33325_v14 = vld [vmem:[#allocation182_spill] sm:$0xff] }
 0x9b6   : > { %33320 = vst [vmem:[#allocation54_spill] sm:$0xff] %v31695_v29  ;;  %v4271_v15 = vadd.f32 %v33325_v14, %v33324_v49  ;;  %v33327_v29 = vld [vmem:[#allocation183_spill] sm:$0xff] }
 0x9b7   : > { %v31711_v20 = vadd.f32 %v33327_v29, %v33326_v41  ;;  %v33334_v41 = vld [vmem:[#allocation85_spill] sm:$0xff] }
 0x9c7   : > { %v26231_v53 = vpop.f32.mrf.mxu1 }
 0x9c8   : > { %v21382_v56 = vadd.f32 %v26231_v53, %v30913_v12  ;;  %v33308_v12 = vld [vmem:[#allocation210_spill] sm:$0xff] }
 0x9c9   : > { %v18727_v33 = vpop.f32.mrf.mxu1  ;;  %v8961_v53 = vadd.f32 %v33308_v12, %v3411_v44 }
 0x9ca   : > { %v21534_v23 = vadd.f32 %v31647_v34, %v21382_v56  ;;  %v21381_v40 = vadd.f32 %v18727_v33, %v30917_v18  ;;  %v31697_v56 = vpop.permute.xlu0 %21530  ;;  %v33321_v18 = vld [vmem:[#allocation71_spill] sm:$0xff]  ;;  %v33322_v33 = vld [vmem:[#allocation181_spill] sm:$0xff] }
 0x9cb   : > { %v26234_v44 = vpop.f32.mrf.mxu1  ;;  %v4261_v12 = vadd.f32 %v33322_v33, %v33321_v18  ;;  %v12067_v3 = vadd.f32 %v33323_v1, %v8961_v53  ;;  %v33329_v18 = vld [vmem:[#allocation184_spill] sm:$0xff]  ;;  %v33330_v53 = vld [vmem:[#allocation83_spill] sm:$0xff]  ;;  %v33331_v1 = vld [vmem:[#allocation185_spill] sm:$0xff] }
 0x9cc   : > { %21662 = vst [vmem:[%s31702_s11 + $0x8] sm:$0xff] %v21534_v23  ;;  %v21533_v58 = vadd.f32 %v31612_v54, %v21381_v40  ;;  %v21384_v31 = vadd.f32 %v26234_v44, %v30921_v32  ;;  %v31715_v33 = vadd.f32 %v33329_v18, %v33328_v37  ;;  %v31719_v50 = vadd.f32 %v33331_v1, %v33330_v53  ;;  %v31721_v40 = vpop.permute.xlu1 %21525  ;;  %v33332_v32 = vld [vmem:[#allocation211_spill] sm:$0xff]  ;;  %v33335_v37 = vld [vmem:[#allocation186_spill] sm:$0xff]  ;;  %v33338_v1 = vld [vmem:[#allocation89_spill] sm:$0xff] }
 0x9cd   : > { %v18737_v23 = vpop.f32.mrf.mxu1  ;;  %v8963_v44 = vadd.f32 %v33332_v32, %v3421_v0  ;;  %v15173_v49 = vadd.f32 %v33333_v13, %v12067_v3  ;;  %v31730_v18 = vadd.f32 %v33335_v37, %v33334_v41  ;;  %v31734_v53 = vadd.f32 %v33337_v36, %v33336_v9  ;;  %v33340_v0 = vld [vmem:[#allocation91_spill] sm:$0xff]  ;;  %v33341_v13 = vld [vmem:[#allocation189_spill] sm:$0xff]  ;;  %v33344_v41 = vld [vmem:[#allocation190_spill] sm:$0xff] }
 0x9ce   : > { %21661 = vst [vmem:[%s31702_s11] sm:$0xff] %v21533_v58  ;;  %v21536_v29 = vadd.f32 %v31697_v56, %v21384_v31  ;;  %v21383_v14 = vadd.f32 %v18737_v23, %v30925_v43  ;;  %v31738_v8 = vadd.f32 %v33339_v52, %v33338_v1  ;;  %v31742_v3 = vadd.f32 %v33341_v13, %v33340_v0  ;;  %v33342_v31 = vld [vmem:[#allocation165_spill] sm:$0xff]  ;;  %v33346_v1 = vld [vmem:[#allocation191_spill] sm:$0xff]  ;;  %v33349_v13 = vld [vmem:[#allocation192_spill] sm:$0xff] }
 0x9cf   : > { %v26239_v58 = vpop.f32.mrf.mxu1  ;;  %v12069_v43 = vadd.f32 %v33342_v31, %v8963_v44  ;;  %v18279_v23 = vadd.f32 %v30932_v57, %v15173_v49  ;;  %v33343_v36 = vld [vmem:[#allocation93_spill] sm:$0xff] }
 0x9d0   : > { %21664 = vst [vmem:[%s31702_s11 + $0x18] sm:$0xff] %v21536_v29  ;;  %v21535_v32 = vadd.f32 %v31721_v40, %v21383_v14  ;;  %v21386_v9 = vadd.f32 %v26239_v58, %v30929_v46  ;;  %v31751_v37 = vadd.f32 %v33344_v41, %v33343_v36  ;;  %v33345_v52 = vld [vmem:[#allocation97_spill] sm:$0xff]  ;;  %v33354_v46 = vld [vmem:[#allocation212_spill] sm:$0xff] }
 0x9d1   : > { %v31755_v38 = vadd.f32 %v33346_v1, %v33345_v52  ;;  %v33348_v0 = vld [vmem:[#allocation101_spill] sm:$0xff]  ;;  %v18812_v29 = vpop.f32.mrf.mxu1  ;;  %v8965_v14 = vadd.f32 %v33354_v46, %v31592_v24  ;;  %v33355_v58 = vld [vmem:[#allocation64_spill] sm:$0xff]  ;;  %v33357_v1 = vld [vmem:[#allocation194_spill] sm:$0xff] }
 0x9d2   : > { %v31759_v45 = vadd.f32 %v33349_v13, %v33348_v0  ;;  %v33351_v44 = vld [vmem:[#allocation105_spill] sm:$0xff]  ;;  %v15175_v31 = vadd.f32 %v33355_v58, %v12069_v43  ;;  %21663 = vst [vmem:[%s31702_s11 + $0x10] sm:$0xff] %v21535_v32  ;;  %v21538_v36 = vadd.f32 %v31647_v34, %v21386_v9  ;;  %v21385_v41 = vadd.f32 %v18812_v29, %v18279_v23  ;;  %v33359_v13 = vld [vmem:[#allocation196_spill] sm:$0xff] }
 0x9d3   : > { %33347 = vst [vmem:[#allocation102_spill] sm:$0xff] %v31755_v38  ;;  %v33352_v57 = vld [vmem:[#allocation193_spill] sm:$0xff]  ;;  %v26242_v43 = vpop.f32.mrf.mxu1  ;;  %v33364_v32 = vld [vmem:[#allocation76_spill] sm:$0xff] }
 0x9d4   : > { %33350 = vst [vmem:[#allocation65_spill] sm:$0xff] %v31759_v45  ;;  %v31763_v49 = vadd.f32 %v33352_v57, %v33351_v44  ;;  %v33356_v52 = vld [vmem:[#allocation109_spill] sm:$0xff]  ;;  %v33362_v57 = vld [vmem:[#allocation198_spill] sm:$0xff]  ;;  %v12071_v58 = vadd.f32 %v33364_v32, %v8965_v14  ;;  %v18281_v23 = vadd.f32 %v30939_v47, %v15175_v31  ;;  %21666 = vst [vmem:[%s31702_s11 + $0x28] sm:$0xff] %v21538_v36 }
 0x9d5   : > { %v31772_v38 = vadd.f32 %v33357_v1, %v33356_v52  ;;  %v33358_v0 = vld [vmem:[#allocation113_spill] sm:$0xff]  ;;  %v21537_v9 = vadd.f32 %v31612_v54, %v21385_v41  ;;  %v21388_v29 = vadd.f32 %v26242_v43, %v30936_v21  ;;  %v33366_v1 = vld [vmem:[#allocation200_spill] sm:$0xff]  ;;  %v33374_v47 = vld [vmem:[#allocation214_spill] sm:$0xff]  ;;  %v18822_v31 = vpop.f32.mrf.mxu1 }
 0x9d6   : > { %33353 = vst [vmem:[#allocation106_spill] sm:$0xff] %v31763_v49  ;;  %v31776_v45 = vadd.f32 %v33359_v13, %v33358_v0  ;;  %v33361_v44 = vld [vmem:[#allocation117_spill] sm:$0xff]  ;;  %v8967_v14 = vadd.f32 %v33374_v47, %v31596_v25  ;;  %v33375_v36 = vld [vmem:[#allocation80_spill] sm:$0xff]  ;;  %v33376_v21 = vld [vmem:[#allocation67_spill] sm:$0xff] }
 0x9d7   : > { %v31780_v49 = vadd.f32 %v33362_v57, %v33361_v44  ;;  %v33363_v24 = vld [vmem:[#allocation213_spill] sm:$0xff]  ;;  %v33371_v57 = vld [vmem:[#allocation130_spill] sm:$0xff]  ;;  %v15177_v43 = vadd.f32 %v33376_v21, %v12071_v58  ;;  %21665 = vst [vmem:[%s31702_s11 + $0x20] sm:$0xff] %v21537_v9  ;;  %v21540_v32 = vadd.f32 %v31697_v56, %v21388_v29  ;;  %v33382_v47 = vld [vmem:[#allocation12_spill] sm:$0xff] }
 0x9d8   : > { %33360 = vst [vmem:[#allocation68_spill] sm:$0xff] %v31776_v45  ;;  %v9001_v46 = vadd.f32 %v33363_v24, %v4261_v12  ;;  %v33365_v52 = vld [vmem:[#allocation121_spill] sm:$0xff]  ;;  %v33369_v45 = vld [vmem:[#allocation202_spill] sm:$0xff]  ;;  %v33372_v12 = vld [vmem:[#allocation203_spill] sm:$0xff] }
 0x9d9   : > { %v31790_v0 = vadd.f32 %v33366_v1, %v33365_v52  ;;  %v33368_v13 = vld [vmem:[#allocation125_spill] sm:$0xff]  ;;  %v31798_v24 = vadd.f32 %v33372_v12, %v33371_v57  ;;  %v21387_v52 = vadd.f32 %v18822_v31, %v18281_v23  ;;  %v33377_v1 = vld [vmem:[#allocation136_spill] sm:$0xff]  ;;  %v33381_v12 = vld [vmem:[#allocation215_spill] sm:$0xff]  ;;  %v18283_v9 = vadd.f32 %v30946_v16, %v15177_v43  ;;  %21668 = vst [vmem:[%s31702_s11 + $0x38] sm:$0xff] %v21540_v32 }
 0x9da   : > { %v31794_v44 = vadd.f32 %v33369_v45, %v33368_v13  ;;  %v12107_v41 = vadd.f32 %v33375_v36, %v9001_v46  ;;  %v33378_v45 = vld [vmem:[#allocation205_spill] sm:$0xff]  ;;  %v9003_v25 = vadd.f32 %v33381_v12, %v4271_v15  ;;  %v26247_v46 = vpop.f32.mrf.mxu1  ;;  %v33383_v36 = vld [vmem:[#allocation162_spill] sm:$0xff]  ;;  %v33384_v31 = vld [vmem:[#allocation148_spill] sm:$0xff] }
 0x9db   : > { %33367 = vst [vmem:[#allocation110_spill] sm:$0xff] %v31790_v0  ;;  %33373 = vst [vmem:[#allocation114_spill] sm:$0xff] %v31798_v24  ;;  %v31808_v13 = vadd.f32 %v33378_v45, %v33377_v1  ;;  %v33380_v0 = vld [vmem:[#allocation207_spill] sm:$0xff]  ;;  %v12073_v24 = vadd.f32 %v33382_v47, %v8967_v14  ;;  %v21539_v23 = vadd.f32 %v31721_v40, %v21387_v52  ;;  %v33385_v21 = vld [vmem:[#allocation209_spill] sm:$0xff]  ;;  %v26319_v47 = vpop.f32.mrf.mxu0 }
 0x9dc   : > { %33370 = vst [vmem:[#allocation19_spill] sm:$0xff] %v31794_v44  ;;  %v33379_v44 = vld [vmem:[#allocation142_spill] sm:$0xff]  ;;  %v15213_v58 = vadd.f32 %v33383_v36, %v12107_v41  ;;  %v21390_v29 = vadd.f32 %v26247_v46, %v30943_v7  ;;  %v31823_v1 = vadd.f32 %v33385_v21, %v33384_v31  ;;  %v33387_v15 = vld [vmem:[#allocation231_spill] sm:$0xff]  ;;  %v18897_v41 = vpop.f32.mrf.mxu1  ;;  %v21426_v32 = vadd.f32 %v26319_v47, %v30949_v27  ;;  %v33389_v52 = vld [vmem:[#allocation217_spill] sm:$0xff] }
 0x9dd   : > { %v31812_v57 = vadd.f32 %v33380_v0, %v33379_v44  ;;  %v33386_v0 = vld [vmem:[#allocation216_spill] sm:$0xff]  ;;  %v12109_v14 = vadd.f32 %v33387_v15, %v9003_v25  ;;  %v33388_v45 = vld [vmem:[#allocation70_spill] sm:$0xff]  ;;  %21667 = vst [vmem:[%s31702_s11 + $0x30] sm:$0xff] %v21539_v23  ;;  %v21389_v7 = vadd.f32 %v18897_v41, %v18283_v9  ;;  %v9009_v46 = vadd.f32 %v33389_v52, %v31711_v20  ;;  %v33390_v36 = vld [vmem:[#allocation233_spill] sm:$0xff] }
 0x9de   : > { %v8969_v44 = vadd.f32 %v33386_v0, %v31664_v28  ;;  %v15179_v12 = vadd.f32 %v33388_v45, %v12073_v24  ;;  %v18319_v16 = vadd.f32 %v30952_v59, %v15213_v58  ;;  %v21542_v43 = vadd.f32 %v31647_v34, %v21390_v29  ;;  %v33391_v31 = vld [vmem:[#allocation73_spill] sm:$0xff]  ;;  %v26250_v21 = vpop.f32.mrf.mxu1  ;;  %v19662_v0 = vpop.f32.mrf.mxu0  ;;  %v33392_v20 = vld [vmem:[#allocation218_spill] sm:$0xff]  ;;  %v33393_v29 = vld [vmem:[#allocation235_spill] sm:$0xff] }
 0x9df   : > { %v15215_v25 = vadd.f32 %v33391_v31, %v12109_v14  ;;  %v21541_v59 = vadd.f32 %v31612_v54, %v21389_v7  ;;  %v21578_v58 = vadd.f32 %v31647_v34, %v21426_v32  ;;  %v21392_v27 = vadd.f32 %v26250_v21, %v30955_v30  ;;  %v33394_v15 = vld [vmem:[#allocation168_spill] sm:$0xff]  ;;  %v33396_v7 = vld [vmem:[#allocation237_spill] sm:$0xff] }
 0x9e0   : > { %v12075_v28 = vadd.f32 %v33390_v36, %v8969_v44  ;;  %v18285_v24 = vadd.f32 %v30958_v4, %v15179_v12  ;;  %21670 = vst [vmem:[%s31702_s11 + $0x48] sm:$0xff] %v21542_v43  ;;  %v21425_v9 = vadd.f32 %v19662_v0, %v18319_v16  ;;  %v8971_v23 = vadd.f32 %v33392_v20, %v31668_v55  ;;  %v18907_v45 = vpop.f32.mrf.mxu1  ;;  %v26322_v12 = vpop.f32.mrf.mxu0  ;;  %v33395_v55 = vld [vmem:[#allocation219_spill] sm:$0xff]  ;;  %v33397_v52 = vld [vmem:[#allocation172_spill] sm:$0xff] }
 0x9e1   : > { %v12115_v44 = vadd.f32 %v33393_v29, %v9009_v46  ;;  %v18321_v4 = vadd.f32 %v30963_v60, %v15215_v25  ;;  %21669 = vst [vmem:[%s31702_s11 + $0x40] sm:$0xff] %v21541_v59  ;;  %21706 = vst [vmem:[%s31702_s11 + $0x168] sm:$0xff] %v21578_v58  ;;  %v21544_v41 = vadd.f32 %v31697_v56, %v21392_v27  ;;  %v33400_v59 = vld [vmem:[#allocation239_spill] sm:$0xff] }
 0x9e2   : > { %v15181_v14 = vadd.f32 %v33394_v15, %v12075_v28  ;;  %v21577_v30 = vadd.f32 %v31612_v54, %v21425_v9  ;;  %v21391_v47 = vadd.f32 %v18907_v45, %v18285_v24  ;;  %v21428_v16 = vadd.f32 %v26322_v12, %v30961_v42  ;;  %v26255_v36 = vpop.f32.mrf.mxu1  ;;  %v19672_v28 = vpop.f32.mrf.mxu0  ;;  %v33398_v42 = vld [vmem:[#allocation339_spill] sm:$0xff]  ;;  %v33404_v12 = vld [vmem:[#allocation241_spill] sm:$0xff] }
 0x9e3   : > { %v9011_v43 = vadd.f32 %v33395_v55, %v31715_v33  ;;  %v12077_v32 = vadd.f32 %v33396_v7, %v8971_v23  ;;  %v15221_v46 = vadd.f32 %v33397_v52, %v12115_v44  ;;  %21672 = vst [vmem:[%s31702_s11 + $0x58] sm:$0xff] %v21544_v41  ;;  %v21394_v24 = vadd.f32 %v26255_v36, %v33398_v42  ;;  %v33399_v33 = vld [vmem:[#allocation220_spill] sm:$0xff]  ;;  %v33401_v27 = vld [vmem:[#allocation11_spill] sm:$0xff] }
 0x9e4   : > { %v18287_v60 = vadd.f32 %v30970_v51, %v15181_v14  ;;  %21705 = vst [vmem:[%s31702_s11 + $0x160] sm:$0xff] %v21577_v30  ;;  %v21543_v31 = vadd.f32 %v31721_v40, %v21391_v47  ;;  %v21580_v25 = vadd.f32 %v31697_v56, %v21428_v16  ;;  %v21427_v21 = vadd.f32 %v19672_v28, %v18321_v4  ;;  %v18982_v20 = vpop.f32.mrf.mxu1  ;;  %v26335_v23 = vpop.f32.mrf.mxu0  ;;  %v33402_v14 = vld [vmem:[#allocation340_spill] sm:$0xff]  ;;  %v33405_v30 = vld [vmem:[#allocation82_spill] sm:$0xff]  ;;  %v33408_v36 = vld [vmem:[#allocation243_spill] sm:$0xff] }
 0x9e5   : > { %v8973_v0 = vadd.f32 %v33399_v33, %v31600_v39  ;;  %v12117_v58 = vadd.f32 %v33400_v59, %v9011_v43  ;;  %v15183_v9 = vadd.f32 %v33401_v27, %v12077_v32  ;;  %v18327_v51 = vadd.f32 %v30975_v5, %v15221_v46  ;;  %v33403_v39 = vld [vmem:[#allocation221_spill] sm:$0xff]  ;;  %v33410_v59 = vld [vmem:[#allocation342_spill] sm:$0xff] }
 0x9e6   : > { %21671 = vst [vmem:[%s31702_s11 + $0x50] sm:$0xff] %v21543_v31  ;;  %21708 = vst [vmem:[%s31702_s11 + $0x178] sm:$0xff] %v21580_v25  ;;  %v21546_v29 = vadd.f32 %v31647_v34, %v21394_v24  ;;  %v21579_v44 = vadd.f32 %v31721_v40, %v21427_v21  ;;  %v21393_v15 = vadd.f32 %v18982_v20, %v18287_v60  ;;  %v26258_v16 = vpop.f32.mrf.mxu1  ;;  %v19832_v55 = vpop.f32.mrf.mxu0  ;;  %v33406_v32 = vld [vmem:[#allocation341_spill] sm:$0xff]  ;;  %v33409_v31 = vld [vmem:[#allocation232_spill] sm:$0xff] }
 0x9e7   : > { %v21434_v4 = vadd.f32 %v26335_v23, %v33402_v14  ;;  %v9017_v45 = vadd.f32 %v33403_v39, %v31719_v50  ;;  %v12079_v41 = vadd.f32 %v33404_v12, %v8973_v0  ;;  %v15223_v47 = vadd.f32 %v33405_v30, %v12117_v58  ;;  %v33407_v50 = vld [vmem:[#allocation222_spill] sm:$0xff] }
 0x9e8   : > { %v18289_v5 = vadd.f32 %v30982_v22, %v15183_v9  ;;  %21674 = vst [vmem:[%s31702_s11 + $0x68] sm:$0xff] %v21546_v29  ;;  %21707 = vst [vmem:[%s31702_s11 + $0x170] sm:$0xff] %v21579_v44  ;;  %v21545_v43 = vadd.f32 %v31612_v54, %v21393_v15  ;;  %v21396_v52 = vadd.f32 %v26258_v16, %v33406_v32  ;;  %v18992_v42 = vpop.f32.mrf.mxu1  ;;  %v26338_v24 = vpop.f32.mrf.mxu0  ;;  %v33412_v9 = vld [vmem:[#allocation245_spill] sm:$0xff]  ;;  %v33413_v20 = vld [vmem:[#allocation234_spill] sm:$0xff] }
 0x9e9   : > { %v21586_v7 = vadd.f32 %v31647_v34, %v21434_v4  ;;  %v21433_v46 = vadd.f32 %v19832_v55, %v18327_v51  ;;  %v8975_v60 = vadd.f32 %v33407_v50, %v31604_v26  ;;  %v12123_v28 = vadd.f32 %v33408_v36, %v9017_v45  ;;  %v33411_v26 = vld [vmem:[#allocation223_spill] sm:$0xff] }
 0x9ea   : > { %v15185_v25 = vadd.f32 %v33409_v31, %v12079_v41  ;;  %v18329_v22 = vadd.f32 %v30987_v11, %v15223_v47  ;;  %21673 = vst [vmem:[%s31702_s11 + $0x60] sm:$0xff] %v21545_v43  ;;  %v21548_v21 = vadd.f32 %v31697_v56, %v21396_v52  ;;  %v21395_v0 = vadd.f32 %v18992_v42, %v18289_v5  ;;  %v26263_v29 = vpop.f32.mrf.mxu1  ;;  %v19842_v44 = vpop.f32.mrf.mxu0  ;;  %v33414_v4 = vld [vmem:[#allocation343_spill] sm:$0xff]  ;;  %v33417_v47 = vld [vmem:[#allocation236_spill] sm:$0xff] }
 0x9eb   : > { %21714 = vst [vmem:[%s31702_s11 + $0x1a8] sm:$0xff] %v21586_v7  ;;  %v21585_v33 = vadd.f32 %v31612_v54, %v21433_v46  ;;  %v21436_v58 = vadd.f32 %v26338_v24, %v33410_v59  ;;  %v9019_v27 = vadd.f32 %v33411_v26, %v31730_v18  ;;  %v12081_v51 = vadd.f32 %v33412_v9, %v8975_v60  ;;  %v33415_v18 = vld [vmem:[#allocation224_spill] sm:$0xff]  ;;  %v33416_v41 = vld [vmem:[#allocation247_spill] sm:$0xff]  ;;  %v33420_v60 = vld [vmem:[#allocation249_spill] sm:$0xff] }
 0x9ec   : > { %v15229_v23 = vadd.f32 %v33413_v20, %v12123_v28  ;;  %v18291_v11 = vadd.f32 %v30994_v17, %v15185_v25  ;;  %21676 = vst [vmem:[%s31702_s11 + $0x78] sm:$0xff] %v21548_v21  ;;  %v21547_v15 = vadd.f32 %v31721_v40, %v21395_v0  ;;  %v21398_v39 = vadd.f32 %v26263_v29, %v33414_v4  ;;  %v19067_v16 = vpop.f32.mrf.mxu1  ;;  %v26351_v55 = vpop.f32.mrf.mxu0  ;;  %v33418_v52 = vld [vmem:[#allocation344_spill] sm:$0xff]  ;;  %v33421_v28 = vld [vmem:[#allocation238_spill] sm:$0xff]  ;;  %v33422_v21 = vld [vmem:[#allocation345_spill] sm:$0xff] }
 0x9ed   : > { %21713 = vst [vmem:[%s31702_s11 + $0x1a0] sm:$0xff] %v21585_v33  ;;  %v21588_v14 = vadd.f32 %v31697_v56, %v21436_v58  ;;  %v21435_v45 = vadd.f32 %v19842_v44, %v18329_v22  ;;  %v8977_v12 = vadd.f32 %v33415_v18, %v31672_v35  ;;  %v12125_v30 = vadd.f32 %v33416_v41, %v9019_v27  ;;  %v33419_v35 = vld [vmem:[#allocation225_spill] sm:$0xff]  ;;  %v33424_v58 = vld [vmem:[#allocation251_spill] sm:$0xff]  ;;  %v33425_v27 = vld [vmem:[#allocation240_spill] sm:$0xff] }
 0x9ee   : > { %v15187_v5 = vadd.f32 %v33417_v47, %v12081_v51  ;;  %v18335_v17 = vadd.f32 %v30999_v6, %v15229_v23  ;;  %21675 = vst [vmem:[%s31702_s11 + $0x70] sm:$0xff] %v21547_v15  ;;  %v21550_v43 = vadd.f32 %v31647_v34, %v21398_v39  ;;  %v21397_v32 = vadd.f32 %v19067_v16, %v18291_v11  ;;  %v26266_v25 = vpop.f32.mrf.mxu1  ;;  %v20002_v22 = vpop.f32.mrf.mxu0  ;;  %v33426_v44 = vld [vmem:[#allocation346_spill] sm:$0xff]  ;;  %v33428_v4 = vld [vmem:[#allocation253_spill] sm:$0xff] }
 0x9ef   : > { %21716 = vst [vmem:[%s31702_s11 + $0x1b8] sm:$0xff] %v21588_v14  ;;  %v21587_v7 = vadd.f32 %v31721_v40, %v21435_v45  ;;  %v21442_v46 = vadd.f32 %v26351_v55, %v33418_v52  ;;  %v9025_v50 = vadd.f32 %v33419_v35, %v31734_v53  ;;  %v12083_v36 = vadd.f32 %v33420_v60, %v8977_v12  ;;  %v33423_v53 = vld [vmem:[#allocation226_spill] sm:$0xff] }
 0x9f0   : > { %v15231_v31 = vadd.f32 %v33421_v28, %v12125_v30  ;;  %v18293_v6 = vadd.f32 %v31006_v61, %v15187_v5  ;;  %21678 = vst [vmem:[%s31702_s11 + $0x88] sm:$0xff] %v21550_v43  ;;  %v21549_v42 = vadd.f32 %v31612_v54, %v21397_v32  ;;  %v21400_v33 = vadd.f32 %v26266_v25, %v33422_v21  ;;  %v19077_v51 = vpop.f32.mrf.mxu1  ;;  %v26354_v20 = vpop.f32.mrf.mxu0  ;;  %v33429_v45 = vld [vmem:[#allocation242_spill] sm:$0xff]  ;;  %v33430_v5 = vld [vmem:[#allocation347_spill] sm:$0xff]  ;;  %v33433_v32 = vld [vmem:[#allocation244_spill] sm:$0xff] }
 0x9f1   : > { %21715 = vst [vmem:[%s31702_s11 + $0x1b0] sm:$0xff] %v21587_v7  ;;  %v21594_v24 = vadd.f32 %v31647_v34, %v21442_v46  ;;  %v21441_v0 = vadd.f32 %v20002_v22, %v18335_v17  ;;  %v8979_v59 = vadd.f32 %v33423_v53, %v31676_v2  ;;  %v12131_v26 = vadd.f32 %v33424_v58, %v9025_v50  ;;  %v33427_v2 = vld [vmem:[#allocation227_spill] sm:$0xff]  ;;  %v33434_v28 = vld [vmem:[#allocation348_spill] sm:$0xff]  ;;  %v33436_v25 = vld [vmem:[#allocation257_spill] sm:$0xff] }
 0x9f2   : > { %v15189_v9 = vadd.f32 %v33425_v27, %v12083_v36  ;;  %v18337_v61 = vadd.f32 %v31011_v48, %v15231_v31  ;;  %21677 = vst [vmem:[%s31702_s11 + $0x80] sm:$0xff] %v21549_v42  ;;  %v21552_v23 = vadd.f32 %v31697_v56, %v21400_v33  ;;  %v21399_v29 = vadd.f32 %v19077_v51, %v18293_v6  ;;  %v26271_v12 = vpop.f32.mrf.mxu1  ;;  %v20012_v41 = vpop.f32.mrf.mxu0  ;;  %v33432_v43 = vld [vmem:[#allocation255_spill] sm:$0xff]  ;;  %v33437_v42 = vld [vmem:[#allocation246_spill] sm:$0xff] }
 0x9f3   : > { %21722 = vst [vmem:[%s31702_s11 + $0x1e8] sm:$0xff] %v21594_v24  ;;  %v21593_v11 = vadd.f32 %v31612_v54, %v21441_v0  ;;  %v21444_v15 = vadd.f32 %v26354_v20, %v33426_v44  ;;  %v9027_v14 = vadd.f32 %v33427_v2, %v31738_v8  ;;  %v12085_v39 = vadd.f32 %v33428_v4, %v8979_v59  ;;  %v33431_v8 = vld [vmem:[#allocation228_spill] sm:$0xff]  ;;  %v33438_v59 = vld [vmem:[#allocation349_spill] sm:$0xff]  ;;  %v33440_v27 = vld [vmem:[#allocation230_spill] sm:$0xff] }
 0x9f4   : > { %v15237_v18 = vadd.f32 %v33429_v45, %v12131_v26  ;;  %v18295_v48 = vadd.f32 %v31018_v19, %v15189_v9  ;;  %21680 = vst [vmem:[%s31702_s11 + $0x98] sm:$0xff] %v21552_v23  ;;  %v21551_v30 = vadd.f32 %v31721_v40, %v21399_v29  ;;  %v21402_v17 = vadd.f32 %v26271_v12, %v33430_v5  ;;  %v19152_v46 = vpop.f32.mrf.mxu1  ;;  %v26367_v35 = vpop.f32.mrf.mxu0  ;;  %v33442_v20 = vld [vmem:[#allocation248_spill] sm:$0xff]  ;;  %v33444_v4 = vld [vmem:[#allocation350_spill] sm:$0xff]  ;;  %v33445_v45 = vld [vmem:[#allocation171_spill] sm:$0xff] }
 0x9f5   : > { %21721 = vst [vmem:[%s31702_s11 + $0x1e0] sm:$0xff] %v21593_v11  ;;  %v21596_v47 = vadd.f32 %v31697_v56, %v21444_v15  ;;  %v21443_v16 = vadd.f32 %v20012_v41, %v18337_v61  ;;  %v8981_v55 = vadd.f32 %v33431_v8, %v31608_v63  ;;  %v12133_v7 = vadd.f32 %v33432_v43, %v9027_v14  ;;  %v33435_v63 = vld [vmem:[#allocation229_spill] sm:$0xff]  ;;  %v33441_v61 = vld [vmem:[#allocation259_spill] sm:$0xff]  ;;  %v33447_v41 = vld [vmem:[#allocation250_spill] sm:$0xff] }
 0x9f6   : > { %v15191_v52 = vadd.f32 %v33433_v32, %v12085_v39  ;;  %v18343_v19 = vadd.f32 %v31023_v62, %v15237_v18  ;;  %21679 = vst [vmem:[%s31702_s11 + $0x90] sm:$0xff] %v21551_v30  ;;  %v21554_v50 = vadd.f32 %v31647_v34, %v21402_v17  ;;  %v21401_v36 = vadd.f32 %v19152_v46, %v18295_v48  ;;  %v26274_v21 = vpop.f32.mrf.mxu1  ;;  %v20172_v33 = vpop.f32.mrf.mxu0  ;;  %v33446_v48 = vld [vmem:[#allocation261_spill] sm:$0xff]  ;;  %v33449_v43 = vld [vmem:[#allocation352_spill] sm:$0xff]  ;;  %v33452_v46 = vld [vmem:[#allocation263_spill] sm:$0xff] }
 0x9f7   : > { %21724 = vst [vmem:[%s31702_s11 + $0x1f8] sm:$0xff] %v21596_v47  ;;  %v21595_v60 = vadd.f32 %v31721_v40, %v21443_v16  ;;  %v21450_v31 = vadd.f32 %v26367_v35, %v33434_v28  ;;  %v9033_v6 = vadd.f32 %v33435_v63, %v31742_v3  ;;  %v12087_v22 = vadd.f32 %v33436_v25, %v8981_v55  ;;  %v33439_v3 = vld [vmem:[#allocation84_spill] sm:$0xff]  ;;  %v33448_v47 = vld [vmem:[#allocation353_spill] sm:$0xff] }
 0x9f8   : > { %v15239_v24 = vadd.f32 %v33437_v42, %v12133_v7  ;;  %v18297_v62 = vadd.f32 %v31030_v10, %v15191_v52  ;;  %21682 = vst [vmem:[%s31702_s11 + $0xa8] sm:$0xff] %v21554_v50  ;;  %v21553_v0 = vadd.f32 %v31612_v54, %v21401_v36  ;;  %v21404_v58 = vadd.f32 %v26274_v21, %v33438_v59  ;;  %v33443_v10 = vld [vmem:[#allocation351_spill] sm:$0xff]  ;;  %v19162_v29 = vpop.f32.mrf.mxu1  ;;  %v26370_v44 = vpop.f32.mrf.mxu0  ;;  %v33453_v50 = vld [vmem:[#allocation252_spill] sm:$0xff]  ;;  %v33455_v42 = vld [vmem:[#allocation354_spill] sm:$0xff] }
 0x9f9   : > { %21723 = vst [vmem:[%s31702_s11 + $0x1f0] sm:$0xff] %v21595_v60  ;;  %v21602_v53 = vadd.f32 %v31647_v34, %v21450_v31  ;;  %v21449_v26 = vadd.f32 %v20172_v33, %v18343_v19  ;;  %v8983_v9 = vadd.f32 %v33440_v27, %v33439_v3  ;;  %v12139_v51 = vadd.f32 %v33441_v61, %v9033_v6  ;;  %v33451_v52 = vld [vmem:[#allocation95_spill] sm:$0xff]  ;;  %v33457_v21 = vld [vmem:[#allocation44_spill] sm:$0xff]  ;;  %v33459_v59 = vld [vmem:[#allocation254_spill] sm:$0xff] }
 0x9fa   : > { %v15193_v23 = vadd.f32 %v33442_v20, %v12087_v22  ;;  %v18345_v11 = vadd.f32 %v33443_v10, %v15239_v24  ;;  %21681 = vst [vmem:[%s31702_s11 + $0xa0] sm:$0xff] %v21553_v0  ;;  %v21556_v15 = vadd.f32 %v31697_v56, %v21404_v58  ;;  %v21403_v14 = vadd.f32 %v19162_v29, %v18297_v62  ;;  %v26279_v17 = vpop.f32.mrf.mxu1  ;;  %v20182_v16 = vpop.f32.mrf.mxu0  ;;  %v33454_v36 = vld [vmem:[#allocation355_spill] sm:$0xff]  ;;  %v33456_v62 = vld [vmem:[#allocation102_spill] sm:$0xff]  ;;  %v33461_v20 = vld [vmem:[#allocation356_spill] sm:$0xff] }
 0x9fb   : > { %21730 = vst [vmem:[%s31702_s11 + $0x228] sm:$0xff] %v21602_v53  ;;  %v21601_v2 = vadd.f32 %v31612_v54, %v21449_v26  ;;  %v21452_v39 = vadd.f32 %v26370_v44, %v33444_v4  ;;  %v9035_v18 = vadd.f32 %v33445_v45, %v31751_v37  ;;  %v12089_v12 = vadd.f32 %v33446_v48, %v8983_v9  ;;  %v33450_v37 = vld [vmem:[#allocation94_spill] sm:$0xff]  ;;  %v33458_v0 = vld [vmem:[#allocation267_spill] sm:$0xff]  ;;  %v33460_v26 = vld [vmem:[#allocation357_spill] sm:$0xff] }
 0x9fc   : > { %v15245_v30 = vadd.f32 %v33447_v41, %v12139_v51  ;;  %v18299_v5 = vadd.f32 %v33448_v47, %v15193_v23  ;;  %21684 = vst [vmem:[%s31702_s11 + $0xb8] sm:$0xff] %v21556_v15  ;;  %v21555_v8 = vadd.f32 %v31721_v40, %v21403_v14  ;;  %v21406_v7 = vadd.f32 %v26279_v17, %v33449_v43  ;;  %v19237_v31 = vpop.f32.mrf.mxu1  ;;  %v26383_v63 = vpop.f32.mrf.mxu0  ;;  %v33463_v29 = vld [vmem:[#allocation175_spill] sm:$0xff]  ;;  %v33464_v15 = vld [vmem:[#allocation268_spill] sm:$0xff]  ;;  %v33467_v47 = vld [vmem:[#allocation358_spill] sm:$0xff] }
 0x9fd   : > { %21729 = vst [vmem:[%s31702_s11 + $0x220] sm:$0xff] %v21601_v2  ;;  %v21604_v55 = vadd.f32 %v31697_v56, %v21452_v39  ;;  %v21451_v32 = vadd.f32 %v20182_v16, %v18345_v11  ;;  %v8985_v19 = vadd.f32 %v33451_v52, %v33450_v37  ;;  %v12141_v35 = vadd.f32 %v33452_v46, %v9035_v18  ;;  %v33462_v11 = vld [vmem:[#allocation50_spill] sm:$0xff]  ;;  %v33465_v14 = vld [vmem:[#allocation256_spill] sm:$0xff]  ;;  %v33466_v39 = vld [vmem:[#allocation359_spill] sm:$0xff] }
 0x9fe   : > { %v15195_v60 = vadd.f32 %v33453_v50, %v12089_v12  ;;  %v18351_v28 = vadd.f32 %v33454_v36, %v15245_v30  ;;  %21683 = vst [vmem:[%s31702_s11 + $0xb0] sm:$0xff] %v21555_v8  ;;  %v21558_v6 = vadd.f32 %v31647_v34, %v21406_v7  ;;  %v21405_v22 = vadd.f32 %v19237_v31, %v18299_v5  ;;  %v26282_v27 = vpop.f32.mrf.mxu1  ;;  %v20342_v9 = vpop.f32.mrf.mxu0  ;;  %v33468_v17 = vld [vmem:[#allocation65_spill] sm:$0xff]  ;;  %v33469_v16 = vld [vmem:[#allocation99_spill] sm:$0xff]  ;;  %v33471_v7 = vld [vmem:[#allocation258_spill] sm:$0xff] }
 0x9ff   : > { %21732 = vst [vmem:[%s31702_s11 + $0x238] sm:$0xff] %v21604_v55  ;;  %v21603_v25 = vadd.f32 %v31721_v40, %v21451_v32  ;;  %v21458_v24 = vadd.f32 %v26383_v63, %v33455_v42  ;;  %v9041_v33 = vadd.f32 %v33457_v21, %v33456_v62  ;;  %v12091_v53 = vadd.f32 %v33458_v0, %v8985_v19  ;;  %v33470_v55 = vld [vmem:[#allocation270_spill] sm:$0xff]  ;;  %v33472_v37 = vld [vmem:[#allocation361_spill] sm:$0xff]  ;;  %v33474_v31 = vld [vmem:[#allocation16_spill] sm:$0xff] }
 0xa00   : > { %v15247_v58 = vadd.f32 %v33459_v59, %v12141_v35  ;;  %v18301_v3 = vadd.f32 %v33460_v26, %v15195_v60  ;;  %21686 = vst [vmem:[%s31702_s11 + $0xc8] sm:$0xff] %v21558_v6  ;;  %v21557_v61 = vadd.f32 %v31612_v54, %v21405_v22  ;;  %v21408_v23 = vadd.f32 %v26282_v27, %v33461_v20  ;;  %v19247_v18 = vpop.f32.mrf.mxu1  ;;  %v26386_v48 = vpop.f32.mrf.mxu0  ;;  %v33473_v60 = vld [vmem:[#allocation360_spill] sm:$0xff]  ;;  %v33478_v62 = vld [vmem:[#allocation363_spill] sm:$0xff]  ;;  %v33479_v26 = vld [vmem:[#allocation362_spill] sm:$0xff] }
 0xa01   : > { %21731 = vst [vmem:[%s31702_s11 + $0x230] sm:$0xff] %v21603_v25  ;;  %v21610_v51 = vadd.f32 %v31647_v34, %v21458_v24  ;;  %v21457_v10 = vadd.f32 %v20342_v9, %v18351_v28  ;;  %v8987_v44 = vadd.f32 %v33463_v29, %v33462_v11  ;;  %v12147_v2 = vadd.f32 %v33464_v15, %v9041_v33  ;;  %v33475_v63 = vld [vmem:[#allocation48_spill] sm:$0xff]  ;;  %v33476_v25 = vld [vmem:[#allocation271_spill] sm:$0xff]  ;;  %v33480_v27 = vld [vmem:[#allocation106_spill] sm:$0xff] }
 0xa02   : > { %v15197_v4 = vadd.f32 %v33465_v14, %v12091_v53  ;;  %v18353_v45 = vadd.f32 %v33466_v39, %v15247_v58  ;;  %21685 = vst [vmem:[%s31702_s11 + $0xc0] sm:$0xff] %v21557_v61  ;;  %v21560_v12 = vadd.f32 %v31697_v56, %v21408_v23  ;;  %v21407_v30 = vadd.f32 %v19247_v18, %v18301_v3  ;;  %v26287_v19 = vpop.f32.mrf.mxu1  ;;  %v20352_v46 = vpop.f32.mrf.mxu0  ;;  %v33477_v42 = vld [vmem:[#allocation260_spill] sm:$0xff]  ;;  %v33483_v23 = vld [vmem:[#allocation262_spill] sm:$0xff]  ;;  %v33484_v11 = vld [vmem:[#allocation365_spill] sm:$0xff] }
 0xa03   : > { %21738 = vst [vmem:[%s31702_s11 + $0x268] sm:$0xff] %v21610_v51  ;;  %v21609_v41 = vadd.f32 %v31612_v54, %v21457_v10  ;;  %v21460_v5 = vadd.f32 %v26386_v48, %v33467_v47  ;;  %v9043_v8 = vadd.f32 %v33469_v16, %v33468_v17  ;;  %v12093_v43 = vadd.f32 %v33470_v55, %v8987_v44  ;;  %v33481_v9 = vld [vmem:[#allocation96_spill] sm:$0xff]  ;;  %v33486_v18 = vld [vmem:[#allocation86_spill] sm:$0xff]  ;;  %v33487_v48 = vld [vmem:[#allocation103_spill] sm:$0xff] }
 0xa04   : > { %v15253_v32 = vadd.f32 %v33471_v7, %v12147_v2  ;;  %v18303_v52 = vadd.f32 %v33472_v37, %v15197_v4  ;;  %21688 = vst [vmem:[%s31702_s11 + $0xd8] sm:$0xff] %v21560_v12  ;;  %v21559_v35 = vadd.f32 %v31721_v40, %v21407_v30  ;;  %v21410_v36 = vadd.f32 %v26287_v19, %v33473_v60  ;;  %v19322_v33 = vpop.f32.mrf.mxu1  ;;  %v26399_v0 = vpop.f32.mrf.mxu0  ;;  %v33482_v51 = vld [vmem:[#allocation272_spill] sm:$0xff]  ;;  %v33490_v17 = vld [vmem:[#allocation367_spill] sm:$0xff]  ;;  %v33491_v37 = vld [vmem:[#allocation366_spill] sm:$0xff] }
 0xa05   : > { %21737 = vst [vmem:[%s31702_s11 + $0x260] sm:$0xff] %v21609_v41  ;;  %v21612_v50 = vadd.f32 %v31697_v56, %v21460_v5  ;;  %v21459_v28 = vadd.f32 %v20352_v46, %v18353_v45  ;;  %v8989_v6 = vadd.f32 %v33475_v63, %v33474_v31  ;;  %v12149_v22 = vadd.f32 %v33476_v25, %v9043_v8  ;;  %v33485_v4 = vld [vmem:[#allocation364_spill] sm:$0xff]  ;;  %v33488_v41 = vld [vmem:[#allocation274_spill] sm:$0xff]  ;;  %v33494_v60 = vld [vmem:[#allocation265_spill] sm:$0xff] }
 0xa06   : > { %v15199_v24 = vadd.f32 %v33477_v42, %v12093_v43  ;;  %v18359_v21 = vadd.f32 %v33478_v62, %v15253_v32  ;;  %21687 = vst [vmem:[%s31702_s11 + $0xd0] sm:$0xff] %v21559_v35  ;;  %v21562_v53 = vadd.f32 %v31647_v34, %v21410_v36  ;;  %v21409_v58 = vadd.f32 %v19322_v33, %v18303_v52  ;;  %v26290_v44 = vpop.f32.mrf.mxu1  ;;  %v20512_v15 = vpop.f32.mrf.mxu0  ;;  %v33489_v47 = vld [vmem:[#allocation264_spill] sm:$0xff]  ;;  %v33493_v35 = vld [vmem:[#allocation275_spill] sm:$0xff] }
 0xa07   : > { %21740 = vst [vmem:[%s31702_s11 + $0x278] sm:$0xff] %v21612_v50  ;;  %v21611_v59 = vadd.f32 %v31721_v40, %v21459_v28  ;;  %v21466_v3 = vadd.f32 %v26399_v0, %v33479_v26  ;;  %v9049_v61 = vadd.f32 %v33481_v9, %v33480_v27  ;;  %v12095_v20 = vadd.f32 %v33482_v51, %v8989_v6  ;;  %v33492_v19 = vld [vmem:[#allocation52_spill] sm:$0xff]  ;;  %v33495_v28 = vld [vmem:[#allocation369_spill] sm:$0xff]  ;;  %v33501_v26 = vld [vmem:[#allocation371_spill] sm:$0xff] }
 0xa08   : > { %v15255_v10 = vadd.f32 %v33483_v23, %v12149_v22  ;;  %v18305_v29 = vadd.f32 %v33484_v11, %v15199_v24  ;;  %21690 = vst [vmem:[%s31702_s11 + $0xe8] sm:$0xff] %v21562_v53  ;;  %v21561_v2 = vadd.f32 %v31612_v54, %v21409_v58  ;;  %v21412_v39 = vadd.f32 %v26290_v44, %v33485_v4  ;;  %v19332_v8 = vpop.f32.mrf.mxu1  ;;  %v26402_v55 = vpop.f32.mrf.mxu0  ;;  %v33496_v42 = vld [vmem:[#allocation368_spill] sm:$0xff]  ;;  %v33502_v23 = vld [vmem:[#allocation370_spill] sm:$0xff] }
 0xa09   : > { %21739 = vst [vmem:[%s31702_s11 + $0x270] sm:$0xff] %v21611_v59  ;;  %v21618_v14 = vadd.f32 %v31647_v34, %v21466_v3  ;;  %v21465_v45 = vadd.f32 %v20512_v15, %v18359_v21  ;;  %v8991_v12 = vadd.f32 %v33487_v48, %v33486_v18  ;;  %v12155_v30 = vadd.f32 %v33488_v41, %v9049_v61  ;;  %v33498_v21 = vld [vmem:[#allocation100_spill] sm:$0xff]  ;;  %v33500_v59 = vld [vmem:[#allocation266_spill] sm:$0xff]  ;;  %v33505_v15 = vld [vmem:[#allocation277_spill] sm:$0xff] }
 0xa0a   : > { %v15201_v5 = vadd.f32 %v33489_v47, %v12095_v20  ;;  %v18361_v16 = vadd.f32 %v33490_v17, %v15255_v10  ;;  %21689 = vst [vmem:[%s31702_s11 + $0xe0] sm:$0xff] %v21561_v2  ;;  %v21564_v43 = vadd.f32 %v31697_v56, %v21412_v39  ;;  %v21411_v32 = vadd.f32 %v19332_v8, %v18305_v29  ;;  %v26295_v63 = vpop.f32.mrf.mxu1  ;;  %v20522_v6 = vpop.f32.mrf.mxu0  ;;  %v33499_v0 = vld [vmem:[#allocation276_spill] sm:$0xff]  ;;  %v33504_v29 = vld [vmem:[#allocation107_spill] sm:$0xff]  ;;  %v33507_v39 = vld [vmem:[#allocation373_spill] sm:$0xff] }
 0xa0b   : > { %21746 = vst [vmem:[%s31702_s11 + $0x2a8] sm:$0xff] %v21618_v14  ;;  %v21617_v7 = vadd.f32 %v31612_v54, %v21465_v45  ;;  %v21468_v52 = vadd.f32 %v26402_v55, %v33491_v37  ;;  %v9051_v46 = vadd.f32 %v33492_v19, %v31772_v38  ;;  %v12097_v50 = vadd.f32 %v33493_v35, %v8991_v12  ;;  %v33497_v38 = vld [vmem:[#allocation98_spill] sm:$0xff]  ;;  %v33503_v11 = vld [vmem:[#allocation68_spill] sm:$0xff]  ;;  %v33506_v14 = vld [vmem:[#allocation269_spill] sm:$0xff] }
 0xa0c   : > { %v15261_v36 = vadd.f32 %v33494_v60, %v12155_v30  ;;  %v18307_v31 = vadd.f32 %v33495_v28, %v15201_v5  ;;  %21692 = vst [vmem:[%s31702_s11 + $0xf8] sm:$0xff] %v21564_v43  ;;  %v21563_v25 = vadd.f32 %v31721_v40, %v21411_v32  ;;  %v21414_v24 = vadd.f32 %v26295_v63, %v33496_v42  ;;  %v19407_v27 = vpop.f32.mrf.mxu1  ;;  %v26415_v9 = vpop.f32.mrf.mxu0  ;;  %v33508_v30 = vld [vmem:[#allocation372_spill] sm:$0xff]  ;;  %v33509_v17 = vld [vmem:[#allocation54_spill] sm:$0xff]  ;;  %v33513_v37 = vld [vmem:[#allocation375_spill] sm:$0xff] }
 0xa0d   : > { %21745 = vst [vmem:[%s31702_s11 + $0x2a0] sm:$0xff] %v21617_v7  ;;  %v21620_v22 = vadd.f32 %v31697_v56, %v21468_v52  ;;  %v21467_v62 = vadd.f32 %v20522_v6, %v18361_v16  ;;  %v8993_v33 = vadd.f32 %v33498_v21, %v33497_v38  ;;  %v12157_v53 = vadd.f32 %v33499_v0, %v9051_v46  ;;  %v33510_v16 = vld [vmem:[#allocation56_spill] sm:$0xff]  ;;  %v33511_v55 = vld [vmem:[#allocation278_spill] sm:$0xff]  ;;  %v33512_v7 = vld [vmem:[#allocation273_spill] sm:$0xff] }
 0xa0e   : > { %v15203_v58 = vadd.f32 %v33500_v59, %v12097_v50  ;;  %v18367_v3 = vadd.f32 %v33501_v26, %v15261_v36  ;;  %21691 = vst [vmem:[%s31702_s11 + $0xf0] sm:$0xff] %v21563_v25  ;;  %v21566_v61 = vadd.f32 %v31647_v34, %v21414_v24  ;;  %v21413_v20 = vadd.f32 %v19407_v27, %v18307_v31  ;;  %v26298_v18 = vpop.f32.mrf.mxu1  ;;  %v20682_v48 = vpop.f32.mrf.mxu0  ;;  %v33514_v36 = vld [vmem:[#allocation374_spill] sm:$0xff]  ;;  %v33515_v31 = vld [vmem:[#allocation177_spill] sm:$0xff]  ;;  %v33516_v6 = vld [vmem:[#allocation279_spill] sm:$0xff] }
 0xa0f   : > { %21748 = vst [vmem:[%s31702_s11 + $0x2b8] sm:$0xff] %v21620_v22  ;;  %v21619_v51 = vadd.f32 %v31721_v40, %v21467_v62  ;;  %v21474_v10 = vadd.f32 %v26415_v9, %v33502_v23  ;;  %v9057_v44 = vadd.f32 %v33504_v29, %v33503_v11  ;;  %v12099_v2 = vadd.f32 %v33505_v15, %v8993_v33  ;;  %v33517_v22 = vld [vmem:[#allocation312_spill] sm:$0xff]  ;;  %v33518_v24 = vld [vmem:[#allocation377_spill] sm:$0xff]  ;;  %v33521_v26 = vld [vmem:[#allocation111_spill] sm:$0xff] }
 0xa10   : > { %v15263_v4 = vadd.f32 %v33506_v14, %v12157_v53  ;;  %v18309_v45 = vadd.f32 %v33507_v39, %v15203_v58  ;;  %21694 = vst [vmem:[%s31702_s11 + $0x108] sm:$0xff] %v21566_v61  ;;  %v21565_v12 = vadd.f32 %v31612_v54, %v21413_v20  ;;  %v21416_v47 = vadd.f32 %v26298_v18, %v33508_v30  ;;  %v19417_v19 = vpop.f32.mrf.mxu1  ;;  %v26418_v46 = vpop.f32.mrf.mxu0  ;;  %v33519_v53 = vld [vmem:[#allocation376_spill] sm:$0xff]  ;;  %v33523_v61 = vld [vmem:[#allocation313_spill] sm:$0xff]  ;;  %v33524_v20 = vld [vmem:[#allocation379_spill] sm:$0xff] }
 0xa11   : > { %21747 = vst [vmem:[%s31702_s11 + $0x2b0] sm:$0xff] %v21619_v51  ;;  %v21626_v41 = vadd.f32 %v31647_v34, %v21474_v10  ;;  %v21473_v5 = vadd.f32 %v20682_v48, %v18367_v3  ;;  %v8995_v8 = vadd.f32 %v33510_v16, %v33509_v17  ;;  %v12163_v43 = vadd.f32 %v33511_v55, %v9057_v44  ;;  %v33522_v27 = vld [vmem:[#allocation280_spill] sm:$0xff]  ;;  %v33527_v39 = vld [vmem:[#allocation195_spill] sm:$0xff]  ;;  %v33528_v18 = vld [vmem:[#allocation281_spill] sm:$0xff] }
 0xa12   : > { %v15205_v32 = vadd.f32 %v33512_v7, %v12099_v2  ;;  %v18369_v52 = vadd.f32 %v33513_v37, %v15263_v4  ;;  %21693 = vst [vmem:[%s31702_s11 + $0x100] sm:$0xff] %v21565_v12  ;;  %v21568_v35 = vadd.f32 %v31697_v56, %v21416_v47  ;;  %v21415_v60 = vadd.f32 %v19417_v19, %v18309_v45  ;;  %v26303_v38 = vpop.f32.mrf.mxu1  ;;  %v20692_v21 = vpop.f32.mrf.mxu0  ;;  %v33525_v2 = vld [vmem:[#allocation378_spill] sm:$0xff]  ;;  %v33530_v30 = vld [vmem:[#allocation381_spill] sm:$0xff]  ;;  %v33531_v55 = vld [vmem:[#allocation380_spill] sm:$0xff] }
 0xa13   : > { %21754 = vst [vmem:[%s31702_s11 + $0x2e8] sm:$0xff] %v21626_v41  ;;  %v21625_v50 = vadd.f32 %v31612_v54, %v21473_v5  ;;  %v21476_v28 = vadd.f32 %v26418_v46, %v33514_v36  ;;  %v9059_v63 = vadd.f32 %v33515_v31, %v31780_v49  ;;  %v12101_v25 = vadd.f32 %v33516_v6, %v8995_v8  ;;  %v33520_v49 = vld [vmem:[#allocation24_spill] sm:$0xff]  ;;  %v33526_v4 = vld [vmem:[#allocation110_spill] sm:$0xff] }
 0xa14   : > { %v15269_v42 = vadd.f32 %v33517_v22, %v12163_v43  ;;  %v18311_v62 = vadd.f32 %v33518_v24, %v15205_v32  ;;  %21696 = vst [vmem:[%s31702_s11 + $0x118] sm:$0xff] %v21568_v35  ;;  %v21567_v33 = vadd.f32 %v31721_v40, %v21415_v60  ;;  %v21418_v59 = vadd.f32 %v26303_v38, %v33519_v53  ;;  %v19492_v10 = vpop.f32.mrf.mxu1  ;;  %v26431_v11 = vpop.f32.mrf.mxu0  ;;  %v33529_v12 = vld [vmem:[#allocation314_spill] sm:$0xff]  ;;  %v33532_v32 = vld [vmem:[#allocation88_spill] sm:$0xff]  ;;  %v33535_v35 = vld [vmem:[#allocation315_spill] sm:$0xff] }
 0xa15   : > { %21753 = vst [vmem:[%s31702_s11 + $0x2e0] sm:$0xff] %v21625_v50  ;;  %v21628_v0 = vadd.f32 %v31697_v56, %v21476_v28  ;;  %v21475_v58 = vadd.f32 %v20692_v21, %v18369_v52  ;;  %v8997_v3 = vadd.f32 %v33521_v26, %v33520_v49  ;;  %v12165_v9 = vadd.f32 %v33522_v27, %v9059_v63  ;;  %v33533_v37 = vld [vmem:[#allocation60_spill] sm:$0xff]  ;;  %v33534_v19 = vld [vmem:[#allocation282_spill] sm:$0xff]  ;;  %v33536_v60 = vld [vmem:[#allocation383_spill] sm:$0xff] }
 0xa16   : > { %v15207_v51 = vadd.f32 %v33523_v61, %v12101_v25  ;;  %v18375_v23 = vadd.f32 %v33524_v20, %v15269_v42  ;;  %21695 = vst [vmem:[%s31702_s11 + $0x110] sm:$0xff] %v21567_v33  ;;  %v21570_v29 = vadd.f32 %v31647_v34, %v21418_v59  ;;  %v21417_v15 = vadd.f32 %v19492_v10, %v18311_v62  ;;  %v26306_v5 = vpop.f32.mrf.mxu1  ;;  %v20852_v17 = vpop.f32.mrf.mxu0  ;;  %v33537_v22 = vld [vmem:[#allocation382_spill] sm:$0xff]  ;;  %v33538_v24 = vld [vmem:[#allocation19_spill] sm:$0xff]  ;;  %v33540_v21 = vld [vmem:[#allocation284_spill] sm:$0xff] }
 0xa17   : > { %21756 = vst [vmem:[%s31702_s11 + $0x2f8] sm:$0xff] %v21628_v0  ;;  %v21627_v44 = vadd.f32 %v31721_v40, %v21475_v58  ;;  %v21482_v14 = vadd.f32 %v26431_v11, %v33525_v2  ;;  %v9065_v45 = vadd.f32 %v33527_v39, %v33526_v4  ;;  %v12103_v48 = vadd.f32 %v33528_v18, %v8997_v3  ;;  %v33539_v62 = vld [vmem:[#allocation179_spill] sm:$0xff]  ;;  %v33541_v0 = vld [vmem:[#allocation316_spill] sm:$0xff]  ;;  %v33542_v59 = vld [vmem:[#allocation385_spill] sm:$0xff] }
 0xa18   : > { %v15271_v41 = vadd.f32 %v33529_v12, %v12165_v9  ;;  %v18313_v47 = vadd.f32 %v33530_v30, %v15207_v51  ;;  %21698 = vst [vmem:[%s31702_s11 + $0x128] sm:$0xff] %v21570_v29  ;;  %v21569_v16 = vadd.f32 %v31612_v54, %v21417_v15  ;;  %v21420_v43 = vadd.f32 %v26306_v5, %v33531_v55  ;;  %v19502_v28 = vpop.f32.mrf.mxu1  ;;  %v26434_v31 = vpop.f32.mrf.mxu0  ;;  %v33543_v9 = vld [vmem:[#allocation384_spill] sm:$0xff]  ;;  %v33544_v20 = vld [vmem:[#allocation27_spill] sm:$0xff]  ;;  %v33546_v11 = vld [vmem:[#allocation286_spill] sm:$0xff] }
 0xa19   : > { %21755 = vst [vmem:[%s31702_s11 + $0x2f0] sm:$0xff] %v21627_v44  ;;  %v21634_v8 = vadd.f32 %v31647_v34, %v21482_v14  ;;  %v21481_v7 = vadd.f32 %v20852_v17, %v18375_v23  ;;  %v8999_v52 = vadd.f32 %v33533_v37, %v33532_v32  ;;  %v12171_v46 = vadd.f32 %v33534_v19, %v9065_v45  ;;  %v33545_v23 = vld [vmem:[#allocation115_spill] sm:$0xff]  ;;  %v33549_v12 = vld [vmem:[#allocation386_spill] sm:$0xff]  ;;  %v33552_v17 = vld [vmem:[#allocation288_spill] sm:$0xff] }
 0xa1a   : > { %v15209_v50 = vadd.f32 %v33535_v35, %v12103_v48  ;;  %v18377_v36 = vadd.f32 %v33536_v60, %v15271_v41  ;;  %21697 = vst [vmem:[%s31702_s11 + $0x120] sm:$0xff] %v21569_v16  ;;  %v21572_v63 = vadd.f32 %v31697_v56, %v21420_v43  ;;  %v21419_v25 = vadd.f32 %v19502_v28, %v18313_v47  ;;  %v26311_v49 = vpop.f32.mrf.mxu1  ;;  %v20862_v26 = vpop.f32.mrf.mxu0  ;;  %v33547_v44 = vld [vmem:[#allocation283_spill] sm:$0xff]  ;;  %v33550_v30 = vld [vmem:[#allocation114_spill] sm:$0xff]  ;;  %v33551_v47 = vld [vmem:[#allocation197_spill] sm:$0xff] }
 0xa1b   : > { %21762 = vst [vmem:[%s31702_s11 + $0x328] sm:$0xff] %v21634_v8  ;;  %v21633_v6 = vadd.f32 %v31612_v54, %v21481_v7  ;;  %v21484_v42 = vadd.f32 %v26434_v31, %v33537_v22  ;;  %v9067_v38 = vadd.f32 %v33539_v62, %v33538_v24  ;;  %v12105_v33 = vadd.f32 %v33540_v21, %v8999_v52  ;;  %v33548_v2 = vld [vmem:[#allocation387_spill] sm:$0xff]  ;;  %v33553_v8 = vld [vmem:[#allocation285_spill] sm:$0xff]  ;;  %v33556_v60 = vld [vmem:[#allocation90_spill] sm:$0xff] }
 0xa1c   : > { %v15277_v53 = vadd.f32 %v33541_v0, %v12171_v46  ;;  %v18315_v58 = vadd.f32 %v33542_v59, %v15209_v50  ;;  %21700 = vst [vmem:[%s31702_s11 + $0x138] sm:$0xff] %v21572_v63  ;;  %v21571_v3 = vadd.f32 %v31721_v40, %v21419_v25  ;;  %v21422_v61 = vadd.f32 %v26311_v49, %v33543_v9  ;;  %v19577_v4 = vpop.f32.mrf.mxu1  ;;  %v26447_v39 = vpop.f32.mrf.mxu0  ;;  %v33554_v43 = vld [vmem:[#allocation389_spill] sm:$0xff]  ;;  %v33555_v46 = vld [vmem:[#allocation388_spill] sm:$0xff]  ;;  %v33558_v31 = vld [vmem:[#allocation290_spill] sm:$0xff] }
 0xa1d   : > { %21761 = vst [vmem:[%s31702_s11 + $0x320] sm:$0xff] %v21633_v6  ;;  %v21636_v27 = vadd.f32 %v31697_v56, %v21484_v42  ;;  %v21483_v51 = vadd.f32 %v20862_v26, %v18377_v36  ;;  %v9005_v10 = vadd.f32 %v33545_v23, %v33544_v20  ;;  %v12173_v29 = vadd.f32 %v33546_v11, %v9067_v38  ;;  %v33557_v36 = vld [vmem:[#allocation199_spill] sm:$0xff]  ;;  %v33561_v0 = vld [vmem:[#allocation390_spill] sm:$0xff]  ;;  %v33565_v9 = vld [vmem:[#allocation393_spill] sm:$0xff] }
 0xa1e   : > { %v15211_v15 = vadd.f32 %v33547_v44, %v12105_v33  ;;  %v18383_v14 = vadd.f32 %v33548_v2, %v15277_v53  ;;  %21699 = vst [vmem:[%s31702_s11 + $0x130] sm:$0xff] %v21571_v3  ;;  %v21574_v45 = vadd.f32 %v31647_v34, %v21422_v61  ;;  %v21421_v48 = vadd.f32 %v19577_v4, %v18315_v58  ;;  %v26314_v32 = vpop.f32.mrf.mxu1  ;;  %v21022_v37 = vpop.f32.mrf.mxu0  ;;  %v33559_v6 = vld [vmem:[#allocation287_spill] sm:$0xff]  ;;  %v33564_v3 = vld [vmem:[#allocation289_spill] sm:$0xff]  ;;  %v33566_v11 = vld [vmem:[#allocation392_spill] sm:$0xff] }
 0xa1f   : > { %21764 = vst [vmem:[%s31702_s11 + $0x338] sm:$0xff] %v21636_v27  ;;  %v21635_v18 = vadd.f32 %v31721_v40, %v21483_v51  ;;  %v21490_v41 = vadd.f32 %v26447_v39, %v33549_v12  ;;  %v9073_v5 = vadd.f32 %v33551_v47, %v33550_v30  ;;  %v12111_v16 = vadd.f32 %v33552_v17, %v9005_v10  ;;  %v33560_v22 = vld [vmem:[#allocation391_spill] sm:$0xff]  ;;  %v33572_v17 = vld [vmem:[#allocation394_spill] sm:$0xff] }
 0xa20   : > { %v15279_v55 = vadd.f32 %v33553_v8, %v12173_v29  ;;  %v18317_v7 = vadd.f32 %v33554_v43, %v15211_v15  ;;  %21702 = vst [vmem:[%s31702_s11 + $0x148] sm:$0xff] %v21574_v45  ;;  %v21573_v52 = vadd.f32 %v31612_v54, %v21421_v48  ;;  %v21424_v35 = vadd.f32 %v26314_v32, %v33555_v46  ;;  %v19587_v24 = vpop.f32.mrf.mxu1  ;;  %v26450_v62 = vpop.f32.mrf.mxu0  ;;  %v33562_v59 = vld [vmem:[#allocation123_spill] sm:$0xff]  ;;  %v33568_v15 = vld [vmem:[#allocation108_spill] sm:$0xff]  ;;  %v33574_v43 = vld [vmem:[#allocation201_spill] sm:$0xff] }
 0xa21   : > { %21763 = vst [vmem:[%s31702_s11 + $0x330] sm:$0xff] %v21635_v18  ;;  %v21642_v19 = vadd.f32 %v31647_v34, %v21490_v41  ;;  %v21489_v50 = vadd.f32 %v21022_v37, %v18383_v14  ;;  %v9007_v28 = vadd.f32 %v33557_v36, %v33556_v60  ;;  %v12179_v63 = vadd.f32 %v33558_v31, %v9073_v5  ;;  %v33563_v49 = vld [vmem:[#allocation291_spill] sm:$0xff]  ;;  %v33569_v14 = vld [vmem:[#allocation104_spill] sm:$0xff]  ;;  %v33575_v32 = vld [vmem:[#allocation317_spill] sm:$0xff] }
 0xa22   : > { %v15217_v25 = vadd.f32 %v33559_v6, %v12111_v16  ;;  %v18385_v42 = vadd.f32 %v33560_v22, %v15279_v55  ;;  %21701 = vst [vmem:[%s31702_s11 + $0x140] sm:$0xff] %v21573_v52  ;;  %v21576_v38 = vadd.f32 %v31697_v56, %v21424_v35  ;;  %v21423_v33 = vadd.f32 %v19587_v24, %v18317_v7  ;;  %v26327_v51 = vpop.f32.mrf.mxu1  ;;  %v21032_v20 = vpop.f32.mrf.mxu0  ;;  %v33570_v39 = vld [vmem:[#allocation119_spill] sm:$0xff]  ;;  %v33573_v8 = vld [vmem:[#allocation112_spill] sm:$0xff]  ;;  %v33576_v52 = vld [vmem:[#allocation397_spill] sm:$0xff] }
 0xa23   : > { %21770 = vst [vmem:[%s31702_s11 + $0x368] sm:$0xff] %v21642_v19  ;;  %v21641_v21 = vadd.f32 %v31612_v54, %v21489_v50  ;;  %v21492_v53 = vadd.f32 %v26450_v62, %v33561_v0  ;;  %v9075_v58 = vadd.f32 %v33562_v59, %v31808_v13  ;;  %v12113_v26 = vadd.f32 %v33563_v49, %v9007_v28  ;;  %v33567_v13 = vld [vmem:[#allocation36_spill] sm:$0xff]  ;;  %v33571_v18 = vld [vmem:[#allocation395_spill] sm:$0xff] }
 0xa24   : > { %v15285_v27 = vadd.f32 %v33564_v3, %v12179_v63  ;;  %v18323_v61 = vadd.f32 %v33565_v9, %v15217_v25  ;;  %21704 = vst [vmem:[%s31702_s11 + $0x158] sm:$0xff] %v21576_v38  ;;  %v21575_v23 = vadd.f32 %v31721_v40, %v21423_v33  ;;  %v21430_v29 = vadd.f32 %v26327_v51, %v33566_v11  ;;  %v19747_v12 = vpop.f32.mrf.mxu1  ;;  %v26463_v41 = vpop.f32.mrf.mxu0  ;;  %v33577_v36 = vld [vmem:[#allocation396_spill] sm:$0xff]  ;;  %v33579_v63 = vld [vmem:[#allocation133_spill] sm:$0xff]  ;;  %v33582_v62 = vld [vmem:[#allocation399_spill] sm:$0xff] }
 0xa25   : > { %21769 = vst [vmem:[%s31702_s11 + $0x360] sm:$0xff] %v21641_v21  ;;  %v21644_v10 = vadd.f32 %v31697_v56, %v21492_v53  ;;  %v21491_v44 = vadd.f32 %v21032_v20, %v18385_v42  ;;  %v9013_v2 = vadd.f32 %v33568_v15, %v33567_v13  ;;  %v12181_v4 = vadd.f32 %v33569_v14, %v9075_v58  ;;  %v33580_v25 = vld [vmem:[#allocation292_spill] sm:$0xff]  ;;  %v33581_v42 = vld [vmem:[#allocation319_spill] sm:$0xff]  ;;  %v33583_v58 = vld [vmem:[#allocation398_spill] sm:$0xff] }
 0xa26   : > { %v15219_v45 = vadd.f32 %v33570_v39, %v12113_v26  ;;  %v18391_v48 = vadd.f32 %v33571_v18, %v15285_v27  ;;  %21703 = vst [vmem:[%s31702_s11 + $0x150] sm:$0xff] %v21575_v23  ;;  %v21582_v30 = vadd.f32 %v31647_v34, %v21430_v29  ;;  %v21429_v5 = vadd.f32 %v19747_v12, %v18323_v61  ;;  %v26330_v46 = vpop.f32.mrf.mxu1  ;;  %v21192_v35 = vpop.f32.mrf.mxu0  ;;  %v33584_v26 = vld [vmem:[#allocation61_spill] sm:$0xff]  ;;  %v33586_v61 = vld [vmem:[#allocation320_spill] sm:$0xff]  ;;  %v33588_v13 = vld [vmem:[#allocation318_spill] sm:$0xff] }
 0xa27   : > { %21772 = vst [vmem:[%s31702_s11 + $0x378] sm:$0xff] %v21644_v10  ;;  %v21643_v47 = vadd.f32 %v31721_v40, %v21491_v44  ;;  %v21498_v16 = vadd.f32 %v26463_v41, %v33572_v17  ;;  %v9081_v55 = vadd.f32 %v33573_v8, %v31812_v57  ;;  %v12119_v7 = vadd.f32 %v33574_v43, %v9013_v2  ;;  %v33578_v57 = vld [vmem:[#allocation92_spill] sm:$0xff]  ;;  %v33585_v27 = vld [vmem:[#allocation293_spill] sm:$0xff]  ;;  %v33591_v39 = vld [vmem:[#allocation154_spill] sm:$0xff] }
 0xa28   : > { %v15287_v37 = vadd.f32 %v33575_v32, %v12181_v4  ;;  %v18325_v19 = vadd.f32 %v33576_v52, %v15219_v45  ;;  %21710 = vst [vmem:[%s31702_s11 + $0x188] sm:$0xff] %v21582_v30  ;;  %v21581_v50 = vadd.f32 %v31612_v54, %v21429_v5  ;;  %v21432_v28 = vadd.f32 %v26330_v46, %v33577_v36  ;;  %v19757_v21 = vpop.f32.mrf.mxu1  ;;  %v26466_v33 = vpop.f32.mrf.mxu0  ;;  %v33587_v20 = vld [vmem:[#allocation400_spill] sm:$0xff]  ;;  %v33592_v18 = vld [vmem:[#allocation321_spill] sm:$0xff]  ;;  %v33595_v43 = vld [vmem:[#allocation31_spill] sm:$0xff] }
 0xa29   : > { %21771 = vst [vmem:[%s31702_s11 + $0x370] sm:$0xff] %v21643_v47  ;;  %v21650_v60 = vadd.f32 %v31647_v34, %v21498_v16  ;;  %v21497_v31 = vadd.f32 %v21192_v35, %v18391_v48  ;;  %v9015_v6 = vadd.f32 %v33579_v63, %v33578_v57  ;;  %v12187_v22 = vadd.f32 %v33580_v25, %v9081_v55  ;;  %v33590_v14 = vld [vmem:[#allocation204_spill] sm:$0xff]  ;;  %v33593_v12 = vld [vmem:[#allocation401_spill] sm:$0xff]  ;;  %v33599_v35 = vld [vmem:[#allocation402_spill] sm:$0xff] }
 0xa2a   : > { %v15225_v24 = vadd.f32 %v33581_v42, %v12119_v7  ;;  %v18393_v38 = vadd.f32 %v33582_v62, %v15287_v37  ;;  %21709 = vst [vmem:[%s31702_s11 + $0x180] sm:$0xff] %v21581_v50  ;;  %v21584_v0 = vadd.f32 %v31697_v56, %v21432_v28  ;;  %v21431_v59 = vadd.f32 %v19757_v21, %v18325_v19  ;;  %v26343_v10 = vpop.f32.mrf.mxu1  ;;  %v21202_v11 = vpop.f32.mrf.mxu0  ;;  %v33594_v8 = vld [vmem:[#allocation17_spill] sm:$0xff]  ;;  %v33596_v7 = vld [vmem:[#allocation132_spill] sm:$0xff]  ;;  %v33598_v19 = vld [vmem:[#allocation338_spill] sm:$0xff] }
 0xa2b   : > { %21778 = vst [vmem:[%s31702_s11 + $0x3a8] sm:$0xff] %v21650_v60  ;;  %v21649_v53 = vadd.f32 %v31612_v54, %v21497_v31  ;;  %v21500_v49 = vadd.f32 %v26466_v33, %v33583_v58  ;;  %v9083_v3 = vadd.f32 %v33584_v26, %v31823_v1  ;;  %v12121_v9 = vadd.f32 %v33585_v27, %v9015_v6  ;;  %v33589_v1 = vld [vmem:[#allocation39_spill] sm:$0xff]  ;;  %v33597_v37 = vld [vmem:[#allocation296_spill] sm:$0xff]  ;;  %v33602_v42 = vld [vmem:[#allocation322_spill] sm:$0xff] }
 0xa2c   : > { %v15293_v51 = vadd.f32 %v33586_v61, %v12187_v22  ;;  %v18331_v23 = vadd.f32 %v33587_v20, %v15225_v24  ;;  %21712 = vst [vmem:[%s31702_s11 + $0x198] sm:$0xff] %v21584_v0  ;;  %v21583_v29 = vadd.f32 %v31721_v40, %v21431_v59  ;;  %v21438_v15 = vadd.f32 %v26343_v10, %v33588_v13  ;;  %v19917_v30 = vpop.f32.mrf.mxu1  ;;  %v26479_v47 = vpop.f32.mrf.mxu0  ;;  %v33600_v57 = vld [vmem:[#allocation127_spill] sm:$0xff]  ;;  %v33601_v25 = vld [vmem:[#allocation20_spill] sm:$0xff]  ;;  %v33604_v58 = vld [vmem:[#allocation294_spill] sm:$0xff] }
 0xa2d   : > { %21777 = vst [vmem:[%s31702_s11 + $0x3a0] sm:$0xff] %v21649_v53  ;;  %v21652_v44 = vadd.f32 %v31697_v56, %v21500_v49  ;;  %v21499_v2 = vadd.f32 %v21202_v11, %v18393_v38  ;;  %v9021_v4 = vadd.f32 %v33590_v14, %v33589_v1  ;;  %v12189_v45 = vadd.f32 %v33591_v39, %v9083_v3  ;;  %v33603_v62 = vld [vmem:[#allocation15_spill] sm:$0xff]  ;;  %v33605_v26 = vld [vmem:[#allocation34_spill] sm:$0xff] }
 0xa2e   : > { %v15227_v48 = vadd.f32 %v33592_v18, %v12121_v9  ;;  %v18399_v41 = vadd.f32 %v33593_v12, %v15293_v51  ;;  %21711 = vst [vmem:[%s31702_s11 + $0x190] sm:$0xff] %v21583_v29  ;;  %v21590_v5 = vadd.f32 %v31647_v34, %v21438_v15  ;;  %v21437_v16 = vadd.f32 %v19917_v30, %v18331_v23  ;;  %v26346_v60 = vpop.f32.mrf.mxu1  ;;  %v21362_v36 = vpop.f32.mrf.mxu0  ;;  %v33606_v3 = vld [vmem:[#allocation135_spill] sm:$0xff]  ;;  %v33607_v9 = vld [vmem:[#allocation297_spill] sm:$0xff] }
 0xa2f   : > { %21780 = vst [vmem:[%s31702_s11 + $0x3b8] sm:$0xff] %v21652_v44  ;;  %v21651_v17 = vadd.f32 %v31721_v40, %v21499_v2  ;;  %v21506_v55 = vadd.f32 %v26479_v47, %v33594_v8  ;;  %v4696_v32 = vadd.f32 %v33596_v7, %v33595_v43  ;;  %v12127_v52 = vadd.f32 %v33597_v37, %v9021_v4  ;;  %v33608_v51 = vld [vmem:[#allocation403_spill] sm:$0xff]  ;;  %v33612_v12 = vld [vmem:[#allocation37_spill] sm:$0xff]  ;;  %v33616_v43 = vld [vmem:[#allocation116_spill] sm:$0xff] }
 0xa30   : > { %v15295_v46 = vadd.f32 %v33598_v19, %v12189_v45  ;;  %v18333_v50 = vadd.f32 %v33599_v35, %v15227_v48  ;;  %21718 = vst [vmem:[%s31702_s11 + $0x1c8] sm:$0xff] %v21590_v5  ;;  %v21589_v28 = vadd.f32 %v31612_v54, %v21437_v16  ;;  %v21440_v63 = vadd.f32 %v26346_v60, %v33600_v57  ;;  %v19927_v21 = vpop.f32.mrf.mxu1  ;;  %v26482_v33 = vpop.f32.mrf.mxu0  ;;  %v33609_v44 = vld [vmem:[#allocation295_spill] sm:$0xff]  ;;  %v33614_v5 = vld [vmem:[#allocation298_spill] sm:$0xff]  ;;  %v33615_v16 = vld [vmem:[#allocation404_spill] sm:$0xff] }
 0xa31   : > { %21779 = vst [vmem:[%s31702_s11 + $0x3b0] sm:$0xff] %v21651_v17  ;;  %v21658_v31 = vadd.f32 %v31647_v34, %v21506_v55  ;;  %v21505_v6 = vadd.f32 %v21362_v36, %v18399_v41  ;;  %v9023_v22 = vadd.f32 %v33601_v25, %v4696_v32  ;;  %v15233_v24 = vadd.f32 %v33602_v42, %v12127_v52  ;;  %v33610_v2 = vld [vmem:[#allocation139_spill] sm:$0xff]  ;;  %v33613_v41 = vld [vmem:[#allocation138_spill] sm:$0xff]  ;;  %v33618_v19 = vld [vmem:[#allocation324_spill] sm:$0xff] }
 0xa32   : > { %v18401_v38 = vadd.f32 %v33603_v62, %v15295_v46  ;;  %21717 = vst [vmem:[%s31702_s11 + $0x1c0] sm:$0xff] %v21589_v28  ;;  %v21592_v0 = vadd.f32 %v31697_v56, %v21440_v63  ;;  %v21439_v59 = vadd.f32 %v19927_v21, %v18333_v50  ;;  %v21508_v49 = vadd.f32 %v26482_v33, %v33604_v58  ;;  %v26359_v23 = vpop.f32.mrf.mxu1  ;;  %v21372_v10 = vpop.f32.mrf.mxu0  ;;  %v33611_v4 = vld [vmem:[#allocation323_spill] sm:$0xff]  ;;  %v33619_v60 = vld [vmem:[#allocation40_spill] sm:$0xff]  ;;  %v33620_v36 = vld [vmem:[#allocation141_spill] sm:$0xff] }
 0xa33   : > { %21786 = vst [vmem:[%s31702_s11 + $0x3e8] sm:$0xff] %v21658_v31  ;;  %v21657_v53 = vadd.f32 %v31612_v54, %v21505_v6  ;;  %v4856_v27 = vadd.f32 %v33606_v3, %v33605_v26  ;;  %v12129_v61 = vadd.f32 %v33607_v9, %v9023_v22  ;;  %v18339_v20 = vadd.f32 %v33608_v51, %v15233_v24  ;;  %v33617_v37 = vld [vmem:[#allocation23_spill] sm:$0xff]  ;;  %v33622_v6 = vld [vmem:[#allocation405_spill] sm:$0xff]  ;;  %v33623_v42 = vld [vmem:[#allocation120_spill] sm:$0xff] }
 0xa34   : > { %21720 = vst [vmem:[%s31702_s11 + $0x1d8] sm:$0xff] %v21592_v0  ;;  %v21591_v11 = vadd.f32 %v31721_v40, %v21439_v59  ;;  %v21660_v29 = vadd.f32 %v31697_v56, %v21508_v49  ;;  %v21446_v13 = vadd.f32 %v26359_v23, %v33609_v44  ;;  %v21507_v15 = vadd.f32 %v21372_v10, %v18401_v38  ;;  %v20087_v14 = vpop.f32.mrf.mxu1  ;;  %v33621_v57 = vld [vmem:[#allocation299_spill] sm:$0xff]  ;;  %v33624_v38 = vld [vmem:[#allocation145_spill] sm:$0xff]  ;;  %v33627_v49 = vld [vmem:[#allocation144_spill] sm:$0xff] }
 0xa35   : > { %21785 = vst [vmem:[%s31702_s11 + $0x3e0] sm:$0xff] %v21657_v53  ;;  %v9029_v1 = vadd.f32 %v33610_v2, %v4856_v27  ;;  %v15235_v39 = vadd.f32 %v33611_v4, %v12129_v61  ;;  %v21445_v48 = vadd.f32 %v20087_v14, %v18339_v20  ;;  %v4866_v30 = vadd.f32 %v33613_v41, %v33612_v12  ;;  %v33625_v33 = vld [vmem:[#allocation325_spill] sm:$0xff]  ;;  %v33626_v58 = vld [vmem:[#allocation43_spill] sm:$0xff]  ;;  %v33628_v27 = vld [vmem:[#allocation300_spill] sm:$0xff] }
 0xa36   : > { %21719 = vst [vmem:[%s31702_s11 + $0x1d0] sm:$0xff] %v21591_v11  ;;  %21788 = vst [vmem:[%s31702_s11 + $0x3f8] sm:$0xff] %v21660_v29  ;;  %v21598_v45 = vadd.f32 %v31647_v34, %v21446_v13  ;;  %v21659_v18 = vadd.f32 %v31721_v40, %v21507_v15  ;;  %v26362_v47 = vpop.f32.mrf.mxu1  ;;  %v5026_v28 = vadd.f32 %v33620_v36, %v33619_v60  ;;  %v33629_v61 = vld [vmem:[#allocation406_spill] sm:$0xff]  ;;  %v33633_v14 = vld [vmem:[#allocation47_spill] sm:$0xff] }
 0xa37   : > { %v12135_v17 = vadd.f32 %v33614_v5, %v9029_v1  ;;  %v18341_v8 = vadd.f32 %v33615_v16, %v15235_v39  ;;  %v21597_v55 = vadd.f32 %v31612_v54, %v21445_v48  ;;  %v21448_v7 = vadd.f32 %v26362_v47, %v33616_v43  ;;  %v33630_v23 = vld [vmem:[#allocation206_spill] sm:$0xff]  ;;  %v33634_v4 = vld [vmem:[#allocation147_spill] sm:$0xff]  ;;  %v33637_v47 = vld [vmem:[#allocation124_spill] sm:$0xff] }
 0xa38   : > { %21726 = vst [vmem:[%s31702_s11 + $0x208] sm:$0xff] %v21598_v45  ;;  %21787 = vst [vmem:[%s31702_s11 + $0x3f0] sm:$0xff] %v21659_v18  ;;  %v20097_v32 = vpop.f32.mrf.mxu1  ;;  %v9031_v52 = vadd.f32 %v33617_v37, %v4866_v30  ;;  %v9037_v21 = vadd.f32 %v33624_v38, %v5026_v28  ;;  %v5036_v26 = vadd.f32 %v33627_v49, %v33626_v58  ;;  %v33631_v29 = vld [vmem:[#allocation26_spill] sm:$0xff]  ;;  %v33635_v18 = vld [vmem:[#allocation301_spill] sm:$0xff] }
 0xa39   : > { %v15241_v46 = vadd.f32 %v33618_v19, %v12135_v17  ;;  %21725 = vst [vmem:[%s31702_s11 + $0x200] sm:$0xff] %v21597_v55  ;;  %v21600_v35 = vadd.f32 %v31697_v56, %v21448_v7  ;;  %v21447_v50 = vadd.f32 %v20097_v32, %v18341_v8  ;;  %v33632_v13 = vld [vmem:[#allocation326_spill] sm:$0xff]  ;;  %v5196_v39 = vadd.f32 %v33634_v4, %v33633_v14  ;;  %v33636_v12 = vld [vmem:[#allocation407_spill] sm:$0xff]  ;;  %v33638_v16 = vld [vmem:[#allocation29_spill] sm:$0xff] }
 0xa3a   : > { %v26375_v31 = vpop.f32.mrf.mxu1  ;;  %v12137_v63 = vadd.f32 %v33621_v57, %v9031_v52  ;;  %v12143_v9 = vadd.f32 %v33628_v27, %v9037_v21  ;;  %v9039_v44 = vadd.f32 %v33631_v29, %v5036_v26  ;;  %v33639_v55 = vld [vmem:[#allocation208_spill] sm:$0xff]  ;;  %v33640_v37 = vld [vmem:[#allocation51_spill] sm:$0xff]  ;;  %v33641_v52 = vld [vmem:[#allocation150_spill] sm:$0xff] }
 0xa3b   : > { %v18347_v25 = vadd.f32 %v33622_v6, %v15241_v46  ;;  %21728 = vst [vmem:[%s31702_s11 + $0x218] sm:$0xff] %v21600_v35  ;;  %v21599_v22 = vadd.f32 %v31721_v40, %v21447_v50  ;;  %v21454_v24 = vadd.f32 %v26375_v31, %v33623_v42  ;;  %v9045_v8 = vadd.f32 %v33638_v16, %v5196_v39  ;;  %v33642_v35 = vld [vmem:[#allocation302_spill] sm:$0xff]  ;;  %v33643_v60 = vld [vmem:[#allocation409_spill] sm:$0xff]  ;;  %v33644_v31 = vld [vmem:[#allocation408_spill] sm:$0xff] }
 0xa3c   : > { %v20257_v62 = vpop.f32.mrf.mxu1  ;;  %v15243_v0 = vadd.f32 %v33625_v33, %v12137_v63  ;;  %v15249_v15 = vadd.f32 %v33632_v13, %v12143_v9  ;;  %v12145_v48 = vadd.f32 %v33635_v18, %v9039_v44  ;;  %v5206_v19 = vadd.f32 %v33641_v52, %v33640_v37  ;;  %v33645_v6 = vld [vmem:[#allocation32_spill] sm:$0xff]  ;;  %v33647_v38 = vld [vmem:[#allocation55_spill] sm:$0xff]  ;;  %v33664_v37 = vld [vmem:[#allocation413_spill] sm:$0xff] }
 0xa3d   : > { %21727 = vst [vmem:[%s31702_s11 + $0x210] sm:$0xff] %v21599_v22  ;;  %v21606_v53 = vadd.f32 %v31647_v34, %v21454_v24  ;;  %v21453_v59 = vadd.f32 %v20257_v62, %v18347_v25  ;;  %v12151_v50 = vadd.f32 %v33642_v35, %v9045_v8  ;;  %v33646_v22 = vld [vmem:[#allocation128_spill] sm:$0xff]  ;;  %v33650_v58 = vld [vmem:[#allocation411_spill] sm:$0xff]  ;;  %v33662_v8 = vld [vmem:[#allocation158_spill] sm:$0xff] }
 0xa3e   : > { %v26378_v3 = vpop.f32.mrf.mxu1  ;;  %v18349_v51 = vadd.f32 %v33629_v61, %v15243_v0  ;;  %v18355_v41 = vadd.f32 %v33636_v12, %v15249_v15  ;;  %v15251_v43 = vadd.f32 %v33639_v55, %v12145_v48  ;;  %v9047_v25 = vadd.f32 %v33645_v6, %v5206_v19  ;;  %v33648_v21 = vld [vmem:[#allocation152_spill] sm:$0xff]  ;;  %v33652_v61 = vld [vmem:[#allocation35_spill] sm:$0xff]  ;;  %v33659_v12 = vld [vmem:[#allocation38_spill] sm:$0xff] }
 0xa3f   : > { %21734 = vst [vmem:[%s31702_s11 + $0x248] sm:$0xff] %v21606_v53  ;;  %v21605_v20 = vadd.f32 %v31612_v54, %v21453_v59  ;;  %v21456_v10 = vadd.f32 %v26378_v3, %v33630_v23  ;;  %v15257_v42 = vadd.f32 %v33646_v22, %v12151_v50  ;;  %v5366_v33 = vadd.f32 %v33648_v21, %v33647_v38  ;;  %v33649_v53 = vld [vmem:[#allocation303_spill] sm:$0xff]  ;;  %v33651_v3 = vld [vmem:[#allocation410_spill] sm:$0xff]  ;;  %v33657_v14 = vld [vmem:[#allocation412_spill] sm:$0xff] }
 0xa40   : > { %v20267_v11 = vpop.f32.mrf.mxu1  ;;  %v18357_v36 = vadd.f32 %v33643_v60, %v15251_v43  ;;  %v12153_v59 = vadd.f32 %v33649_v53, %v9047_v25  ;;  %v33654_v29 = vld [vmem:[#allocation59_spill] sm:$0xff]  ;;  %v33666_v60 = vld [vmem:[#allocation41_spill] sm:$0xff]  ;;  %v33668_v6 = vld [vmem:[#allocation66_spill] sm:$0xff] }
 0xa41   : > { %21733 = vst [vmem:[%s31702_s11 + $0x240] sm:$0xff] %v21605_v20  ;;  %v21608_v2 = vadd.f32 %v31697_v56, %v21456_v10  ;;  %v21455_v1 = vadd.f32 %v20267_v11, %v18349_v51  ;;  %v18363_v49 = vadd.f32 %v33650_v58, %v15257_v42  ;;  %v9053_v51 = vadd.f32 %v33652_v61, %v5366_v33  ;;  %v33653_v20 = vld [vmem:[#allocation327_spill] sm:$0xff]  ;;  %v33669_v25 = vld [vmem:[#allocation161_spill] sm:$0xff]  ;;  %v33671_v38 = vld [vmem:[#allocation414_spill] sm:$0xff] }
 0xa42   : > { %v26391_v45 = vpop.f32.mrf.mxu1  ;;  %v15259_v23 = vadd.f32 %v33653_v20, %v12153_v59  ;;  %v33655_v44 = vld [vmem:[#allocation155_spill] sm:$0xff]  ;;  %v5546_v22 = vadd.f32 %v33669_v25, %v33668_v6  ;;  %v33673_v58 = vld [vmem:[#allocation45_spill] sm:$0xff] }
 0xa43   : > { %21736 = vst [vmem:[%s31702_s11 + $0x258] sm:$0xff] %v21608_v2  ;;  %v21607_v30 = vadd.f32 %v31721_v40, %v21455_v1  ;;  %v21462_v5 = vadd.f32 %v26391_v45, %v33637_v47  ;;  %v5376_v13 = vadd.f32 %v33655_v44, %v33654_v29  ;;  %v33656_v2 = vld [vmem:[#allocation304_spill] sm:$0xff]  ;;  %v33658_v45 = vld [vmem:[#allocation131_spill] sm:$0xff]  ;;  %v33675_v61 = vld [vmem:[#allocation69_spill] sm:$0xff] }
 0xa44   : > { %v20427_v17 = vpop.f32.mrf.mxu1  ;;  %v12159_v1 = vadd.f32 %v33656_v2, %v9053_v51  ;;  %v18365_v4 = vadd.f32 %v33657_v14, %v15259_v23  ;;  %v33661_v16 = vld [vmem:[#allocation63_spill] sm:$0xff]  ;;  %v33676_v51 = vld [vmem:[#allocation164_spill] sm:$0xff]  ;;  %v33680_v14 = vld [vmem:[#allocation49_spill] sm:$0xff] }
 0xa45   : > { %21735 = vst [vmem:[%s31702_s11 + $0x250] sm:$0xff] %v21607_v30  ;;  %v21614_v7 = vadd.f32 %v31647_v34, %v21462_v5  ;;  %v21461_v32 = vadd.f32 %v20427_v17, %v18355_v41  ;;  %v9055_v41 = vadd.f32 %v33659_v12, %v5376_v13  ;;  %v33660_v30 = vld [vmem:[#allocation328_spill] sm:$0xff]  ;;  %v5536_v55 = vadd.f32 %v33662_v8, %v33661_v16  ;;  %v33678_v29 = vld [vmem:[#allocation415_spill] sm:$0xff]  ;;  %v33692_v6 = vld [vmem:[#allocation417_spill] sm:$0xff] }
 0xa46   : > { %v26394_v46 = vpop.f32.mrf.mxu1  ;;  %v15265_v47 = vadd.f32 %v33660_v30, %v12159_v1  ;;  %v5706_v20 = vadd.f32 %v33676_v51, %v33675_v61  ;;  %v33682_v12 = vld [vmem:[#allocation72_spill] sm:$0xff]  ;;  %v33699_v61 = vld [vmem:[#allocation418_spill] sm:$0xff] }
 0xa47   : > { %21742 = vst [vmem:[%s31702_s11 + $0x288] sm:$0xff] %v21614_v7  ;;  %v21613_v28 = vadd.f32 %v31612_v54, %v21461_v32  ;;  %v21464_v57 = vadd.f32 %v26394_v46, %v33644_v31  ;;  %v33663_v7 = vld [vmem:[#allocation137_spill] sm:$0xff]  ;;  %v33665_v46 = vld [vmem:[#allocation134_spill] sm:$0xff]  ;;  %v33685_v16 = vld [vmem:[#allocation416_spill] sm:$0xff] }
 0xa48   : > { %v20437_v63 = vpop.f32.mrf.mxu1  ;;  %v12161_v32 = vadd.f32 %v33663_v7, %v9055_v41  ;;  %v18371_v52 = vadd.f32 %v33664_v37, %v15265_v47  ;;  %v33683_v41 = vld [vmem:[#allocation167_spill] sm:$0xff]  ;;  %v33687_v37 = vld [vmem:[#allocation149_spill] sm:$0xff] }
 0xa49   : > { %21741 = vst [vmem:[%s31702_s11 + $0x280] sm:$0xff] %v21613_v28  ;;  %v21616_v24 = vadd.f32 %v31697_v56, %v21464_v57  ;;  %v21463_v62 = vadd.f32 %v20437_v63, %v18357_v36  ;;  %v9061_v36 = vadd.f32 %v33666_v60, %v5536_v55  ;;  %v33667_v28 = vld [vmem:[#allocation330_spill] sm:$0xff]  ;;  %v5716_v30 = vadd.f32 %v33683_v41, %v33682_v12  ;;  %v33689_v60 = vld [vmem:[#allocation75_spill] sm:$0xff]  ;;  %v33705_v12 = vld [vmem:[#allocation309_spill] sm:$0xff] }
 0xa4a   : > { %v26407_v0 = vpop.f32.mrf.mxu1  ;;  %v15267_v31 = vadd.f32 %v33667_v28, %v12161_v32 }
 0xa4b   : > { %21744 = vst [vmem:[%s31702_s11 + $0x298] sm:$0xff] %v21616_v24  ;;  %v21615_v26 = vadd.f32 %v31721_v40, %v21463_v62  ;;  %v21470_v27 = vadd.f32 %v26407_v0, %v33651_v3  ;;  %v33670_v24 = vld [vmem:[#allocation140_spill] sm:$0xff]  ;;  %v33672_v0 = vld [vmem:[#allocation329_spill] sm:$0xff] }
 0xa4c   : > { %v20597_v9 = vpop.f32.mrf.mxu1  ;;  %v12167_v62 = vadd.f32 %v33670_v24, %v9061_v36  ;;  %v18373_v21 = vadd.f32 %v33671_v38, %v15267_v31  ;;  %v33690_v36 = vld [vmem:[#allocation170_spill] sm:$0xff]  ;;  %v33694_v38 = vld [vmem:[#allocation53_spill] sm:$0xff] }
 0xa4d   : > { %21743 = vst [vmem:[%s31702_s11 + $0x290] sm:$0xff] %v21615_v26  ;;  %v21622_v10 = vadd.f32 %v31647_v34, %v21470_v27  ;;  %v21469_v11 = vadd.f32 %v20597_v9, %v18363_v49  ;;  %v9063_v49 = vadd.f32 %v33673_v58, %v5546_v22  ;;  %v33674_v26 = vld [vmem:[#allocation332_spill] sm:$0xff]  ;;  %v5876_v28 = vadd.f32 %v33690_v36, %v33689_v60  ;;  %v33696_v58 = vld [vmem:[#allocation78_spill] sm:$0xff] }
 0xa4e   : > { %v26410_v15 = vpop.f32.mrf.mxu1  ;;  %v15273_v3 = vadd.f32 %v33674_v26, %v12167_v62 }
 0xa4f   : > { %21750 = vst [vmem:[%s31702_s11 + $0x2c8] sm:$0xff] %v21622_v10  ;;  %v21621_v39 = vadd.f32 %v31612_v54, %v21469_v11  ;;  %v21472_v18 = vadd.f32 %v26410_v15, %v33658_v45  ;;  %v33677_v10 = vld [vmem:[#allocation305_spill] sm:$0xff]  ;;  %v33679_v15 = vld [vmem:[#allocation331_spill] sm:$0xff] }
 0xa50   : > { %v20607_v48 = vpop.f32.mrf.mxu1  ;;  %v12169_v11 = vadd.f32 %v33677_v10, %v9063_v49  ;;  %v18379_v44 = vadd.f32 %v33678_v29, %v15273_v3  ;;  %v33697_v49 = vld [vmem:[#allocation174_spill] sm:$0xff]  ;;  %v33701_v29 = vld [vmem:[#allocation57_spill] sm:$0xff] }
 0xa51   : > { %21749 = vst [vmem:[%s31702_s11 + $0x2c0] sm:$0xff] %v21621_v39  ;;  %v21624_v5 = vadd.f32 %v31697_v56, %v21472_v18  ;;  %v21471_v17 = vadd.f32 %v20607_v48, %v18365_v4  ;;  %v9069_v4 = vadd.f32 %v33680_v14, %v5706_v20  ;;  %v33681_v39 = vld [vmem:[#allocation333_spill] sm:$0xff]  ;;  %v5886_v26 = vadd.f32 %v33697_v49, %v33696_v58 }
 0xa52   : > { %v26423_v43 = vpop.f32.mrf.mxu1  ;;  %v15275_v45 = vadd.f32 %v33681_v39, %v12169_v11 }
 0xa53   : > { %21752 = vst [vmem:[%s31702_s11 + $0x2d8] sm:$0xff] %v21624_v5  ;;  %v21623_v19 = vadd.f32 %v31721_v40, %v21471_v17  ;;  %v21478_v35 = vadd.f32 %v26423_v43, %v33665_v46  ;;  %v33684_v5 = vld [vmem:[#allocation306_spill] sm:$0xff]  ;;  %v33686_v43 = vld [vmem:[#allocation143_spill] sm:$0xff] }
 0xa54   : > { %v20767_v50 = vpop.f32.mrf.mxu1  ;;  %v12175_v17 = vadd.f32 %v33684_v5, %v9069_v4  ;;  %v18381_v8 = vadd.f32 %v33685_v16, %v15275_v45  ;;  %v33703_v4 = vld [vmem:[#allocation311_spill] sm:$0xff] }
 0xa55   : > { %21751 = vst [vmem:[%s31702_s11 + $0x2d0] sm:$0xff] %v21623_v19  ;;  %v21630_v57 = vadd.f32 %v31647_v34, %v21478_v35  ;;  %v21477_v63 = vadd.f32 %v20767_v50, %v18371_v52  ;;  %v9071_v52 = vadd.f32 %v33687_v37, %v5716_v30  ;;  %v33688_v19 = vld [vmem:[#allocation334_spill] sm:$0xff]  ;;  %v33704_v45 = vld [vmem:[#allocation419_spill] sm:$0xff] }
 0xa56   : > { %v26426_v42 = vpop.f32.mrf.mxu1  ;;  %v15281_v46 = vadd.f32 %v33688_v19, %v12175_v17 }
 0xa57   : > { %21758 = vst [vmem:[%s31702_s11 + $0x308] sm:$0xff] %v21630_v57  ;;  %v21629_v33 = vadd.f32 %v31612_v54, %v21477_v63  ;;  %v21480_v53 = vadd.f32 %v26426_v42, %v33672_v0  ;;  %v33691_v57 = vld [vmem:[#allocation308_spill] sm:$0xff]  ;;  %v33693_v42 = vld [vmem:[#allocation146_spill] sm:$0xff] }
 0xa58   : > { %v20777_v59 = vpop.f32.mrf.mxu1  ;;  %v12177_v63 = vadd.f32 %v33691_v57, %v9071_v52  ;;  %v18387_v25 = vadd.f32 %v33692_v6, %v15281_v46 }
 0xa59   : > { %21757 = vst [vmem:[%s31702_s11 + $0x300] sm:$0xff] %v21629_v33  ;;  %v21632_v27 = vadd.f32 %v31697_v56, %v21480_v53  ;;  %v21479_v9 = vadd.f32 %v20777_v59, %v18373_v21  ;;  %v9077_v21 = vadd.f32 %v33694_v38, %v5876_v28  ;;  %v33695_v33 = vld [vmem:[#allocation335_spill] sm:$0xff] }
 0xa5a   : > { %v26439_v23 = vpop.f32.mrf.mxu1  ;;  %v15283_v0 = vadd.f32 %v33695_v33, %v12177_v63 }
 0xa5b   : > { %21760 = vst [vmem:[%s31702_s11 + $0x318] sm:$0xff] %v21632_v27  ;;  %v21631_v13 = vadd.f32 %v31721_v40, %v21479_v9  ;;  %v21486_v2 = vadd.f32 %v26439_v23, %v33679_v15  ;;  %v33698_v27 = vld [vmem:[#allocation310_spill] sm:$0xff]  ;;  %v33700_v23 = vld [vmem:[#allocation307_spill] sm:$0xff] }
 0xa5c   : > { %v20937_v1 = vpop.f32.mrf.mxu1  ;;  %v12183_v9 = vadd.f32 %v33698_v27, %v9077_v21  ;;  %v18389_v51 = vadd.f32 %v33699_v61, %v15283_v0 }
 0xa5d   : > { %21759 = vst [vmem:[%s31702_s11 + $0x310] sm:$0xff] %v21631_v13  ;;  %v21638_v18 = vadd.f32 %v31647_v34, %v21486_v2  ;;  %v21485_v48 = vadd.f32 %v20937_v1, %v18379_v44  ;;  %v9079_v44 = vadd.f32 %v33701_v29, %v5886_v26  ;;  %v33702_v13 = vld [vmem:[#allocation336_spill] sm:$0xff] }
 0xa5e   : > { %v26442_v47 = vpop.f32.mrf.mxu1  ;;  %v15289_v15 = vadd.f32 %v33702_v13, %v12183_v9 }
 0xa5f   : > { %21766 = vst [vmem:[%s31702_s11 + $0x348] sm:$0xff] %v21638_v18  ;;  %v21637_v55 = vadd.f32 %v31612_v54, %v21485_v48  ;;  %v21488_v7 = vadd.f32 %v26442_v47, %v33686_v43  ;;  %v12185_v39 = vadd.f32 %v33703_v4, %v9079_v44  ;;  %v33706_v47 = vld [vmem:[#allocation337_spill] sm:$0xff] }
 0xa60   : > { %v20947_v32 = vpop.f32.mrf.mxu1  ;;  %v18395_v18 = vadd.f32 %v33704_v45, %v15289_v15 }
 0xa61   : > { %21765 = vst [vmem:[%s31702_s11 + $0x340] sm:$0xff] %v21637_v55  ;;  %v21640_v35 = vadd.f32 %v31697_v56, %v21488_v7  ;;  %v21487_v50 = vadd.f32 %v20947_v32, %v18381_v8  ;;  %v15291_v5 = vadd.f32 %v33706_v47, %v12185_v39  ;;  %v33707_v55 = vld [vmem:[#allocation420_spill] sm:$0xff]  ;;  %v33708_v32 = vld [vmem:[#allocation151_spill] sm:$0xff] }
 0xa62   : > { %v26455_v31 = vpop.f32.mrf.mxu1 }
 0xa63   : > { %21768 = vst [vmem:[%s31702_s11 + $0x358] sm:$0xff] %v21640_v35  ;;  %v21639_v22 = vadd.f32 %v31721_v40, %v21487_v50  ;;  %v21494_v24 = vadd.f32 %v26455_v31, %v33693_v42  ;;  %v18397_v43 = vadd.f32 %v33707_v55, %v15291_v5 }
 0xa64   : > { %v21107_v62 = vpop.f32.mrf.mxu1 }
 0xa65   : > { %21767 = vst [vmem:[%s31702_s11 + $0x350] sm:$0xff] %v21639_v22  ;;  %v21646_v53 = vadd.f32 %v31647_v34, %v21494_v24  ;;  %v21493_v59 = vadd.f32 %v21107_v62, %v18387_v25 }
 0xa66   : > { %v26458_v3 = vpop.f32.mrf.mxu1 }
 0xa67   : > { %21774 = vst [vmem:[%s31702_s11 + $0x388] sm:$0xff] %v21646_v53  ;;  %v21645_v20 = vadd.f32 %v31612_v54, %v21493_v59  ;;  %v21496_v10 = vadd.f32 %v26458_v3, %v33700_v23 }
 0xa68   : > { %v21117_v11 = vpop.f32.mrf.mxu1 }
 0xa69   : > { %21773 = vst [vmem:[%s31702_s11 + $0x380] sm:$0xff] %v21645_v20  ;;  %v21648_v2 = vadd.f32 %v31697_v56, %v21496_v10  ;;  %v21495_v1 = vadd.f32 %v21117_v11, %v18389_v51 }
 0xa6a   : > { %v26471_v14 = vpop.f32.mrf.mxu1 }
 0xa6b   : > { %21776 = vst [vmem:[%s31702_s11 + $0x398] sm:$0xff] %v21648_v2  ;;  %v21647_v48 = vadd.f32 %v31721_v40, %v21495_v1  ;;  %v21502_v41 = vadd.f32 %v26471_v14, %v33705_v12 }
 0xa6c   : > { %v21277_v30 = vpop.f32.mrf.mxu1 }
 0xa6d   : > { %21775 = vst [vmem:[%s31702_s11 + $0x390] sm:$0xff] %v21647_v48  ;;  %v21654_v17 = vadd.f32 %v31647_v34, %v21502_v41  ;;  %v21501_v16 = vadd.f32 %v21277_v30, %v18395_v18 }
 0xa6e   : > { %v26474_v8 = vpop.f32.mrf.mxu1 }
 0xa6f   : > { %21782 = vst [vmem:[%s31702_s11 + $0x3c8] sm:$0xff] %v21654_v17  ;;  %v21653_v7 = vadd.f32 %v31612_v54, %v21501_v16  ;;  %v21504_v37 = vadd.f32 %v26474_v8, %v33708_v32 }
 0xa70   : > { %v21287_v52 = vpop.f32.mrf.mxu1 }
 0xa71   : > { %21781 = vst [vmem:[%s31702_s11 + $0x3c0] sm:$0xff] %v21653_v7  ;;  %v21656_v19 = vadd.f32 %v31697_v56, %v21504_v37  ;;  %v21503_v46 = vadd.f32 %v21287_v52, %v18397_v43 }
 0xa73   : > { %21784 = vst [vmem:[%s31702_s11 + $0x3d8] sm:$0xff] %v21656_v19  ;;  %v21655_v54 = vadd.f32 %v31721_v40, %v21503_v46 }
 0xa75   : > { %21783 = vst [vmem:[%s31702_s11 + $0x3d0] sm:$0xff] %v21655_v54 }
 0xa76   : > { %26766 = shalt.err (!%p26763_p0)
}
 0xa77   : > { %s26767_s6 = scalar_lea.hbm %s32428_s12, 16384  ;;  %s26771_s28 = scalar_lea.hbm %s32480_s4, 32768 }
 0xa78   : > { %p26768_p5 = scmp.ne.s32.totalorder %s32428_s12, %s26767_s6  ;;  %p26772_p4 = scmp.lt.s32.totalorder %s32428_s12, %s32480_s4 }
 0xa79   : > { %p26773_p6 = scmp.lt.s32.totalorder %s26771_s28, %s26767_s6 }
 0xa7a   : > { %p26769_p2 = pnand %p26768_p5, %p33709_p11 }
 0xa7b   : > { %p26774_p8 = por %p26773_p6, %p26772_p4 }
 0xa7c   : > { %p26770_p1 = pneg %p26769_p2 }
 0xa7e   : > { %p26775_p3 = pnand %p26774_p8, %p26770_p1 }
 0xa80   : > { %26778 = shalt.err (!%p26775_p3)
}
 0xa81   : > { %s26835_s11 = smov 128   ;;  %s26836_s20 = smov 8  }
 0xa82   : > { %26491 = dma.vmem_to_hbm [thread:$0]  (%p33709_p11), %s32430_s25, 16384, %s32428_s12, %s21790_s19, %s26835_s11, %s26835_s11, %s26836_s20  }
 0xa83 PF: > { %s21819_s7 = sand.u32 1, %s26809_s15   ;;  %p33710_p7 = scmp.ne.s32.totalorder %s32505_s22, 0 }
 0xa84   : > { %p33711_p9 = scmp.ge.s32.totalorder %s26821_s18, 2  ;;  %s21820_s8 = scalar_lea.sflag [#allocation4], %s21819_s7 }
 0xa86   : > { %p26502_p10 = pnand %p33711_p9, %p33710_p7 }
 0xa88   : > { %p26503_p12 = pneg %p26502_p10 }
 0xa8a   : > { %26804 = dma.done.wait (%p26503_p12), %s21820_s8, 16384  }
 0xa8b   : > { %26806 = vsyncadd (%p26503_p12), %s21820_s8, 4294950912  ;;  %p18_p13 = scmp.ge.s32.totalorder %s26916_s27, 4   ;;  %s33712_s15 = smov %s26813_s16 }
 0xa8c   : > { %s33713_s16 = smov %s26817_s17  ;;  %s33714_s17 = smov %s26936_s9 }
 0xa8d   : > { %s33715_s18 = smov %s26916_s27  ;;  %20 = sbr.rel (!%p18_p13) target bundleno = 6 (0x6), region = 90 }
 0xa92   :  { %21825 = vsyncpa [#allocation3], 1 }
 0xa93   :  { %21827 = vsyncpa [#allocation3 + $0x1], 1 }
 0xa94   :  { %21828 = vsyncpa [#allocation6], 1 }
 0xa95   :  { %21829 = vsyncpa [#allocation4], 1 }
 0xa96   :  { %21831 = vsyncpa [#allocation4 + $0x1], 1 }

</bundles_post_ra>
